<compile_context>
chip_gen: v6e
topology: v6e:2x2x1
jax: 0.10.0
libtpu: 0.0.40
codegen_flags: <defaults>
</compile_context>

<pallas_src>
import functools

import jax
import jax.numpy as jnp
import numpy as np
from jax.experimental import pallas as pl
from jax.experimental.pallas import tpu as pltpu

BN_EPS = 1e-5


def _round_up(a, b):
    return (a + b - 1) // b * b


def _pick_batch_block(N):
    # Batch several samples per grid step (amortize ~0.35us/step overhead and
    # grow DMA granularity) while keeping >= 2 grid steps so both v7x
    # TensorCores get work under dimension_semantics=("parallel",).
    for nb in (8, 4, 2):
        if N % nb == 0 and N // nb >= 2:
            return nb
    return 1


# ---------------------------------------------------------------------------
# Kernel A: fused M-branch grouped conv + bias + masked BN statistics.
# One tap-packed MXU dot per (sample, branch, group).
# ---------------------------------------------------------------------------
def _fused_conv_kernel(ks, d_offs, G, Og, Cg, Wpp, Qp, Nb, M, C, *refs):
    """
    refs layout:
      refs[0:M]   per-branch tap-packed weights  [G, Og, k*k*Cg]  bf16
      refs[M+0]   bias        [M, C, 1]        f32
      refs[M+1]   x           [Nb, G, Cg, Lp]  bf16 (zero-padded, flattened)
      refs[M+2]   mask        [1, Qp]          f32  (1.0 on valid output cols)
      refs[M+3]   conv out    [Nb, M, C, Qp]   bf16 (conv + bias, pre-BN)
      refs[M+4]   stats out   [1, M, C, 128]   f32  (sum @ lane0, sumsq @ lane1)
      refs[M+5]   acc scratch [C, Qp]          f32
      refs[M+6]   rhs scratch [Kmax, Qp]       bf16 (tap-packed MXU operand)
    """
    w_refs = refs[:M]
    b_ref, x_ref, mask_ref, conv_ref, stats_ref, acc_ref, rhs_ref = refs[M:]

    # Hoisted broadcast (JAX does not CSE broadcast_in_dim).
    mask_c = jnp.broadcast_to(mask_ref[...], (C, Qp))            # [C, Qp]

    stat_acc = [None] * M                                        # per-branch [C, 2]
    for n in range(Nb):
        for m in range(M):
            k, d_off = ks[m], d_offs[m]
            km = k * k * Cg
            for g in range(G):
                # Stage the k*k shifted slices into a [k*k*Cg, Qp] VMEM block.
                for ky in range(k):
                    for kx in range(k):
                        off = (ky + d_off) * Wpp + (kx + d_off)  # static offset
                        t = ky * k + kx
                        rhs_ref[t * Cg:(t + 1) * Cg, :] = (
                            x_ref[n, g, :, off:off + Qp])
                # Single MXU contraction per (sample, branch, group).
                part = jnp.dot(w_refs[m][g], rhs_ref[0:km, :],
                               preferred_element_type=jnp.float32)   # [Og, Qp]
                acc_ref[g * Og:(g + 1) * Og, :] = (
                    part + b_ref[m, g * Og:(g + 1) * Og, :])
            conv = acc_ref[...]                                      # [C, Qp] f32
            conv_ref[n, m] = conv.astype(conv_ref.dtype)             # bf16 store
            cm = conv * mask_c
            st = jnp.concatenate(
                [jnp.sum(cm, axis=1, keepdims=True),
                 jnp.sum(cm * conv, axis=1, keepdims=True)], axis=1)  # [C, 2]
            stat_acc[m] = st if stat_acc[m] is None else stat_acc[m] + st

    # One lane-dense (128-wide) stats store per grid step.
    stats = jnp.stack(stat_acc, axis=0)                              # [M, C, 2]
    stats_ref[0] = jnp.concatenate(
        [stats, jnp.zeros((M, C, 126), jnp.float32)], axis=2)        # [M, C, 128]


# ---------------------------------------------------------------------------
# Kernel B1: BN+ReLU recompute (from bf16 conv) + masked global-average-pool,
# summed over branches.  Output is a lane-dense [Nb, C, 128] tile.
# ---------------------------------------------------------------------------
def _gap_kernel(M, Nb, C, Qp, inv_hw,
                conv_ref, scale_ref, shift_ref, mask_ref, pool_ref):
    mask_c = jnp.broadcast_to(mask_ref[...], (C, Qp))
    scale = scale_ref[...]                                           # [M, C, 1]
    shift = shift_ref[...]
    for n in range(Nb):
        pooled = jnp.zeros((C, 1), jnp.float32)
        for m in range(M):
            fea = jnp.maximum(
                conv_ref[n, m].astype(jnp.float32) * scale[m] + shift[m], 0.0)
            pooled = pooled + jnp.sum(fea * mask_c, axis=1, keepdims=True)
        pool_ref[n] = jnp.broadcast_to(pooled * inv_hw, (C, 128))


# ---------------------------------------------------------------------------
# Kernel B2: BN+ReLU recompute + attention-weighted recombination.
# Pure lane-dense VPU work (attention is precomputed in the glue).
# ---------------------------------------------------------------------------
def _recombine_kernel(M, Nb, conv_ref, scale_ref, shift_ref, att_ref, out_ref):
    scale = scale_ref[...]
    shift = shift_ref[...]
    for n in range(Nb):
        acc = None
        for m in range(M):
            fea = jnp.maximum(
                conv_ref[n, m].astype(jnp.float32) * scale[m] + shift[m], 0.0)
            t = fea * att_ref[n, m]                                  # [C, Qp]
            acc = t if acc is None else acc + t
        out_ref[n] = acc


# ---------------------------------------------------------------------------
# Wrapper
# ---------------------------------------------------------------------------
def sk_conv_forward(x, params, M, G):
    """SKConv forward.  x: [N, C, H, W] (NCHW).  Returns [N, C, H, W]."""
    N, C, H, W = x.shape
    assert C % G == 0
    Og = Cg = C // G
    ks = tuple(3 + 2 * i for i in range(M))
    pads = tuple(1 + i for i in range(M))
    pad_max = max(pads)
    d_offs = tuple(pad_max - p for p in pads)
    Hp, Wpp = H + 2 * pad_max, W + 2 * pad_max
    Q = H * Wpp                                   # per-sample output frame
    Qp = _round_up(Q, 128)                        # lane-dense output width
    max_off = 2 * pad_max * (Wpp + 1)             # largest tap offset
    Lp = _round_up(max(Qp + max_off, Hp * Wpp), 128)
    Kmax = max(ks) * max(ks) * Cg

    Nb = _pick_batch_block(N)
    GN = N // Nb

    # Single cast + pad of x (bf16 for the MXU), grouped-channel flat layout
    # [N, G, C/G, Lp]; the two pads fuse in XLA.
    xb = x.astype(jnp.bfloat16)
    xp = jnp.pad(xb, ((0, 0), (0, 0), (pad_max, pad_max), (pad_max, pad_max)))
    xf = xp.reshape(N, G, Cg, Hp * Wpp)
    xg = jnp.pad(xf, ((0, 0), (0, 0), (0, 0), (0, Lp - Hp * Wpp)))

    # Valid-column mask over the Qp-wide output frame.
    cols = np.arange(Qp)
    mask = jnp.asarray(((cols < Q) & ((cols % Wpp) < W))
                       .astype(np.float32)[None, :])                 # [1, Qp]

    # Tap-packed per-group weights [G, Og, k*k*Cg] bf16 (K-axis order = tap-major,
    # in-group-channel minor, matching the RHS staging order).
    wts = []
    for i in range(M):
        k = ks[i]
        w = params["conv_w"][i]                                      # [C, Cg, k, k]
        wts.append(w.reshape(G, Og, Cg, k * k).transpose(0, 1, 3, 2)
                    .reshape(G, Og, k * k * Cg).astype(jnp.bfloat16))
    bias_all = jnp.stack(params["conv_b"], axis=0)                   # [M, C, 1]

    # --- Kernel A: fused M-branch conv + bias + masked BN stats --------------
    conv, pstats = pl.pallas_call(
        functools.partial(_fused_conv_kernel,
                          ks, d_offs, G, Og, Cg, Wpp, Qp, Nb, M, C),
        grid=(GN,),
        in_specs=([pl.BlockSpec((G, Og, ks[i] * ks[i] * Cg), lambda n: (0, 0, 0))
                   for i in range(M)]
                  + [pl.BlockSpec((M, C, 1), lambda n: (0, 0, 0)),
                     pl.BlockSpec((Nb, G, Cg, Lp), lambda n: (n, 0, 0, 0)),
                     pl.BlockSpec((1, Qp), lambda n: (0, 0))]),
        out_specs=(pl.BlockSpec((Nb, M, C, Qp), lambda n: (n, 0, 0, 0)),
                   pl.BlockSpec((1, M, C, 128), lambda n: (n, 0, 0, 0))),
        out_shape=(jax.ShapeDtypeStruct((N, M, C, Qp), jnp.bfloat16),
                   jax.ShapeDtypeStruct((GN, M, C, 128), jnp.float32)),
        scratch_shapes=[pltpu.VMEM((C, Qp), jnp.float32),
                        pltpu.VMEM((Kmax, Qp), jnp.bfloat16)],
        compiler_params=pltpu.CompilerParams(
            dimension_semantics=("parallel",)),
    )(*wts, bias_all, xg, mask)

    # --- BN fold (batch statistics, training-mode forward) -------------------
    stats = pstats.sum(axis=0)                                       # [M, C, 128]
    inv_cnt = 1.0 / float(N * H * W)
    mu = stats[:, :, 0:1] * inv_cnt
    # TODO(synk): one-pass E[x^2]-E[x]^2 can cancel badly when |mean| >> std;
    # use a centered second pass / Welford if used beyond this toy setting.
    var = stats[:, :, 1:2] * inv_cnt - mu * mu
    gamma = jnp.stack(params["bn_gamma"], axis=0)                    # [M, C, 1]
    beta = jnp.stack(params["bn_beta"], axis=0)
    scale_all = gamma * jax.lax.rsqrt(var + BN_EPS)
    shift_all = beta - mu * scale_all

    # --- Kernel B1: masked GAP of sum_m ReLU(BN(conv_m)) ---------------------
    pooled = pl.pallas_call(
        functools.partial(_gap_kernel, M, Nb, C, Qp, 1.0 / float(H * W)),
        grid=(GN,),
        in_specs=[pl.BlockSpec((Nb, M, C, Qp), lambda n: (n, 0, 0, 0)),
                  pl.BlockSpec((M, C, 1), lambda n: (0, 0, 0)),
                  pl.BlockSpec((M, C, 1), lambda n: (0, 0, 0)),
                  pl.BlockSpec((1, Qp), lambda n: (0, 0))],
        out_specs=pl.BlockSpec((Nb, C, 128), lambda n: (n, 0, 0)),
        out_shape=jax.ShapeDtypeStruct((N, C, 128), jnp.float32),
        compiler_params=pltpu.CompilerParams(
            dimension_semantics=("parallel",)),
    )(conv, scale_all, shift_all, mask)

    # --- Attention: batched fc -> fcs -> softmax over branches (tiny glue) ---
    fea_s = pooled[:, :, 0]                                          # [N, C]
    fea_z = fea_s @ params["fc_w"].T + params["fc_b"][:, 0]          # [N, d]
    logits = (jnp.einsum("nd,mcd->nmc", fea_z, params["fcs_w"])
              + params["fcs_b"][None, :, :, 0])                      # [N, M, C]
    att = jax.nn.softmax(logits, axis=1)[..., None]                  # [N, M, C, 1]

    # --- Kernel B2: BN+ReLU recompute + attention-weighted recombination -----
    out = pl.pallas_call(
        functools.partial(_recombine_kernel, M, Nb),
        grid=(GN,),
        in_specs=[pl.BlockSpec((Nb, M, C, Qp), lambda n: (n, 0, 0, 0)),
                  pl.BlockSpec((M, C, 1), lambda n: (0, 0, 0)),
                  pl.BlockSpec((M, C, 1), lambda n: (0, 0, 0)),
                  pl.BlockSpec((Nb, M, C, 1), lambda n: (n, 0, 0, 0))],
        out_specs=pl.BlockSpec((Nb, C, Qp), lambda n: (n, 0, 0)),
        out_shape=jax.ShapeDtypeStruct((N, C, Qp), jnp.float32),
        compiler_params=pltpu.CompilerParams(
            dimension_semantics=("parallel",)),
    )(conv, scale_all, shift_all, att)

    # Drop padded columns: [N, C, Qp] -> [N, C, H, W] (NCHW).
    return out[:, :, :Q].reshape(N, C, H, Wpp)[:, :, :, :W]


# ---------------------------------------------------------------------------
# Pure-JAX reference (f32, im2col based) for the correctness check.
# ---------------------------------------------------------------------------
def _im2col(x, k, pad, stride=1):
    N, C, H, W = x.shape
    xp = jnp.pad(x, ((0, 0), (0, 0), (pad, pad), (pad, pad)))
    Ho = (H + 2 * pad - k) // stride + 1
    Wo = (W + 2 * pad - k) // stride + 1
    taps = []
    for ky in range(k):
        for kx in range(k):
            taps.append(xp[:, :, ky:ky + stride * Ho:stride,
                           kx:kx + stride * Wo:stride])
    pat = jnp.stack(taps, axis=0).reshape(k, k, N, C, Ho * Wo)
    pat = pat.transpose(3, 0, 1, 2, 4).reshape(C * k * k, N * Ho * Wo)
    return pat, Ho, Wo


def _grouped_dense_weight(W, G):
    Cout, Cg, k, _ = W.shape
    Cin = Cg * G
    og = Cout // G
    Wd = jnp.zeros((Cout, Cin, k, k), dtype=W.dtype)
    for g in range(G):
        Wd = Wd.at[g * og:(g + 1) * og, g * Cg:(g + 1) * Cg].set(W[g * og:(g + 1) * og])
    return Wd.reshape(Cout, Cin * k * k)


def sk_conv_reference(x, params, M, G):
    N, C, H, W = x.shape
    HW = H * W
    feas = []
    for i in range(M):
        k = 3 + 2 * i
        pad = 1 + i
        patches, _, _ = _im2col(x, k, pad, stride=1)
        Wd = _grouped_dense_weight(params["conv_w"][i], G)
        conv = Wd @ patches + params["conv_b"][i]
        mu = conv.mean(axis=1, keepdims=True)
        var = ((conv - mu) ** 2).mean(axis=1, keepdims=True)
        y = (conv - mu) / jnp.sqrt(var + BN_EPS) * params["bn_gamma"][i] + params["bn_beta"][i]
        feas.append(jnp.maximum(y, 0.0))
    feas = jnp.stack(feas, axis=0)                        # [M, C, P] (n-major P)
    fea_U = feas.sum(axis=0).reshape(C, N, HW)
    fea_s = fea_U.mean(axis=2)                            # [C, N]
    fea_z = params["fc_w"] @ fea_s + params["fc_b"]       # [d, N]
    logits = jnp.stack([params["fcs_w"][m] @ fea_z + params["fcs_b"][m]
                        for m in range(M)], axis=0)       # [M, C, N]
    att = jax.nn.softmax(logits, axis=0)
    out = (feas.reshape(M, C, N, HW) * att[:, :, :, None]).sum(axis=0)
    return out.reshape(C, N, H, W).transpose(1, 0, 2, 3)


# ---------------------------------------------------------------------------
if __name__ == "__main__":
    # SKConv(features=4, WH=16, M=2, G=2, r=2, L=32)  ->  d = max(4//2, 32) = 32
    # batch=4 so the batch-blocked grid runs with Nb=2 samples/step, 2 steps.
    N, C, H, W = 4, 4, 16, 16
    M, G, r, L = 2, 2, 2, 32
    d = max(C // r, L)

    key = jax.random.PRNGKey(0)
    keys = jax.random.split(key, 7)
    x = jax.random.normal(keys[0], (N, C, H, W), dtype=jnp.float32)

    params = {"conv_w": [], "conv_b": [], "bn_gamma": [], "bn_beta": []}
    for i in range(M):
        k = 3 + 2 * i
        params["conv_w"].append(
            0.1 * jax.random.normal(jax.random.fold_in(keys[1], i),
                                    (C, C // G, k, k), jnp.float32))
        params["conv_b"].append(
            0.1 * jax.random.normal(jax.random.fold_in(keys[2], i),
                                    (C, 1), jnp.float32))
        params["bn_gamma"].append(jnp.ones((C, 1), jnp.float32))   # PyTorch BN default
        params["bn_beta"].append(jnp.zeros((C, 1), jnp.float32))
    params["fc_w"] = 0.1 * jax.random.normal(keys[3], (d, C), jnp.float32)
    params["fc_b"] = 0.1 * jax.random.normal(keys[4], (d, 1), jnp.float32)
    params["fcs_w"] = 0.1 * jax.random.normal(keys[5], (M, C, d), jnp.float32)
    params["fcs_b"] = 0.1 * jax.random.normal(keys[6], (M, C, 1), jnp.float32)

    fwd = jax.jit(lambda xx, pp: sk_conv_forward(xx, pp, M, G))
    out = jax.block_until_ready(fwd(x, params))
    assert out.shape == (N, C, H, W)

    ref = jax.block_until_ready(sk_conv_reference(x, params, M, G))
    # Tolerance accounts for bf16 MXU operands and the bf16 conv intermediate
    # (accumulation, BN statistics and softmax are exact f32).
    np.testing.assert_allclose(np.asarray(out), np.asarray(ref),
                               rtol=2e-2, atol=3e-2)
    print("KERNEL_OK")
</pallas_src>

<mosaic_0001>
module attributes {stable_mosaic.version = 11 : i64} {
  func.func @_gap_kernel(%arg0: i32, %arg1: memref<2x2x4x384xbf16, #tpu.memory_space<vmem>>, %arg2: memref<2x4x1xf32, #tpu.memory_space<vmem>>, %arg3: memref<2x4x1xf32, #tpu.memory_space<vmem>>, %arg4: memref<1x384xf32, #tpu.memory_space<vmem>>, %arg5: memref<2x4x128xf32, #tpu.memory_space<vmem>>) attributes {dimension_semantics = [#tpu.dimension_semantics<parallel>], iteration_bounds = array<i64: 2>, scalar_prefetch = 0 : i64, scratch_operands = 0 : i64, tpu.core_type = #tpu.core_type<tc>, window_params = [{transform_indices = @transform_0, window_bounds = array<i64: 2, 2, 4, 384>}, {pipeline_mode = #tpu.pipeline_mode<synchronous>, transform_indices = @transform_1, window_bounds = array<i64: 2, 4, 1>}, {pipeline_mode = #tpu.pipeline_mode<synchronous>, transform_indices = @transform_2, window_bounds = array<i64: 2, 4, 1>}, {pipeline_mode = #tpu.pipeline_mode<synchronous>, transform_indices = @transform_3, window_bounds = array<i64: 1, 384>}, {transform_indices = @transform_4, window_bounds = array<i64: 2, 4, 128>}]} {
    %c0 = arith.constant 0 : index
    %c0_0 = arith.constant 0 : index
    %0 = vector.load %arg4[%c0, %c0_0] : memref<1x384xf32, #tpu.memory_space<vmem>>, vector<1x384xf32>
    %1 = vector.shape_cast %0 : vector<1x384xf32> to vector<1x384xf32>
    %2 = vector.broadcast %1 : vector<1x384xf32> to vector<4x384xf32>
    %c0_1 = arith.constant 0 : index
    %c0_2 = arith.constant 0 : index
    %c0_3 = arith.constant 0 : index
    %3 = vector.load %arg2[%c0_1, %c0_2, %c0_3] : memref<2x4x1xf32, #tpu.memory_space<vmem>>, vector<2x4x1xf32>
    %c0_4 = arith.constant 0 : index
    %c0_5 = arith.constant 0 : index
    %c0_6 = arith.constant 0 : index
    %4 = vector.load %arg3[%c0_4, %c0_5, %c0_6] : memref<2x4x1xf32, #tpu.memory_space<vmem>>, vector<2x4x1xf32>
    %cst = arith.constant 0.000000e+00 : f32
    %5 = vector.broadcast %cst : f32 to vector<4x1xf32>
    %c0_7 = arith.constant 0 : index
    %c0_8 = arith.constant 0 : index
    %c0_9 = arith.constant 0 : index
    %c0_10 = arith.constant 0 : index
    %6 = vector.load %arg1[%c0_7, %c0_8, %c0_9, %c0_10] : memref<2x2x4x384xbf16, #tpu.memory_space<vmem>>, vector<1x1x4x384xbf16>
    %7 = vector.shape_cast %6 : vector<1x1x4x384xbf16> to vector<4x384xbf16>
    %8 = arith.extf %7 : vector<4x384xbf16> to vector<4x384xf32>
    %9 = vector.extract_strided_slice %3 {offsets = [0, 0, 0], sizes = [1, 4, 1], strides = [1, 1, 1]} : vector<2x4x1xf32> to vector<1x4x1xf32>
    %10 = vector.shape_cast %9 : vector<1x4x1xf32> to vector<4x1xf32>
    %11 = vector.broadcast %10 : vector<4x1xf32> to vector<4x384xf32>
    %12 = arith.mulf %8, %11 : vector<4x384xf32>
    %13 = vector.extract_strided_slice %4 {offsets = [0, 0, 0], sizes = [1, 4, 1], strides = [1, 1, 1]} : vector<2x4x1xf32> to vector<1x4x1xf32>
    %14 = vector.shape_cast %13 : vector<1x4x1xf32> to vector<4x1xf32>
    %15 = vector.broadcast %14 : vector<4x1xf32> to vector<4x384xf32>
    %16 = arith.addf %12, %15 : vector<4x384xf32>
    %cst_11 = arith.constant 0.000000e+00 : f32
    %17 = vector.broadcast %cst_11 : f32 to vector<4x384xf32>
    %18 = arith.maximumf %16, %17 : vector<4x384xf32>
    %19 = arith.mulf %18, %2 : vector<4x384xf32>
    %cst_12 = arith.constant dense<0.000000e+00> : vector<4xf32>
    %20 = vector.multi_reduction <add>, %19, %cst_12 [1] : vector<4x384xf32> to vector<4xf32>
    %21 = vector.shape_cast %20 : vector<4xf32> to vector<4x1xf32>
    %22 = arith.addf %5, %21 : vector<4x1xf32>
    %c0_13 = arith.constant 0 : index
    %c1 = arith.constant 1 : index
    %c0_14 = arith.constant 0 : index
    %c0_15 = arith.constant 0 : index
    %23 = vector.load %arg1[%c0_13, %c1, %c0_14, %c0_15] : memref<2x2x4x384xbf16, #tpu.memory_space<vmem>>, vector<1x1x4x384xbf16>
    %24 = vector.shape_cast %23 : vector<1x1x4x384xbf16> to vector<4x384xbf16>
    %25 = arith.extf %24 : vector<4x384xbf16> to vector<4x384xf32>
    %26 = vector.extract_strided_slice %3 {offsets = [1, 0, 0], sizes = [1, 4, 1], strides = [1, 1, 1]} : vector<2x4x1xf32> to vector<1x4x1xf32>
    %27 = vector.shape_cast %26 : vector<1x4x1xf32> to vector<4x1xf32>
    %28 = vector.broadcast %27 : vector<4x1xf32> to vector<4x384xf32>
    %29 = arith.mulf %25, %28 : vector<4x384xf32>
    %30 = vector.extract_strided_slice %4 {offsets = [1, 0, 0], sizes = [1, 4, 1], strides = [1, 1, 1]} : vector<2x4x1xf32> to vector<1x4x1xf32>
    %31 = vector.shape_cast %30 : vector<1x4x1xf32> to vector<4x1xf32>
    %32 = vector.broadcast %31 : vector<4x1xf32> to vector<4x384xf32>
    %33 = arith.addf %29, %32 : vector<4x384xf32>
    %cst_16 = arith.constant 0.000000e+00 : f32
    %34 = vector.broadcast %cst_16 : f32 to vector<4x384xf32>
    %35 = arith.maximumf %33, %34 : vector<4x384xf32>
    %36 = arith.mulf %35, %2 : vector<4x384xf32>
    %cst_17 = arith.constant dense<0.000000e+00> : vector<4xf32>
    %37 = vector.multi_reduction <add>, %36, %cst_17 [1] : vector<4x384xf32> to vector<4xf32>
    %38 = vector.shape_cast %37 : vector<4xf32> to vector<4x1xf32>
    %39 = arith.addf %22, %38 : vector<4x1xf32>
    %cst_18 = arith.constant 3.906250e-03 : f32
    %40 = vector.broadcast %cst_18 : f32 to vector<4x1xf32>
    %41 = arith.mulf %39, %40 : vector<4x1xf32>
    %42 = vector.shape_cast %41 : vector<4x1xf32> to vector<4x1xf32>
    %43 = vector.broadcast %42 : vector<4x1xf32> to vector<4x128xf32>
    %c0_19 = arith.constant 0 : index
    %c0_20 = arith.constant 0 : index
    %c0_21 = arith.constant 0 : index
    %44 = vector.load %arg5[%c0_19, %c0_20, %c0_21] : memref<2x4x128xf32, #tpu.memory_space<vmem>>, vector<1x4x128xf32>
    %45 = vector.shape_cast %44 : vector<1x4x128xf32> to vector<4x128xf32>
    %46 = vector.shape_cast %43 : vector<4x128xf32> to vector<1x4x128xf32>
    tpu.vector_store %arg5[%c0_19, %c0_20, %c0_21], %46 {strides = array<i32>} : memref<2x4x128xf32, #tpu.memory_space<vmem>>, vector<1x4x128xf32>,
    %cst_22 = arith.constant 0.000000e+00 : f32
    %47 = vector.broadcast %cst_22 : f32 to vector<4x1xf32>
    %c1_23 = arith.constant 1 : index
    %c0_24 = arith.constant 0 : index
    %c0_25 = arith.constant 0 : index
    %c0_26 = arith.constant 0 : index
    %48 = vector.load %arg1[%c1_23, %c0_24, %c0_25, %c0_26] : memref<2x2x4x384xbf16, #tpu.memory_space<vmem>>, vector<1x1x4x384xbf16>
    %49 = vector.shape_cast %48 : vector<1x1x4x384xbf16> to vector<4x384xbf16>
    %50 = arith.extf %49 : vector<4x384xbf16> to vector<4x384xf32>
    %51 = vector.extract_strided_slice %3 {offsets = [0, 0, 0], sizes = [1, 4, 1], strides = [1, 1, 1]} : vector<2x4x1xf32> to vector<1x4x1xf32>
    %52 = vector.shape_cast %51 : vector<1x4x1xf32> to vector<4x1xf32>
    %53 = vector.broadcast %52 : vector<4x1xf32> to vector<4x384xf32>
    %54 = arith.mulf %50, %53 : vector<4x384xf32>
    %55 = vector.extract_strided_slice %4 {offsets = [0, 0, 0], sizes = [1, 4, 1], strides = [1, 1, 1]} : vector<2x4x1xf32> to vector<1x4x1xf32>
    %56 = vector.shape_cast %55 : vector<1x4x1xf32> to vector<4x1xf32>
    %57 = vector.broadcast %56 : vector<4x1xf32> to vector<4x384xf32>
    %58 = arith.addf %54, %57 : vector<4x384xf32>
    %cst_27 = arith.constant 0.000000e+00 : f32
    %59 = vector.broadcast %cst_27 : f32 to vector<4x384xf32>
    %60 = arith.maximumf %58, %59 : vector<4x384xf32>
    %61 = arith.mulf %60, %2 : vector<4x384xf32>
    %cst_28 = arith.constant dense<0.000000e+00> : vector<4xf32>
    %62 = vector.multi_reduction <add>, %61, %cst_28 [1] : vector<4x384xf32> to vector<4xf32>
    %63 = vector.shape_cast %62 : vector<4xf32> to vector<4x1xf32>
    %64 = arith.addf %47, %63 : vector<4x1xf32>
    %c1_29 = arith.constant 1 : index
    %c1_30 = arith.constant 1 : index
    %c0_31 = arith.constant 0 : index
    %c0_32 = arith.constant 0 : index
    %65 = vector.load %arg1[%c1_29, %c1_30, %c0_31, %c0_32] : memref<2x2x4x384xbf16, #tpu.memory_space<vmem>>, vector<1x1x4x384xbf16>
    %66 = vector.shape_cast %65 : vector<1x1x4x384xbf16> to vector<4x384xbf16>
    %67 = arith.extf %66 : vector<4x384xbf16> to vector<4x384xf32>
    %68 = vector.extract_strided_slice %3 {offsets = [1, 0, 0], sizes = [1, 4, 1], strides = [1, 1, 1]} : vector<2x4x1xf32> to vector<1x4x1xf32>
    %69 = vector.shape_cast %68 : vector<1x4x1xf32> to vector<4x1xf32>
    %70 = vector.broadcast %69 : vector<4x1xf32> to vector<4x384xf32>
    %71 = arith.mulf %67, %70 : vector<4x384xf32>
    %72 = vector.extract_strided_slice %4 {offsets = [1, 0, 0], sizes = [1, 4, 1], strides = [1, 1, 1]} : vector<2x4x1xf32> to vector<1x4x1xf32>
    %73 = vector.shape_cast %72 : vector<1x4x1xf32> to vector<4x1xf32>
    %74 = vector.broadcast %73 : vector<4x1xf32> to vector<4x384xf32>
    %75 = arith.addf %71, %74 : vector<4x384xf32>
    %cst_33 = arith.constant 0.000000e+00 : f32
    %76 = vector.broadcast %cst_33 : f32 to vector<4x384xf32>
    %77 = arith.maximumf %75, %76 : vector<4x384xf32>
    %78 = arith.mulf %77, %2 : vector<4x384xf32>
    %cst_34 = arith.constant dense<0.000000e+00> : vector<4xf32>
    %79 = vector.multi_reduction <add>, %78, %cst_34 [1] : vector<4x384xf32> to vector<4xf32>
    %80 = vector.shape_cast %79 : vector<4xf32> to vector<4x1xf32>
    %81 = arith.addf %64, %80 : vector<4x1xf32>
    %cst_35 = arith.constant 3.906250e-03 : f32
    %82 = vector.broadcast %cst_35 : f32 to vector<4x1xf32>
    %83 = arith.mulf %81, %82 : vector<4x1xf32>
    %84 = vector.shape_cast %83 : vector<4x1xf32> to vector<4x1xf32>
    %85 = vector.broadcast %84 : vector<4x1xf32> to vector<4x128xf32>
    %c1_36 = arith.constant 1 : index
    %c0_37 = arith.constant 0 : index
    %c0_38 = arith.constant 0 : index
    %86 = vector.load %arg5[%c1_36, %c0_37, %c0_38] : memref<2x4x128xf32, #tpu.memory_space<vmem>>, vector<1x4x128xf32>
    %87 = vector.shape_cast %86 : vector<1x4x128xf32> to vector<4x128xf32>
    %88 = vector.shape_cast %85 : vector<4x128xf32> to vector<1x4x128xf32>
    tpu.vector_store %arg5[%c1_36, %c0_37, %c0_38], %88 {strides = array<i32>} : memref<2x4x128xf32, #tpu.memory_space<vmem>>, vector<1x4x128xf32>,
    return
  }
  func.func @transform_0(%arg0: i32) -> (i32, i32, i32, i32) {
    %c0_i32 = arith.constant 0 : i32
    %c0_i32_0 = arith.constant 0 : i32
    %c0_i32_1 = arith.constant 0 : i32
    %c0_i32_2 = arith.constant 0 : i32
    return %arg0, %c0_i32, %c0_i32_0, %c0_i32_1 : i32, i32, i32, i32
  }
  func.func @transform_1(%arg0: i32) -> (i32, i32, i32) {
    %c0_i32 = arith.constant 0 : i32
    %c0_i32_0 = arith.constant 0 : i32
    %c0_i32_1 = arith.constant 0 : i32
    %c0_i32_2 = arith.constant 0 : i32
    return %c0_i32, %c0_i32_0, %c0_i32_1 : i32, i32, i32
  }
  func.func @transform_2(%arg0: i32) -> (i32, i32, i32) {
    %c0_i32 = arith.constant 0 : i32
    %c0_i32_0 = arith.constant 0 : i32
    %c0_i32_1 = arith.constant 0 : i32
    %c0_i32_2 = arith.constant 0 : i32
    return %c0_i32, %c0_i32_0, %c0_i32_1 : i32, i32, i32
  }
  func.func @transform_3(%arg0: i32) -> (i32, i32) {
    %c0_i32 = arith.constant 0 : i32
    %c0_i32_0 = arith.constant 0 : i32
    %c0_i32_1 = arith.constant 0 : i32
    return %c0_i32, %c0_i32_0 : i32, i32
  }
  func.func @transform_4(%arg0: i32) -> (i32, i32, i32) {
    %c0_i32 = arith.constant 0 : i32
    %c0_i32_0 = arith.constant 0 : i32
    %c0_i32_1 = arith.constant 0 : i32
    return %arg0, %c0_i32, %c0_i32_0 : i32, i32, i32
  }
}

module attributes {stable_mosaic.version = 11 : i64} {
  func.func @_fused_conv_kernel(%arg0: i32, %arg1: memref<2x2x18xbf16, #tpu.memory_space<vmem>>, %arg2: memref<2x2x50xbf16, #tpu.memory_space<vmem>>, %arg3: memref<2x4x1xf32, #tpu.memory_space<vmem>>, %arg4: memref<2x2x2x512xbf16, #tpu.memory_space<vmem>>, %arg5: memref<1x384xf32, #tpu.memory_space<vmem>>, %arg6: memref<2x2x4x384xbf16, #tpu.memory_space<vmem>>, %arg7: memref<1x2x4x128xf32, #tpu.memory_space<vmem>>, %arg8: memref<4x384xf32, #tpu.memory_space<vmem>>, %arg9: memref<50x384xbf16, #tpu.memory_space<vmem>>) attributes {dimension_semantics = [#tpu.dimension_semantics<parallel>], iteration_bounds = array<i64: 2>, scalar_prefetch = 0 : i64, scratch_operands = 2 : i64, tpu.core_type = #tpu.core_type<tc>, window_params = [{pipeline_mode = #tpu.pipeline_mode<synchronous>, transform_indices = @transform_0, window_bounds = array<i64: 2, 2, 18>}, {pipeline_mode = #tpu.pipeline_mode<synchronous>, transform_indices = @transform_1, window_bounds = array<i64: 2, 2, 50>}, {pipeline_mode = #tpu.pipeline_mode<synchronous>, transform_indices = @transform_2, window_bounds = array<i64: 2, 4, 1>}, {transform_indices = @transform_3, window_bounds = array<i64: 2, 2, 2, 512>}, {pipeline_mode = #tpu.pipeline_mode<synchronous>, transform_indices = @transform_4, window_bounds = array<i64: 1, 384>}, {transform_indices = @transform_5, window_bounds = array<i64: 2, 2, 4, 384>}, {transform_indices = @transform_6, window_bounds = array<i64: 1, 2, 4, 128>}]} {
    %c0 = arith.constant 0 : index
    %c0_0 = arith.constant 0 : index
    %0 = vector.load %arg5[%c0, %c0_0] : memref<1x384xf32, #tpu.memory_space<vmem>>, vector<1x384xf32>
    %1 = vector.shape_cast %0 : vector<1x384xf32> to vector<1x384xf32>
    %2 = vector.broadcast %1 : vector<1x384xf32> to vector<4x384xf32>
    %c0_1 = arith.constant 0 : index
    %c0_2 = arith.constant 0 : index
    %c0_3 = arith.constant 0 : index
    %c21 = arith.constant 21 : index
    %3 = vector.load %arg4[%c0_1, %c0_2, %c0_3, %c21] : memref<2x2x2x512xbf16, #tpu.memory_space<vmem>>, vector<1x1x2x384xbf16>
    %4 = vector.shape_cast %3 : vector<1x1x2x384xbf16> to vector<2x384xbf16>
    %c0_4 = arith.constant 0 : index
    %c0_5 = arith.constant 0 : index
    %5 = vector.load %arg9[%c0_4, %c0_5] : memref<50x384xbf16, #tpu.memory_space<vmem>>, vector<2x384xbf16>
    tpu.vector_store %arg9[%c0_4, %c0_5], %4 {strides = array<i32>} : memref<50x384xbf16, #tpu.memory_space<vmem>>, vector<2x384xbf16>,
    %c0_6 = arith.constant 0 : index
    %c0_7 = arith.constant 0 : index
    %c0_8 = arith.constant 0 : index
    %c22 = arith.constant 22 : index
    %6 = vector.load %arg4[%c0_6, %c0_7, %c0_8, %c22] : memref<2x2x2x512xbf16, #tpu.memory_space<vmem>>, vector<1x1x2x384xbf16>
    %7 = vector.shape_cast %6 : vector<1x1x2x384xbf16> to vector<2x384xbf16>
    %c2 = arith.constant 2 : index
    %c0_9 = arith.constant 0 : index
    %8 = vector.load %arg9[%c2, %c0_9] : memref<50x384xbf16, #tpu.memory_space<vmem>>, vector<2x384xbf16>
    tpu.vector_store %arg9[%c2, %c0_9], %7 {strides = array<i32>} : memref<50x384xbf16, #tpu.memory_space<vmem>>, vector<2x384xbf16>,
    %c0_10 = arith.constant 0 : index
    %c0_11 = arith.constant 0 : index
    %c0_12 = arith.constant 0 : index
    %c23 = arith.constant 23 : index
    %9 = vector.load %arg4[%c0_10, %c0_11, %c0_12, %c23] : memref<2x2x2x512xbf16, #tpu.memory_space<vmem>>, vector<1x1x2x384xbf16>
    %10 = vector.shape_cast %9 : vector<1x1x2x384xbf16> to vector<2x384xbf16>
    %c4 = arith.constant 4 : index
    %c0_13 = arith.constant 0 : index
    %11 = vector.load %arg9[%c4, %c0_13] : memref<50x384xbf16, #tpu.memory_space<vmem>>, vector<2x384xbf16>
    tpu.vector_store %arg9[%c4, %c0_13], %10 {strides = array<i32>} : memref<50x384xbf16, #tpu.memory_space<vmem>>, vector<2x384xbf16>,
    %c0_14 = arith.constant 0 : index
    %c0_15 = arith.constant 0 : index
    %c0_16 = arith.constant 0 : index
    %c41 = arith.constant 41 : index
    %12 = vector.load %arg4[%c0_14, %c0_15, %c0_16, %c41] : memref<2x2x2x512xbf16, #tpu.memory_space<vmem>>, vector<1x1x2x384xbf16>
    %13 = vector.shape_cast %12 : vector<1x1x2x384xbf16> to vector<2x384xbf16>
    %c6 = arith.constant 6 : index
    %c0_17 = arith.constant 0 : index
    %14 = vector.load %arg9[%c6, %c0_17] : memref<50x384xbf16, #tpu.memory_space<vmem>>, vector<2x384xbf16>
    tpu.vector_store %arg9[%c6, %c0_17], %13 {strides = array<i32>} : memref<50x384xbf16, #tpu.memory_space<vmem>>, vector<2x384xbf16>,
    %c0_18 = arith.constant 0 : index
    %c0_19 = arith.constant 0 : index
    %c0_20 = arith.constant 0 : index
    %c42 = arith.constant 42 : index
    %15 = vector.load %arg4[%c0_18, %c0_19, %c0_20, %c42] : memref<2x2x2x512xbf16, #tpu.memory_space<vmem>>, vector<1x1x2x384xbf16>
    %16 = vector.shape_cast %15 : vector<1x1x2x384xbf16> to vector<2x384xbf16>
    %c8 = arith.constant 8 : index
    %c0_21 = arith.constant 0 : index
    %17 = vector.load %arg9[%c8, %c0_21] : memref<50x384xbf16, #tpu.memory_space<vmem>>, vector<2x384xbf16>
    tpu.vector_store %arg9[%c8, %c0_21], %16 {strides = array<i32>} : memref<50x384xbf16, #tpu.memory_space<vmem>>, vector<2x384xbf16>,
    %c0_22 = arith.constant 0 : index
    %c0_23 = arith.constant 0 : index
    %c0_24 = arith.constant 0 : index
    %c43 = arith.constant 43 : index
    %18 = vector.load %arg4[%c0_22, %c0_23, %c0_24, %c43] : memref<2x2x2x512xbf16, #tpu.memory_space<vmem>>, vector<1x1x2x384xbf16>
    %19 = vector.shape_cast %18 : vector<1x1x2x384xbf16> to vector<2x384xbf16>
    %c10 = arith.constant 10 : index
    %c0_25 = arith.constant 0 : index
    %20 = vector.load %arg9[%c10, %c0_25] : memref<50x384xbf16, #tpu.memory_space<vmem>>, vector<2x384xbf16>
    tpu.vector_store %arg9[%c10, %c0_25], %19 {strides = array<i32>} : memref<50x384xbf16, #tpu.memory_space<vmem>>, vector<2x384xbf16>,
    %c0_26 = arith.constant 0 : index
    %c0_27 = arith.constant 0 : index
    %c0_28 = arith.constant 0 : index
    %c61 = arith.constant 61 : index
    %21 = vector.load %arg4[%c0_26, %c0_27, %c0_28, %c61] : memref<2x2x2x512xbf16, #tpu.memory_space<vmem>>, vector<1x1x2x384xbf16>
    %22 = vector.shape_cast %21 : vector<1x1x2x384xbf16> to vector<2x384xbf16>
    %c12 = arith.constant 12 : index
    %c0_29 = arith.constant 0 : index
    %23 = vector.load %arg9[%c12, %c0_29] : memref<50x384xbf16, #tpu.memory_space<vmem>>, vector<2x384xbf16>
    tpu.vector_store %arg9[%c12, %c0_29], %22 {strides = array<i32>} : memref<50x384xbf16, #tpu.memory_space<vmem>>, vector<2x384xbf16>,
    %c0_30 = arith.constant 0 : index
    %c0_31 = arith.constant 0 : index
    %c0_32 = arith.constant 0 : index
    %c62 = arith.constant 62 : index
    %24 = vector.load %arg4[%c0_30, %c0_31, %c0_32, %c62] : memref<2x2x2x512xbf16, #tpu.memory_space<vmem>>, vector<1x1x2x384xbf16>
    %25 = vector.shape_cast %24 : vector<1x1x2x384xbf16> to vector<2x384xbf16>
    %c14 = arith.constant 14 : index
    %c0_33 = arith.constant 0 : index
    %26 = vector.load %arg9[%c14, %c0_33] : memref<50x384xbf16, #tpu.memory_space<vmem>>, vector<2x384xbf16>
    tpu.vector_store %arg9[%c14, %c0_33], %25 {strides = array<i32>} : memref<50x384xbf16, #tpu.memory_space<vmem>>, vector<2x384xbf16>,
    %c0_34 = arith.constant 0 : index
    %c0_35 = arith.constant 0 : index
    %c0_36 = arith.constant 0 : index
    %c63 = arith.constant 63 : index
    %27 = vector.load %arg4[%c0_34, %c0_35, %c0_36, %c63] : memref<2x2x2x512xbf16, #tpu.memory_space<vmem>>, vector<1x1x2x384xbf16>
    %28 = vector.shape_cast %27 : vector<1x1x2x384xbf16> to vector<2x384xbf16>
    %c16 = arith.constant 16 : index
    %c0_37 = arith.constant 0 : index
    %29 = vector.load %arg9[%c16, %c0_37] : memref<50x384xbf16, #tpu.memory_space<vmem>>, vector<2x384xbf16>
    tpu.vector_store %arg9[%c16, %c0_37], %28 {strides = array<i32>} : memref<50x384xbf16, #tpu.memory_space<vmem>>, vector<2x384xbf16>,
    %c0_38 = arith.constant 0 : index
    %c0_39 = arith.constant 0 : index
    %c0_40 = arith.constant 0 : index
    %30 = vector.load %arg1[%c0_38, %c0_39, %c0_40] : memref<2x2x18xbf16, #tpu.memory_space<vmem>>, vector<1x2x18xbf16>
    %31 = vector.shape_cast %30 : vector<1x2x18xbf16> to vector<2x18xbf16>
    %c0_41 = arith.constant 0 : index
    %c0_42 = arith.constant 0 : index
    %32 = vector.load %arg9[%c0_41, %c0_42] : memref<50x384xbf16, #tpu.memory_space<vmem>>, vector<18x384xbf16>
    %cst = arith.constant dense<0.000000e+00> : vector<2x384xf32>
    %33 = tpu.matmul %31, %32, %cst {dimension_numbers = #tpu.dot_dimension_numbers<[1], [0], [0], [1], [0, 0, 1, 1], [], []>} : vector<2x18xbf16>, vector<18x384xbf16>, vector<2x384xf32> -> vector<2x384xf32>
    %c0_43 = arith.constant 0 : index
    %c0_44 = arith.constant 0 : index
    %c0_45 = arith.constant 0 : index
    %34 = vector.load %arg3[%c0_43, %c0_44, %c0_45] : memref<2x4x1xf32, #tpu.memory_space<vmem>>, vector<1x2x1xf32>
    %35 = vector.shape_cast %34 : vector<1x2x1xf32> to vector<2x1xf32>
    %36 = vector.broadcast %35 : vector<2x1xf32> to vector<2x384xf32>
    %37 = arith.addf %33, %36 : vector<2x384xf32>
    %c0_46 = arith.constant 0 : index
    %c0_47 = arith.constant 0 : index
    %38 = vector.load %arg8[%c0_46, %c0_47] : memref<4x384xf32, #tpu.memory_space<vmem>>, vector<2x384xf32>
    tpu.vector_store %arg8[%c0_46, %c0_47], %37 {strides = array<i32>} : memref<4x384xf32, #tpu.memory_space<vmem>>, vector<2x384xf32>,
    %c0_48 = arith.constant 0 : index
    %c1 = arith.constant 1 : index
    %c0_49 = arith.constant 0 : index
    %c21_50 = arith.constant 21 : index
    %39 = vector.load %arg4[%c0_48, %c1, %c0_49, %c21_50] : memref<2x2x2x512xbf16, #tpu.memory_space<vmem>>, vector<1x1x2x384xbf16>
    %40 = vector.shape_cast %39 : vector<1x1x2x384xbf16> to vector<2x384xbf16>
    %c0_51 = arith.constant 0 : index
    %c0_52 = arith.constant 0 : index
    %41 = vector.load %arg9[%c0_51, %c0_52] : memref<50x384xbf16, #tpu.memory_space<vmem>>, vector<2x384xbf16>
    tpu.vector_store %arg9[%c0_51, %c0_52], %40 {strides = array<i32>} : memref<50x384xbf16, #tpu.memory_space<vmem>>, vector<2x384xbf16>,
    %c0_53 = arith.constant 0 : index
    %c1_54 = arith.constant 1 : index
    %c0_55 = arith.constant 0 : index
    %c22_56 = arith.constant 22 : index
    %42 = vector.load %arg4[%c0_53, %c1_54, %c0_55, %c22_56] : memref<2x2x2x512xbf16, #tpu.memory_space<vmem>>, vector<1x1x2x384xbf16>
    %43 = vector.shape_cast %42 : vector<1x1x2x384xbf16> to vector<2x384xbf16>
    %c2_57 = arith.constant 2 : index
    %c0_58 = arith.constant 0 : index
    %44 = vector.load %arg9[%c2_57, %c0_58] : memref<50x384xbf16, #tpu.memory_space<vmem>>, vector<2x384xbf16>
    tpu.vector_store %arg9[%c2_57, %c0_58], %43 {strides = array<i32>} : memref<50x384xbf16, #tpu.memory_space<vmem>>, vector<2x384xbf16>,
    %c0_59 = arith.constant 0 : index
    %c1_60 = arith.constant 1 : index
    %c0_61 = arith.constant 0 : index
    %c23_62 = arith.constant 23 : index
    %45 = vector.load %arg4[%c0_59, %c1_60, %c0_61, %c23_62] : memref<2x2x2x512xbf16, #tpu.memory_space<vmem>>, vector<1x1x2x384xbf16>
    %46 = vector.shape_cast %45 : vector<1x1x2x384xbf16> to vector<2x384xbf16>
    %c4_63 = arith.constant 4 : index
    %c0_64 = arith.constant 0 : index
    %47 = vector.load %arg9[%c4_63, %c0_64] : memref<50x384xbf16, #tpu.memory_space<vmem>>, vector<2x384xbf16>
    tpu.vector_store %arg9[%c4_63, %c0_64], %46 {strides = array<i32>} : memref<50x384xbf16, #tpu.memory_space<vmem>>, vector<2x384xbf16>,
    %c0_65 = arith.constant 0 : index
    %c1_66 = arith.constant 1 : index
    %c0_67 = arith.constant 0 : index
    %c41_68 = arith.constant 41 : index
    %48 = vector.load %arg4[%c0_65, %c1_66, %c0_67, %c41_68] : memref<2x2x2x512xbf16, #tpu.memory_space<vmem>>, vector<1x1x2x384xbf16>
    %49 = vector.shape_cast %48 : vector<1x1x2x384xbf16> to vector<2x384xbf16>
    %c6_69 = arith.constant 6 : index
    %c0_70 = arith.constant 0 : index
    %50 = vector.load %arg9[%c6_69, %c0_70] : memref<50x384xbf16, #tpu.memory_space<vmem>>, vector<2x384xbf16>
    tpu.vector_store %arg9[%c6_69, %c0_70], %49 {strides = array<i32>} : memref<50x384xbf16, #tpu.memory_space<vmem>>, vector<2x384xbf16>,
    %c0_71 = arith.constant 0 : index
    %c1_72 = arith.constant 1 : index
    %c0_73 = arith.constant 0 : index
    %c42_74 = arith.constant 42 : index
    %51 = vector.load %arg4[%c0_71, %c1_72, %c0_73, %c42_74] : memref<2x2x2x512xbf16, #tpu.memory_space<vmem>>, vector<1x1x2x384xbf16>
    %52 = vector.shape_cast %51 : vector<1x1x2x384xbf16> to vector<2x384xbf16>
    %c8_75 = arith.constant 8 : index
    %c0_76 = arith.constant 0 : index
    %53 = vector.load %arg9[%c8_75, %c0_76] : memref<50x384xbf16, #tpu.memory_space<vmem>>, vector<2x384xbf16>
    tpu.vector_store %arg9[%c8_75, %c0_76], %52 {strides = array<i32>} : memref<50x384xbf16, #tpu.memory_space<vmem>>, vector<2x384xbf16>,
    %c0_77 = arith.constant 0 : index
    %c1_78 = arith.constant 1 : index
    %c0_79 = arith.constant 0 : index
    %c43_80 = arith.constant 43 : index
    %54 = vector.load %arg4[%c0_77, %c1_78, %c0_79, %c43_80] : memref<2x2x2x512xbf16, #tpu.memory_space<vmem>>, vector<1x1x2x384xbf16>
    %55 = vector.shape_cast %54 : vector<1x1x2x384xbf16> to vector<2x384xbf16>
    %c10_81 = arith.constant 10 : index
    %c0_82 = arith.constant 0 : index
    %56 = vector.load %arg9[%c10_81, %c0_82] : memref<50x384xbf16, #tpu.memory_space<vmem>>, vector<2x384xbf16>
    tpu.vector_store %arg9[%c10_81, %c0_82], %55 {strides = array<i32>} : memref<50x384xbf16, #tpu.memory_space<vmem>>, vector<2x384xbf16>,
    %c0_83 = arith.constant 0 : index
    %c1_84 = arith.constant 1 : index
    %c0_85 = arith.constant 0 : index
    %c61_86 = arith.constant 61 : index
    %57 = vector.load %arg4[%c0_83, %c1_84, %c0_85, %c61_86] : memref<2x2x2x512xbf16, #tpu.memory_space<vmem>>, vector<1x1x2x384xbf16>
    %58 = vector.shape_cast %57 : vector<1x1x2x384xbf16> to vector<2x384xbf16>
    %c12_87 = arith.constant 12 : index
    %c0_88 = arith.constant 0 : index
    %59 = vector.load %arg9[%c12_87, %c0_88] : memref<50x384xbf16, #tpu.memory_space<vmem>>, vector<2x384xbf16>
    tpu.vector_store %arg9[%c12_87, %c0_88], %58 {strides = array<i32>} : memref<50x384xbf16, #tpu.memory_space<vmem>>, vector<2x384xbf16>,
    %c0_89 = arith.constant 0 : index
    %c1_90 = arith.constant 1 : index
    %c0_91 = arith.constant 0 : index
    %c62_92 = arith.constant 62 : index
    %60 = vector.load %arg4[%c0_89, %c1_90, %c0_91, %c62_92] : memref<2x2x2x512xbf16, #tpu.memory_space<vmem>>, vector<1x1x2x384xbf16>
    %61 = vector.shape_cast %60 : vector<1x1x2x384xbf16> to vector<2x384xbf16>
    %c14_93 = arith.constant 14 : index
    %c0_94 = arith.constant 0 : index
    %62 = vector.load %arg9[%c14_93, %c0_94] : memref<50x384xbf16, #tpu.memory_space<vmem>>, vector<2x384xbf16>
    tpu.vector_store %arg9[%c14_93, %c0_94], %61 {strides = array<i32>} : memref<50x384xbf16, #tpu.memory_space<vmem>>, vector<2x384xbf16>,
    %c0_95 = arith.constant 0 : index
    %c1_96 = arith.constant 1 : index
    %c0_97 = arith.constant 0 : index
    %c63_98 = arith.constant 63 : index
    %63 = vector.load %arg4[%c0_95, %c1_96, %c0_97, %c63_98] : memref<2x2x2x512xbf16, #tpu.memory_space<vmem>>, vector<1x1x2x384xbf16>
    %64 = vector.shape_cast %63 : vector<1x1x2x384xbf16> to vector<2x384xbf16>
    %c16_99 = arith.constant 16 : index
    %c0_100 = arith.constant 0 : index
    %65 = vector.load %arg9[%c16_99, %c0_100] : memref<50x384xbf16, #tpu.memory_space<vmem>>, vector<2x384xbf16>
    tpu.vector_store %arg9[%c16_99, %c0_100], %64 {strides = array<i32>} : memref<50x384xbf16, #tpu.memory_space<vmem>>, vector<2x384xbf16>,
    %c1_101 = arith.constant 1 : index
    %c0_102 = arith.constant 0 : index
    %c0_103 = arith.constant 0 : index
    %66 = vector.load %arg1[%c1_101, %c0_102, %c0_103] : memref<2x2x18xbf16, #tpu.memory_space<vmem>>, vector<1x2x18xbf16>
    %67 = vector.shape_cast %66 : vector<1x2x18xbf16> to vector<2x18xbf16>
    %c0_104 = arith.constant 0 : index
    %c0_105 = arith.constant 0 : index
    %68 = vector.load %arg9[%c0_104, %c0_105] : memref<50x384xbf16, #tpu.memory_space<vmem>>, vector<18x384xbf16>
    %cst_106 = arith.constant dense<0.000000e+00> : vector<2x384xf32>
    %69 = tpu.matmul %67, %68, %cst_106 {dimension_numbers = #tpu.dot_dimension_numbers<[1], [0], [0], [1], [0, 0, 1, 1], [], []>} : vector<2x18xbf16>, vector<18x384xbf16>, vector<2x384xf32> -> vector<2x384xf32>
    %c0_107 = arith.constant 0 : index
    %c2_108 = arith.constant 2 : index
    %c0_109 = arith.constant 0 : index
    %70 = vector.load %arg3[%c0_107, %c2_108, %c0_109] : memref<2x4x1xf32, #tpu.memory_space<vmem>>, vector<1x2x1xf32>
    %71 = vector.shape_cast %70 : vector<1x2x1xf32> to vector<2x1xf32>
    %72 = vector.broadcast %71 : vector<2x1xf32> to vector<2x384xf32>
    %73 = arith.addf %69, %72 : vector<2x384xf32>
    %c2_110 = arith.constant 2 : index
    %c0_111 = arith.constant 0 : index
    %74 = vector.load %arg8[%c2_110, %c0_111] : memref<4x384xf32, #tpu.memory_space<vmem>>, vector<2x384xf32>
    tpu.vector_store %arg8[%c2_110, %c0_111], %73 {strides = array<i32>} : memref<4x384xf32, #tpu.memory_space<vmem>>, vector<2x384xf32>,
    %c0_112 = arith.constant 0 : index
    %c0_113 = arith.constant 0 : index
    %75 = vector.load %arg8[%c0_112, %c0_113] : memref<4x384xf32, #tpu.memory_space<vmem>>, vector<4x384xf32>
    %76 = arith.truncf %75 : vector<4x384xf32> to vector<4x384xbf16>
    %c0_114 = arith.constant 0 : index
    %c0_115 = arith.constant 0 : index
    %c0_116 = arith.constant 0 : index
    %c0_117 = arith.constant 0 : index
    %77 = vector.load %arg6[%c0_114, %c0_115, %c0_116, %c0_117] : memref<2x2x4x384xbf16, #tpu.memory_space<vmem>>, vector<1x1x4x384xbf16>
    %78 = vector.shape_cast %77 : vector<1x1x4x384xbf16> to vector<4x384xbf16>
    %79 = vector.shape_cast %76 : vector<4x384xbf16> to vector<1x1x4x384xbf16>
    tpu.vector_store %arg6[%c0_114, %c0_115, %c0_116, %c0_117], %79 {strides = array<i32>} : memref<2x2x4x384xbf16, #tpu.memory_space<vmem>>, vector<1x1x4x384xbf16>,
    %80 = arith.mulf %75, %2 : vector<4x384xf32>
    %cst_118 = arith.constant dense<0.000000e+00> : vector<4xf32>
    %81 = vector.multi_reduction <add>, %80, %cst_118 [1] : vector<4x384xf32> to vector<4xf32>
    %82 = vector.shape_cast %81 : vector<4xf32> to vector<4x1xf32>
    %83 = arith.mulf %80, %75 : vector<4x384xf32>
    %cst_119 = arith.constant dense<0.000000e+00> : vector<4xf32>
    %84 = vector.multi_reduction <add>, %83, %cst_119 [1] : vector<4x384xf32> to vector<4xf32>
    %85 = vector.shape_cast %84 : vector<4xf32> to vector<4x1xf32>
    %86 = tpu.concatenate %82, %85 in 1 : vector<4x1xf32>, vector<4x1xf32> -> vector<4x2xf32>
    %c0_120 = arith.constant 0 : index
    %c0_121 = arith.constant 0 : index
    %c0_122 = arith.constant 0 : index
    %c0_123 = arith.constant 0 : index
    %87 = vector.load %arg4[%c0_120, %c0_121, %c0_122, %c0_123] : memref<2x2x2x512xbf16, #tpu.memory_space<vmem>>, vector<1x1x2x384xbf16>
    %88 = vector.shape_cast %87 : vector<1x1x2x384xbf16> to vector<2x384xbf16>
    %c0_124 = arith.constant 0 : index
    %c0_125 = arith.constant 0 : index
    %89 = vector.load %arg9[%c0_124, %c0_125] : memref<50x384xbf16, #tpu.memory_space<vmem>>, vector<2x384xbf16>
    tpu.vector_store %arg9[%c0_124, %c0_125], %88 {strides = array<i32>} : memref<50x384xbf16, #tpu.memory_space<vmem>>, vector<2x384xbf16>,
    %c0_126 = arith.constant 0 : index
    %c0_127 = arith.constant 0 : index
    %c0_128 = arith.constant 0 : index
    %c1_129 = arith.constant 1 : index
    %90 = vector.load %arg4[%c0_126, %c0_127, %c0_128, %c1_129] : memref<2x2x2x512xbf16, #tpu.memory_space<vmem>>, vector<1x1x2x384xbf16>
    %91 = vector.shape_cast %90 : vector<1x1x2x384xbf16> to vector<2x384xbf16>
    %c2_130 = arith.constant 2 : index
    %c0_131 = arith.constant 0 : index
    %92 = vector.load %arg9[%c2_130, %c0_131] : memref<50x384xbf16, #tpu.memory_space<vmem>>, vector<2x384xbf16>
    tpu.vector_store %arg9[%c2_130, %c0_131], %91 {strides = array<i32>} : memref<50x384xbf16, #tpu.memory_space<vmem>>, vector<2x384xbf16>,
    %c0_132 = arith.constant 0 : index
    %c0_133 = arith.constant 0 : index
    %c0_134 = arith.constant 0 : index
    %c2_135 = arith.constant 2 : index
    %93 = vector.load %arg4[%c0_132, %c0_133, %c0_134, %c2_135] : memref<2x2x2x512xbf16, #tpu.memory_space<vmem>>, vector<1x1x2x384xbf16>
    %94 = vector.shape_cast %93 : vector<1x1x2x384xbf16> to vector<2x384xbf16>
    %c4_136 = arith.constant 4 : index
    %c0_137 = arith.constant 0 : index
    %95 = vector.load %arg9[%c4_136, %c0_137] : memref<50x384xbf16, #tpu.memory_space<vmem>>, vector<2x384xbf16>
    tpu.vector_store %arg9[%c4_136, %c0_137], %94 {strides = array<i32>} : memref<50x384xbf16, #tpu.memory_space<vmem>>, vector<2x384xbf16>,
    %c0_138 = arith.constant 0 : index
    %c0_139 = arith.constant 0 : index
    %c0_140 = arith.constant 0 : index
    %c3 = arith.constant 3 : index
    %96 = vector.load %arg4[%c0_138, %c0_139, %c0_140, %c3] : memref<2x2x2x512xbf16, #tpu.memory_space<vmem>>, vector<1x1x2x384xbf16>
    %97 = vector.shape_cast %96 : vector<1x1x2x384xbf16> to vector<2x384xbf16>
    %c6_141 = arith.constant 6 : index
    %c0_142 = arith.constant 0 : index
    %98 = vector.load %arg9[%c6_141, %c0_142] : memref<50x384xbf16, #tpu.memory_space<vmem>>, vector<2x384xbf16>
    tpu.vector_store %arg9[%c6_141, %c0_142], %97 {strides = array<i32>} : memref<50x384xbf16, #tpu.memory_space<vmem>>, vector<2x384xbf16>,
    %c0_143 = arith.constant 0 : index
    %c0_144 = arith.constant 0 : index
    %c0_145 = arith.constant 0 : index
    %c4_146 = arith.constant 4 : index
    %99 = vector.load %arg4[%c0_143, %c0_144, %c0_145, %c4_146] : memref<2x2x2x512xbf16, #tpu.memory_space<vmem>>, vector<1x1x2x384xbf16>
    %100 = vector.shape_cast %99 : vector<1x1x2x384xbf16> to vector<2x384xbf16>
    %c8_147 = arith.constant 8 : index
    %c0_148 = arith.constant 0 : index
    %101 = vector.load %arg9[%c8_147, %c0_148] : memref<50x384xbf16, #tpu.memory_space<vmem>>, vector<2x384xbf16>
    tpu.vector_store %arg9[%c8_147, %c0_148], %100 {strides = array<i32>} : memref<50x384xbf16, #tpu.memory_space<vmem>>, vector<2x384xbf16>,
    %c0_149 = arith.constant 0 : index
    %c0_150 = arith.constant 0 : index
    %c0_151 = arith.constant 0 : index
    %c20 = arith.constant 20 : index
    %102 = vector.load %arg4[%c0_149, %c0_150, %c0_151, %c20] : memref<2x2x2x512xbf16, #tpu.memory_space<vmem>>, vector<1x1x2x384xbf16>
    %103 = vector.shape_cast %102 : vector<1x1x2x384xbf16> to vector<2x384xbf16>
    %c10_152 = arith.constant 10 : index
    %c0_153 = arith.constant 0 : index
    %104 = vector.load %arg9[%c10_152, %c0_153] : memref<50x384xbf16, #tpu.memory_space<vmem>>, vector<2x384xbf16>
    tpu.vector_store %arg9[%c10_152, %c0_153], %103 {strides = array<i32>} : memref<50x384xbf16, #tpu.memory_space<vmem>>, vector<2x384xbf16>,
    %c0_154 = arith.constant 0 : index
    %c0_155 = arith.constant 0 : index
    %c0_156 = arith.constant 0 : index
    %c21_157 = arith.constant 21 : index
    %105 = vector.load %arg4[%c0_154, %c0_155, %c0_156, %c21_157] : memref<2x2x2x512xbf16, #tpu.memory_space<vmem>>, vector<1x1x2x384xbf16>
    %106 = vector.shape_cast %105 : vector<1x1x2x384xbf16> to vector<2x384xbf16>
    %c12_158 = arith.constant 12 : index
    %c0_159 = arith.constant 0 : index
    %107 = vector.load %arg9[%c12_158, %c0_159] : memref<50x384xbf16, #tpu.memory_space<vmem>>, vector<2x384xbf16>
    tpu.vector_store %arg9[%c12_158, %c0_159], %106 {strides = array<i32>} : memref<50x384xbf16, #tpu.memory_space<vmem>>, vector<2x384xbf16>,
    %c0_160 = arith.constant 0 : index
    %c0_161 = arith.constant 0 : index
    %c0_162 = arith.constant 0 : index
    %c22_163 = arith.constant 22 : index
    %108 = vector.load %arg4[%c0_160, %c0_161, %c0_162, %c22_163] : memref<2x2x2x512xbf16, #tpu.memory_space<vmem>>, vector<1x1x2x384xbf16>
    %109 = vector.shape_cast %108 : vector<1x1x2x384xbf16> to vector<2x384xbf16>
    %c14_164 = arith.constant 14 : index
    %c0_165 = arith.constant 0 : index
    %110 = vector.load %arg9[%c14_164, %c0_165] : memref<50x384xbf16, #tpu.memory_space<vmem>>, vector<2x384xbf16>
    tpu.vector_store %arg9[%c14_164, %c0_165], %109 {strides = array<i32>} : memref<50x384xbf16, #tpu.memory_space<vmem>>, vector<2x384xbf16>,
    %c0_166 = arith.constant 0 : index
    %c0_167 = arith.constant 0 : index
    %c0_168 = arith.constant 0 : index
    %c23_169 = arith.constant 23 : index
    %111 = vector.load %arg4[%c0_166, %c0_167, %c0_168, %c23_169] : memref<2x2x2x512xbf16, #tpu.memory_space<vmem>>, vector<1x1x2x384xbf16>
    %112 = vector.shape_cast %111 : vector<1x1x2x384xbf16> to vector<2x384xbf16>
    %c16_170 = arith.constant 16 : index
    %c0_171 = arith.constant 0 : index
    %113 = vector.load %arg9[%c16_170, %c0_171] : memref<50x384xbf16, #tpu.memory_space<vmem>>, vector<2x384xbf16>
    tpu.vector_store %arg9[%c16_170, %c0_171], %112 {strides = array<i32>} : memref<50x384xbf16, #tpu.memory_space<vmem>>, vector<2x384xbf16>,
    %c0_172 = arith.constant 0 : index
    %c0_173 = arith.constant 0 : index
    %c0_174 = arith.constant 0 : index
    %c24 = arith.constant 24 : index
    %114 = vector.load %arg4[%c0_172, %c0_173, %c0_174, %c24] : memref<2x2x2x512xbf16, #tpu.memory_space<vmem>>, vector<1x1x2x384xbf16>
    %115 = vector.shape_cast %114 : vector<1x1x2x384xbf16> to vector<2x384xbf16>
    %c18 = arith.constant 18 : index
    %c0_175 = arith.constant 0 : index
    %116 = vector.load %arg9[%c18, %c0_175] : memref<50x384xbf16, #tpu.memory_space<vmem>>, vector<2x384xbf16>
    tpu.vector_store %arg9[%c18, %c0_175], %115 {strides = array<i32>} : memref<50x384xbf16, #tpu.memory_space<vmem>>, vector<2x384xbf16>,
    %c0_176 = arith.constant 0 : index
    %c0_177 = arith.constant 0 : index
    %c0_178 = arith.constant 0 : index
    %c40 = arith.constant 40 : index
    %117 = vector.load %arg4[%c0_176, %c0_177, %c0_178, %c40] : memref<2x2x2x512xbf16, #tpu.memory_space<vmem>>, vector<1x1x2x384xbf16>
    %118 = vector.shape_cast %117 : vector<1x1x2x384xbf16> to vector<2x384xbf16>
    %c20_179 = arith.constant 20 : index
    %c0_180 = arith.constant 0 : index
    %119 = vector.load %arg9[%c20_179, %c0_180] : memref<50x384xbf16, #tpu.memory_space<vmem>>, vector<2x384xbf16>
    tpu.vector_store %arg9[%c20_179, %c0_180], %118 {strides = array<i32>} : memref<50x384xbf16, #tpu.memory_space<vmem>>, vector<2x384xbf16>,
    %c0_181 = arith.constant 0 : index
    %c0_182 = arith.constant 0 : index
    %c0_183 = arith.constant 0 : index
    %c41_184 = arith.constant 41 : index
    %120 = vector.load %arg4[%c0_181, %c0_182, %c0_183, %c41_184] : memref<2x2x2x512xbf16, #tpu.memory_space<vmem>>, vector<1x1x2x384xbf16>
    %121 = vector.shape_cast %120 : vector<1x1x2x384xbf16> to vector<2x384xbf16>
    %c22_185 = arith.constant 22 : index
    %c0_186 = arith.constant 0 : index
    %122 = vector.load %arg9[%c22_185, %c0_186] : memref<50x384xbf16, #tpu.memory_space<vmem>>, vector<2x384xbf16>
    tpu.vector_store %arg9[%c22_185, %c0_186], %121 {strides = array<i32>} : memref<50x384xbf16, #tpu.memory_space<vmem>>, vector<2x384xbf16>,
    %c0_187 = arith.constant 0 : index
    %c0_188 = arith.constant 0 : index
    %c0_189 = arith.constant 0 : index
    %c42_190 = arith.constant 42 : index
    %123 = vector.load %arg4[%c0_187, %c0_188, %c0_189, %c42_190] : memref<2x2x2x512xbf16, #tpu.memory_space<vmem>>, vector<1x1x2x384xbf16>
    %124 = vector.shape_cast %123 : vector<1x1x2x384xbf16> to vector<2x384xbf16>
    %c24_191 = arith.constant 24 : index
    %c0_192 = arith.constant 0 : index
    %125 = vector.load %arg9[%c24_191, %c0_192] : memref<50x384xbf16, #tpu.memory_space<vmem>>, vector<2x384xbf16>
    tpu.vector_store %arg9[%c24_191, %c0_192], %124 {strides = array<i32>} : memref<50x384xbf16, #tpu.memory_space<vmem>>, vector<2x384xbf16>,
    %c0_193 = arith.constant 0 : index
    %c0_194 = arith.constant 0 : index
    %c0_195 = arith.constant 0 : index
    %c43_196 = arith.constant 43 : index
    %126 = vector.load %arg4[%c0_193, %c0_194, %c0_195, %c43_196] : memref<2x2x2x512xbf16, #tpu.memory_space<vmem>>, vector<1x1x2x384xbf16>
    %127 = vector.shape_cast %126 : vector<1x1x2x384xbf16> to vector<2x384xbf16>
    %c26 = arith.constant 26 : index
    %c0_197 = arith.constant 0 : index
    %128 = vector.load %arg9[%c26, %c0_197] : memref<50x384xbf16, #tpu.memory_space<vmem>>, vector<2x384xbf16>
    tpu.vector_store %arg9[%c26, %c0_197], %127 {strides = array<i32>} : memref<50x384xbf16, #tpu.memory_space<vmem>>, vector<2x384xbf16>,
    %c0_198 = arith.constant 0 : index
    %c0_199 = arith.constant 0 : index
    %c0_200 = arith.constant 0 : index
    %c44 = arith.constant 44 : index
    %129 = vector.load %arg4[%c0_198, %c0_199, %c0_200, %c44] : memref<2x2x2x512xbf16, #tpu.memory_space<vmem>>, vector<1x1x2x384xbf16>
    %130 = vector.shape_cast %129 : vector<1x1x2x384xbf16> to vector<2x384xbf16>
    %c28 = arith.constant 28 : index
    %c0_201 = arith.constant 0 : index
    %131 = vector.load %arg9[%c28, %c0_201] : memref<50x384xbf16, #tpu.memory_space<vmem>>, vector<2x384xbf16>
    tpu.vector_store %arg9[%c28, %c0_201], %130 {strides = array<i32>} : memref<50x384xbf16, #tpu.memory_space<vmem>>, vector<2x384xbf16>,
    %c0_202 = arith.constant 0 : index
    %c0_203 = arith.constant 0 : index
    %c0_204 = arith.constant 0 : index
    %c60 = arith.constant 60 : index
    %132 = vector.load %arg4[%c0_202, %c0_203, %c0_204, %c60] : memref<2x2x2x512xbf16, #tpu.memory_space<vmem>>, vector<1x1x2x384xbf16>
    %133 = vector.shape_cast %132 : vector<1x1x2x384xbf16> to vector<2x384xbf16>
    %c30 = arith.constant 30 : index
    %c0_205 = arith.constant 0 : index
    %134 = vector.load %arg9[%c30, %c0_205] : memref<50x384xbf16, #tpu.memory_space<vmem>>, vector<2x384xbf16>
    tpu.vector_store %arg9[%c30, %c0_205], %133 {strides = array<i32>} : memref<50x384xbf16, #tpu.memory_space<vmem>>, vector<2x384xbf16>,
    %c0_206 = arith.constant 0 : index
    %c0_207 = arith.constant 0 : index
    %c0_208 = arith.constant 0 : index
    %c61_209 = arith.constant 61 : index
    %135 = vector.load %arg4[%c0_206, %c0_207, %c0_208, %c61_209] : memref<2x2x2x512xbf16, #tpu.memory_space<vmem>>, vector<1x1x2x384xbf16>
    %136 = vector.shape_cast %135 : vector<1x1x2x384xbf16> to vector<2x384xbf16>
    %c32 = arith.constant 32 : index
    %c0_210 = arith.constant 0 : index
    %137 = vector.load %arg9[%c32, %c0_210] : memref<50x384xbf16, #tpu.memory_space<vmem>>, vector<2x384xbf16>
    tpu.vector_store %arg9[%c32, %c0_210], %136 {strides = array<i32>} : memref<50x384xbf16, #tpu.memory_space<vmem>>, vector<2x384xbf16>,
    %c0_211 = arith.constant 0 : index
    %c0_212 = arith.constant 0 : index
    %c0_213 = arith.constant 0 : index
    %c62_214 = arith.constant 62 : index
    %138 = vector.load %arg4[%c0_211, %c0_212, %c0_213, %c62_214] : memref<2x2x2x512xbf16, #tpu.memory_space<vmem>>, vector<1x1x2x384xbf16>
    %139 = vector.shape_cast %138 : vector<1x1x2x384xbf16> to vector<2x384xbf16>
    %c34 = arith.constant 34 : index
    %c0_215 = arith.constant 0 : index
    %140 = vector.load %arg9[%c34, %c0_215] : memref<50x384xbf16, #tpu.memory_space<vmem>>, vector<2x384xbf16>
    tpu.vector_store %arg9[%c34, %c0_215], %139 {strides = array<i32>} : memref<50x384xbf16, #tpu.memory_space<vmem>>, vector<2x384xbf16>,
    %c0_216 = arith.constant 0 : index
    %c0_217 = arith.constant 0 : index
    %c0_218 = arith.constant 0 : index
    %c63_219 = arith.constant 63 : index
    %141 = vector.load %arg4[%c0_216, %c0_217, %c0_218, %c63_219] : memref<2x2x2x512xbf16, #tpu.memory_space<vmem>>, vector<1x1x2x384xbf16>
    %142 = vector.shape_cast %141 : vector<1x1x2x384xbf16> to vector<2x384xbf16>
    %c36 = arith.constant 36 : index
    %c0_220 = arith.constant 0 : index
    %143 = vector.load %arg9[%c36, %c0_220] : memref<50x384xbf16, #tpu.memory_space<vmem>>, vector<2x384xbf16>
    tpu.vector_store %arg9[%c36, %c0_220], %142 {strides = array<i32>} : memref<50x384xbf16, #tpu.memory_space<vmem>>, vector<2x384xbf16>,
    %c0_221 = arith.constant 0 : index
    %c0_222 = arith.constant 0 : index
    %c0_223 = arith.constant 0 : index
    %c64 = arith.constant 64 : index
    %144 = vector.load %arg4[%c0_221, %c0_222, %c0_223, %c64] : memref<2x2x2x512xbf16, #tpu.memory_space<vmem>>, vector<1x1x2x384xbf16>
    %145 = vector.shape_cast %144 : vector<1x1x2x384xbf16> to vector<2x384xbf16>
    %c38 = arith.constant 38 : index
    %c0_224 = arith.constant 0 : index
    %146 = vector.load %arg9[%c38, %c0_224] : memref<50x384xbf16, #tpu.memory_space<vmem>>, vector<2x384xbf16>
    tpu.vector_store %arg9[%c38, %c0_224], %145 {strides = array<i32>} : memref<50x384xbf16, #tpu.memory_space<vmem>>, vector<2x384xbf16>,
    %c0_225 = arith.constant 0 : index
    %c0_226 = arith.constant 0 : index
    %c0_227 = arith.constant 0 : index
    %c80 = arith.constant 80 : index
    %147 = vector.load %arg4[%c0_225, %c0_226, %c0_227, %c80] : memref<2x2x2x512xbf16, #tpu.memory_space<vmem>>, vector<1x1x2x384xbf16>
    %148 = vector.shape_cast %147 : vector<1x1x2x384xbf16> to vector<2x384xbf16>
    %c40_228 = arith.constant 40 : index
    %c0_229 = arith.constant 0 : index
    %149 = vector.load %arg9[%c40_228, %c0_229] : memref<50x384xbf16, #tpu.memory_space<vmem>>, vector<2x384xbf16>
    tpu.vector_store %arg9[%c40_228, %c0_229], %148 {strides = array<i32>} : memref<50x384xbf16, #tpu.memory_space<vmem>>, vector<2x384xbf16>,
    %c0_230 = arith.constant 0 : index
    %c0_231 = arith.constant 0 : index
    %c0_232 = arith.constant 0 : index
    %c81 = arith.constant 81 : index
    %150 = vector.load %arg4[%c0_230, %c0_231, %c0_232, %c81] : memref<2x2x2x512xbf16, #tpu.memory_space<vmem>>, vector<1x1x2x384xbf16>
    %151 = vector.shape_cast %150 : vector<1x1x2x384xbf16> to vector<2x384xbf16>
    %c42_233 = arith.constant 42 : index
    %c0_234 = arith.constant 0 : index
    %152 = vector.load %arg9[%c42_233, %c0_234] : memref<50x384xbf16, #tpu.memory_space<vmem>>, vector<2x384xbf16>
    tpu.vector_store %arg9[%c42_233, %c0_234], %151 {strides = array<i32>} : memref<50x384xbf16, #tpu.memory_space<vmem>>, vector<2x384xbf16>,
    %c0_235 = arith.constant 0 : index
    %c0_236 = arith.constant 0 : index
    %c0_237 = arith.constant 0 : index
    %c82 = arith.constant 82 : index
    %153 = vector.load %arg4[%c0_235, %c0_236, %c0_237, %c82] : memref<2x2x2x512xbf16, #tpu.memory_space<vmem>>, vector<1x1x2x384xbf16>
    %154 = vector.shape_cast %153 : vector<1x1x2x384xbf16> to vector<2x384xbf16>
    %c44_238 = arith.constant 44 : index
    %c0_239 = arith.constant 0 : index
    %155 = vector.load %arg9[%c44_238, %c0_239] : memref<50x384xbf16, #tpu.memory_space<vmem>>, vector<2x384xbf16>
    tpu.vector_store %arg9[%c44_238, %c0_239], %154 {strides = array<i32>} : memref<50x384xbf16, #tpu.memory_space<vmem>>, vector<2x384xbf16>,
    %c0_240 = arith.constant 0 : index
    %c0_241 = arith.constant 0 : index
    %c0_242 = arith.constant 0 : index
    %c83 = arith.constant 83 : index
    %156 = vector.load %arg4[%c0_240, %c0_241, %c0_242, %c83] : memref<2x2x2x512xbf16, #tpu.memory_space<vmem>>, vector<1x1x2x384xbf16>
    %157 = vector.shape_cast %156 : vector<1x1x2x384xbf16> to vector<2x384xbf16>
    %c46 = arith.constant 46 : index
    %c0_243 = arith.constant 0 : index
    %158 = vector.load %arg9[%c46, %c0_243] : memref<50x384xbf16, #tpu.memory_space<vmem>>, vector<2x384xbf16>
    tpu.vector_store %arg9[%c46, %c0_243], %157 {strides = array<i32>} : memref<50x384xbf16, #tpu.memory_space<vmem>>, vector<2x384xbf16>,
    %c0_244 = arith.constant 0 : index
    %c0_245 = arith.constant 0 : index
    %c0_246 = arith.constant 0 : index
    %c84 = arith.constant 84 : index
    %159 = vector.load %arg4[%c0_244, %c0_245, %c0_246, %c84] : memref<2x2x2x512xbf16, #tpu.memory_space<vmem>>, vector<1x1x2x384xbf16>
    %160 = vector.shape_cast %159 : vector<1x1x2x384xbf16> to vector<2x384xbf16>
    %c48 = arith.constant 48 : index
    %c0_247 = arith.constant 0 : index
    %161 = vector.load %arg9[%c48, %c0_247] : memref<50x384xbf16, #tpu.memory_space<vmem>>, vector<2x384xbf16>
    tpu.vector_store %arg9[%c48, %c0_247], %160 {strides = array<i32>} : memref<50x384xbf16, #tpu.memory_space<vmem>>, vector<2x384xbf16>,
    %c0_248 = arith.constant 0 : index
    %c0_249 = arith.constant 0 : index
    %c0_250 = arith.constant 0 : index
    %162 = vector.load %arg2[%c0_248, %c0_249, %c0_250] : memref<2x2x50xbf16, #tpu.memory_space<vmem>>, vector<1x2x50xbf16>
    %163 = vector.shape_cast %162 : vector<1x2x50xbf16> to vector<2x50xbf16>
    %c0_251 = arith.constant 0 : index
    %c0_252 = arith.constant 0 : index
    %164 = vector.load %arg9[%c0_251, %c0_252] : memref<50x384xbf16, #tpu.memory_space<vmem>>, vector<50x384xbf16>
    %cst_253 = arith.constant dense<0.000000e+00> : vector<2x384xf32>
    %165 = tpu.matmul %163, %164, %cst_253 {dimension_numbers = #tpu.dot_dimension_numbers<[1], [0], [0], [1], [0, 0, 1, 1], [], []>} : vector<2x50xbf16>, vector<50x384xbf16>, vector<2x384xf32> -> vector<2x384xf32>
    %c1_254 = arith.constant 1 : index
    %c0_255 = arith.constant 0 : index
    %c0_256 = arith.constant 0 : index
    %166 = vector.load %arg3[%c1_254, %c0_255, %c0_256] : memref<2x4x1xf32, #tpu.memory_space<vmem>>, vector<1x2x1xf32>
    %167 = vector.shape_cast %166 : vector<1x2x1xf32> to vector<2x1xf32>
    %168 = vector.broadcast %167 : vector<2x1xf32> to vector<2x384xf32>
    %169 = arith.addf %165, %168 : vector<2x384xf32>
    %c0_257 = arith.constant 0 : index
    %c0_258 = arith.constant 0 : index
    %170 = vector.load %arg8[%c0_257, %c0_258] : memref<4x384xf32, #tpu.memory_space<vmem>>, vector<2x384xf32>
    tpu.vector_store %arg8[%c0_257, %c0_258], %169 {strides = array<i32>} : memref<4x384xf32, #tpu.memory_space<vmem>>, vector<2x384xf32>,
    %c0_259 = arith.constant 0 : index
    %c1_260 = arith.constant 1 : index
    %c0_261 = arith.constant 0 : index
    %c0_262 = arith.constant 0 : index
    %171 = vector.load %arg4[%c0_259, %c1_260, %c0_261, %c0_262] : memref<2x2x2x512xbf16, #tpu.memory_space<vmem>>, vector<1x1x2x384xbf16>
    %172 = vector.shape_cast %171 : vector<1x1x2x384xbf16> to vector<2x384xbf16>
    %c0_263 = arith.constant 0 : index
    %c0_264 = arith.constant 0 : index
    %173 = vector.load %arg9[%c0_263, %c0_264] : memref<50x384xbf16, #tpu.memory_space<vmem>>, vector<2x384xbf16>
    tpu.vector_store %arg9[%c0_263, %c0_264], %172 {strides = array<i32>} : memref<50x384xbf16, #tpu.memory_space<vmem>>, vector<2x384xbf16>,
    %c0_265 = arith.constant 0 : index
    %c1_266 = arith.constant 1 : index
    %c0_267 = arith.constant 0 : index
    %c1_268 = arith.constant 1 : index
    %174 = vector.load %arg4[%c0_265, %c1_266, %c0_267, %c1_268] : memref<2x2x2x512xbf16, #tpu.memory_space<vmem>>, vector<1x1x2x384xbf16>
    %175 = vector.shape_cast %174 : vector<1x1x2x384xbf16> to vector<2x384xbf16>
    %c2_269 = arith.constant 2 : index
    %c0_270 = arith.constant 0 : index
    %176 = vector.load %arg9[%c2_269, %c0_270] : memref<50x384xbf16, #tpu.memory_space<vmem>>, vector<2x384xbf16>
    tpu.vector_store %arg9[%c2_269, %c0_270], %175 {strides = array<i32>} : memref<50x384xbf16, #tpu.memory_space<vmem>>, vector<2x384xbf16>,
    %c0_271 = arith.constant 0 : index
    %c1_272 = arith.constant 1 : index
    %c0_273 = arith.constant 0 : index
    %c2_274 = arith.constant 2 : index
    %177 = vector.load %arg4[%c0_271, %c1_272, %c0_273, %c2_274] : memref<2x2x2x512xbf16, #tpu.memory_space<vmem>>, vector<1x1x2x384xbf16>
    %178 = vector.shape_cast %177 : vector<1x1x2x384xbf16> to vector<2x384xbf16>
    %c4_275 = arith.constant 4 : index
    %c0_276 = arith.constant 0 : index
    %179 = vector.load %arg9[%c4_275, %c0_276] : memref<50x384xbf16, #tpu.memory_space<vmem>>, vector<2x384xbf16>
    tpu.vector_store %arg9[%c4_275, %c0_276], %178 {strides = array<i32>} : memref<50x384xbf16, #tpu.memory_space<vmem>>, vector<2x384xbf16>,
    %c0_277 = arith.constant 0 : index
    %c1_278 = arith.constant 1 : index
    %c0_279 = arith.constant 0 : index
    %c3_280 = arith.constant 3 : index
    %180 = vector.load %arg4[%c0_277, %c1_278, %c0_279, %c3_280] : memref<2x2x2x512xbf16, #tpu.memory_space<vmem>>, vector<1x1x2x384xbf16>
    %181 = vector.shape_cast %180 : vector<1x1x2x384xbf16> to vector<2x384xbf16>
    %c6_281 = arith.constant 6 : index
    %c0_282 = arith.constant 0 : index
    %182 = vector.load %arg9[%c6_281, %c0_282] : memref<50x384xbf16, #tpu.memory_space<vmem>>, vector<2x384xbf16>
    tpu.vector_store %arg9[%c6_281, %c0_282], %181 {strides = array<i32>} : memref<50x384xbf16, #tpu.memory_space<vmem>>, vector<2x384xbf16>,
    %c0_283 = arith.constant 0 : index
    %c1_284 = arith.constant 1 : index
    %c0_285 = arith.constant 0 : index
    %c4_286 = arith.constant 4 : index
    %183 = vector.load %arg4[%c0_283, %c1_284, %c0_285, %c4_286] : memref<2x2x2x512xbf16, #tpu.memory_space<vmem>>, vector<1x1x2x384xbf16>
    %184 = vector.shape_cast %183 : vector<1x1x2x384xbf16> to vector<2x384xbf16>
    %c8_287 = arith.constant 8 : index
    %c0_288 = arith.constant 0 : index
    %185 = vector.load %arg9[%c8_287, %c0_288] : memref<50x384xbf16, #tpu.memory_space<vmem>>, vector<2x384xbf16>
    tpu.vector_store %arg9[%c8_287, %c0_288], %184 {strides = array<i32>} : memref<50x384xbf16, #tpu.memory_space<vmem>>, vector<2x384xbf16>,
    %c0_289 = arith.constant 0 : index
    %c1_290 = arith.constant 1 : index
    %c0_291 = arith.constant 0 : index
    %c20_292 = arith.constant 20 : index
    %186 = vector.load %arg4[%c0_289, %c1_290, %c0_291, %c20_292] : memref<2x2x2x512xbf16, #tpu.memory_space<vmem>>, vector<1x1x2x384xbf16>
    %187 = vector.shape_cast %186 : vector<1x1x2x384xbf16> to vector<2x384xbf16>
    %c10_293 = arith.constant 10 : index
    %c0_294 = arith.constant 0 : index
    %188 = vector.load %arg9[%c10_293, %c0_294] : memref<50x384xbf16, #tpu.memory_space<vmem>>, vector<2x384xbf16>
    tpu.vector_store %arg9[%c10_293, %c0_294], %187 {strides = array<i32>} : memref<50x384xbf16, #tpu.memory_space<vmem>>, vector<2x384xbf16>,
    %c0_295 = arith.constant 0 : index
    %c1_296 = arith.constant 1 : index
    %c0_297 = arith.constant 0 : index
    %c21_298 = arith.constant 21 : index
    %189 = vector.load %arg4[%c0_295, %c1_296, %c0_297, %c21_298] : memref<2x2x2x512xbf16, #tpu.memory_space<vmem>>, vector<1x1x2x384xbf16>
    %190 = vector.shape_cast %189 : vector<1x1x2x384xbf16> to vector<2x384xbf16>
    %c12_299 = arith.constant 12 : index
    %c0_300 = arith.constant 0 : index
    %191 = vector.load %arg9[%c12_299, %c0_300] : memref<50x384xbf16, #tpu.memory_space<vmem>>, vector<2x384xbf16>
    tpu.vector_store %arg9[%c12_299, %c0_300], %190 {strides = array<i32>} : memref<50x384xbf16, #tpu.memory_space<vmem>>, vector<2x384xbf16>,
    %c0_301 = arith.constant 0 : index
    %c1_302 = arith.constant 1 : index
    %c0_303 = arith.constant 0 : index
    %c22_304 = arith.constant 22 : index
    %192 = vector.load %arg4[%c0_301, %c1_302, %c0_303, %c22_304] : memref<2x2x2x512xbf16, #tpu.memory_space<vmem>>, vector<1x1x2x384xbf16>
    %193 = vector.shape_cast %192 : vector<1x1x2x384xbf16> to vector<2x384xbf16>
    %c14_305 = arith.constant 14 : index
    %c0_306 = arith.constant 0 : index
    %194 = vector.load %arg9[%c14_305, %c0_306] : memref<50x384xbf16, #tpu.memory_space<vmem>>, vector<2x384xbf16>
    tpu.vector_store %arg9[%c14_305, %c0_306], %193 {strides = array<i32>} : memref<50x384xbf16, #tpu.memory_space<vmem>>, vector<2x384xbf16>,
    %c0_307 = arith.constant 0 : index
    %c1_308 = arith.constant 1 : index
    %c0_309 = arith.constant 0 : index
    %c23_310 = arith.constant 23 : index
    %195 = vector.load %arg4[%c0_307, %c1_308, %c0_309, %c23_310] : memref<2x2x2x512xbf16, #tpu.memory_space<vmem>>, vector<1x1x2x384xbf16>
    %196 = vector.shape_cast %195 : vector<1x1x2x384xbf16> to vector<2x384xbf16>
    %c16_311 = arith.constant 16 : index
    %c0_312 = arith.constant 0 : index
    %197 = vector.load %arg9[%c16_311, %c0_312] : memref<50x384xbf16, #tpu.memory_space<vmem>>, vector<2x384xbf16>
    tpu.vector_store %arg9[%c16_311, %c0_312], %196 {strides = array<i32>} : memref<50x384xbf16, #tpu.memory_space<vmem>>, vector<2x384xbf16>,
    %c0_313 = arith.constant 0 : index
    %c1_314 = arith.constant 1 : index
    %c0_315 = arith.constant 0 : index
    %c24_316 = arith.constant 24 : index
    %198 = vector.load %arg4[%c0_313, %c1_314, %c0_315, %c24_316] : memref<2x2x2x512xbf16, #tpu.memory_space<vmem>>, vector<1x1x2x384xbf16>
    %199 = vector.shape_cast %198 : vector<1x1x2x384xbf16> to vector<2x384xbf16>
    %c18_317 = arith.constant 18 : index
    %c0_318 = arith.constant 0 : index
    %200 = vector.load %arg9[%c18_317, %c0_318] : memref<50x384xbf16, #tpu.memory_space<vmem>>, vector<2x384xbf16>
    tpu.vector_store %arg9[%c18_317, %c0_318], %199 {strides = array<i32>} : memref<50x384xbf16, #tpu.memory_space<vmem>>, vector<2x384xbf16>,
    %c0_319 = arith.constant 0 : index
    %c1_320 = arith.constant 1 : index
    %c0_321 = arith.constant 0 : index
    %c40_322 = arith.constant 40 : index
    %201 = vector.load %arg4[%c0_319, %c1_320, %c0_321, %c40_322] : memref<2x2x2x512xbf16, #tpu.memory_space<vmem>>, vector<1x1x2x384xbf16>
    %202 = vector.shape_cast %201 : vector<1x1x2x384xbf16> to vector<2x384xbf16>
    %c20_323 = arith.constant 20 : index
    %c0_324 = arith.constant 0 : index
    %203 = vector.load %arg9[%c20_323, %c0_324] : memref<50x384xbf16, #tpu.memory_space<vmem>>, vector<2x384xbf16>
    tpu.vector_store %arg9[%c20_323, %c0_324], %202 {strides = array<i32>} : memref<50x384xbf16, #tpu.memory_space<vmem>>, vector<2x384xbf16>,
    %c0_325 = arith.constant 0 : index
    %c1_326 = arith.constant 1 : index
    %c0_327 = arith.constant 0 : index
    %c41_328 = arith.constant 41 : index
    %204 = vector.load %arg4[%c0_325, %c1_326, %c0_327, %c41_328] : memref<2x2x2x512xbf16, #tpu.memory_space<vmem>>, vector<1x1x2x384xbf16>
    %205 = vector.shape_cast %204 : vector<1x1x2x384xbf16> to vector<2x384xbf16>
    %c22_329 = arith.constant 22 : index
    %c0_330 = arith.constant 0 : index
    %206 = vector.load %arg9[%c22_329, %c0_330] : memref<50x384xbf16, #tpu.memory_space<vmem>>, vector<2x384xbf16>
    tpu.vector_store %arg9[%c22_329, %c0_330], %205 {strides = array<i32>} : memref<50x384xbf16, #tpu.memory_space<vmem>>, vector<2x384xbf16>,
    %c0_331 = arith.constant 0 : index
    %c1_332 = arith.constant 1 : index
    %c0_333 = arith.constant 0 : index
    %c42_334 = arith.constant 42 : index
    %207 = vector.load %arg4[%c0_331, %c1_332, %c0_333, %c42_334] : memref<2x2x2x512xbf16, #tpu.memory_space<vmem>>, vector<1x1x2x384xbf16>
    %208 = vector.shape_cast %207 : vector<1x1x2x384xbf16> to vector<2x384xbf16>
    %c24_335 = arith.constant 24 : index
    %c0_336 = arith.constant 0 : index
    %209 = vector.load %arg9[%c24_335, %c0_336] : memref<50x384xbf16, #tpu.memory_space<vmem>>, vector<2x384xbf16>
    tpu.vector_store %arg9[%c24_335, %c0_336], %208 {strides = array<i32>} : memref<50x384xbf16, #tpu.memory_space<vmem>>, vector<2x384xbf16>,
    %c0_337 = arith.constant 0 : index
    %c1_338 = arith.constant 1 : index
    %c0_339 = arith.constant 0 : index
    %c43_340 = arith.constant 43 : index
    %210 = vector.load %arg4[%c0_337, %c1_338, %c0_339, %c43_340] : memref<2x2x2x512xbf16, #tpu.memory_space<vmem>>, vector<1x1x2x384xbf16>
    %211 = vector.shape_cast %210 : vector<1x1x2x384xbf16> to vector<2x384xbf16>
    %c26_341 = arith.constant 26 : index
    %c0_342 = arith.constant 0 : index
    %212 = vector.load %arg9[%c26_341, %c0_342] : memref<50x384xbf16, #tpu.memory_space<vmem>>, vector<2x384xbf16>
    tpu.vector_store %arg9[%c26_341, %c0_342], %211 {strides = array<i32>} : memref<50x384xbf16, #tpu.memory_space<vmem>>, vector<2x384xbf16>,
    %c0_343 = arith.constant 0 : index
    %c1_344 = arith.constant 1 : index
    %c0_345 = arith.constant 0 : index
    %c44_346 = arith.constant 44 : index
    %213 = vector.load %arg4[%c0_343, %c1_344, %c0_345, %c44_346] : memref<2x2x2x512xbf16, #tpu.memory_space<vmem>>, vector<1x1x2x384xbf16>
    %214 = vector.shape_cast %213 : vector<1x1x2x384xbf16> to vector<2x384xbf16>
    %c28_347 = arith.constant 28 : index
    %c0_348 = arith.constant 0 : index
    %215 = vector.load %arg9[%c28_347, %c0_348] : memref<50x384xbf16, #tpu.memory_space<vmem>>, vector<2x384xbf16>
    tpu.vector_store %arg9[%c28_347, %c0_348], %214 {strides = array<i32>} : memref<50x384xbf16, #tpu.memory_space<vmem>>, vector<2x384xbf16>,
    %c0_349 = arith.constant 0 : index
    %c1_350 = arith.constant 1 : index
    %c0_351 = arith.constant 0 : index
    %c60_352 = arith.constant 60 : index
    %216 = vector.load %arg4[%c0_349, %c1_350, %c0_351, %c60_352] : memref<2x2x2x512xbf16, #tpu.memory_space<vmem>>, vector<1x1x2x384xbf16>
    %217 = vector.shape_cast %216 : vector<1x1x2x384xbf16> to vector<2x384xbf16>
    %c30_353 = arith.constant 30 : index
    %c0_354 = arith.constant 0 : index
    %218 = vector.load %arg9[%c30_353, %c0_354] : memref<50x384xbf16, #tpu.memory_space<vmem>>, vector<2x384xbf16>
    tpu.vector_store %arg9[%c30_353, %c0_354], %217 {strides = array<i32>} : memref<50x384xbf16, #tpu.memory_space<vmem>>, vector<2x384xbf16>,
    %c0_355 = arith.constant 0 : index
    %c1_356 = arith.constant 1 : index
    %c0_357 = arith.constant 0 : index
    %c61_358 = arith.constant 61 : index
    %219 = vector.load %arg4[%c0_355, %c1_356, %c0_357, %c61_358] : memref<2x2x2x512xbf16, #tpu.memory_space<vmem>>, vector<1x1x2x384xbf16>
    %220 = vector.shape_cast %219 : vector<1x1x2x384xbf16> to vector<2x384xbf16>
    %c32_359 = arith.constant 32 : index
    %c0_360 = arith.constant 0 : index
    %221 = vector.load %arg9[%c32_359, %c0_360] : memref<50x384xbf16, #tpu.memory_space<vmem>>, vector<2x384xbf16>
    tpu.vector_store %arg9[%c32_359, %c0_360], %220 {strides = array<i32>} : memref<50x384xbf16, #tpu.memory_space<vmem>>, vector<2x384xbf16>,
    %c0_361 = arith.constant 0 : index
    %c1_362 = arith.constant 1 : index
    %c0_363 = arith.constant 0 : index
    %c62_364 = arith.constant 62 : index
    %222 = vector.load %arg4[%c0_361, %c1_362, %c0_363, %c62_364] : memref<2x2x2x512xbf16, #tpu.memory_space<vmem>>, vector<1x1x2x384xbf16>
    %223 = vector.shape_cast %222 : vector<1x1x2x384xbf16> to vector<2x384xbf16>
    %c34_365 = arith.constant 34 : index
    %c0_366 = arith.constant 0 : index
    %224 = vector.load %arg9[%c34_365, %c0_366] : memref<50x384xbf16, #tpu.memory_space<vmem>>, vector<2x384xbf16>
    tpu.vector_store %arg9[%c34_365, %c0_366], %223 {strides = array<i32>} : memref<50x384xbf16, #tpu.memory_space<vmem>>, vector<2x384xbf16>,
    %c0_367 = arith.constant 0 : index
    %c1_368 = arith.constant 1 : index
    %c0_369 = arith.constant 0 : index
    %c63_370 = arith.constant 63 : index
    %225 = vector.load %arg4[%c0_367, %c1_368, %c0_369, %c63_370] : memref<2x2x2x512xbf16, #tpu.memory_space<vmem>>, vector<1x1x2x384xbf16>
    %226 = vector.shape_cast %225 : vector<1x1x2x384xbf16> to vector<2x384xbf16>
    %c36_371 = arith.constant 36 : index
    %c0_372 = arith.constant 0 : index
    %227 = vector.load %arg9[%c36_371, %c0_372] : memref<50x384xbf16, #tpu.memory_space<vmem>>, vector<2x384xbf16>
    tpu.vector_store %arg9[%c36_371, %c0_372], %226 {strides = array<i32>} : memref<50x384xbf16, #tpu.memory_space<vmem>>, vector<2x384xbf16>,
    %c0_373 = arith.constant 0 : index
    %c1_374 = arith.constant 1 : index
    %c0_375 = arith.constant 0 : index
    %c64_376 = arith.constant 64 : index
    %228 = vector.load %arg4[%c0_373, %c1_374, %c0_375, %c64_376] : memref<2x2x2x512xbf16, #tpu.memory_space<vmem>>, vector<1x1x2x384xbf16>
    %229 = vector.shape_cast %228 : vector<1x1x2x384xbf16> to vector<2x384xbf16>
    %c38_377 = arith.constant 38 : index
    %c0_378 = arith.constant 0 : index
    %230 = vector.load %arg9[%c38_377, %c0_378] : memref<50x384xbf16, #tpu.memory_space<vmem>>, vector<2x384xbf16>
    tpu.vector_store %arg9[%c38_377, %c0_378], %229 {strides = array<i32>} : memref<50x384xbf16, #tpu.memory_space<vmem>>, vector<2x384xbf16>,
    %c0_379 = arith.constant 0 : index
    %c1_380 = arith.constant 1 : index
    %c0_381 = arith.constant 0 : index
    %c80_382 = arith.constant 80 : index
    %231 = vector.load %arg4[%c0_379, %c1_380, %c0_381, %c80_382] : memref<2x2x2x512xbf16, #tpu.memory_space<vmem>>, vector<1x1x2x384xbf16>
    %232 = vector.shape_cast %231 : vector<1x1x2x384xbf16> to vector<2x384xbf16>
    %c40_383 = arith.constant 40 : index
    %c0_384 = arith.constant 0 : index
    %233 = vector.load %arg9[%c40_383, %c0_384] : memref<50x384xbf16, #tpu.memory_space<vmem>>, vector<2x384xbf16>
    tpu.vector_store %arg9[%c40_383, %c0_384], %232 {strides = array<i32>} : memref<50x384xbf16, #tpu.memory_space<vmem>>, vector<2x384xbf16>,
    %c0_385 = arith.constant 0 : index
    %c1_386 = arith.constant 1 : index
    %c0_387 = arith.constant 0 : index
    %c81_388 = arith.constant 81 : index
    %234 = vector.load %arg4[%c0_385, %c1_386, %c0_387, %c81_388] : memref<2x2x2x512xbf16, #tpu.memory_space<vmem>>, vector<1x1x2x384xbf16>
    %235 = vector.shape_cast %234 : vector<1x1x2x384xbf16> to vector<2x384xbf16>
    %c42_389 = arith.constant 42 : index
    %c0_390 = arith.constant 0 : index
    %236 = vector.load %arg9[%c42_389, %c0_390] : memref<50x384xbf16, #tpu.memory_space<vmem>>, vector<2x384xbf16>
    tpu.vector_store %arg9[%c42_389, %c0_390], %235 {strides = array<i32>} : memref<50x384xbf16, #tpu.memory_space<vmem>>, vector<2x384xbf16>,
    %c0_391 = arith.constant 0 : index
    %c1_392 = arith.constant 1 : index
    %c0_393 = arith.constant 0 : index
    %c82_394 = arith.constant 82 : index
    %237 = vector.load %arg4[%c0_391, %c1_392, %c0_393, %c82_394] : memref<2x2x2x512xbf16, #tpu.memory_space<vmem>>, vector<1x1x2x384xbf16>
    %238 = vector.shape_cast %237 : vector<1x1x2x384xbf16> to vector<2x384xbf16>
    %c44_395 = arith.constant 44 : index
    %c0_396 = arith.constant 0 : index
    %239 = vector.load %arg9[%c44_395, %c0_396] : memref<50x384xbf16, #tpu.memory_space<vmem>>, vector<2x384xbf16>
    tpu.vector_store %arg9[%c44_395, %c0_396], %238 {strides = array<i32>} : memref<50x384xbf16, #tpu.memory_space<vmem>>, vector<2x384xbf16>,
    %c0_397 = arith.constant 0 : index
    %c1_398 = arith.constant 1 : index
    %c0_399 = arith.constant 0 : index
    %c83_400 = arith.constant 83 : index
    %240 = vector.load %arg4[%c0_397, %c1_398, %c0_399, %c83_400] : memref<2x2x2x512xbf16, #tpu.memory_space<vmem>>, vector<1x1x2x384xbf16>
    %241 = vector.shape_cast %240 : vector<1x1x2x384xbf16> to vector<2x384xbf16>
    %c46_401 = arith.constant 46 : index
    %c0_402 = arith.constant 0 : index
    %242 = vector.load %arg9[%c46_401, %c0_402] : memref<50x384xbf16, #tpu.memory_space<vmem>>, vector<2x384xbf16>
    tpu.vector_store %arg9[%c46_401, %c0_402], %241 {strides = array<i32>} : memref<50x384xbf16, #tpu.memory_space<vmem>>, vector<2x384xbf16>,
    %c0_403 = arith.constant 0 : index
    %c1_404 = arith.constant 1 : index
    %c0_405 = arith.constant 0 : index
    %c84_406 = arith.constant 84 : index
    %243 = vector.load %arg4[%c0_403, %c1_404, %c0_405, %c84_406] : memref<2x2x2x512xbf16, #tpu.memory_space<vmem>>, vector<1x1x2x384xbf16>
    %244 = vector.shape_cast %243 : vector<1x1x2x384xbf16> to vector<2x384xbf16>
    %c48_407 = arith.constant 48 : index
    %c0_408 = arith.constant 0 : index
    %245 = vector.load %arg9[%c48_407, %c0_408] : memref<50x384xbf16, #tpu.memory_space<vmem>>, vector<2x384xbf16>
    tpu.vector_store %arg9[%c48_407, %c0_408], %244 {strides = array<i32>} : memref<50x384xbf16, #tpu.memory_space<vmem>>, vector<2x384xbf16>,
    %c1_409 = arith.constant 1 : index
    %c0_410 = arith.constant 0 : index
    %c0_411 = arith.constant 0 : index
    %246 = vector.load %arg2[%c1_409, %c0_410, %c0_411] : memref<2x2x50xbf16, #tpu.memory_space<vmem>>, vector<1x2x50xbf16>
    %247 = vector.shape_cast %246 : vector<1x2x50xbf16> to vector<2x50xbf16>
    %c0_412 = arith.constant 0 : index
    %c0_413 = arith.constant 0 : index
    %248 = vector.load %arg9[%c0_412, %c0_413] : memref<50x384xbf16, #tpu.memory_space<vmem>>, vector<50x384xbf16>
    %cst_414 = arith.constant dense<0.000000e+00> : vector<2x384xf32>
    %249 = tpu.matmul %247, %248, %cst_414 {dimension_numbers = #tpu.dot_dimension_numbers<[1], [0], [0], [1], [0, 0, 1, 1], [], []>} : vector<2x50xbf16>, vector<50x384xbf16>, vector<2x384xf32> -> vector<2x384xf32>
    %c1_415 = arith.constant 1 : index
    %c2_416 = arith.constant 2 : index
    %c0_417 = arith.constant 0 : index
    %250 = vector.load %arg3[%c1_415, %c2_416, %c0_417] : memref<2x4x1xf32, #tpu.memory_space<vmem>>, vector<1x2x1xf32>
    %251 = vector.shape_cast %250 : vector<1x2x1xf32> to vector<2x1xf32>
    %252 = vector.broadcast %251 : vector<2x1xf32> to vector<2x384xf32>
    %253 = arith.addf %249, %252 : vector<2x384xf32>
    %c2_418 = arith.constant 2 : index
    %c0_419 = arith.constant 0 : index
    %254 = vector.load %arg8[%c2_418, %c0_419] : memref<4x384xf32, #tpu.memory_space<vmem>>, vector<2x384xf32>
    tpu.vector_store %arg8[%c2_418, %c0_419], %253 {strides = array<i32>} : memref<4x384xf32, #tpu.memory_space<vmem>>, vector<2x384xf32>,
    %c0_420 = arith.constant 0 : index
    %c0_421 = arith.constant 0 : index
    %255 = vector.load %arg8[%c0_420, %c0_421] : memref<4x384xf32, #tpu.memory_space<vmem>>, vector<4x384xf32>
    %256 = arith.truncf %255 : vector<4x384xf32> to vector<4x384xbf16>
    %c0_422 = arith.constant 0 : index
    %c1_423 = arith.constant 1 : index
    %c0_424 = arith.constant 0 : index
    %c0_425 = arith.constant 0 : index
    %257 = vector.load %arg6[%c0_422, %c1_423, %c0_424, %c0_425] : memref<2x2x4x384xbf16, #tpu.memory_space<vmem>>, vector<1x1x4x384xbf16>
    %258 = vector.shape_cast %257 : vector<1x1x4x384xbf16> to vector<4x384xbf16>
    %259 = vector.shape_cast %256 : vector<4x384xbf16> to vector<1x1x4x384xbf16>
    tpu.vector_store %arg6[%c0_422, %c1_423, %c0_424, %c0_425], %259 {strides = array<i32>} : memref<2x2x4x384xbf16, #tpu.memory_space<vmem>>, vector<1x1x4x384xbf16>,
    %260 = arith.mulf %255, %2 : vector<4x384xf32>
    %cst_426 = arith.constant dense<0.000000e+00> : vector<4xf32>
    %261 = vector.multi_reduction <add>, %260, %cst_426 [1] : vector<4x384xf32> to vector<4xf32>
    %262 = vector.shape_cast %261 : vector<4xf32> to vector<4x1xf32>
    %263 = arith.mulf %260, %255 : vector<4x384xf32>
    %cst_427 = arith.constant dense<0.000000e+00> : vector<4xf32>
    %264 = vector.multi_reduction <add>, %263, %cst_427 [1] : vector<4x384xf32> to vector<4xf32>
    %265 = vector.shape_cast %264 : vector<4xf32> to vector<4x1xf32>
    %266 = tpu.concatenate %262, %265 in 1 : vector<4x1xf32>, vector<4x1xf32> -> vector<4x2xf32>
    %c1_428 = arith.constant 1 : index
    %c0_429 = arith.constant 0 : index
    %c0_430 = arith.constant 0 : index
    %c21_431 = arith.constant 21 : index
    %267 = vector.load %arg4[%c1_428, %c0_429, %c0_430, %c21_431] : memref<2x2x2x512xbf16, #tpu.memory_space<vmem>>, vector<1x1x2x384xbf16>
    %268 = vector.shape_cast %267 : vector<1x1x2x384xbf16> to vector<2x384xbf16>
    %c0_432 = arith.constant 0 : index
    %c0_433 = arith.constant 0 : index
    %269 = vector.load %arg9[%c0_432, %c0_433] : memref<50x384xbf16, #tpu.memory_space<vmem>>, vector<2x384xbf16>
    tpu.vector_store %arg9[%c0_432, %c0_433], %268 {strides = array<i32>} : memref<50x384xbf16, #tpu.memory_space<vmem>>, vector<2x384xbf16>,
    %c1_434 = arith.constant 1 : index
    %c0_435 = arith.constant 0 : index
    %c0_436 = arith.constant 0 : index
    %c22_437 = arith.constant 22 : index
    %270 = vector.load %arg4[%c1_434, %c0_435, %c0_436, %c22_437] : memref<2x2x2x512xbf16, #tpu.memory_space<vmem>>, vector<1x1x2x384xbf16>
    %271 = vector.shape_cast %270 : vector<1x1x2x384xbf16> to vector<2x384xbf16>
    %c2_438 = arith.constant 2 : index
    %c0_439 = arith.constant 0 : index
    %272 = vector.load %arg9[%c2_438, %c0_439] : memref<50x384xbf16, #tpu.memory_space<vmem>>, vector<2x384xbf16>
    tpu.vector_store %arg9[%c2_438, %c0_439], %271 {strides = array<i32>} : memref<50x384xbf16, #tpu.memory_space<vmem>>, vector<2x384xbf16>,
    %c1_440 = arith.constant 1 : index
    %c0_441 = arith.constant 0 : index
    %c0_442 = arith.constant 0 : index
    %c23_443 = arith.constant 23 : index
    %273 = vector.load %arg4[%c1_440, %c0_441, %c0_442, %c23_443] : memref<2x2x2x512xbf16, #tpu.memory_space<vmem>>, vector<1x1x2x384xbf16>
    %274 = vector.shape_cast %273 : vector<1x1x2x384xbf16> to vector<2x384xbf16>
    %c4_444 = arith.constant 4 : index
    %c0_445 = arith.constant 0 : index
    %275 = vector.load %arg9[%c4_444, %c0_445] : memref<50x384xbf16, #tpu.memory_space<vmem>>, vector<2x384xbf16>
    tpu.vector_store %arg9[%c4_444, %c0_445], %274 {strides = array<i32>} : memref<50x384xbf16, #tpu.memory_space<vmem>>, vector<2x384xbf16>,
    %c1_446 = arith.constant 1 : index
    %c0_447 = arith.constant 0 : index
    %c0_448 = arith.constant 0 : index
    %c41_449 = arith.constant 41 : index
    %276 = vector.load %arg4[%c1_446, %c0_447, %c0_448, %c41_449] : memref<2x2x2x512xbf16, #tpu.memory_space<vmem>>, vector<1x1x2x384xbf16>
    %277 = vector.shape_cast %276 : vector<1x1x2x384xbf16> to vector<2x384xbf16>
    %c6_450 = arith.constant 6 : index
    %c0_451 = arith.constant 0 : index
    %278 = vector.load %arg9[%c6_450, %c0_451] : memref<50x384xbf16, #tpu.memory_space<vmem>>, vector<2x384xbf16>
    tpu.vector_store %arg9[%c6_450, %c0_451], %277 {strides = array<i32>} : memref<50x384xbf16, #tpu.memory_space<vmem>>, vector<2x384xbf16>,
    %c1_452 = arith.constant 1 : index
    %c0_453 = arith.constant 0 : index
    %c0_454 = arith.constant 0 : index
    %c42_455 = arith.constant 42 : index
    %279 = vector.load %arg4[%c1_452, %c0_453, %c0_454, %c42_455] : memref<2x2x2x512xbf16, #tpu.memory_space<vmem>>, vector<1x1x2x384xbf16>
    %280 = vector.shape_cast %279 : vector<1x1x2x384xbf16> to vector<2x384xbf16>
    %c8_456 = arith.constant 8 : index
    %c0_457 = arith.constant 0 : index
    %281 = vector.load %arg9[%c8_456, %c0_457] : memref<50x384xbf16, #tpu.memory_space<vmem>>, vector<2x384xbf16>
    tpu.vector_store %arg9[%c8_456, %c0_457], %280 {strides = array<i32>} : memref<50x384xbf16, #tpu.memory_space<vmem>>, vector<2x384xbf16>,
    %c1_458 = arith.constant 1 : index
    %c0_459 = arith.constant 0 : index
    %c0_460 = arith.constant 0 : index
    %c43_461 = arith.constant 43 : index
    %282 = vector.load %arg4[%c1_458, %c0_459, %c0_460, %c43_461] : memref<2x2x2x512xbf16, #tpu.memory_space<vmem>>, vector<1x1x2x384xbf16>
    %283 = vector.shape_cast %282 : vector<1x1x2x384xbf16> to vector<2x384xbf16>
    %c10_462 = arith.constant 10 : index
    %c0_463 = arith.constant 0 : index
    %284 = vector.load %arg9[%c10_462, %c0_463] : memref<50x384xbf16, #tpu.memory_space<vmem>>, vector<2x384xbf16>
    tpu.vector_store %arg9[%c10_462, %c0_463], %283 {strides = array<i32>} : memref<50x384xbf16, #tpu.memory_space<vmem>>, vector<2x384xbf16>,
    %c1_464 = arith.constant 1 : index
    %c0_465 = arith.constant 0 : index
    %c0_466 = arith.constant 0 : index
    %c61_467 = arith.constant 61 : index
    %285 = vector.load %arg4[%c1_464, %c0_465, %c0_466, %c61_467] : memref<2x2x2x512xbf16, #tpu.memory_space<vmem>>, vector<1x1x2x384xbf16>
    %286 = vector.shape_cast %285 : vector<1x1x2x384xbf16> to vector<2x384xbf16>
    %c12_468 = arith.constant 12 : index
    %c0_469 = arith.constant 0 : index
    %287 = vector.load %arg9[%c12_468, %c0_469] : memref<50x384xbf16, #tpu.memory_space<vmem>>, vector<2x384xbf16>
    tpu.vector_store %arg9[%c12_468, %c0_469], %286 {strides = array<i32>} : memref<50x384xbf16, #tpu.memory_space<vmem>>, vector<2x384xbf16>,
    %c1_470 = arith.constant 1 : index
    %c0_471 = arith.constant 0 : index
    %c0_472 = arith.constant 0 : index
    %c62_473 = arith.constant 62 : index
    %288 = vector.load %arg4[%c1_470, %c0_471, %c0_472, %c62_473] : memref<2x2x2x512xbf16, #tpu.memory_space<vmem>>, vector<1x1x2x384xbf16>
    %289 = vector.shape_cast %288 : vector<1x1x2x384xbf16> to vector<2x384xbf16>
    %c14_474 = arith.constant 14 : index
    %c0_475 = arith.constant 0 : index
    %290 = vector.load %arg9[%c14_474, %c0_475] : memref<50x384xbf16, #tpu.memory_space<vmem>>, vector<2x384xbf16>
    tpu.vector_store %arg9[%c14_474, %c0_475], %289 {strides = array<i32>} : memref<50x384xbf16, #tpu.memory_space<vmem>>, vector<2x384xbf16>,
    %c1_476 = arith.constant 1 : index
    %c0_477 = arith.constant 0 : index
    %c0_478 = arith.constant 0 : index
    %c63_479 = arith.constant 63 : index
    %291 = vector.load %arg4[%c1_476, %c0_477, %c0_478, %c63_479] : memref<2x2x2x512xbf16, #tpu.memory_space<vmem>>, vector<1x1x2x384xbf16>
    %292 = vector.shape_cast %291 : vector<1x1x2x384xbf16> to vector<2x384xbf16>
    %c16_480 = arith.constant 16 : index
    %c0_481 = arith.constant 0 : index
    %293 = vector.load %arg9[%c16_480, %c0_481] : memref<50x384xbf16, #tpu.memory_space<vmem>>, vector<2x384xbf16>
    tpu.vector_store %arg9[%c16_480, %c0_481], %292 {strides = array<i32>} : memref<50x384xbf16, #tpu.memory_space<vmem>>, vector<2x384xbf16>,
    %c0_482 = arith.constant 0 : index
    %c0_483 = arith.constant 0 : index
    %c0_484 = arith.constant 0 : index
    %294 = vector.load %arg1[%c0_482, %c0_483, %c0_484] : memref<2x2x18xbf16, #tpu.memory_space<vmem>>, vector<1x2x18xbf16>
    %295 = vector.shape_cast %294 : vector<1x2x18xbf16> to vector<2x18xbf16>
    %c0_485 = arith.constant 0 : index
    %c0_486 = arith.constant 0 : index
    %296 = vector.load %arg9[%c0_485, %c0_486] : memref<50x384xbf16, #tpu.memory_space<vmem>>, vector<18x384xbf16>
    %cst_487 = arith.constant dense<0.000000e+00> : vector<2x384xf32>
    %297 = tpu.matmul %295, %296, %cst_487 {dimension_numbers = #tpu.dot_dimension_numbers<[1], [0], [0], [1], [0, 0, 1, 1], [], []>} : vector<2x18xbf16>, vector<18x384xbf16>, vector<2x384xf32> -> vector<2x384xf32>
    %c0_488 = arith.constant 0 : index
    %c0_489 = arith.constant 0 : index
    %c0_490 = arith.constant 0 : index
    %298 = vector.load %arg3[%c0_488, %c0_489, %c0_490] : memref<2x4x1xf32, #tpu.memory_space<vmem>>, vector<1x2x1xf32>
    %299 = vector.shape_cast %298 : vector<1x2x1xf32> to vector<2x1xf32>
    %300 = vector.broadcast %299 : vector<2x1xf32> to vector<2x384xf32>
    %301 = arith.addf %297, %300 : vector<2x384xf32>
    %c0_491 = arith.constant 0 : index
    %c0_492 = arith.constant 0 : index
    %302 = vector.load %arg8[%c0_491, %c0_492] : memref<4x384xf32, #tpu.memory_space<vmem>>, vector<2x384xf32>
    tpu.vector_store %arg8[%c0_491, %c0_492], %301 {strides = array<i32>} : memref<4x384xf32, #tpu.memory_space<vmem>>, vector<2x384xf32>,
    %c1_493 = arith.constant 1 : index
    %c1_494 = arith.constant 1 : index
    %c0_495 = arith.constant 0 : index
    %c21_496 = arith.constant 21 : index
    %303 = vector.load %arg4[%c1_493, %c1_494, %c0_495, %c21_496] : memref<2x2x2x512xbf16, #tpu.memory_space<vmem>>, vector<1x1x2x384xbf16>
    %304 = vector.shape_cast %303 : vector<1x1x2x384xbf16> to vector<2x384xbf16>
    %c0_497 = arith.constant 0 : index
    %c0_498 = arith.constant 0 : index
    %305 = vector.load %arg9[%c0_497, %c0_498] : memref<50x384xbf16, #tpu.memory_space<vmem>>, vector<2x384xbf16>
    tpu.vector_store %arg9[%c0_497, %c0_498], %304 {strides = array<i32>} : memref<50x384xbf16, #tpu.memory_space<vmem>>, vector<2x384xbf16>,
    %c1_499 = arith.constant 1 : index
    %c1_500 = arith.constant 1 : index
    %c0_501 = arith.constant 0 : index
    %c22_502 = arith.constant 22 : index
    %306 = vector.load %arg4[%c1_499, %c1_500, %c0_501, %c22_502] : memref<2x2x2x512xbf16, #tpu.memory_space<vmem>>, vector<1x1x2x384xbf16>
    %307 = vector.shape_cast %306 : vector<1x1x2x384xbf16> to vector<2x384xbf16>
    %c2_503 = arith.constant 2 : index
    %c0_504 = arith.constant 0 : index
    %308 = vector.load %arg9[%c2_503, %c0_504] : memref<50x384xbf16, #tpu.memory_space<vmem>>, vector<2x384xbf16>
    tpu.vector_store %arg9[%c2_503, %c0_504], %307 {strides = array<i32>} : memref<50x384xbf16, #tpu.memory_space<vmem>>, vector<2x384xbf16>,
    %c1_505 = arith.constant 1 : index
    %c1_506 = arith.constant 1 : index
    %c0_507 = arith.constant 0 : index
    %c23_508 = arith.constant 23 : index
    %309 = vector.load %arg4[%c1_505, %c1_506, %c0_507, %c23_508] : memref<2x2x2x512xbf16, #tpu.memory_space<vmem>>, vector<1x1x2x384xbf16>
    %310 = vector.shape_cast %309 : vector<1x1x2x384xbf16> to vector<2x384xbf16>
    %c4_509 = arith.constant 4 : index
    %c0_510 = arith.constant 0 : index
    %311 = vector.load %arg9[%c4_509, %c0_510] : memref<50x384xbf16, #tpu.memory_space<vmem>>, vector<2x384xbf16>
    tpu.vector_store %arg9[%c4_509, %c0_510], %310 {strides = array<i32>} : memref<50x384xbf16, #tpu.memory_space<vmem>>, vector<2x384xbf16>,
    %c1_511 = arith.constant 1 : index
    %c1_512 = arith.constant 1 : index
    %c0_513 = arith.constant 0 : index
    %c41_514 = arith.constant 41 : index
    %312 = vector.load %arg4[%c1_511, %c1_512, %c0_513, %c41_514] : memref<2x2x2x512xbf16, #tpu.memory_space<vmem>>, vector<1x1x2x384xbf16>
    %313 = vector.shape_cast %312 : vector<1x1x2x384xbf16> to vector<2x384xbf16>
    %c6_515 = arith.constant 6 : index
    %c0_516 = arith.constant 0 : index
    %314 = vector.load %arg9[%c6_515, %c0_516] : memref<50x384xbf16, #tpu.memory_space<vmem>>, vector<2x384xbf16>
    tpu.vector_store %arg9[%c6_515, %c0_516], %313 {strides = array<i32>} : memref<50x384xbf16, #tpu.memory_space<vmem>>, vector<2x384xbf16>,
    %c1_517 = arith.constant 1 : index
    %c1_518 = arith.constant 1 : index
    %c0_519 = arith.constant 0 : index
    %c42_520 = arith.constant 42 : index
    %315 = vector.load %arg4[%c1_517, %c1_518, %c0_519, %c42_520] : memref<2x2x2x512xbf16, #tpu.memory_space<vmem>>, vector<1x1x2x384xbf16>
    %316 = vector.shape_cast %315 : vector<1x1x2x384xbf16> to vector<2x384xbf16>
    %c8_521 = arith.constant 8 : index
    %c0_522 = arith.constant 0 : index
    %317 = vector.load %arg9[%c8_521, %c0_522] : memref<50x384xbf16, #tpu.memory_space<vmem>>, vector<2x384xbf16>
    tpu.vector_store %arg9[%c8_521, %c0_522], %316 {strides = array<i32>} : memref<50x384xbf16, #tpu.memory_space<vmem>>, vector<2x384xbf16>,
    %c1_523 = arith.constant 1 : index
    %c1_524 = arith.constant 1 : index
    %c0_525 = arith.constant 0 : index
    %c43_526 = arith.constant 43 : index
    %318 = vector.load %arg4[%c1_523, %c1_524, %c0_525, %c43_526] : memref<2x2x2x512xbf16, #tpu.memory_space<vmem>>, vector<1x1x2x384xbf16>
    %319 = vector.shape_cast %318 : vector<1x1x2x384xbf16> to vector<2x384xbf16>
    %c10_527 = arith.constant 10 : index
    %c0_528 = arith.constant 0 : index
    %320 = vector.load %arg9[%c10_527, %c0_528] : memref<50x384xbf16, #tpu.memory_space<vmem>>, vector<2x384xbf16>
    tpu.vector_store %arg9[%c10_527, %c0_528], %319 {strides = array<i32>} : memref<50x384xbf16, #tpu.memory_space<vmem>>, vector<2x384xbf16>,
    %c1_529 = arith.constant 1 : index
    %c1_530 = arith.constant 1 : index
    %c0_531 = arith.constant 0 : index
    %c61_532 = arith.constant 61 : index
    %321 = vector.load %arg4[%c1_529, %c1_530, %c0_531, %c61_532] : memref<2x2x2x512xbf16, #tpu.memory_space<vmem>>, vector<1x1x2x384xbf16>
    %322 = vector.shape_cast %321 : vector<1x1x2x384xbf16> to vector<2x384xbf16>
    %c12_533 = arith.constant 12 : index
    %c0_534 = arith.constant 0 : index
    %323 = vector.load %arg9[%c12_533, %c0_534] : memref<50x384xbf16, #tpu.memory_space<vmem>>, vector<2x384xbf16>
    tpu.vector_store %arg9[%c12_533, %c0_534], %322 {strides = array<i32>} : memref<50x384xbf16, #tpu.memory_space<vmem>>, vector<2x384xbf16>,
    %c1_535 = arith.constant 1 : index
    %c1_536 = arith.constant 1 : index
    %c0_537 = arith.constant 0 : index
    %c62_538 = arith.constant 62 : index
    %324 = vector.load %arg4[%c1_535, %c1_536, %c0_537, %c62_538] : memref<2x2x2x512xbf16, #tpu.memory_space<vmem>>, vector<1x1x2x384xbf16>
    %325 = vector.shape_cast %324 : vector<1x1x2x384xbf16> to vector<2x384xbf16>
    %c14_539 = arith.constant 14 : index
    %c0_540 = arith.constant 0 : index
    %326 = vector.load %arg9[%c14_539, %c0_540] : memref<50x384xbf16, #tpu.memory_space<vmem>>, vector<2x384xbf16>
    tpu.vector_store %arg9[%c14_539, %c0_540], %325 {strides = array<i32>} : memref<50x384xbf16, #tpu.memory_space<vmem>>, vector<2x384xbf16>,
    %c1_541 = arith.constant 1 : index
    %c1_542 = arith.constant 1 : index
    %c0_543 = arith.constant 0 : index
    %c63_544 = arith.constant 63 : index
    %327 = vector.load %arg4[%c1_541, %c1_542, %c0_543, %c63_544] : memref<2x2x2x512xbf16, #tpu.memory_space<vmem>>, vector<1x1x2x384xbf16>
    %328 = vector.shape_cast %327 : vector<1x1x2x384xbf16> to vector<2x384xbf16>
    %c16_545 = arith.constant 16 : index
    %c0_546 = arith.constant 0 : index
    %329 = vector.load %arg9[%c16_545, %c0_546] : memref<50x384xbf16, #tpu.memory_space<vmem>>, vector<2x384xbf16>
    tpu.vector_store %arg9[%c16_545, %c0_546], %328 {strides = array<i32>} : memref<50x384xbf16, #tpu.memory_space<vmem>>, vector<2x384xbf16>,
    %c1_547 = arith.constant 1 : index
    %c0_548 = arith.constant 0 : index
    %c0_549 = arith.constant 0 : index
    %330 = vector.load %arg1[%c1_547, %c0_548, %c0_549] : memref<2x2x18xbf16, #tpu.memory_space<vmem>>, vector<1x2x18xbf16>
    %331 = vector.shape_cast %330 : vector<1x2x18xbf16> to vector<2x18xbf16>
    %c0_550 = arith.constant 0 : index
    %c0_551 = arith.constant 0 : index
    %332 = vector.load %arg9[%c0_550, %c0_551] : memref<50x384xbf16, #tpu.memory_space<vmem>>, vector<18x384xbf16>
    %cst_552 = arith.constant dense<0.000000e+00> : vector<2x384xf32>
    %333 = tpu.matmul %331, %332, %cst_552 {dimension_numbers = #tpu.dot_dimension_numbers<[1], [0], [0], [1], [0, 0, 1, 1], [], []>} : vector<2x18xbf16>, vector<18x384xbf16>, vector<2x384xf32> -> vector<2x384xf32>
    %c0_553 = arith.constant 0 : index
    %c2_554 = arith.constant 2 : index
    %c0_555 = arith.constant 0 : index
    %334 = vector.load %arg3[%c0_553, %c2_554, %c0_555] : memref<2x4x1xf32, #tpu.memory_space<vmem>>, vector<1x2x1xf32>
    %335 = vector.shape_cast %334 : vector<1x2x1xf32> to vector<2x1xf32>
    %336 = vector.broadcast %335 : vector<2x1xf32> to vector<2x384xf32>
    %337 = arith.addf %333, %336 : vector<2x384xf32>
    %c2_556 = arith.constant 2 : index
    %c0_557 = arith.constant 0 : index
    %338 = vector.load %arg8[%c2_556, %c0_557] : memref<4x384xf32, #tpu.memory_space<vmem>>, vector<2x384xf32>
    tpu.vector_store %arg8[%c2_556, %c0_557], %337 {strides = array<i32>} : memref<4x384xf32, #tpu.memory_space<vmem>>, vector<2x384xf32>,
    %c0_558 = arith.constant 0 : index
    %c0_559 = arith.constant 0 : index
    %339 = vector.load %arg8[%c0_558, %c0_559] : memref<4x384xf32, #tpu.memory_space<vmem>>, vector<4x384xf32>
    %340 = arith.truncf %339 : vector<4x384xf32> to vector<4x384xbf16>
    %c1_560 = arith.constant 1 : index
    %c0_561 = arith.constant 0 : index
    %c0_562 = arith.constant 0 : index
    %c0_563 = arith.constant 0 : index
    %341 = vector.load %arg6[%c1_560, %c0_561, %c0_562, %c0_563] : memref<2x2x4x384xbf16, #tpu.memory_space<vmem>>, vector<1x1x4x384xbf16>
    %342 = vector.shape_cast %341 : vector<1x1x4x384xbf16> to vector<4x384xbf16>
    %343 = vector.shape_cast %340 : vector<4x384xbf16> to vector<1x1x4x384xbf16>
    tpu.vector_store %arg6[%c1_560, %c0_561, %c0_562, %c0_563], %343 {strides = array<i32>} : memref<2x2x4x384xbf16, #tpu.memory_space<vmem>>, vector<1x1x4x384xbf16>,
    %344 = arith.mulf %339, %2 : vector<4x384xf32>
    %cst_564 = arith.constant dense<0.000000e+00> : vector<4xf32>
    %345 = vector.multi_reduction <add>, %344, %cst_564 [1] : vector<4x384xf32> to vector<4xf32>
    %346 = vector.shape_cast %345 : vector<4xf32> to vector<4x1xf32>
    %347 = arith.mulf %344, %339 : vector<4x384xf32>
    %cst_565 = arith.constant dense<0.000000e+00> : vector<4xf32>
    %348 = vector.multi_reduction <add>, %347, %cst_565 [1] : vector<4x384xf32> to vector<4xf32>
    %349 = vector.shape_cast %348 : vector<4xf32> to vector<4x1xf32>
    %350 = tpu.concatenate %346, %349 in 1 : vector<4x1xf32>, vector<4x1xf32> -> vector<4x2xf32>
    %351 = arith.addf %86, %350 : vector<4x2xf32>
    %c1_566 = arith.constant 1 : index
    %c0_567 = arith.constant 0 : index
    %c0_568 = arith.constant 0 : index
    %c0_569 = arith.constant 0 : index
    %352 = vector.load %arg4[%c1_566, %c0_567, %c0_568, %c0_569] : memref<2x2x2x512xbf16, #tpu.memory_space<vmem>>, vector<1x1x2x384xbf16>
    %353 = vector.shape_cast %352 : vector<1x1x2x384xbf16> to vector<2x384xbf16>
    %c0_570 = arith.constant 0 : index
    %c0_571 = arith.constant 0 : index
    %354 = vector.load %arg9[%c0_570, %c0_571] : memref<50x384xbf16, #tpu.memory_space<vmem>>, vector<2x384xbf16>
    tpu.vector_store %arg9[%c0_570, %c0_571], %353 {strides = array<i32>} : memref<50x384xbf16, #tpu.memory_space<vmem>>, vector<2x384xbf16>,
    %c1_572 = arith.constant 1 : index
    %c0_573 = arith.constant 0 : index
    %c0_574 = arith.constant 0 : index
    %c1_575 = arith.constant 1 : index
    %355 = vector.load %arg4[%c1_572, %c0_573, %c0_574, %c1_575] : memref<2x2x2x512xbf16, #tpu.memory_space<vmem>>, vector<1x1x2x384xbf16>
    %356 = vector.shape_cast %355 : vector<1x1x2x384xbf16> to vector<2x384xbf16>
    %c2_576 = arith.constant 2 : index
    %c0_577 = arith.constant 0 : index
    %357 = vector.load %arg9[%c2_576, %c0_577] : memref<50x384xbf16, #tpu.memory_space<vmem>>, vector<2x384xbf16>
    tpu.vector_store %arg9[%c2_576, %c0_577], %356 {strides = array<i32>} : memref<50x384xbf16, #tpu.memory_space<vmem>>, vector<2x384xbf16>,
    %c1_578 = arith.constant 1 : index
    %c0_579 = arith.constant 0 : index
    %c0_580 = arith.constant 0 : index
    %c2_581 = arith.constant 2 : index
    %358 = vector.load %arg4[%c1_578, %c0_579, %c0_580, %c2_581] : memref<2x2x2x512xbf16, #tpu.memory_space<vmem>>, vector<1x1x2x384xbf16>
    %359 = vector.shape_cast %358 : vector<1x1x2x384xbf16> to vector<2x384xbf16>
    %c4_582 = arith.constant 4 : index
    %c0_583 = arith.constant 0 : index
    %360 = vector.load %arg9[%c4_582, %c0_583] : memref<50x384xbf16, #tpu.memory_space<vmem>>, vector<2x384xbf16>
    tpu.vector_store %arg9[%c4_582, %c0_583], %359 {strides = array<i32>} : memref<50x384xbf16, #tpu.memory_space<vmem>>, vector<2x384xbf16>,
    %c1_584 = arith.constant 1 : index
    %c0_585 = arith.constant 0 : index
    %c0_586 = arith.constant 0 : index
    %c3_587 = arith.constant 3 : index
    %361 = vector.load %arg4[%c1_584, %c0_585, %c0_586, %c3_587] : memref<2x2x2x512xbf16, #tpu.memory_space<vmem>>, vector<1x1x2x384xbf16>
    %362 = vector.shape_cast %361 : vector<1x1x2x384xbf16> to vector<2x384xbf16>
    %c6_588 = arith.constant 6 : index
    %c0_589 = arith.constant 0 : index
    %363 = vector.load %arg9[%c6_588, %c0_589] : memref<50x384xbf16, #tpu.memory_space<vmem>>, vector<2x384xbf16>
    tpu.vector_store %arg9[%c6_588, %c0_589], %362 {strides = array<i32>} : memref<50x384xbf16, #tpu.memory_space<vmem>>, vector<2x384xbf16>,
    %c1_590 = arith.constant 1 : index
    %c0_591 = arith.constant 0 : index
    %c0_592 = arith.constant 0 : index
    %c4_593 = arith.constant 4 : index
    %364 = vector.load %arg4[%c1_590, %c0_591, %c0_592, %c4_593] : memref<2x2x2x512xbf16, #tpu.memory_space<vmem>>, vector<1x1x2x384xbf16>
    %365 = vector.shape_cast %364 : vector<1x1x2x384xbf16> to vector<2x384xbf16>
    %c8_594 = arith.constant 8 : index
    %c0_595 = arith.constant 0 : index
    %366 = vector.load %arg9[%c8_594, %c0_595] : memref<50x384xbf16, #tpu.memory_space<vmem>>, vector<2x384xbf16>
    tpu.vector_store %arg9[%c8_594, %c0_595], %365 {strides = array<i32>} : memref<50x384xbf16, #tpu.memory_space<vmem>>, vector<2x384xbf16>,
    %c1_596 = arith.constant 1 : index
    %c0_597 = arith.constant 0 : index
    %c0_598 = arith.constant 0 : index
    %c20_599 = arith.constant 20 : index
    %367 = vector.load %arg4[%c1_596, %c0_597, %c0_598, %c20_599] : memref<2x2x2x512xbf16, #tpu.memory_space<vmem>>, vector<1x1x2x384xbf16>
    %368 = vector.shape_cast %367 : vector<1x1x2x384xbf16> to vector<2x384xbf16>
    %c10_600 = arith.constant 10 : index
    %c0_601 = arith.constant 0 : index
    %369 = vector.load %arg9[%c10_600, %c0_601] : memref<50x384xbf16, #tpu.memory_space<vmem>>, vector<2x384xbf16>
    tpu.vector_store %arg9[%c10_600, %c0_601], %368 {strides = array<i32>} : memref<50x384xbf16, #tpu.memory_space<vmem>>, vector<2x384xbf16>,
    %c1_602 = arith.constant 1 : index
    %c0_603 = arith.constant 0 : index
    %c0_604 = arith.constant 0 : index
    %c21_605 = arith.constant 21 : index
    %370 = vector.load %arg4[%c1_602, %c0_603, %c0_604, %c21_605] : memref<2x2x2x512xbf16, #tpu.memory_space<vmem>>, vector<1x1x2x384xbf16>
    %371 = vector.shape_cast %370 : vector<1x1x2x384xbf16> to vector<2x384xbf16>
    %c12_606 = arith.constant 12 : index
    %c0_607 = arith.constant 0 : index
    %372 = vector.load %arg9[%c12_606, %c0_607] : memref<50x384xbf16, #tpu.memory_space<vmem>>, vector<2x384xbf16>
    tpu.vector_store %arg9[%c12_606, %c0_607], %371 {strides = array<i32>} : memref<50x384xbf16, #tpu.memory_space<vmem>>, vector<2x384xbf16>,
    %c1_608 = arith.constant 1 : index
    %c0_609 = arith.constant 0 : index
    %c0_610 = arith.constant 0 : index
    %c22_611 = arith.constant 22 : index
    %373 = vector.load %arg4[%c1_608, %c0_609, %c0_610, %c22_611] : memref<2x2x2x512xbf16, #tpu.memory_space<vmem>>, vector<1x1x2x384xbf16>
    %374 = vector.shape_cast %373 : vector<1x1x2x384xbf16> to vector<2x384xbf16>
    %c14_612 = arith.constant 14 : index
    %c0_613 = arith.constant 0 : index
    %375 = vector.load %arg9[%c14_612, %c0_613] : memref<50x384xbf16, #tpu.memory_space<vmem>>, vector<2x384xbf16>
    tpu.vector_store %arg9[%c14_612, %c0_613], %374 {strides = array<i32>} : memref<50x384xbf16, #tpu.memory_space<vmem>>, vector<2x384xbf16>,
    %c1_614 = arith.constant 1 : index
    %c0_615 = arith.constant 0 : index
    %c0_616 = arith.constant 0 : index
    %c23_617 = arith.constant 23 : index
    %376 = vector.load %arg4[%c1_614, %c0_615, %c0_616, %c23_617] : memref<2x2x2x512xbf16, #tpu.memory_space<vmem>>, vector<1x1x2x384xbf16>
    %377 = vector.shape_cast %376 : vector<1x1x2x384xbf16> to vector<2x384xbf16>
    %c16_618 = arith.constant 16 : index
    %c0_619 = arith.constant 0 : index
    %378 = vector.load %arg9[%c16_618, %c0_619] : memref<50x384xbf16, #tpu.memory_space<vmem>>, vector<2x384xbf16>
    tpu.vector_store %arg9[%c16_618, %c0_619], %377 {strides = array<i32>} : memref<50x384xbf16, #tpu.memory_space<vmem>>, vector<2x384xbf16>,
    %c1_620 = arith.constant 1 : index
    %c0_621 = arith.constant 0 : index
    %c0_622 = arith.constant 0 : index
    %c24_623 = arith.constant 24 : index
    %379 = vector.load %arg4[%c1_620, %c0_621, %c0_622, %c24_623] : memref<2x2x2x512xbf16, #tpu.memory_space<vmem>>, vector<1x1x2x384xbf16>
    %380 = vector.shape_cast %379 : vector<1x1x2x384xbf16> to vector<2x384xbf16>
    %c18_624 = arith.constant 18 : index
    %c0_625 = arith.constant 0 : index
    %381 = vector.load %arg9[%c18_624, %c0_625] : memref<50x384xbf16, #tpu.memory_space<vmem>>, vector<2x384xbf16>
    tpu.vector_store %arg9[%c18_624, %c0_625], %380 {strides = array<i32>} : memref<50x384xbf16, #tpu.memory_space<vmem>>, vector<2x384xbf16>,
    %c1_626 = arith.constant 1 : index
    %c0_627 = arith.constant 0 : index
    %c0_628 = arith.constant 0 : index
    %c40_629 = arith.constant 40 : index
    %382 = vector.load %arg4[%c1_626, %c0_627, %c0_628, %c40_629] : memref<2x2x2x512xbf16, #tpu.memory_space<vmem>>, vector<1x1x2x384xbf16>
    %383 = vector.shape_cast %382 : vector<1x1x2x384xbf16> to vector<2x384xbf16>
    %c20_630 = arith.constant 20 : index
    %c0_631 = arith.constant 0 : index
    %384 = vector.load %arg9[%c20_630, %c0_631] : memref<50x384xbf16, #tpu.memory_space<vmem>>, vector<2x384xbf16>
    tpu.vector_store %arg9[%c20_630, %c0_631], %383 {strides = array<i32>} : memref<50x384xbf16, #tpu.memory_space<vmem>>, vector<2x384xbf16>,
    %c1_632 = arith.constant 1 : index
    %c0_633 = arith.constant 0 : index
    %c0_634 = arith.constant 0 : index
    %c41_635 = arith.constant 41 : index
    %385 = vector.load %arg4[%c1_632, %c0_633, %c0_634, %c41_635] : memref<2x2x2x512xbf16, #tpu.memory_space<vmem>>, vector<1x1x2x384xbf16>
    %386 = vector.shape_cast %385 : vector<1x1x2x384xbf16> to vector<2x384xbf16>
    %c22_636 = arith.constant 22 : index
    %c0_637 = arith.constant 0 : index
    %387 = vector.load %arg9[%c22_636, %c0_637] : memref<50x384xbf16, #tpu.memory_space<vmem>>, vector<2x384xbf16>
    tpu.vector_store %arg9[%c22_636, %c0_637], %386 {strides = array<i32>} : memref<50x384xbf16, #tpu.memory_space<vmem>>, vector<2x384xbf16>,
    %c1_638 = arith.constant 1 : index
    %c0_639 = arith.constant 0 : index
    %c0_640 = arith.constant 0 : index
    %c42_641 = arith.constant 42 : index
    %388 = vector.load %arg4[%c1_638, %c0_639, %c0_640, %c42_641] : memref<2x2x2x512xbf16, #tpu.memory_space<vmem>>, vector<1x1x2x384xbf16>
    %389 = vector.shape_cast %388 : vector<1x1x2x384xbf16> to vector<2x384xbf16>
    %c24_642 = arith.constant 24 : index
    %c0_643 = arith.constant 0 : index
    %390 = vector.load %arg9[%c24_642, %c0_643] : memref<50x384xbf16, #tpu.memory_space<vmem>>, vector<2x384xbf16>
    tpu.vector_store %arg9[%c24_642, %c0_643], %389 {strides = array<i32>} : memref<50x384xbf16, #tpu.memory_space<vmem>>, vector<2x384xbf16>,
    %c1_644 = arith.constant 1 : index
    %c0_645 = arith.constant 0 : index
    %c0_646 = arith.constant 0 : index
    %c43_647 = arith.constant 43 : index
    %391 = vector.load %arg4[%c1_644, %c0_645, %c0_646, %c43_647] : memref<2x2x2x512xbf16, #tpu.memory_space<vmem>>, vector<1x1x2x384xbf16>
    %392 = vector.shape_cast %391 : vector<1x1x2x384xbf16> to vector<2x384xbf16>
    %c26_648 = arith.constant 26 : index
    %c0_649 = arith.constant 0 : index
    %393 = vector.load %arg9[%c26_648, %c0_649] : memref<50x384xbf16, #tpu.memory_space<vmem>>, vector<2x384xbf16>
    tpu.vector_store %arg9[%c26_648, %c0_649], %392 {strides = array<i32>} : memref<50x384xbf16, #tpu.memory_space<vmem>>, vector<2x384xbf16>,
    %c1_650 = arith.constant 1 : index
    %c0_651 = arith.constant 0 : index
    %c0_652 = arith.constant 0 : index
    %c44_653 = arith.constant 44 : index
    %394 = vector.load %arg4[%c1_650, %c0_651, %c0_652, %c44_653] : memref<2x2x2x512xbf16, #tpu.memory_space<vmem>>, vector<1x1x2x384xbf16>
    %395 = vector.shape_cast %394 : vector<1x1x2x384xbf16> to vector<2x384xbf16>
    %c28_654 = arith.constant 28 : index
    %c0_655 = arith.constant 0 : index
    %396 = vector.load %arg9[%c28_654, %c0_655] : memref<50x384xbf16, #tpu.memory_space<vmem>>, vector<2x384xbf16>
    tpu.vector_store %arg9[%c28_654, %c0_655], %395 {strides = array<i32>} : memref<50x384xbf16, #tpu.memory_space<vmem>>, vector<2x384xbf16>,
    %c1_656 = arith.constant 1 : index
    %c0_657 = arith.constant 0 : index
    %c0_658 = arith.constant 0 : index
    %c60_659 = arith.constant 60 : index
    %397 = vector.load %arg4[%c1_656, %c0_657, %c0_658, %c60_659] : memref<2x2x2x512xbf16, #tpu.memory_space<vmem>>, vector<1x1x2x384xbf16>
    %398 = vector.shape_cast %397 : vector<1x1x2x384xbf16> to vector<2x384xbf16>
    %c30_660 = arith.constant 30 : index
    %c0_661 = arith.constant 0 : index
    %399 = vector.load %arg9[%c30_660, %c0_661] : memref<50x384xbf16, #tpu.memory_space<vmem>>, vector<2x384xbf16>
    tpu.vector_store %arg9[%c30_660, %c0_661], %398 {strides = array<i32>} : memref<50x384xbf16, #tpu.memory_space<vmem>>, vector<2x384xbf16>,
    %c1_662 = arith.constant 1 : index
    %c0_663 = arith.constant 0 : index
    %c0_664 = arith.constant 0 : index
    %c61_665 = arith.constant 61 : index
    %400 = vector.load %arg4[%c1_662, %c0_663, %c0_664, %c61_665] : memref<2x2x2x512xbf16, #tpu.memory_space<vmem>>, vector<1x1x2x384xbf16>
    %401 = vector.shape_cast %400 : vector<1x1x2x384xbf16> to vector<2x384xbf16>
    %c32_666 = arith.constant 32 : index
    %c0_667 = arith.constant 0 : index
    %402 = vector.load %arg9[%c32_666, %c0_667] : memref<50x384xbf16, #tpu.memory_space<vmem>>, vector<2x384xbf16>
    tpu.vector_store %arg9[%c32_666, %c0_667], %401 {strides = array<i32>} : memref<50x384xbf16, #tpu.memory_space<vmem>>, vector<2x384xbf16>,
    %c1_668 = arith.constant 1 : index
    %c0_669 = arith.constant 0 : index
    %c0_670 = arith.constant 0 : index
    %c62_671 = arith.constant 62 : index
    %403 = vector.load %arg4[%c1_668, %c0_669, %c0_670, %c62_671] : memref<2x2x2x512xbf16, #tpu.memory_space<vmem>>, vector<1x1x2x384xbf16>
    %404 = vector.shape_cast %403 : vector<1x1x2x384xbf16> to vector<2x384xbf16>
    %c34_672 = arith.constant 34 : index
    %c0_673 = arith.constant 0 : index
    %405 = vector.load %arg9[%c34_672, %c0_673] : memref<50x384xbf16, #tpu.memory_space<vmem>>, vector<2x384xbf16>
    tpu.vector_store %arg9[%c34_672, %c0_673], %404 {strides = array<i32>} : memref<50x384xbf16, #tpu.memory_space<vmem>>, vector<2x384xbf16>,
    %c1_674 = arith.constant 1 : index
    %c0_675 = arith.constant 0 : index
    %c0_676 = arith.constant 0 : index
    %c63_677 = arith.constant 63 : index
    %406 = vector.load %arg4[%c1_674, %c0_675, %c0_676, %c63_677] : memref<2x2x2x512xbf16, #tpu.memory_space<vmem>>, vector<1x1x2x384xbf16>
    %407 = vector.shape_cast %406 : vector<1x1x2x384xbf16> to vector<2x384xbf16>
    %c36_678 = arith.constant 36 : index
    %c0_679 = arith.constant 0 : index
    %408 = vector.load %arg9[%c36_678, %c0_679] : memref<50x384xbf16, #tpu.memory_space<vmem>>, vector<2x384xbf16>
    tpu.vector_store %arg9[%c36_678, %c0_679], %407 {strides = array<i32>} : memref<50x384xbf16, #tpu.memory_space<vmem>>, vector<2x384xbf16>,
    %c1_680 = arith.constant 1 : index
    %c0_681 = arith.constant 0 : index
    %c0_682 = arith.constant 0 : index
    %c64_683 = arith.constant 64 : index
    %409 = vector.load %arg4[%c1_680, %c0_681, %c0_682, %c64_683] : memref<2x2x2x512xbf16, #tpu.memory_space<vmem>>, vector<1x1x2x384xbf16>
    %410 = vector.shape_cast %409 : vector<1x1x2x384xbf16> to vector<2x384xbf16>
    %c38_684 = arith.constant 38 : index
    %c0_685 = arith.constant 0 : index
    %411 = vector.load %arg9[%c38_684, %c0_685] : memref<50x384xbf16, #tpu.memory_space<vmem>>, vector<2x384xbf16>
    tpu.vector_store %arg9[%c38_684, %c0_685], %410 {strides = array<i32>} : memref<50x384xbf16, #tpu.memory_space<vmem>>, vector<2x384xbf16>,
    %c1_686 = arith.constant 1 : index
    %c0_687 = arith.constant 0 : index
    %c0_688 = arith.constant 0 : index
    %c80_689 = arith.constant 80 : index
    %412 = vector.load %arg4[%c1_686, %c0_687, %c0_688, %c80_689] : memref<2x2x2x512xbf16, #tpu.memory_space<vmem>>, vector<1x1x2x384xbf16>
    %413 = vector.shape_cast %412 : vector<1x1x2x384xbf16> to vector<2x384xbf16>
    %c40_690 = arith.constant 40 : index
    %c0_691 = arith.constant 0 : index
    %414 = vector.load %arg9[%c40_690, %c0_691] : memref<50x384xbf16, #tpu.memory_space<vmem>>, vector<2x384xbf16>
    tpu.vector_store %arg9[%c40_690, %c0_691], %413 {strides = array<i32>} : memref<50x384xbf16, #tpu.memory_space<vmem>>, vector<2x384xbf16>,
    %c1_692 = arith.constant 1 : index
    %c0_693 = arith.constant 0 : index
    %c0_694 = arith.constant 0 : index
    %c81_695 = arith.constant 81 : index
    %415 = vector.load %arg4[%c1_692, %c0_693, %c0_694, %c81_695] : memref<2x2x2x512xbf16, #tpu.memory_space<vmem>>, vector<1x1x2x384xbf16>
    %416 = vector.shape_cast %415 : vector<1x1x2x384xbf16> to vector<2x384xbf16>
    %c42_696 = arith.constant 42 : index
    %c0_697 = arith.constant 0 : index
    %417 = vector.load %arg9[%c42_696, %c0_697] : memref<50x384xbf16, #tpu.memory_space<vmem>>, vector<2x384xbf16>
    tpu.vector_store %arg9[%c42_696, %c0_697], %416 {strides = array<i32>} : memref<50x384xbf16, #tpu.memory_space<vmem>>, vector<2x384xbf16>,
    %c1_698 = arith.constant 1 : index
    %c0_699 = arith.constant 0 : index
    %c0_700 = arith.constant 0 : index
    %c82_701 = arith.constant 82 : index
    %418 = vector.load %arg4[%c1_698, %c0_699, %c0_700, %c82_701] : memref<2x2x2x512xbf16, #tpu.memory_space<vmem>>, vector<1x1x2x384xbf16>
    %419 = vector.shape_cast %418 : vector<1x1x2x384xbf16> to vector<2x384xbf16>
    %c44_702 = arith.constant 44 : index
    %c0_703 = arith.constant 0 : index
    %420 = vector.load %arg9[%c44_702, %c0_703] : memref<50x384xbf16, #tpu.memory_space<vmem>>, vector<2x384xbf16>
    tpu.vector_store %arg9[%c44_702, %c0_703], %419 {strides = array<i32>} : memref<50x384xbf16, #tpu.memory_space<vmem>>, vector<2x384xbf16>,
    %c1_704 = arith.constant 1 : index
    %c0_705 = arith.constant 0 : index
    %c0_706 = arith.constant 0 : index
    %c83_707 = arith.constant 83 : index
    %421 = vector.load %arg4[%c1_704, %c0_705, %c0_706, %c83_707] : memref<2x2x2x512xbf16, #tpu.memory_space<vmem>>, vector<1x1x2x384xbf16>
    %422 = vector.shape_cast %421 : vector<1x1x2x384xbf16> to vector<2x384xbf16>
    %c46_708 = arith.constant 46 : index
    %c0_709 = arith.constant 0 : index
    %423 = vector.load %arg9[%c46_708, %c0_709] : memref<50x384xbf16, #tpu.memory_space<vmem>>, vector<2x384xbf16>
    tpu.vector_store %arg9[%c46_708, %c0_709], %422 {strides = array<i32>} : memref<50x384xbf16, #tpu.memory_space<vmem>>, vector<2x384xbf16>,
    %c1_710 = arith.constant 1 : index
    %c0_711 = arith.constant 0 : index
    %c0_712 = arith.constant 0 : index
    %c84_713 = arith.constant 84 : index
    %424 = vector.load %arg4[%c1_710, %c0_711, %c0_712, %c84_713] : memref<2x2x2x512xbf16, #tpu.memory_space<vmem>>, vector<1x1x2x384xbf16>
    %425 = vector.shape_cast %424 : vector<1x1x2x384xbf16> to vector<2x384xbf16>
    %c48_714 = arith.constant 48 : index
    %c0_715 = arith.constant 0 : index
    %426 = vector.load %arg9[%c48_714, %c0_715] : memref<50x384xbf16, #tpu.memory_space<vmem>>, vector<2x384xbf16>
    tpu.vector_store %arg9[%c48_714, %c0_715], %425 {strides = array<i32>} : memref<50x384xbf16, #tpu.memory_space<vmem>>, vector<2x384xbf16>,
    %c0_716 = arith.constant 0 : index
    %c0_717 = arith.constant 0 : index
    %c0_718 = arith.constant 0 : index
    %427 = vector.load %arg2[%c0_716, %c0_717, %c0_718] : memref<2x2x50xbf16, #tpu.memory_space<vmem>>, vector<1x2x50xbf16>
    %428 = vector.shape_cast %427 : vector<1x2x50xbf16> to vector<2x50xbf16>
    %c0_719 = arith.constant 0 : index
    %c0_720 = arith.constant 0 : index
    %429 = vector.load %arg9[%c0_719, %c0_720] : memref<50x384xbf16, #tpu.memory_space<vmem>>, vector<50x384xbf16>
    %cst_721 = arith.constant dense<0.000000e+00> : vector<2x384xf32>
    %430 = tpu.matmul %428, %429, %cst_721 {dimension_numbers = #tpu.dot_dimension_numbers<[1], [0], [0], [1], [0, 0, 1, 1], [], []>} : vector<2x50xbf16>, vector<50x384xbf16>, vector<2x384xf32> -> vector<2x384xf32>
    %c1_722 = arith.constant 1 : index
    %c0_723 = arith.constant 0 : index
    %c0_724 = arith.constant 0 : index
    %431 = vector.load %arg3[%c1_722, %c0_723, %c0_724] : memref<2x4x1xf32, #tpu.memory_space<vmem>>, vector<1x2x1xf32>
    %432 = vector.shape_cast %431 : vector<1x2x1xf32> to vector<2x1xf32>
    %433 = vector.broadcast %432 : vector<2x1xf32> to vector<2x384xf32>
    %434 = arith.addf %430, %433 : vector<2x384xf32>
    %c0_725 = arith.constant 0 : index
    %c0_726 = arith.constant 0 : index
    %435 = vector.load %arg8[%c0_725, %c0_726] : memref<4x384xf32, #tpu.memory_space<vmem>>, vector<2x384xf32>
    tpu.vector_store %arg8[%c0_725, %c0_726], %434 {strides = array<i32>} : memref<4x384xf32, #tpu.memory_space<vmem>>, vector<2x384xf32>,
    %c1_727 = arith.constant 1 : index
    %c1_728 = arith.constant 1 : index
    %c0_729 = arith.constant 0 : index
    %c0_730 = arith.constant 0 : index
    %436 = vector.load %arg4[%c1_727, %c1_728, %c0_729, %c0_730] : memref<2x2x2x512xbf16, #tpu.memory_space<vmem>>, vector<1x1x2x384xbf16>
    %437 = vector.shape_cast %436 : vector<1x1x2x384xbf16> to vector<2x384xbf16>
    %c0_731 = arith.constant 0 : index
    %c0_732 = arith.constant 0 : index
    %438 = vector.load %arg9[%c0_731, %c0_732] : memref<50x384xbf16, #tpu.memory_space<vmem>>, vector<2x384xbf16>
    tpu.vector_store %arg9[%c0_731, %c0_732], %437 {strides = array<i32>} : memref<50x384xbf16, #tpu.memory_space<vmem>>, vector<2x384xbf16>,
    %c1_733 = arith.constant 1 : index
    %c1_734 = arith.constant 1 : index
    %c0_735 = arith.constant 0 : index
    %c1_736 = arith.constant 1 : index
    %439 = vector.load %arg4[%c1_733, %c1_734, %c0_735, %c1_736] : memref<2x2x2x512xbf16, #tpu.memory_space<vmem>>, vector<1x1x2x384xbf16>
    %440 = vector.shape_cast %439 : vector<1x1x2x384xbf16> to vector<2x384xbf16>
    %c2_737 = arith.constant 2 : index
    %c0_738 = arith.constant 0 : index
    %441 = vector.load %arg9[%c2_737, %c0_738] : memref<50x384xbf16, #tpu.memory_space<vmem>>, vector<2x384xbf16>
    tpu.vector_store %arg9[%c2_737, %c0_738], %440 {strides = array<i32>} : memref<50x384xbf16, #tpu.memory_space<vmem>>, vector<2x384xbf16>,
    %c1_739 = arith.constant 1 : index
    %c1_740 = arith.constant 1 : index
    %c0_741 = arith.constant 0 : index
    %c2_742 = arith.constant 2 : index
    %442 = vector.load %arg4[%c1_739, %c1_740, %c0_741, %c2_742] : memref<2x2x2x512xbf16, #tpu.memory_space<vmem>>, vector<1x1x2x384xbf16>
    %443 = vector.shape_cast %442 : vector<1x1x2x384xbf16> to vector<2x384xbf16>
    %c4_743 = arith.constant 4 : index
    %c0_744 = arith.constant 0 : index
    %444 = vector.load %arg9[%c4_743, %c0_744] : memref<50x384xbf16, #tpu.memory_space<vmem>>, vector<2x384xbf16>
    tpu.vector_store %arg9[%c4_743, %c0_744], %443 {strides = array<i32>} : memref<50x384xbf16, #tpu.memory_space<vmem>>, vector<2x384xbf16>,
    %c1_745 = arith.constant 1 : index
    %c1_746 = arith.constant 1 : index
    %c0_747 = arith.constant 0 : index
    %c3_748 = arith.constant 3 : index
    %445 = vector.load %arg4[%c1_745, %c1_746, %c0_747, %c3_748] : memref<2x2x2x512xbf16, #tpu.memory_space<vmem>>, vector<1x1x2x384xbf16>
    %446 = vector.shape_cast %445 : vector<1x1x2x384xbf16> to vector<2x384xbf16>
    %c6_749 = arith.constant 6 : index
    %c0_750 = arith.constant 0 : index
    %447 = vector.load %arg9[%c6_749, %c0_750] : memref<50x384xbf16, #tpu.memory_space<vmem>>, vector<2x384xbf16>
    tpu.vector_store %arg9[%c6_749, %c0_750], %446 {strides = array<i32>} : memref<50x384xbf16, #tpu.memory_space<vmem>>, vector<2x384xbf16>,
    %c1_751 = arith.constant 1 : index
    %c1_752 = arith.constant 1 : index
    %c0_753 = arith.constant 0 : index
    %c4_754 = arith.constant 4 : index
    %448 = vector.load %arg4[%c1_751, %c1_752, %c0_753, %c4_754] : memref<2x2x2x512xbf16, #tpu.memory_space<vmem>>, vector<1x1x2x384xbf16>
    %449 = vector.shape_cast %448 : vector<1x1x2x384xbf16> to vector<2x384xbf16>
    %c8_755 = arith.constant 8 : index
    %c0_756 = arith.constant 0 : index
    %450 = vector.load %arg9[%c8_755, %c0_756] : memref<50x384xbf16, #tpu.memory_space<vmem>>, vector<2x384xbf16>
    tpu.vector_store %arg9[%c8_755, %c0_756], %449 {strides = array<i32>} : memref<50x384xbf16, #tpu.memory_space<vmem>>, vector<2x384xbf16>,
    %c1_757 = arith.constant 1 : index
    %c1_758 = arith.constant 1 : index
    %c0_759 = arith.constant 0 : index
    %c20_760 = arith.constant 20 : index
    %451 = vector.load %arg4[%c1_757, %c1_758, %c0_759, %c20_760] : memref<2x2x2x512xbf16, #tpu.memory_space<vmem>>, vector<1x1x2x384xbf16>
    %452 = vector.shape_cast %451 : vector<1x1x2x384xbf16> to vector<2x384xbf16>
    %c10_761 = arith.constant 10 : index
    %c0_762 = arith.constant 0 : index
    %453 = vector.load %arg9[%c10_761, %c0_762] : memref<50x384xbf16, #tpu.memory_space<vmem>>, vector<2x384xbf16>
    tpu.vector_store %arg9[%c10_761, %c0_762], %452 {strides = array<i32>} : memref<50x384xbf16, #tpu.memory_space<vmem>>, vector<2x384xbf16>,
    %c1_763 = arith.constant 1 : index
    %c1_764 = arith.constant 1 : index
    %c0_765 = arith.constant 0 : index
    %c21_766 = arith.constant 21 : index
    %454 = vector.load %arg4[%c1_763, %c1_764, %c0_765, %c21_766] : memref<2x2x2x512xbf16, #tpu.memory_space<vmem>>, vector<1x1x2x384xbf16>
    %455 = vector.shape_cast %454 : vector<1x1x2x384xbf16> to vector<2x384xbf16>
    %c12_767 = arith.constant 12 : index
    %c0_768 = arith.constant 0 : index
    %456 = vector.load %arg9[%c12_767, %c0_768] : memref<50x384xbf16, #tpu.memory_space<vmem>>, vector<2x384xbf16>
    tpu.vector_store %arg9[%c12_767, %c0_768], %455 {strides = array<i32>} : memref<50x384xbf16, #tpu.memory_space<vmem>>, vector<2x384xbf16>,
    %c1_769 = arith.constant 1 : index
    %c1_770 = arith.constant 1 : index
    %c0_771 = arith.constant 0 : index
    %c22_772 = arith.constant 22 : index
    %457 = vector.load %arg4[%c1_769, %c1_770, %c0_771, %c22_772] : memref<2x2x2x512xbf16, #tpu.memory_space<vmem>>, vector<1x1x2x384xbf16>
    %458 = vector.shape_cast %457 : vector<1x1x2x384xbf16> to vector<2x384xbf16>
    %c14_773 = arith.constant 14 : index
    %c0_774 = arith.constant 0 : index
    %459 = vector.load %arg9[%c14_773, %c0_774] : memref<50x384xbf16, #tpu.memory_space<vmem>>, vector<2x384xbf16>
    tpu.vector_store %arg9[%c14_773, %c0_774], %458 {strides = array<i32>} : memref<50x384xbf16, #tpu.memory_space<vmem>>, vector<2x384xbf16>,
    %c1_775 = arith.constant 1 : index
    %c1_776 = arith.constant 1 : index
    %c0_777 = arith.constant 0 : index
    %c23_778 = arith.constant 23 : index
    %460 = vector.load %arg4[%c1_775, %c1_776, %c0_777, %c23_778] : memref<2x2x2x512xbf16, #tpu.memory_space<vmem>>, vector<1x1x2x384xbf16>
    %461 = vector.shape_cast %460 : vector<1x1x2x384xbf16> to vector<2x384xbf16>
    %c16_779 = arith.constant 16 : index
    %c0_780 = arith.constant 0 : index
    %462 = vector.load %arg9[%c16_779, %c0_780] : memref<50x384xbf16, #tpu.memory_space<vmem>>, vector<2x384xbf16>
    tpu.vector_store %arg9[%c16_779, %c0_780], %461 {strides = array<i32>} : memref<50x384xbf16, #tpu.memory_space<vmem>>, vector<2x384xbf16>,
    %c1_781 = arith.constant 1 : index
    %c1_782 = arith.constant 1 : index
    %c0_783 = arith.constant 0 : index
    %c24_784 = arith.constant 24 : index
    %463 = vector.load %arg4[%c1_781, %c1_782, %c0_783, %c24_784] : memref<2x2x2x512xbf16, #tpu.memory_space<vmem>>, vector<1x1x2x384xbf16>
    %464 = vector.shape_cast %463 : vector<1x1x2x384xbf16> to vector<2x384xbf16>
    %c18_785 = arith.constant 18 : index
    %c0_786 = arith.constant 0 : index
    %465 = vector.load %arg9[%c18_785, %c0_786] : memref<50x384xbf16, #tpu.memory_space<vmem>>, vector<2x384xbf16>
    tpu.vector_store %arg9[%c18_785, %c0_786], %464 {strides = array<i32>} : memref<50x384xbf16, #tpu.memory_space<vmem>>, vector<2x384xbf16>,
    %c1_787 = arith.constant 1 : index
    %c1_788 = arith.constant 1 : index
    %c0_789 = arith.constant 0 : index
    %c40_790 = arith.constant 40 : index
    %466 = vector.load %arg4[%c1_787, %c1_788, %c0_789, %c40_790] : memref<2x2x2x512xbf16, #tpu.memory_space<vmem>>, vector<1x1x2x384xbf16>
    %467 = vector.shape_cast %466 : vector<1x1x2x384xbf16> to vector<2x384xbf16>
    %c20_791 = arith.constant 20 : index
    %c0_792 = arith.constant 0 : index
    %468 = vector.load %arg9[%c20_791, %c0_792] : memref<50x384xbf16, #tpu.memory_space<vmem>>, vector<2x384xbf16>
    tpu.vector_store %arg9[%c20_791, %c0_792], %467 {strides = array<i32>} : memref<50x384xbf16, #tpu.memory_space<vmem>>, vector<2x384xbf16>,
    %c1_793 = arith.constant 1 : index
    %c1_794 = arith.constant 1 : index
    %c0_795 = arith.constant 0 : index
    %c41_796 = arith.constant 41 : index
    %469 = vector.load %arg4[%c1_793, %c1_794, %c0_795, %c41_796] : memref<2x2x2x512xbf16, #tpu.memory_space<vmem>>, vector<1x1x2x384xbf16>
    %470 = vector.shape_cast %469 : vector<1x1x2x384xbf16> to vector<2x384xbf16>
    %c22_797 = arith.constant 22 : index
    %c0_798 = arith.constant 0 : index
    %471 = vector.load %arg9[%c22_797, %c0_798] : memref<50x384xbf16, #tpu.memory_space<vmem>>, vector<2x384xbf16>
    tpu.vector_store %arg9[%c22_797, %c0_798], %470 {strides = array<i32>} : memref<50x384xbf16, #tpu.memory_space<vmem>>, vector<2x384xbf16>,
    %c1_799 = arith.constant 1 : index
    %c1_800 = arith.constant 1 : index
    %c0_801 = arith.constant 0 : index
    %c42_802 = arith.constant 42 : index
    %472 = vector.load %arg4[%c1_799, %c1_800, %c0_801, %c42_802] : memref<2x2x2x512xbf16, #tpu.memory_space<vmem>>, vector<1x1x2x384xbf16>
    %473 = vector.shape_cast %472 : vector<1x1x2x384xbf16> to vector<2x384xbf16>
    %c24_803 = arith.constant 24 : index
    %c0_804 = arith.constant 0 : index
    %474 = vector.load %arg9[%c24_803, %c0_804] : memref<50x384xbf16, #tpu.memory_space<vmem>>, vector<2x384xbf16>
    tpu.vector_store %arg9[%c24_803, %c0_804], %473 {strides = array<i32>} : memref<50x384xbf16, #tpu.memory_space<vmem>>, vector<2x384xbf16>,
    %c1_805 = arith.constant 1 : index
    %c1_806 = arith.constant 1 : index
    %c0_807 = arith.constant 0 : index
    %c43_808 = arith.constant 43 : index
    %475 = vector.load %arg4[%c1_805, %c1_806, %c0_807, %c43_808] : memref<2x2x2x512xbf16, #tpu.memory_space<vmem>>, vector<1x1x2x384xbf16>
    %476 = vector.shape_cast %475 : vector<1x1x2x384xbf16> to vector<2x384xbf16>
    %c26_809 = arith.constant 26 : index
    %c0_810 = arith.constant 0 : index
    %477 = vector.load %arg9[%c26_809, %c0_810] : memref<50x384xbf16, #tpu.memory_space<vmem>>, vector<2x384xbf16>
    tpu.vector_store %arg9[%c26_809, %c0_810], %476 {strides = array<i32>} : memref<50x384xbf16, #tpu.memory_space<vmem>>, vector<2x384xbf16>,
    %c1_811 = arith.constant 1 : index
    %c1_812 = arith.constant 1 : index
    %c0_813 = arith.constant 0 : index
    %c44_814 = arith.constant 44 : index
    %478 = vector.load %arg4[%c1_811, %c1_812, %c0_813, %c44_814] : memref<2x2x2x512xbf16, #tpu.memory_space<vmem>>, vector<1x1x2x384xbf16>
    %479 = vector.shape_cast %478 : vector<1x1x2x384xbf16> to vector<2x384xbf16>
    %c28_815 = arith.constant 28 : index
    %c0_816 = arith.constant 0 : index
    %480 = vector.load %arg9[%c28_815, %c0_816] : memref<50x384xbf16, #tpu.memory_space<vmem>>, vector<2x384xbf16>
    tpu.vector_store %arg9[%c28_815, %c0_816], %479 {strides = array<i32>} : memref<50x384xbf16, #tpu.memory_space<vmem>>, vector<2x384xbf16>,
    %c1_817 = arith.constant 1 : index
    %c1_818 = arith.constant 1 : index
    %c0_819 = arith.constant 0 : index
    %c60_820 = arith.constant 60 : index
    %481 = vector.load %arg4[%c1_817, %c1_818, %c0_819, %c60_820] : memref<2x2x2x512xbf16, #tpu.memory_space<vmem>>, vector<1x1x2x384xbf16>
    %482 = vector.shape_cast %481 : vector<1x1x2x384xbf16> to vector<2x384xbf16>
    %c30_821 = arith.constant 30 : index
    %c0_822 = arith.constant 0 : index
    %483 = vector.load %arg9[%c30_821, %c0_822] : memref<50x384xbf16, #tpu.memory_space<vmem>>, vector<2x384xbf16>
    tpu.vector_store %arg9[%c30_821, %c0_822], %482 {strides = array<i32>} : memref<50x384xbf16, #tpu.memory_space<vmem>>, vector<2x384xbf16>,
    %c1_823 = arith.constant 1 : index
    %c1_824 = arith.constant 1 : index
    %c0_825 = arith.constant 0 : index
    %c61_826 = arith.constant 61 : index
    %484 = vector.load %arg4[%c1_823, %c1_824, %c0_825, %c61_826] : memref<2x2x2x512xbf16, #tpu.memory_space<vmem>>, vector<1x1x2x384xbf16>
    %485 = vector.shape_cast %484 : vector<1x1x2x384xbf16> to vector<2x384xbf16>
    %c32_827 = arith.constant 32 : index
    %c0_828 = arith.constant 0 : index
    %486 = vector.load %arg9[%c32_827, %c0_828] : memref<50x384xbf16, #tpu.memory_space<vmem>>, vector<2x384xbf16>
    tpu.vector_store %arg9[%c32_827, %c0_828], %485 {strides = array<i32>} : memref<50x384xbf16, #tpu.memory_space<vmem>>, vector<2x384xbf16>,
    %c1_829 = arith.constant 1 : index
    %c1_830 = arith.constant 1 : index
    %c0_831 = arith.constant 0 : index
    %c62_832 = arith.constant 62 : index
    %487 = vector.load %arg4[%c1_829, %c1_830, %c0_831, %c62_832] : memref<2x2x2x512xbf16, #tpu.memory_space<vmem>>, vector<1x1x2x384xbf16>
    %488 = vector.shape_cast %487 : vector<1x1x2x384xbf16> to vector<2x384xbf16>
    %c34_833 = arith.constant 34 : index
    %c0_834 = arith.constant 0 : index
    %489 = vector.load %arg9[%c34_833, %c0_834] : memref<50x384xbf16, #tpu.memory_space<vmem>>, vector<2x384xbf16>
    tpu.vector_store %arg9[%c34_833, %c0_834], %488 {strides = array<i32>} : memref<50x384xbf16, #tpu.memory_space<vmem>>, vector<2x384xbf16>,
    %c1_835 = arith.constant 1 : index
    %c1_836 = arith.constant 1 : index
    %c0_837 = arith.constant 0 : index
    %c63_838 = arith.constant 63 : index
    %490 = vector.load %arg4[%c1_835, %c1_836, %c0_837, %c63_838] : memref<2x2x2x512xbf16, #tpu.memory_space<vmem>>, vector<1x1x2x384xbf16>
    %491 = vector.shape_cast %490 : vector<1x1x2x384xbf16> to vector<2x384xbf16>
    %c36_839 = arith.constant 36 : index
    %c0_840 = arith.constant 0 : index
    %492 = vector.load %arg9[%c36_839, %c0_840] : memref<50x384xbf16, #tpu.memory_space<vmem>>, vector<2x384xbf16>
    tpu.vector_store %arg9[%c36_839, %c0_840], %491 {strides = array<i32>} : memref<50x384xbf16, #tpu.memory_space<vmem>>, vector<2x384xbf16>,
    %c1_841 = arith.constant 1 : index
    %c1_842 = arith.constant 1 : index
    %c0_843 = arith.constant 0 : index
    %c64_844 = arith.constant 64 : index
    %493 = vector.load %arg4[%c1_841, %c1_842, %c0_843, %c64_844] : memref<2x2x2x512xbf16, #tpu.memory_space<vmem>>, vector<1x1x2x384xbf16>
    %494 = vector.shape_cast %493 : vector<1x1x2x384xbf16> to vector<2x384xbf16>
    %c38_845 = arith.constant 38 : index
    %c0_846 = arith.constant 0 : index
    %495 = vector.load %arg9[%c38_845, %c0_846] : memref<50x384xbf16, #tpu.memory_space<vmem>>, vector<2x384xbf16>
    tpu.vector_store %arg9[%c38_845, %c0_846], %494 {strides = array<i32>} : memref<50x384xbf16, #tpu.memory_space<vmem>>, vector<2x384xbf16>,
    %c1_847 = arith.constant 1 : index
    %c1_848 = arith.constant 1 : index
    %c0_849 = arith.constant 0 : index
    %c80_850 = arith.constant 80 : index
    %496 = vector.load %arg4[%c1_847, %c1_848, %c0_849, %c80_850] : memref<2x2x2x512xbf16, #tpu.memory_space<vmem>>, vector<1x1x2x384xbf16>
    %497 = vector.shape_cast %496 : vector<1x1x2x384xbf16> to vector<2x384xbf16>
    %c40_851 = arith.constant 40 : index
    %c0_852 = arith.constant 0 : index
    %498 = vector.load %arg9[%c40_851, %c0_852] : memref<50x384xbf16, #tpu.memory_space<vmem>>, vector<2x384xbf16>
    tpu.vector_store %arg9[%c40_851, %c0_852], %497 {strides = array<i32>} : memref<50x384xbf16, #tpu.memory_space<vmem>>, vector<2x384xbf16>,
    %c1_853 = arith.constant 1 : index
    %c1_854 = arith.constant 1 : index
    %c0_855 = arith.constant 0 : index
    %c81_856 = arith.constant 81 : index
    %499 = vector.load %arg4[%c1_853, %c1_854, %c0_855, %c81_856] : memref<2x2x2x512xbf16, #tpu.memory_space<vmem>>, vector<1x1x2x384xbf16>
    %500 = vector.shape_cast %499 : vector<1x1x2x384xbf16> to vector<2x384xbf16>
    %c42_857 = arith.constant 42 : index
    %c0_858 = arith.constant 0 : index
    %501 = vector.load %arg9[%c42_857, %c0_858] : memref<50x384xbf16, #tpu.memory_space<vmem>>, vector<2x384xbf16>
    tpu.vector_store %arg9[%c42_857, %c0_858], %500 {strides = array<i32>} : memref<50x384xbf16, #tpu.memory_space<vmem>>, vector<2x384xbf16>,
    %c1_859 = arith.constant 1 : index
    %c1_860 = arith.constant 1 : index
    %c0_861 = arith.constant 0 : index
    %c82_862 = arith.constant 82 : index
    %502 = vector.load %arg4[%c1_859, %c1_860, %c0_861, %c82_862] : memref<2x2x2x512xbf16, #tpu.memory_space<vmem>>, vector<1x1x2x384xbf16>
    %503 = vector.shape_cast %502 : vector<1x1x2x384xbf16> to vector<2x384xbf16>
    %c44_863 = arith.constant 44 : index
    %c0_864 = arith.constant 0 : index
    %504 = vector.load %arg9[%c44_863, %c0_864] : memref<50x384xbf16, #tpu.memory_space<vmem>>, vector<2x384xbf16>
    tpu.vector_store %arg9[%c44_863, %c0_864], %503 {strides = array<i32>} : memref<50x384xbf16, #tpu.memory_space<vmem>>, vector<2x384xbf16>,
    %c1_865 = arith.constant 1 : index
    %c1_866 = arith.constant 1 : index
    %c0_867 = arith.constant 0 : index
    %c83_868 = arith.constant 83 : index
    %505 = vector.load %arg4[%c1_865, %c1_866, %c0_867, %c83_868] : memref<2x2x2x512xbf16, #tpu.memory_space<vmem>>, vector<1x1x2x384xbf16>
    %506 = vector.shape_cast %505 : vector<1x1x2x384xbf16> to vector<2x384xbf16>
    %c46_869 = arith.constant 46 : index
    %c0_870 = arith.constant 0 : index
    %507 = vector.load %arg9[%c46_869, %c0_870] : memref<50x384xbf16, #tpu.memory_space<vmem>>, vector<2x384xbf16>
    tpu.vector_store %arg9[%c46_869, %c0_870], %506 {strides = array<i32>} : memref<50x384xbf16, #tpu.memory_space<vmem>>, vector<2x384xbf16>,
    %c1_871 = arith.constant 1 : index
    %c1_872 = arith.constant 1 : index
    %c0_873 = arith.constant 0 : index
    %c84_874 = arith.constant 84 : index
    %508 = vector.load %arg4[%c1_871, %c1_872, %c0_873, %c84_874] : memref<2x2x2x512xbf16, #tpu.memory_space<vmem>>, vector<1x1x2x384xbf16>
    %509 = vector.shape_cast %508 : vector<1x1x2x384xbf16> to vector<2x384xbf16>
    %c48_875 = arith.constant 48 : index
    %c0_876 = arith.constant 0 : index
    %510 = vector.load %arg9[%c48_875, %c0_876] : memref<50x384xbf16, #tpu.memory_space<vmem>>, vector<2x384xbf16>
    tpu.vector_store %arg9[%c48_875, %c0_876], %509 {strides = array<i32>} : memref<50x384xbf16, #tpu.memory_space<vmem>>, vector<2x384xbf16>,
    %c1_877 = arith.constant 1 : index
    %c0_878 = arith.constant 0 : index
    %c0_879 = arith.constant 0 : index
    %511 = vector.load %arg2[%c1_877, %c0_878, %c0_879] : memref<2x2x50xbf16, #tpu.memory_space<vmem>>, vector<1x2x50xbf16>
    %512 = vector.shape_cast %511 : vector<1x2x50xbf16> to vector<2x50xbf16>
    %c0_880 = arith.constant 0 : index
    %c0_881 = arith.constant 0 : index
    %513 = vector.load %arg9[%c0_880, %c0_881] : memref<50x384xbf16, #tpu.memory_space<vmem>>, vector<50x384xbf16>
    %cst_882 = arith.constant dense<0.000000e+00> : vector<2x384xf32>
    %514 = tpu.matmul %512, %513, %cst_882 {dimension_numbers = #tpu.dot_dimension_numbers<[1], [0], [0], [1], [0, 0, 1, 1], [], []>} : vector<2x50xbf16>, vector<50x384xbf16>, vector<2x384xf32> -> vector<2x384xf32>
    %c1_883 = arith.constant 1 : index
    %c2_884 = arith.constant 2 : index
    %c0_885 = arith.constant 0 : index
    %515 = vector.load %arg3[%c1_883, %c2_884, %c0_885] : memref<2x4x1xf32, #tpu.memory_space<vmem>>, vector<1x2x1xf32>
    %516 = vector.shape_cast %515 : vector<1x2x1xf32> to vector<2x1xf32>
    %517 = vector.broadcast %516 : vector<2x1xf32> to vector<2x384xf32>
    %518 = arith.addf %514, %517 : vector<2x384xf32>
    %c2_886 = arith.constant 2 : index
    %c0_887 = arith.constant 0 : index
    %519 = vector.load %arg8[%c2_886, %c0_887] : memref<4x384xf32, #tpu.memory_space<vmem>>, vector<2x384xf32>
    tpu.vector_store %arg8[%c2_886, %c0_887], %518 {strides = array<i32>} : memref<4x384xf32, #tpu.memory_space<vmem>>, vector<2x384xf32>,
    %c0_888 = arith.constant 0 : index
    %c0_889 = arith.constant 0 : index
    %520 = vector.load %arg8[%c0_888, %c0_889] : memref<4x384xf32, #tpu.memory_space<vmem>>, vector<4x384xf32>
    %521 = arith.truncf %520 : vector<4x384xf32> to vector<4x384xbf16>
    %c1_890 = arith.constant 1 : index
    %c1_891 = arith.constant 1 : index
    %c0_892 = arith.constant 0 : index
    %c0_893 = arith.constant 0 : index
    %522 = vector.load %arg6[%c1_890, %c1_891, %c0_892, %c0_893] : memref<2x2x4x384xbf16, #tpu.memory_space<vmem>>, vector<1x1x4x384xbf16>
    %523 = vector.shape_cast %522 : vector<1x1x4x384xbf16> to vector<4x384xbf16>
    %524 = vector.shape_cast %521 : vector<4x384xbf16> to vector<1x1x4x384xbf16>
    tpu.vector_store %arg6[%c1_890, %c1_891, %c0_892, %c0_893], %524 {strides = array<i32>} : memref<2x2x4x384xbf16, #tpu.memory_space<vmem>>, vector<1x1x4x384xbf16>,
    %525 = arith.mulf %520, %2 : vector<4x384xf32>
    %cst_894 = arith.constant dense<0.000000e+00> : vector<4xf32>
    %526 = vector.multi_reduction <add>, %525, %cst_894 [1] : vector<4x384xf32> to vector<4xf32>
    %527 = vector.shape_cast %526 : vector<4xf32> to vector<4x1xf32>
    %528 = arith.mulf %525, %520 : vector<4x384xf32>
    %cst_895 = arith.constant dense<0.000000e+00> : vector<4xf32>
    %529 = vector.multi_reduction <add>, %528, %cst_895 [1] : vector<4x384xf32> to vector<4xf32>
    %530 = vector.shape_cast %529 : vector<4xf32> to vector<4x1xf32>
    %531 = tpu.concatenate %527, %530 in 1 : vector<4x1xf32>, vector<4x1xf32> -> vector<4x2xf32>
    %532 = arith.addf %266, %531 : vector<4x2xf32>
    %533 = vector.shape_cast %351 : vector<4x2xf32> to vector<1x4x2xf32>
    %534 = vector.shape_cast %532 : vector<4x2xf32> to vector<1x4x2xf32>
    %535 = tpu.concatenate %533, %534 in 0 : vector<1x4x2xf32>, vector<1x4x2xf32> -> vector<2x4x2xf32>
    %cst_896 = arith.constant 0.000000e+00 : f32
    %536 = vector.broadcast %cst_896 : f32 to vector<2x4x126xf32>
    %537 = tpu.concatenate %535, %536 in 2 : vector<2x4x2xf32>, vector<2x4x126xf32> -> vector<2x4x128xf32>
    %c0_897 = arith.constant 0 : index
    %c0_898 = arith.constant 0 : index
    %c0_899 = arith.constant 0 : index
    %c0_900 = arith.constant 0 : index
    %538 = vector.load %arg7[%c0_897, %c0_898, %c0_899, %c0_900] : memref<1x2x4x128xf32, #tpu.memory_space<vmem>>, vector<1x2x4x128xf32>
    %539 = vector.shape_cast %538 : vector<1x2x4x128xf32> to vector<2x4x128xf32>
    %540 = vector.shape_cast %537 : vector<2x4x128xf32> to vector<1x2x4x128xf32>
    tpu.vector_store %arg7[%c0_897, %c0_898, %c0_899, %c0_900], %540 {strides = array<i32>} : memref<1x2x4x128xf32, #tpu.memory_space<vmem>>, vector<1x2x4x128xf32>,
    return
  }
  func.func @transform_0(%arg0: i32) -> (i32, i32, i32) {
    %c0_i32 = arith.constant 0 : i32
    %c0_i32_0 = arith.constant 0 : i32
    %c0_i32_1 = arith.constant 0 : i32
    %c0_i32_2 = arith.constant 0 : i32
    return %c0_i32, %c0_i32_0, %c0_i32_1 : i32, i32, i32
  }
  func.func @transform_1(%arg0: i32) -> (i32, i32, i32) {
    %c0_i32 = arith.constant 0 : i32
    %c0_i32_0 = arith.constant 0 : i32
    %c0_i32_1 = arith.constant 0 : i32
    %c0_i32_2 = arith.constant 0 : i32
    return %c0_i32, %c0_i32_0, %c0_i32_1 : i32, i32, i32
  }
  func.func @transform_2(%arg0: i32) -> (i32, i32, i32) {
    %c0_i32 = arith.constant 0 : i32
    %c0_i32_0 = arith.constant 0 : i32
    %c0_i32_1 = arith.constant 0 : i32
    %c0_i32_2 = arith.constant 0 : i32
    return %c0_i32, %c0_i32_0, %c0_i32_1 : i32, i32, i32
  }
  func.func @transform_3(%arg0: i32) -> (i32, i32, i32, i32) {
    %c0_i32 = arith.constant 0 : i32
    %c0_i32_0 = arith.constant 0 : i32
    %c0_i32_1 = arith.constant 0 : i32
    %c0_i32_2 = arith.constant 0 : i32
    return %arg0, %c0_i32, %c0_i32_0, %c0_i32_1 : i32, i32, i32, i32
  }
  func.func @transform_4(%arg0: i32) -> (i32, i32) {
    %c0_i32 = arith.constant 0 : i32
    %c0_i32_0 = arith.constant 0 : i32
    %c0_i32_1 = arith.constant 0 : i32
    return %c0_i32, %c0_i32_0 : i32, i32
  }
  func.func @transform_5(%arg0: i32) -> (i32, i32, i32, i32) {
    %c0_i32 = arith.constant 0 : i32
    %c0_i32_0 = arith.constant 0 : i32
    %c0_i32_1 = arith.constant 0 : i32
    %c0_i32_2 = arith.constant 0 : i32
    return %arg0, %c0_i32, %c0_i32_0, %c0_i32_1 : i32, i32, i32, i32
  }
  func.func @transform_6(%arg0: i32) -> (i32, i32, i32, i32) {
    %c0_i32 = arith.constant 0 : i32
    %c0_i32_0 = arith.constant 0 : i32
    %c0_i32_1 = arith.constant 0 : i32
    %c0_i32_2 = arith.constant 0 : i32
    return %arg0, %c0_i32, %c0_i32_0, %c0_i32_1 : i32, i32, i32, i32
  }
}

module attributes {stable_mosaic.version = 11 : i64} {
  func.func @_recombine_kernel(%arg0: i32, %arg1: memref<2x2x4x384xbf16, #tpu.memory_space<vmem>>, %arg2: memref<2x4x1xf32, #tpu.memory_space<vmem>>, %arg3: memref<2x4x1xf32, #tpu.memory_space<vmem>>, %arg4: memref<2x2x4x1xf32, #tpu.memory_space<vmem>>, %arg5: memref<2x4x384xf32, #tpu.memory_space<vmem>>) attributes {dimension_semantics = [#tpu.dimension_semantics<parallel>], iteration_bounds = array<i64: 2>, scalar_prefetch = 0 : i64, scratch_operands = 0 : i64, tpu.core_type = #tpu.core_type<tc>, window_params = [{transform_indices = @transform_0, window_bounds = array<i64: 2, 2, 4, 384>}, {pipeline_mode = #tpu.pipeline_mode<synchronous>, transform_indices = @transform_1, window_bounds = array<i64: 2, 4, 1>}, {pipeline_mode = #tpu.pipeline_mode<synchronous>, transform_indices = @transform_2, window_bounds = array<i64: 2, 4, 1>}, {transform_indices = @transform_3, window_bounds = array<i64: 2, 2, 4, 1>}, {transform_indices = @transform_4, window_bounds = array<i64: 2, 4, 384>}]} {
    %c0 = arith.constant 0 : index
    %c0_0 = arith.constant 0 : index
    %c0_1 = arith.constant 0 : index
    %0 = vector.load %arg2[%c0, %c0_0, %c0_1] : memref<2x4x1xf32, #tpu.memory_space<vmem>>, vector<2x4x1xf32>
    %c0_2 = arith.constant 0 : index
    %c0_3 = arith.constant 0 : index
    %c0_4 = arith.constant 0 : index
    %1 = vector.load %arg3[%c0_2, %c0_3, %c0_4] : memref<2x4x1xf32, #tpu.memory_space<vmem>>, vector<2x4x1xf32>
    %c0_5 = arith.constant 0 : index
    %c0_6 = arith.constant 0 : index
    %c0_7 = arith.constant 0 : index
    %c0_8 = arith.constant 0 : index
    %2 = vector.load %arg1[%c0_5, %c0_6, %c0_7, %c0_8] : memref<2x2x4x384xbf16, #tpu.memory_space<vmem>>, vector<1x1x4x384xbf16>
    %3 = vector.shape_cast %2 : vector<1x1x4x384xbf16> to vector<4x384xbf16>
    %4 = arith.extf %3 : vector<4x384xbf16> to vector<4x384xf32>
    %5 = vector.extract_strided_slice %0 {offsets = [0, 0, 0], sizes = [1, 4, 1], strides = [1, 1, 1]} : vector<2x4x1xf32> to vector<1x4x1xf32>
    %6 = vector.shape_cast %5 : vector<1x4x1xf32> to vector<4x1xf32>
    %7 = vector.broadcast %6 : vector<4x1xf32> to vector<4x384xf32>
    %8 = arith.mulf %4, %7 : vector<4x384xf32>
    %9 = vector.extract_strided_slice %1 {offsets = [0, 0, 0], sizes = [1, 4, 1], strides = [1, 1, 1]} : vector<2x4x1xf32> to vector<1x4x1xf32>
    %10 = vector.shape_cast %9 : vector<1x4x1xf32> to vector<4x1xf32>
    %11 = vector.broadcast %10 : vector<4x1xf32> to vector<4x384xf32>
    %12 = arith.addf %8, %11 : vector<4x384xf32>
    %cst = arith.constant 0.000000e+00 : f32
    %13 = vector.broadcast %cst : f32 to vector<4x384xf32>
    %14 = arith.maximumf %12, %13 : vector<4x384xf32>
    %c0_9 = arith.constant 0 : index
    %c0_10 = arith.constant 0 : index
    %c0_11 = arith.constant 0 : index
    %c0_12 = arith.constant 0 : index
    %15 = vector.load %arg4[%c0_9, %c0_10, %c0_11, %c0_12] : memref<2x2x4x1xf32, #tpu.memory_space<vmem>>, vector<1x1x4x1xf32>
    %16 = vector.shape_cast %15 : vector<1x1x4x1xf32> to vector<4x1xf32>
    %17 = vector.broadcast %16 : vector<4x1xf32> to vector<4x384xf32>
    %18 = arith.mulf %14, %17 : vector<4x384xf32>
    %c0_13 = arith.constant 0 : index
    %c1 = arith.constant 1 : index
    %c0_14 = arith.constant 0 : index
    %c0_15 = arith.constant 0 : index
    %19 = vector.load %arg1[%c0_13, %c1, %c0_14, %c0_15] : memref<2x2x4x384xbf16, #tpu.memory_space<vmem>>, vector<1x1x4x384xbf16>
    %20 = vector.shape_cast %19 : vector<1x1x4x384xbf16> to vector<4x384xbf16>
    %21 = arith.extf %20 : vector<4x384xbf16> to vector<4x384xf32>
    %22 = vector.extract_strided_slice %0 {offsets = [1, 0, 0], sizes = [1, 4, 1], strides = [1, 1, 1]} : vector<2x4x1xf32> to vector<1x4x1xf32>
    %23 = vector.shape_cast %22 : vector<1x4x1xf32> to vector<4x1xf32>
    %24 = vector.broadcast %23 : vector<4x1xf32> to vector<4x384xf32>
    %25 = arith.mulf %21, %24 : vector<4x384xf32>
    %26 = vector.extract_strided_slice %1 {offsets = [1, 0, 0], sizes = [1, 4, 1], strides = [1, 1, 1]} : vector<2x4x1xf32> to vector<1x4x1xf32>
    %27 = vector.shape_cast %26 : vector<1x4x1xf32> to vector<4x1xf32>
    %28 = vector.broadcast %27 : vector<4x1xf32> to vector<4x384xf32>
    %29 = arith.addf %25, %28 : vector<4x384xf32>
    %cst_16 = arith.constant 0.000000e+00 : f32
    %30 = vector.broadcast %cst_16 : f32 to vector<4x384xf32>
    %31 = arith.maximumf %29, %30 : vector<4x384xf32>
    %c0_17 = arith.constant 0 : index
    %c1_18 = arith.constant 1 : index
    %c0_19 = arith.constant 0 : index
    %c0_20 = arith.constant 0 : index
    %32 = vector.load %arg4[%c0_17, %c1_18, %c0_19, %c0_20] : memref<2x2x4x1xf32, #tpu.memory_space<vmem>>, vector<1x1x4x1xf32>
    %33 = vector.shape_cast %32 : vector<1x1x4x1xf32> to vector<4x1xf32>
    %34 = vector.broadcast %33 : vector<4x1xf32> to vector<4x384xf32>
    %35 = arith.mulf %31, %34 : vector<4x384xf32>
    %36 = arith.addf %18, %35 : vector<4x384xf32>
    %c0_21 = arith.constant 0 : index
    %c0_22 = arith.constant 0 : index
    %c0_23 = arith.constant 0 : index
    %37 = vector.load %arg5[%c0_21, %c0_22, %c0_23] : memref<2x4x384xf32, #tpu.memory_space<vmem>>, vector<1x4x384xf32>
    %38 = vector.shape_cast %37 : vector<1x4x384xf32> to vector<4x384xf32>
    %39 = vector.shape_cast %36 : vector<4x384xf32> to vector<1x4x384xf32>
    tpu.vector_store %arg5[%c0_21, %c0_22, %c0_23], %39 {strides = array<i32>} : memref<2x4x384xf32, #tpu.memory_space<vmem>>, vector<1x4x384xf32>,
    %c1_24 = arith.constant 1 : index
    %c0_25 = arith.constant 0 : index
    %c0_26 = arith.constant 0 : index
    %c0_27 = arith.constant 0 : index
    %40 = vector.load %arg1[%c1_24, %c0_25, %c0_26, %c0_27] : memref<2x2x4x384xbf16, #tpu.memory_space<vmem>>, vector<1x1x4x384xbf16>
    %41 = vector.shape_cast %40 : vector<1x1x4x384xbf16> to vector<4x384xbf16>
    %42 = arith.extf %41 : vector<4x384xbf16> to vector<4x384xf32>
    %43 = vector.extract_strided_slice %0 {offsets = [0, 0, 0], sizes = [1, 4, 1], strides = [1, 1, 1]} : vector<2x4x1xf32> to vector<1x4x1xf32>
    %44 = vector.shape_cast %43 : vector<1x4x1xf32> to vector<4x1xf32>
    %45 = vector.broadcast %44 : vector<4x1xf32> to vector<4x384xf32>
    %46 = arith.mulf %42, %45 : vector<4x384xf32>
    %47 = vector.extract_strided_slice %1 {offsets = [0, 0, 0], sizes = [1, 4, 1], strides = [1, 1, 1]} : vector<2x4x1xf32> to vector<1x4x1xf32>
    %48 = vector.shape_cast %47 : vector<1x4x1xf32> to vector<4x1xf32>
    %49 = vector.broadcast %48 : vector<4x1xf32> to vector<4x384xf32>
    %50 = arith.addf %46, %49 : vector<4x384xf32>
    %cst_28 = arith.constant 0.000000e+00 : f32
    %51 = vector.broadcast %cst_28 : f32 to vector<4x384xf32>
    %52 = arith.maximumf %50, %51 : vector<4x384xf32>
    %c1_29 = arith.constant 1 : index
    %c0_30 = arith.constant 0 : index
    %c0_31 = arith.constant 0 : index
    %c0_32 = arith.constant 0 : index
    %53 = vector.load %arg4[%c1_29, %c0_30, %c0_31, %c0_32] : memref<2x2x4x1xf32, #tpu.memory_space<vmem>>, vector<1x1x4x1xf32>
    %54 = vector.shape_cast %53 : vector<1x1x4x1xf32> to vector<4x1xf32>
    %55 = vector.broadcast %54 : vector<4x1xf32> to vector<4x384xf32>
    %56 = arith.mulf %52, %55 : vector<4x384xf32>
    %c1_33 = arith.constant 1 : index
    %c1_34 = arith.constant 1 : index
    %c0_35 = arith.constant 0 : index
    %c0_36 = arith.constant 0 : index
    %57 = vector.load %arg1[%c1_33, %c1_34, %c0_35, %c0_36] : memref<2x2x4x384xbf16, #tpu.memory_space<vmem>>, vector<1x1x4x384xbf16>
    %58 = vector.shape_cast %57 : vector<1x1x4x384xbf16> to vector<4x384xbf16>
    %59 = arith.extf %58 : vector<4x384xbf16> to vector<4x384xf32>
    %60 = vector.extract_strided_slice %0 {offsets = [1, 0, 0], sizes = [1, 4, 1], strides = [1, 1, 1]} : vector<2x4x1xf32> to vector<1x4x1xf32>
    %61 = vector.shape_cast %60 : vector<1x4x1xf32> to vector<4x1xf32>
    %62 = vector.broadcast %61 : vector<4x1xf32> to vector<4x384xf32>
    %63 = arith.mulf %59, %62 : vector<4x384xf32>
    %64 = vector.extract_strided_slice %1 {offsets = [1, 0, 0], sizes = [1, 4, 1], strides = [1, 1, 1]} : vector<2x4x1xf32> to vector<1x4x1xf32>
    %65 = vector.shape_cast %64 : vector<1x4x1xf32> to vector<4x1xf32>
    %66 = vector.broadcast %65 : vector<4x1xf32> to vector<4x384xf32>
    %67 = arith.addf %63, %66 : vector<4x384xf32>
    %cst_37 = arith.constant 0.000000e+00 : f32
    %68 = vector.broadcast %cst_37 : f32 to vector<4x384xf32>
    %69 = arith.maximumf %67, %68 : vector<4x384xf32>
    %c1_38 = arith.constant 1 : index
    %c1_39 = arith.constant 1 : index
    %c0_40 = arith.constant 0 : index
    %c0_41 = arith.constant 0 : index
    %70 = vector.load %arg4[%c1_38, %c1_39, %c0_40, %c0_41] : memref<2x2x4x1xf32, #tpu.memory_space<vmem>>, vector<1x1x4x1xf32>
    %71 = vector.shape_cast %70 : vector<1x1x4x1xf32> to vector<4x1xf32>
    %72 = vector.broadcast %71 : vector<4x1xf32> to vector<4x384xf32>
    %73 = arith.mulf %69, %72 : vector<4x384xf32>
    %74 = arith.addf %56, %73 : vector<4x384xf32>
    %c1_42 = arith.constant 1 : index
    %c0_43 = arith.constant 0 : index
    %c0_44 = arith.constant 0 : index
    %75 = vector.load %arg5[%c1_42, %c0_43, %c0_44] : memref<2x4x384xf32, #tpu.memory_space<vmem>>, vector<1x4x384xf32>
    %76 = vector.shape_cast %75 : vector<1x4x384xf32> to vector<4x384xf32>
    %77 = vector.shape_cast %74 : vector<4x384xf32> to vector<1x4x384xf32>
    tpu.vector_store %arg5[%c1_42, %c0_43, %c0_44], %77 {strides = array<i32>} : memref<2x4x384xf32, #tpu.memory_space<vmem>>, vector<1x4x384xf32>,
    return
  }
  func.func @transform_0(%arg0: i32) -> (i32, i32, i32, i32) {
    %c0_i32 = arith.constant 0 : i32
    %c0_i32_0 = arith.constant 0 : i32
    %c0_i32_1 = arith.constant 0 : i32
    %c0_i32_2 = arith.constant 0 : i32
    return %arg0, %c0_i32, %c0_i32_0, %c0_i32_1 : i32, i32, i32, i32
  }
  func.func @transform_1(%arg0: i32) -> (i32, i32, i32) {
    %c0_i32 = arith.constant 0 : i32
    %c0_i32_0 = arith.constant 0 : i32
    %c0_i32_1 = arith.constant 0 : i32
    %c0_i32_2 = arith.constant 0 : i32
    return %c0_i32, %c0_i32_0, %c0_i32_1 : i32, i32, i32
  }
  func.func @transform_2(%arg0: i32) -> (i32, i32, i32) {
    %c0_i32 = arith.constant 0 : i32
    %c0_i32_0 = arith.constant 0 : i32
    %c0_i32_1 = arith.constant 0 : i32
    %c0_i32_2 = arith.constant 0 : i32
    return %c0_i32, %c0_i32_0, %c0_i32_1 : i32, i32, i32
  }
  func.func @transform_3(%arg0: i32) -> (i32, i32, i32, i32) {
    %c0_i32 = arith.constant 0 : i32
    %c0_i32_0 = arith.constant 0 : i32
    %c0_i32_1 = arith.constant 0 : i32
    %c0_i32_2 = arith.constant 0 : i32
    return %arg0, %c0_i32, %c0_i32_0, %c0_i32_1 : i32, i32, i32, i32
  }
  func.func @transform_4(%arg0: i32) -> (i32, i32, i32) {
    %c0_i32 = arith.constant 0 : i32
    %c0_i32_0 = arith.constant 0 : i32
    %c0_i32_1 = arith.constant 0 : i32
    return %arg0, %c0_i32, %c0_i32_0 : i32, i32, i32
  }
}

</mosaic_0001>

<bundles_post_ra>
// kernel: _lambda_.4
= control target key start
LH: loop header
LB: loop body
LE: loop exit
PB: predicated region body
PF: predicated region fallthrough
CT: control target
= control target key end

     0   :  { %s489_s15 = smov 0   ;;  %s537_s0 = inlined_call_operand.vmem [shape: bf16[4,2,4,384], index: 0, kind: input, shape index: {}]   ;;  %s538_s1 = inlined_call_operand.vmem [shape: f32[2,4,1], index: 1, kind: input, shape index: {}]   ;;  %s539_s2 = inlined_call_operand.vmem [shape: f32[2,4,1], index: 2, kind: input, shape index: {}]   ;;  %s540_s3 = inlined_call_operand.vmem [shape: f32[1,384], index: 3, kind: input, shape index: {}]   ;;  %s541_s4 = inlined_call_operand.vmem [shape: f32[4,4,128], index: 4, kind: output, shape index: {}]  }
   0x1 LB: > { %s426_s16 = sadd.s32 4294967295, %s460_s15   ;;  %p430_p0 = scmp.ge.s32.totalorder %s460_s15, 1  ;;  %s460_s15 = sphi %s489_s15, %s14_s15  }
   0x2   : > { %p164_p1 = scmp.lt.s32.totalorder %s460_s15, 3 }
   0x4   : > { %p165_p2 = pnand %p430_p0, %p164_p1 }
   0x5   : > { %s431_s25 = sshll.u32 (!%p165_p2), %s426_s16, 1 }
   0x6   : > { %168 = sbr.rel (%p165_p2) target bundleno = 306 (0x132), region = 36  ;;  %p192_p3 = scmp.lt.s32.totalorder (!%p165_p2), %s431_s25, 3 }
   0xb   : > { %v221_v0 = vld [vmem:[%s539_s2] sm:$0xf]  ;;  %v462_v2 = vmov 0   ;;  %v222_v3 = vld [vmem:[%s539_s2 + $0x4] sm:$0xf]  ;;  %s543_s25 = smov (!%p192_p3, %s431_s25), 3  ;;  %v206_v7 = vlaneseq }
   0xc   : > { %v219_v1 = vld [vmem:[%s538_s1] sm:$0xf]  ;;  %453 = vset.pattern.permute.xlu1 %v462_v2  ;;  %452 = vset.pattern.permute.xlu0 %v462_v2  ;;  %v220_v4 = vld [vmem:[%s538_s1 + $0x4] sm:$0xf]  ;;  %v463_v5 = vmov 839922192  }
   0xd   : > { %242 = vperm.xlu1 %453, %v221_v0   ;;  %228 = vperm.xlu0 %452, %v219_v1   ;;  %v231_v6 = vunpack.c.l.s4 %v463_v5  ;;  %s441_s26 = smul.u32 12, %s543_s25  ;;  %v207_v9 = vshrl.u32 %v206_v7, 7  ;;  %v204_v14 = vld [vmem:[%s540_s3] sm:$0x7]  ;;  %vm263_vm0 = vcmask 1043456   ;;  %s434_s6 = sshll.u32 %s543_s25, 2 }
   0xe   : > { %s202_s9 = scalar_lea.vmem %s541_s4, %s434_s6 }
   0xf   : > { %v232_v8 = vunpack.c.0.s8 %v231_v6  ;;  %s196_s29 = scalar_lea.vmem %s537_s0, %s441_s26  ;;  %v208_v13 = vsub.s32 0, %v207_v9  ;;  %v212_v15 = vsub.s32 1, %v207_v9  ;;  %v216_v27 = vsub.s32 2, %v207_v9 }
  0x10   : > { %v223_v10 = vld [vmem:[%s196_s29] sm:$0x3f]  ;;  %v436_v11 = vld [vmem:[%s196_s29 + $0xc] sm:$0x3f]  ;;  %v435_v20 = vld [vmem:[%s196_s29 + $0x6] sm:$0x3f] }
  0x11   : > { %292 = vperm.xlu1 %453, %v222_v3   ;;  %278 = vperm.xlu0 %452, %v220_v4   ;;  %v235_v12 = vsub.s32 %v232_v8, %v207_v9  ;;  %v224_v16 = vunpack.c.l.bf16 %v223_v10  ;;  %v225_v17 = vunpack.c.h.bf16 %v223_v10  ;;  %v323_v18 = vunpack.c.l.bf16 %v436_v11  ;;  %v437_v21 = vld [vmem:[%s196_s29 + $0x12] sm:$0x3f] }
  0x12   : > { %v324_v19 = vunpack.c.h.bf16 %v436_v11  ;;  %v209_v26 = vrot.slane %v204_v14, %v208_v13  ;;  %v274_v28 = vunpack.c.l.bf16 %v435_v20  ;;  %v275_v29 = vunpack.c.h.bf16 %v435_v20 }
  0x13   : > { %v346_v30 = vunpack.c.l.bf16 %v437_v21  ;;  %v213_v31 = vrot.slane %v204_v14, %v212_v15  ;;  %v347_v38 = vunpack.c.h.bf16 %v437_v21  ;;  %v217_v43 = vrot.slane %v204_v14, %v216_v27 }
  0x15   : > { %v256_v44 = vcombine.low %v209_v26, %v213_v31 }
  0x88   : > { %v243_v22 = vpop.permute.xlu1 %242  ;;  %v229_v23 = vpop.permute.xlu0 %228 }
  0x89   : > { %v250_v24 = vrot.slane %v243_v22, %v235_v12  ;;  %v236_v25 = vrot.slane %v229_v23, %v235_v12 }
  0x8b   : > { %v238_v32 = vmul.f32 %v236_v25, %v224_v16  ;;  %v239_v33 = vmul.f32 %v236_v25, %v225_v17  ;;  %v325_v34 = vmul.f32 %v323_v18, %v236_v25  ;;  %v326_v35 = vmul.f32 %v324_v19, %v236_v25 }
  0x8c   : > { %v293_v36 = vpop.permute.xlu1 %292  ;;  %v279_v37 = vpop.permute.xlu0 %278 }
  0x8d   : > { %v286_v39 = vrot.slane %v279_v37, %v235_v12  ;;  %v252_v40 = vadd.f32 %v250_v24, %v238_v32  ;;  %v253_v41 = vadd.f32 %v250_v24, %v239_v33  ;;  %v300_v42 = vrot.slane %v293_v36, %v235_v12 }
  0x8e   : > { %v327_v45 = vadd.f32 %v325_v34, %v250_v24  ;;  %v328_v49 = vadd.f32 %v326_v35, %v250_v24 }
  0x8f   : > { %v288_v46 = vmul.f32 %v286_v39, %v274_v28  ;;  %v289_v47 = vmul.f32 %v286_v39, %v275_v29  ;;  %v348_v48 = vmul.f32 %v346_v30, %v286_v39  ;;  %v349_v50 = vmul.f32 %v347_v38, %v286_v39 }
  0x90   : > { %v254_v51 = vmax.f32 %v252_v40, 0.0  ;;  %v255_v52 = vmax.f32 %v253_v41, 0.0  ;;  %v329_v53 = vmax.f32 %v327_v45, 0.0  ;;  %v330_v61 = vmax.f32 %v328_v49, 0.0 }
  0x91   : > { %v302_v54 = vadd.f32 %v300_v42, %v288_v46  ;;  %v303_v55 = vadd.f32 %v300_v42, %v289_v47  ;;  %v350_v56 = vadd.f32 %v348_v48, %v300_v42  ;;  %v351_v2 = vadd.f32 %v349_v50, %v300_v42 }
  0x92   : > { %v258_v57 = vmul.f32 %v256_v44, %v254_v51  ;;  %v331_v58 = vmul.f32 %v329_v53, %v256_v44  ;;  %v259_v63 = vmul.f32 %v255_v52, %v217_v43  ;;  %v332_v11 = vmul.f32 %v330_v61, %v217_v43 }
  0x93   : > { %v304_v59 = vmax.f32 %v302_v54, 0.0  ;;  %v305_v60 = vmax.f32 %v303_v55, 0.0  ;;  %v352_v62 = vmax.f32 %v350_v56, 0.0  ;;  %v353_v14 = vmax.f32 %v351_v2, 0.0 }
  0x94   : > { %v261_v0 = vcombine.high %v258_v57, %v258_v57  ;;  %v334_v1 = vcombine.high %v331_v58, %v331_v58  ;;  %v264_v4 = vsel %vm263_vm0, %v258_v57, 0.0  ;;  %v267_v12 = vsel %vm263_vm0, %v259_v63, 0.0 }
  0x95   : > { %v306_v3 = vmul.f32 %v304_v59, %v256_v44  ;;  %v354_v7 = vmul.f32 %v352_v62, %v256_v44  ;;  %v307_v9 = vmul.f32 %v305_v60, %v217_v43  ;;  %v336_v13 = vsel %vm263_vm0, %v331_v58, 0.0 }
  0x96   : > { %v265_v5 = vsel %vm263_vm0, %v261_v0, 0.0  ;;  %v337_v6 = vsel %vm263_vm0, %v334_v1, 0.0  ;;  %v339_v24 = vsel %vm263_vm0, %v332_v11, 0.0  ;;  %v355_v25 = vmul.f32 %v353_v14, %v217_v43 }
  0x97   : > { %v266_v8 = vadd.f32 %v265_v5, %v264_v4  ;;  %v309_v10 = vcombine.high %v306_v3, %v306_v3  ;;  %v357_v15 = vcombine.high %v354_v7, %v354_v7  ;;  %v311_v17 = vsel %vm263_vm0, %v306_v3, 0.0 }
  0x98   : > { %v338_v19 = vadd.f32 %v337_v6, %v336_v13  ;;  %v314_v22 = vsel %vm263_vm0, %v307_v9, 0.0  ;;  %v359_v26 = vsel %vm263_vm0, %v354_v7, 0.0  ;;  %v362_v29 = vsel %vm263_vm0, %v355_v25, 0.0 }
  0x99   : > { %v268_v16 = vadd.f32 %v267_v12, %v266_v8  ;;  %v312_v18 = vsel %vm263_vm0, %v309_v10, 0.0  ;;  %v360_v21 = vsel %vm263_vm0, %v357_v15, 0.0 }
  0x9a   : > { %v313_v20 = vadd.f32 %v312_v18, %v311_v17  ;;  %v340_v27 = vadd.f32 %v339_v24, %v338_v19  ;;  %v361_v28 = vadd.f32 %v360_v21, %v359_v26 }
  0x9b   : > { %269 = vadd.xlane.f32.xlu0 %v268_v16 }
  0x9c   : > { %v315_v23 = vadd.f32 %v314_v22, %v313_v20  ;;  %v363_v30 = vadd.f32 %v362_v29, %v361_v28 }
  0x9e   : > { %316 = vadd.xlane.f32.xlu1 %v315_v23 }
  0x9f   : > { %341 = vadd.xlane.f32.xlu0 %v340_v27 }
  0xa3   : > { %364 = vadd.xlane.f32.xlu0 %v363_v30 }
 0x124   : > { %v270_v31 = vpop.xlane.xlu0 %269 }
 0x127   : > { %v317_v32 = vpop.xlane.xlu1 %316 }
 0x128   : > { %v318_v33 = vadd.f32 %v317_v32, %v270_v31  ;;  %v342_v34 = vpop.xlane.xlu0 %341 }
 0x12a   : > { %v319_v35 = vmul.f32 0.00390625, %v318_v33 }
 0x12c   : > { %320 = vst [vmem:[%s202_s9] sm:$0xf] %v319_v35  ;;  %v365_v36 = vpop.xlane.xlu0 %364 }
 0x12d   : > { %v366_v37 = vadd.f32 %v365_v36, %v342_v34 }
 0x12f   : > { %v367_v38 = vmul.f32 0.00390625, %v366_v37 }
 0x131   : > { %438 = vst [vmem:[%s202_s9 + $0x4] sm:$0xf] %v367_v38 }
 0x132 PF: > { %s14_s15 = sadd.s32 1, %s460_s15  }
 0x133   : > { %p11_p4 = scmp.ge.s32.totalorder %s14_s15, 4  }
 0x135   :  { %13 = sbr.rel (!%p11_p4) target bundleno = 1 (0x1), region = 70 }

// kernel: _lambda_.5
= control target key start
LH: loop header
LB: loop body
LE: loop exit
PB: predicated region body
PF: predicated region fallthrough
CT: control target
= control target key end

     0   :  { %s535_s15 = smov 0   ;;  %s575_s0 = inlined_call_operand.vmem [shape: bf16[4,2,4,384], index: 0, kind: input, shape index: {}]   ;;  %s576_s1 = inlined_call_operand.vmem [shape: f32[2,4,1], index: 1, kind: input, shape index: {}]   ;;  %s577_s2 = inlined_call_operand.vmem [shape: f32[2,4,1], index: 2, kind: input, shape index: {}]   ;;  %s578_s3 = inlined_call_operand.vmem [shape: f32[4,2,4,1], index: 3, kind: input, shape index: {}]   ;;  %s579_s4 = inlined_call_operand.vmem [shape: f32[4,4,384], index: 4, kind: output, shape index: {}]  }
   0x1 LB: > { %s464_s16 = sadd.s32 4294967295, %s506_s15   ;;  %p468_p0 = scmp.ge.s32.totalorder %s506_s15, 1  ;;  %s506_s15 = sphi %s535_s15, %s14_s15  }
   0x2   : > { %p176_p1 = scmp.lt.s32.totalorder %s506_s15, 3 }
   0x4   : > { %p177_p2 = pnand %p468_p0, %p176_p1 }
   0x5   : > { %s469_s21 = sshll.u32 (!%p177_p2), %s464_s16, 1 }
   0x6   : > { %180 = sbr.rel (%p177_p2) target bundleno = 157 (0x9d), region = 36  ;;  %p211_p3 = scmp.lt.s32.totalorder (!%p177_p2), %s469_s21, 3 }
   0xb   : > { %v233_v0 = vld [vmem:[%s577_s2] sm:$0xf]  ;;  %v508_v2 = vmov 0   ;;  %v234_v3 = vld [vmem:[%s577_s2 + $0x4] sm:$0xf]  ;;  %s581_s21 = smov (!%p211_p3, %s469_s21), 3  ;;  %v245_v11 = vlaneseq }
   0xc   : > { %v231_v1 = vld [vmem:[%s576_s1] sm:$0xf]  ;;  %499 = vset.pattern.permute.xlu1 %v508_v2  ;;  %498 = vset.pattern.permute.xlu0 %v508_v2  ;;  %v232_v4 = vld [vmem:[%s576_s1 + $0x4] sm:$0xf]  ;;  %s486_s26 = sshll.u32 %s581_s21, 3  ;;  %s487_s30 = smul.u32 12, %s581_s21 }
   0xd   : > { %254 = vperm.xlu1 %499, %v233_v0   ;;  %240 = vperm.xlu0 %498, %v231_v1   ;;  %s222_s29 = scalar_lea.vmem %s578_s3, %s486_s26  ;;  %v509_v9 = vmov 839922192   ;;  %v246_v13 = vshrl.u32 %v245_v11, 7 }
   0xe   : > { %v477_v5 = vld [vmem:[%s222_s29 + $0x4] sm:$0xf]  ;;  %v268_v6 = vld [vmem:[%s222_s29] sm:$0xf]  ;;  %v481_v7 = vld [vmem:[%s222_s29 + $0xc] sm:$0xf]  ;;  %v243_v10 = vunpack.c.l.s4 %v509_v9  ;;  %s215_s7 = scalar_lea.vmem %s575_s0, %s487_s30  ;;  %s229_s10 = scalar_lea.vmem %s579_s4, %s487_s30 }
   0xf   : > { %v479_v8 = vld [vmem:[%s222_s29 + $0x8] sm:$0xf]  ;;  %v235_v14 = vld [vmem:[%s215_s7] sm:$0x3f]  ;;  %v478_v16 = vld [vmem:[%s215_s7 + $0xc] sm:$0x3f] }
  0x10   : > { %v244_v12 = vunpack.c.0.s8 %v243_v10  ;;  %v236_v17 = vunpack.c.l.bf16 %v235_v14  ;;  %v237_v18 = vunpack.c.h.bf16 %v235_v14  ;;  %v476_v21 = vld [vmem:[%s215_s7 + $0x6] sm:$0x3f]  ;;  %v339_v22 = vunpack.c.l.bf16 %v478_v16  ;;  %v480_v24 = vld [vmem:[%s215_s7 + $0x12] sm:$0x3f] }
  0x11   : > { %303 = vperm.xlu1 %499, %v234_v3   ;;  %289 = vperm.xlu0 %498, %v232_v4   ;;  %v340_v25 = vunpack.c.h.bf16 %v478_v16  ;;  %v285_v26 = vunpack.c.l.bf16 %v476_v21  ;;  %v286_v27 = vunpack.c.h.bf16 %v476_v21  ;;  %v365_v33 = vunpack.c.l.bf16 %v480_v24 }
  0x12   : > { %v247_v15 = vsub.s32 %v244_v12, %v246_v13  ;;  %v366_v34 = vunpack.c.h.bf16 %v480_v24 }
  0x15   : > { %321 = vperm.xlu1 %499, %v477_v5   ;;  %271 = vperm.xlu0 %498, %v268_v6  }
  0x19   : > { %377 = vperm.xlu1 %499, %v481_v7   ;;  %351 = vperm.xlu0 %498, %v479_v8  }
  0x88   : > { %v255_v19 = vpop.permute.xlu1 %254  ;;  %v241_v20 = vpop.permute.xlu0 %240 }
  0x89   : > { %v248_v23 = vrot.slane %v241_v20, %v247_v15  ;;  %v262_v30 = vrot.slane %v255_v19, %v247_v15 }
  0x8b   : > { %v250_v28 = vmul.f32 %v248_v23, %v236_v17  ;;  %v251_v29 = vmul.f32 %v248_v23, %v237_v18  ;;  %v341_v35 = vmul.f32 %v339_v22, %v248_v23  ;;  %v342_v37 = vmul.f32 %v340_v25, %v248_v23 }
  0x8c   : > { %v304_v31 = vpop.permute.xlu1 %303  ;;  %v290_v32 = vpop.permute.xlu0 %289 }
  0x8d   : > { %v297_v36 = vrot.slane %v290_v32, %v247_v15  ;;  %v264_v38 = vadd.f32 %v262_v30, %v250_v28  ;;  %v265_v39 = vadd.f32 %v262_v30, %v251_v29  ;;  %v311_v40 = vrot.slane %v304_v31, %v247_v15 }
  0x8e   : > { %v343_v47 = vadd.f32 %v341_v35, %v262_v30  ;;  %v344_v51 = vadd.f32 %v342_v37, %v262_v30 }
  0x8f   : > { %v299_v41 = vmul.f32 %v297_v36, %v285_v26  ;;  %v300_v42 = vmul.f32 %v297_v36, %v286_v27  ;;  %v367_v45 = vmul.f32 %v365_v33, %v297_v36  ;;  %v368_v46 = vmul.f32 %v366_v34, %v297_v36 }
  0x90   : > { %v322_v43 = vpop.permute.xlu1 %321  ;;  %v272_v44 = vpop.permute.xlu0 %271  ;;  %v266_v52 = vmax.f32 %v264_v38, 0.0  ;;  %v267_v53 = vmax.f32 %v265_v39, 0.0  ;;  %v345_v5 = vmax.f32 %v343_v47, 0.0  ;;  %v346_v6 = vmax.f32 %v344_v51, 0.0 }
  0x91   : > { %v313_v48 = vadd.f32 %v311_v40, %v299_v41  ;;  %v314_v49 = vadd.f32 %v311_v40, %v300_v42  ;;  %v279_v50 = vrot.slane %v272_v44, %v247_v15  ;;  %v369_v54 = vadd.f32 %v367_v45, %v311_v40 }
  0x92   : > { %v370_v55 = vadd.f32 %v368_v46, %v311_v40  ;;  %v329_v58 = vrot.slane %v322_v43, %v247_v15 }
  0x93   : > { %v315_v56 = vmax.f32 %v313_v48, 0.0  ;;  %v316_v57 = vmax.f32 %v314_v49, 0.0  ;;  %v281_v59 = vmul.f32 %v279_v50, %v266_v52  ;;  %v282_v60 = vmul.f32 %v279_v50, %v267_v53 }
  0x94   : > { %v378_v61 = vpop.permute.xlu1 %377  ;;  %v371_v62 = vmax.f32 %v369_v54, 0.0  ;;  %v372_v63 = vmax.f32 %v370_v55, 0.0  ;;  %v352_v0 = vpop.permute.xlu0 %351 }
  0x95   : > { %v331_v1 = vmul.f32 %v329_v58, %v315_v56  ;;  %v332_v2 = vmul.f32 %v329_v58, %v316_v57  ;;  %v385_v3 = vrot.slane %v378_v61, %v247_v15  ;;  %v359_v4 = vrot.slane %v352_v0, %v247_v15 }
  0x97   : > { %v333_v7 = vadd.f32 %v331_v1, %v281_v59  ;;  %v334_v8 = vadd.f32 %v332_v2, %v282_v60  ;;  %v387_v9 = vmul.f32 %v385_v3, %v371_v62  ;;  %v388_v10 = vmul.f32 %v385_v3, %v372_v63 }
  0x98   : > { %v361_v11 = vmul.f32 %v359_v4, %v345_v5  ;;  %v362_v12 = vmul.f32 %v359_v4, %v346_v6 }
  0x99   : > { %335 = vst [vmem:[%s229_s10] sm:$0xff] %v333_v7  ;;  %336 = vst [vmem:[%s229_s10 + $0x8] sm:$0xf] %v334_v8 }
  0x9a   : > { %v389_v13 = vadd.f32 %v387_v9, %v361_v11  ;;  %v390_v14 = vadd.f32 %v388_v10, %v362_v12 }
  0x9c   : > { %482 = vst [vmem:[%s229_s10 + $0xc] sm:$0xff] %v389_v13  ;;  %483 = vst [vmem:[%s229_s10 + $0x14] sm:$0xf] %v390_v14 }
  0x9d PF: > { %s14_s15 = sadd.s32 1, %s506_s15  }
  0x9e   : > { %p11_p4 = scmp.ge.s32.totalorder %s14_s15, 4  }
  0xa0   :  { %13 = sbr.rel (!%p11_p4) target bundleno = 1 (0x1), region = 76 }

// kernel: _lambda_.3
= control target key start
LH: loop header
LB: loop body
LE: loop exit
PB: predicated region body
PF: predicated region fallthrough
CT: control target
= control target key end

     0   :  { %s7620_s21 = smov 0   ;;  %s9073_s0 = inlined_call_operand.vmem [shape: bf16[2,2,18], index: 0, kind: input, shape index: {}]   ;;  %s9074_s1 = inlined_call_operand.vmem [shape: bf16[2,2,50], index: 1, kind: input, shape index: {}]   ;;  %s9075_s2 = inlined_call_operand.vmem [shape: f32[2,4,1], index: 2, kind: input, shape index: {}]   ;;  %s9076_s3 = inlined_call_operand.vmem [shape: bf16[4,2,2,512], index: 3, kind: input, shape index: {}]   ;;  %s9077_s4 = inlined_call_operand.vmem [shape: f32[1,384], index: 4, kind: input, shape index: {}]   ;;  %s9078_s5 = inlined_call_operand.vmem [shape: bf16[4,2,4,384], index: 5, kind: output, shape index: {0}]   ;;  %s9079_s6 = inlined_call_operand.vmem [shape: f32[2,2,4,128], index: 6, kind: output, shape index: {1}]  }
   0x1 LB: > { %s7626_s22 = sadd.s32 4294967295, %s7554_s21   ;;  %p6969_p0 = scmp.ge.s32.totalorder %s7554_s21, 1  ;;  %s7554_s21 = sphi %s7620_s21, %s17_s21  }
   0x2   : > { %p216_p1 = scmp.lt.s32.totalorder %s7554_s21, 3 }
   0x4   : > { %p217_p2 = pnand %p6969_p0, %p216_p1 }
   0x5   : > { %s6970_s23 = sshll.u32 (!%p217_p2), %s7626_s22, 1  ;;  %s9080_s28 = smov (!%p217_p2), 106  }
   0x6   : > { %220 = sbr.rel (%p217_p2) target bundleno = 1177 (0x499), region = 40  ;;  %p253_p3 = scmp.lt.s32.totalorder (!%p217_p2), %s6970_s23, 3 }
   0x7   : > { %s9115_s29 = smov (!%p217_p2), 107   ;;  %s9088_s30 = smov (!%p217_p2), 86  }
   0x8   : > { %s9090_s7 = smov (!%p217_p2), 87   ;;  %s9127_s8 = smov (!%p217_p2), 105  }
   0x9   : > { %s9086_s9 = smov (!%p217_p2), 85   ;;  %s7564_s10 = smov (!%p217_p2), 67  }
   0xa   : > { %s7565_s11 = smov (!%p217_p2), 66   ;;  %s7567_s12 = smov (!%p217_p2), 65  }
   0xb   : > { %v273_v0 = vlaneseq  ;;  %v7556_v1 = vmov 1935823168   ;;  %v7557_v3 = vmov 0   ;;  %s9264_s23 = smov (!%p253_p3, %s6970_s23), 3  ;;  %v7566_v35 = vmov 0.0   ;;  %s9117_s17 = smov 127  }
   0xc   : > { %v297_v2 = vunpack.c.l.s4 %v7556_v1  ;;  %7422 = vset.pattern.permute.xlu0 %v7557_v3  ;;  %716 = vmatprep.mubr.bf16.mxu0 %v7557_v3  ;;  %s6971_s24 = sshll.u32 %s9264_s23, 3  ;;  %v640_v40 = vld [vmem:[%s9075_s2] sm:$0x3]  ;;  %vm9093_vm0 = vmmov 0   ;;  %v1117_v63 = vld [vmem:[%s9075_s2 + $0x2] sm:$0x3] }
   0xd   : > { %v7633_v4 = vshrl.u32 %v273_v0, 7  ;;  %7423 = vset.pattern.permute.xlu1 %v7557_v3  ;;  %s7645_s27 = scalar_lea.vmem %s9076_s3, %s6971_s24  ;;  %7304 = vmatprep.subr.bf16.mxu1 %v7566_v35  ;;  %s9105_s18 = smov 126   ;;  %vm9096_vm1 = vcmask 867328   ;;  %vm316_vm2 = vcmask 1043456   ;;  %vm9109_vm3 = vcmask 703488  }
   0xe   : > { %v298_v5 = vunpack.c.0.s8 %v297_v2  ;;  %v6977_v7 = vld.sshfl [vmem:[%s7645_s27] sm:$0x55 pattern:$0x73625140]  ;;  %v7428_v38 = vld [vmem:[%s7645_s27 + $0x4] ss:$0 sps:$4 sm:$0xff]   ;;  %7308 = vmatprep.mubr.msk.bf16.mxu1 %vm9093_vm0, %v7566_v35 }
   0xf   : > { %v334_v9 = vcombine.low %v6977_v7, %v6977_v7  ;;  %v7424_v10 = vld [vmem:[%s7645_s27] ss:$0 sps:$4 sm:$0xff]   ;;  %v295_v11 = vcombine.high %v6977_v7, %v6977_v7  ;;  %v6991_v33 = vld.sshfl [vmem:[%s7645_s27 + $0x4] sm:$0x55 pattern:$0x73625140] }
  0x10   : > { %v7640_v6 = vsub.s32 %v298_v5, %v7633_v4  ;;  %v7425_v13 = vld [vmem:[%s7645_s27] ss:$0 sps:$4 sm:$0xff]   ;;  %v781_v34 = vcombine.high %v6991_v33, %v6991_v33  ;;  %v818_v37 = vcombine.low %v6991_v33, %v6991_v33  ;;  %v7429_v39 = vld [vmem:[%s7645_s27 + $0x4] ss:$0 sps:$4 sm:$0xff]   ;;  %s9103_s19 = smov 125   ;;  %s9101_s20 = smov 124  }
  0x11   : > { %v7426_v21 = vld [vmem:[%s7645_s27] ss:$0 sps:$4 sm:$0xff]   ;;  %v7430_v51 = vld [vmem:[%s7645_s27 + $0x4] ss:$0 sps:$4 sm:$0xff]   ;;  %s9098_s24 = smov 108   ;;  %s9125_s25 = smov 104  }
  0x12   : > { %v7649_v8 = vrot.slane %v6977_v7, %v7640_v6  ;;  %v7657_v12 = vrot.slane %v334_v9, %v7640_v6  ;;  %v411_v14 = vrot.slane %v7424_v10, %v7640_v6  ;;  %v7666_v15 = vrot.slane %v295_v11, %v7640_v6  ;;  %v7427_v25 = vld [vmem:[%s7645_s27] ss:$0 sps:$4 sm:$0xff]   ;;  %v7431_v52 = vld [vmem:[%s7645_s27 + $0x4] ss:$0 sps:$4 sm:$0xff]   ;;  %s9123_s26 = smov 88   ;;  %s9084_s13 = smov 84  }
  0x13   : > { %v372_v16 = vrot.slane %v7425_v13, %v7640_v6  ;;  %v526_v24 = vrot.slane %v7426_v21, %v7640_v6  ;;  %v565_v27 = vrot.slane %v7427_v25, %v7640_v6  ;;  %v7704_v36 = vrot.slane %v6991_v33, %v7640_v6  ;;  %v7432_v61 = vld [vmem:[%s7645_s27] ss:$0 sps:$4 sm:$0xff]   ;;  %s9082_s14 = smov 68   ;;  %s7578_s15 = smov 64  }
  0x14   : > { %351 = vrot.lane.b32.xlu1 %v7649_v8, %s9080_s28  ;;  %310 = vrot.lane.b32.xlu0 %v7649_v8, %s9115_s29  ;;  %v426_v17 = vrot.slane %v411_v14, %v7640_v6  ;;  %v412_v20 = vcombine.low %v411_v14, %v411_v14  ;;  %v7712_v41 = vrot.slane %v781_v34, %v7640_v6  ;;  %v7433_v62 = vld [vmem:[%s7645_s27] ss:$0 sps:$4 sm:$0xff]   ;;  %vm9097_vm4 = vcmask 875520   ;;  %s7579_s16 = smov 48   ;;  %p265_p4 = scmp.lt.s32.totalorder %s7626_s22, 1 }
  0x15   : > { %v380_v18 = vrot.slane %v372_v16, %v7640_v6  ;;  %v373_v19 = vcombine.high %v372_v16, %v372_v16  ;;  %v527_v26 = vcombine.high %v526_v24, %v526_v24  ;;  %v534_v29 = vrot.slane %v526_v24, %v7640_v6  ;;  %v7434_v13 = vld [vmem:[%s7645_s27] ss:$0 sps:$4 sm:$0xff]  }
  0x16   : > { %v419_v23 = vrot.slane %v412_v20, %v7640_v6  ;;  %v566_v30 = vcombine.low %v565_v27, %v565_v27  ;;  %v580_v31 = vrot.slane %v565_v27, %v7640_v6  ;;  %v7717_v42 = vrot.slane %v818_v37, %v7640_v6  ;;  %v7435_v14 = vld [vmem:[%s7645_s27] ss:$0 sps:$4 sm:$0xff]   ;;  %s9266_s22 = smov (!%p265_p4, %s7626_s22), 1 }
  0x17   : > { %v387_v22 = vrot.slane %v373_v19, %v7640_v6  ;;  %v541_v28 = vrot.slane %v527_v26, %v7640_v6  ;;  %v855_v43 = vrot.slane %v7428_v38, %v7640_v6  ;;  %v893_v44 = vrot.slane %v7429_v39, %v7640_v6  ;;  %v7436_v24 = vld [vmem:[%s7645_s27] ss:$0 sps:$4 sm:$0xff]  }
  0x18   : > { %349 = vrot.lane.b32.xlu1 %v7657_v12, %s9080_s28  ;;  %465 = vrot.lane.b32.xlu0 %v7649_v8, %s9088_s30  ;;  %v573_v32 = vrot.slane %v566_v30, %v7640_v6  ;;  %v1005_v53 = vrot.slane %v7430_v51, %v7640_v6  ;;  %v1043_v54 = vrot.slane %v7431_v52, %v7640_v6  ;;  %v7437_v25 = vld [vmem:[%s7645_s27] ss:$0 sps:$4 sm:$0xff]   ;;  %vm9110_vm5 = vcmask 711680  }
  0x19   : > { %v863_v45 = vrot.slane %v855_v43, %v7640_v6  ;;  %v856_v46 = vcombine.high %v855_v43, %v855_v43  ;;  %v894_v47 = vcombine.low %v893_v44, %v893_v44  ;;  %v908_v50 = vrot.slane %v893_v44, %v7640_v6  ;;  %v7438_v38 = vld [vmem:[%s7645_s27] ss:$0 sps:$4 sm:$0xff]  }
  0x1a   : > { %v1013_v55 = vrot.slane %v1005_v53, %v7640_v6  ;;  %v1006_v56 = vcombine.high %v1005_v53, %v1005_v53  ;;  %v1044_v57 = vcombine.low %v1043_v54, %v1043_v54  ;;  %v1058_v60 = vrot.slane %v1043_v54, %v7640_v6 }
  0x1b   : > { %v870_v48 = vrot.slane %v856_v46, %v7640_v6  ;;  %v901_v49 = vrot.slane %v894_v47, %v7640_v6  ;;  %v1383_v0 = vrot.slane %v7432_v61, %v7640_v6  ;;  %v1422_v1 = vrot.slane %v7433_v62, %v7640_v6 }
  0x1c   : > { %467 = vrot.lane.b32.xlu1 %v7666_v15, %s9088_s30  ;;  %312 = vrot.lane.b32.xlu0 %v7666_v15, %s9115_s29  ;;  %v1020_v58 = vrot.slane %v1006_v56, %v7640_v6  ;;  %v1051_v59 = vrot.slane %v1044_v57, %v7640_v6  ;;  %v1537_v16 = vrot.slane %v7434_v13, %v7640_v6  ;;  %vm9114_vm6 = vcmask 859136  }
  0x1d   : > { %v1384_v2 = vcombine.high %v1383_v0, %v1383_v0  ;;  %v1391_v5 = vrot.slane %v1383_v0, %v7640_v6  ;;  %v1423_v7 = vcombine.low %v1422_v1, %v1422_v1  ;;  %v1437_v11 = vrot.slane %v1422_v1, %v7640_v6 }
  0x1e   : > { %v1545_v19 = vrot.slane %v1537_v16, %v7640_v6  ;;  %v1688_v26 = vrot.slane %v7436_v24, %v7640_v6  ;;  %v1727_v27 = vrot.slane %v7437_v25, %v7640_v6  ;;  %v1839_v46 = vrot.slane %v7438_v38, %v7640_v6 }
  0x1f   : > { %v1398_v9 = vrot.slane %v1384_v2, %v7640_v6  ;;  %v1430_v10 = vrot.slane %v1423_v7, %v7640_v6  ;;  %vm9100_vm7 = vcmask 695296   ;;  %vm549_vm8 = vcmask 547840  }
  0x20   : > { %429 = vrot.lane.b32.xlu1 %v426_v17, %s9090_s7  ;;  %388 = vrot.lane.b32.xlu0 %v380_v18, %s9127_s8  ;;  %v1575_v17 = vrot.slane %v7435_v14, %v7640_v6  ;;  %v1538_v18 = vcombine.high %v1537_v16, %v1537_v16  ;;  %v1728_v30 = vcombine.low %v1727_v27, %v1727_v27  ;;  %vm588_vm9 = vcmask 539648  }
  0x21   : > { %v1742_v33 = vrot.slane %v1727_v27, %v7640_v6  ;;  %vm626_vm10 = vcmask 531456   ;;  %vm674_vm11 = vcmask 1040384   ;;  %vm9095_vm12 = vcmask 146432  }
  0x22   : > { %v1576_v20 = vcombine.low %v1575_v17, %v1575_v17  ;;  %v1552_v21 = vrot.slane %v1538_v18, %v7640_v6  ;;  %vm9113_vm13 = vcmask 1039360   ;;  %vm9092_vm14 = vcmask 1031168  }
  0x23   : > { %vm9121_vm15 = vcmask 1022976  }
  0x24   : > { %390 = vrot.lane.b32.xlu1 %v387_v22, %s9127_s8  ;;  %427 = vrot.lane.b32.xlu0 %v419_v23, %s9090_s7  ;;  %v1583_v22 = vrot.slane %v1576_v20, %v7640_v6  ;;  %v1590_v23 = vrot.slane %v1575_v17, %v7640_v6  ;;  %v7440_v17 = vld [vmem:[%s7645_s27] ss:$0 sps:$4 sm:$0xff]  }
  0x28   : > { %505 = vrot.lane.b32.xlu1 %v7649_v8, %s9086_s9  ;;  %503 = vrot.lane.b32.xlu0 %v7657_v12, %s9086_s9 }
  0x2c   : > { %544 = vrot.lane.b32.xlu1 %v541_v28, %s7564_s10  ;;  %542 = vrot.lane.b32.xlu0 %v534_v29, %s7564_s10  ;;  %v1689_v28 = vcombine.high %v1688_v26, %v1688_v26  ;;  %v1696_v29 = vrot.slane %v1688_v26, %v7640_v6 }
  0x30   : > { %583 = vrot.lane.b32.xlu1 %v580_v31, %s7565_s11  ;;  %581 = vrot.lane.b32.xlu0 %v573_v32, %s7565_s11  ;;  %v1703_v31 = vrot.slane %v1689_v28, %v7640_v6  ;;  %v1735_v32 = vrot.slane %v1728_v30, %v7640_v6 }
  0x34   : > { %621 = vrot.lane.b32.xlu1 %v7666_v15, %s7567_s12  ;;  %619 = vrot.lane.b32.xlu0 %v7649_v8, %s7567_s12 }
  0x38   : > { %796 = vrot.lane.b32.xlu1 %v7704_v36, %s9115_s29  ;;  %643 = vperm.xlu0 %7422, %v640_v40   ;;  %v7439_v40 = vld [vmem:[%s7645_s27] ss:$0 sps:$4 sm:$0xff]  }
  0x3c   : > { %798 = vrot.lane.b32.xlu1 %v7712_v41, %s9115_s29  ;;  %833 = vrot.lane.b32.xlu0 %v7717_v42, %s9080_s28 }
  0x40   : > { %835 = vrot.lane.b32.xlu1 %v7704_v36, %s9080_s28  ;;  %871 = vrot.lane.b32.xlu0 %v863_v45, %s9127_s8 }
  0x44   : > { %873 = vrot.lane.b32.xlu1 %v870_v48, %s9127_s8  ;;  %909 = vrot.lane.b32.xlu0 %v901_v49, %s9090_s7  ;;  %v1878_v48 = vrot.slane %v7439_v40, %v7640_v6  ;;  %v1840_v49 = vcombine.high %v1839_v46, %v1839_v46 }
  0x48   : > { %911 = vrot.lane.b32.xlu1 %v908_v50, %s9090_s7  ;;  %946 = vrot.lane.b32.xlu0 %v7704_v36, %s9088_s30 }
  0x4c   : > { %948 = vrot.lane.b32.xlu1 %v7712_v41, %s9088_s30  ;;  %983 = vrot.lane.b32.xlu0 %v7717_v42, %s9086_s9 }
  0x50   : > { %985 = vrot.lane.b32.xlu1 %v7704_v36, %s9086_s9  ;;  %1021 = vrot.lane.b32.xlu0 %v1013_v55, %s7564_s10 }
  0x54   : > { %1023 = vrot.lane.b32.xlu1 %v1020_v58, %s7564_s10  ;;  %1059 = vrot.lane.b32.xlu0 %v1051_v59, %s7565_s11  ;;  %v1847_v58 = vrot.slane %v1839_v46, %v7640_v6  ;;  %v1879_v59 = vcombine.low %v1878_v48, %v1878_v48 }
  0x58   : > { %1061 = vrot.lane.b32.xlu1 %v1058_v60, %s7565_s11  ;;  %1096 = vrot.lane.b32.xlu0 %v7704_v36, %s7567_s12  ;;  %v1854_v60 = vrot.slane %v1840_v49, %v7640_v6 }
  0x5c   : > { %1098 = vrot.lane.b32.xlu1 %v7712_v41, %s7567_s12  ;;  %1120 = vperm.xlu0 %7422, %v1117_v63  }
  0x60   : > { %1362 = vrot.lane.b32.xlu1 %v7649_v8, %s9117_s17  ;;  %1360 = vrot.lane.b32.xlu0 %v7657_v12, %s9117_s17 }
  0x64   : > { %1399 = vrot.lane.b32.xlu1 %v1391_v5, %s9105_s18  ;;  %1401 = vrot.lane.b32.xlu0 %v1398_v9, %s9105_s18 }
  0x68   : > { %1438 = vrot.lane.b32.xlu1 %v1430_v10, %s9103_s19  ;;  %1440 = vrot.lane.b32.xlu0 %v1437_v11, %s9103_s19  ;;  %v1886_v10 = vrot.slane %v1879_v59, %v7640_v6  ;;  %v1893_v11 = vrot.slane %v1878_v48, %v7640_v6 }
  0x6c   : > { %1476 = vrot.lane.b32.xlu1 %v7649_v8, %s9101_s20  ;;  %1478 = vrot.lane.b32.xlu0 %v7666_v15, %s9101_s20 }
  0x70   : > { %1514 = vrot.lane.b32.xlu1 %v7657_v12, %s9098_s24  ;;  %1516 = vrot.lane.b32.xlu0 %v7649_v8, %s9098_s24 }
  0x74   : > { %1553 = vrot.lane.b32.xlu1 %v1545_v19, %s9115_s29  ;;  %1555 = vrot.lane.b32.xlu0 %v1552_v21, %s9115_s29  ;;  %v7441_v21 = vld [vmem:[%s7645_s27] ss:$0 sps:$4 sm:$0xff]  }
  0x78   : > { %1591 = vrot.lane.b32.xlu1 %v1583_v22, %s9080_s28  ;;  %1593 = vrot.lane.b32.xlu0 %v1590_v23, %s9080_s28  ;;  %s7580_s28 = smov 47  }
  0x7c   : > { %1628 = vrot.lane.b32.xlu1 %v7649_v8, %s9127_s8  ;;  %1630 = vrot.lane.b32.xlu0 %v7666_v15, %s9127_s8 }
  0x80   : > { %1665 = vrot.lane.b32.xlu1 %v7657_v12, %s9125_s25  ;;  %1667 = vrot.lane.b32.xlu0 %v7649_v8, %s9125_s25 }
  0x84   : > { %1704 = vrot.lane.b32.xlu1 %v1696_v29, %s9123_s26  ;;  %1706 = vrot.lane.b32.xlu0 %v1703_v31, %s9123_s26  ;;  %v1991_v29 = vrot.slane %v7440_v17, %v7640_v6 }
  0x86   : > { %v352_v34 = vpop.permute.xlu1 %351  ;;  %v311_v37 = vpop.permute.xlu0 %310 }
  0x87   : > { %v354_v39 = vrot.slane %v352_v34, 4  ;;  %v314_v54 = vrot.slane %v311_v37, 4 }
  0x88   : > { %1743 = vrot.lane.b32.xlu1 %v1735_v32, %s9090_s7  ;;  %1745 = vrot.lane.b32.xlu0 %v1742_v33, %s9090_s7  ;;  %v2029_v32 = vrot.slane %v7441_v21, %v7640_v6  ;;  %v1992_v33 = vcombine.high %v1991_v29, %v1991_v29  ;;  %s9133_s7 = smov 87  }
  0x89   : > { %v358_v43 = vsel %vm9096_vm1, %v352_v34, %v354_v39 }
  0x8a   : > { %362 = vst [vmem:[#allocation3 + $0x8] sm:$0x2] %v358_v43  ;;  %v350_v44 = vpop.permute.xlu1 %349  ;;  %v466_v45 = vpop.permute.xlu0 %465  ;;  %v2030_v46 = vcombine.low %v2029_v32, %v2029_v32 }
  0x8b   : > { %v353_v47 = vrot.slane %v350_v44, 4  ;;  %v469_v55 = vrot.slane %v466_v45, 4 }
  0x8c   : > { %1780 = vrot.lane.b32.xlu1 %v7649_v8, %s9088_s30  ;;  %1782 = vrot.lane.b32.xlu0 %v7666_v15, %s9088_s30  ;;  %s7583_s30 = smov 44  }
  0x8d   : > { %v355_v50 = vsel %vm316_vm2, %v353_v47, %v354_v39  ;;  %v2006_v47 = vrot.slane %v1992_v33, %v7640_v6 }
  0x8e   : > { %v357_v51 = vsel %vm9096_vm1, %v350_v44, %v355_v50  ;;  %v468_v52 = vpop.permute.xlu1 %467  ;;  %v313_v53 = vpop.permute.xlu0 %312 }
  0x8f   : > { %361 = vst [vmem:[#allocation3] sm:$0x22] %v357_v51  ;;  %v470_v56 = vrot.slane %v468_v52, 4  ;;  %v315_v57 = vrot.slane %v313_v53, 4 }
  0x90   : > { %1817 = vrot.lane.b32.xlu1 %v7657_v12, %s9086_s9  ;;  %1819 = vrot.lane.b32.xlu0 %v7649_v8, %s9086_s9  ;;  %s9134_s9 = smov 86  }
  0x91   : > { %v471_v61 = vsel %vm316_vm2, %v469_v55, %v470_v56  ;;  %v474_v62 = vsel %vm9109_vm3, %v468_v52, %v470_v56  ;;  %v317_v63 = vsel %vm316_vm2, %v314_v54, %v315_v57  ;;  %v320_v0 = vsel %vm9097_vm4, %v313_v53, %v315_v57 }
  0x92   : > { %v473_v1 = vsel %vm9109_vm3, %v466_v45, %v471_v61  ;;  %478 = vst [vmem:[#allocation3 + $0x14] sm:$0x1] %v474_v62  ;;  %v319_v2 = vsel %vm9097_vm4, %v311_v37, %v317_v63  ;;  %324 = vst [vmem:[#allocation3 + $0x8] sm:$0x1] %v320_v0  ;;  %v430_v5 = vpop.permute.xlu1 %429  ;;  %v389_v7 = vpop.permute.xlu0 %388  ;;  %v1999_v45 = vrot.slane %v1991_v29, %v7640_v6  ;;  %v7442_v0 = vld [vmem:[%s7645_s27] ss:$0 sps:$4 sm:$0xff]  }
  0x93   : > { %477 = vst [vmem:[#allocation3 + $0xc] sm:$0x11] %v473_v1  ;;  %323 = vst [vmem:[#allocation3] sm:$0x11] %v319_v2  ;;  %v432_v9 = vrot.slane %v430_v5, 4  ;;  %v392_v18 = vrot.slane %v389_v7, 4  ;;  %v2037_v55 = vrot.slane %v2030_v46, %v7640_v6  ;;  %v2044_v56 = vrot.slane %v2029_v32, %v7640_v6 }
  0x94   : > { %1855 = vrot.lane.b32.xlu1 %v1847_v58, %s9084_s13  ;;  %1857 = vrot.lane.b32.xlu0 %v1854_v60, %s9084_s13  ;;  %v7446_v1 = vld [vmem:[%s7645_s27] ss:$0 sps:$4 sm:$0xff]   ;;  %s9129_s13 = smov 45  }
  0x95   : > { %v436_v13 = vsel %vm9110_vm5, %v430_v5, %v432_v9 }
  0x96   : > { %440 = vst [vmem:[#allocation3 + $0x8] sm:$0x8] %v436_v13  ;;  %v391_v14 = vpop.permute.xlu1 %390  ;;  %v428_v16 = vpop.permute.xlu0 %427 }
  0x97   : > { %v393_v19 = vrot.slane %v391_v14, 4  ;;  %v431_v20 = vrot.slane %v428_v16, 4 }
  0x98   : > { %1894 = vrot.lane.b32.xlu1 %v1886_v10, %s9082_s14  ;;  %1896 = vrot.lane.b32.xlu0 %v1893_v11, %s9082_s14  ;;  %v2144_v10 = vrot.slane %v7442_v0, %v7640_v6  ;;  %v2183_v11 = vrot.slane %v7446_v1, %v7640_v6  ;;  %s9131_s14 = smov 46  }
  0x99   : > { %v394_v22 = vsel %vm316_vm2, %v392_v18, %v393_v19  ;;  %v397_v23 = vsel %vm9114_vm6, %v391_v14, %v393_v19  ;;  %v433_v24 = vsel %vm316_vm2, %v431_v20, %v432_v9 }
  0x9a   : > { %v396_v25 = vsel %vm9114_vm6, %v389_v7, %v394_v22  ;;  %401 = vst [vmem:[#allocation3 + $0x8] sm:$0x4] %v397_v23  ;;  %v435_v26 = vsel %vm9110_vm5, %v428_v16, %v433_v24  ;;  %v506_v27 = vpop.permute.xlu1 %505  ;;  %v504_v28 = vpop.permute.xlu0 %503  ;;  %v2145_v16 = vcombine.high %v2144_v10, %v2144_v10  ;;  %v2152_v19 = vrot.slane %v2144_v10, %v7640_v6 }
  0x9b   : > { %400 = vst [vmem:[#allocation3] sm:$0x44] %v396_v25  ;;  %439 = vst [vmem:[#allocation3] sm:$0x88] %v435_v26  ;;  %v508_v30 = vrot.slane %v506_v27, 4  ;;  %v507_v31 = vrot.slane %v504_v28, 4  ;;  %v2184_v20 = vcombine.low %v2183_v11, %v2183_v11 }
  0x9c   : > { %1932 = vrot.lane.b32.xlu1 %v7649_v8, %s7564_s10  ;;  %1934 = vrot.lane.b32.xlu0 %v7666_v15, %s7564_s10 }
  0x9d   : > { %v512_v34 = vsel %vm9100_vm7, %v506_v27, %v508_v30  ;;  %v509_v37 = vsel %vm316_vm2, %v507_v31, %v508_v30 }
  0x9e   : > { %516 = vst [vmem:[#allocation3 + $0x14] sm:$0x2] %v512_v34  ;;  %v511_v38 = vsel %vm9100_vm7, %v504_v28, %v509_v37  ;;  %v545_v39 = vpop.permute.xlu1 %544  ;;  %v543_v40 = vpop.permute.xlu0 %542  ;;  %v2191_v37 = vrot.slane %v2184_v20, %v7640_v6 }
  0x9f   : > { %515 = vst [vmem:[#allocation3 + $0xc] sm:$0x22] %v511_v38  ;;  %v547_v43 = vrot.slane %v545_v39, 4  ;;  %v546_v44 = vrot.slane %v543_v40, 4 }
  0xa0   : > { %1969 = vrot.lane.b32.xlu1 %v7657_v12, %s7565_s11  ;;  %1971 = vrot.lane.b32.xlu0 %v7649_v8, %s7565_s11 }
  0xa1   : > { %v551_v48 = vsel %vm549_vm8, %v545_v39, %v547_v43  ;;  %v548_v49 = vsel %vm316_vm2, %v546_v44, %v547_v43  ;;  %v635_v18 = vld [vmem:[#allocation3 + $0x8] sm:$0xf] }
  0xa2   : > { %555 = vst [vmem:[#allocation3 + $0x14] sm:$0x4] %v551_v48  ;;  %v550_v50 = vsel %vm549_vm8, %v543_v40, %v548_v49  ;;  %v584_v51 = vpop.permute.xlu1 %583  ;;  %v582_v52 = vpop.permute.xlu0 %581  ;;  %v634_v24 = vld [vmem:[#allocation3] sm:$0xff] }
  0xa3   : > { %554 = vst [vmem:[#allocation3 + $0xc] sm:$0x44] %v550_v50  ;;  %v586_v53 = vrot.slane %v584_v51, 4  ;;  %v585_v54 = vrot.slane %v582_v52, 4  ;;  %v633_v50 = vld [vmem:[%s9073_s0] sm:$0x1] }
  0xa4   : > { %2007 = vrot.lane.b32.xlu1 %v1999_v45, %s7567_s12  ;;  %2009 = vrot.lane.b32.xlu0 %v2006_v47, %s7567_s12  ;;  %v2198_v45 = vrot.slane %v2183_v11, %v7640_v6 }
  0xa5   : > { %v590_v57 = vsel %vm588_vm9, %v584_v51, %v586_v53  ;;  %v587_v58 = vsel %vm316_vm2, %v585_v54, %v586_v53  ;;  %v7447_v51 = vld [vmem:[%s7645_s27 + $0x4] ss:$0 sps:$4 sm:$0xff]  }
  0xa6   : > { %594 = vst [vmem:[#allocation3 + $0x14] sm:$0x8] %v590_v57  ;;  %v589_v59 = vsel %vm588_vm9, %v582_v52, %v587_v58  ;;  %v622_v60 = vpop.permute.xlu1 %621  ;;  %v620_v61 = vpop.permute.xlu0 %619 }
  0xa7   : > { %593 = vst [vmem:[#allocation3 + $0xc] sm:$0x88] %v589_v59  ;;  %v624_v62 = vrot.slane %v622_v60, 4  ;;  %v623_v63 = vrot.slane %v620_v61, 4 }
  0xa8   : > { %2045 = vrot.lane.b32.xlu1 %v2037_v55, %s7578_s15  ;;  %2047 = vrot.lane.b32.xlu0 %v2044_v56, %s7578_s15  ;;  %v7448_v55 = vld [vmem:[%s7645_s27 + $0x4] ss:$0 sps:$4 sm:$0xff]  }
  0xa9   : > { %v628_v2 = vsel %vm626_vm10, %v622_v60, %v624_v62  ;;  %v625_v5 = vsel %vm316_vm2, %v623_v63, %v624_v62  ;;  %v2503_v60 = vrot.slane %v7447_v51, %v7640_v6  ;;  %v7030_v62 = vld [vmem:[%s9075_s2 + $0x4] sm:$0x3] }
  0xaa   : > { %632 = vst [vmem:[#allocation3 + $0x20] sm:$0x1] %v628_v2  ;;  %v627_v7 = vsel %vm626_vm10, %v620_v61, %v625_v5  ;;  %v797_v9 = vpop.permute.xlu1 %796 }
  0xab   : > { %631 = vst [vmem:[#allocation3 + $0x18] sm:$0x11] %v627_v7  ;;  %v800_v13 = vrot.slane %v797_v9, 4  ;;  %v2504_v10 = vcombine.high %v2503_v60, %v2503_v60 }
  0xac   : > { %2083 = vrot.lane.b32.xlu1 %v7649_v8, %s7579_s16  ;;  %2085 = vrot.lane.b32.xlu0 %v7666_v15, %s7579_s16  ;;  %v7015_v7 = vld.sshfl [vmem:[%s7645_s27] sm:$0x15 pattern:$0x73625140] }
  0xad   : > { %v637_v29 = vld [vmem:[#allocation3 + $0x14] sm:$0xf] }
  0xae   : > { %v799_v14 = vpop.permute.xlu1 %798  ;;  %v636_v25 = vld [vmem:[#allocation3 + $0xc] sm:$0xff]  ;;  %v6983_v44 = vcombine.low %v635_v18, %v637_v29 }
  0xaf   : > { %v801_v17 = vrot.slane %v799_v14, 4  ;;  %v6982_v40 = vcombine.high %v634_v24, %v636_v25  ;;  %v6981_v49 = vcombine.low %v634_v24, %v636_v25 }
  0xb0   : > { %2121 = vrot.lane.b32.xlu1 %v7657_v12, %s7580_s28  ;;  %2123 = vrot.lane.b32.xlu0 %v7649_v8, %s7580_s28  ;;  %v2159_v12 = vrot.slane %v2145_v16, %v7640_v6 }
  0xb1   : > { %v802_v21 = vsel %vm316_vm2, %v800_v13, %v801_v17  ;;  %v804_v22 = vsel %vm9097_vm4, %v799_v14, %v801_v17  ;;  %v7443_v23 = vld [vmem:[#allocation3 + $0x20] ss:$0 sps:$4 sm:$0x11]   ;;  %v1317_v17 = vcombine.high %v7015_v7, %v7015_v7 }
  0xb2   : > { %v803_v26 = vsel %vm9097_vm4, %v797_v9, %v802_v21  ;;  %808 = vst [vmem:[#allocation3 + $0x8] sm:$0x1] %v804_v22  ;;  %v836_v27 = vpop.permute.xlu1 %835  ;;  %v638_v28 = vld [vmem:[#allocation3 + $0x18] sm:$0x11]  ;;  %v682_v32 = vsel %vm674_vm11, %v7443_v23, 0  ;;  %v2518_v22 = vrot.slane %v2504_v10, %v7640_v6 }
  0xb3   : > { %807 = vst [vmem:[#allocation3] sm:$0x11] %v803_v26  ;;  %v838_v30 = vrot.slane %v836_v27, 4  ;;  %v7904_v31 = vpop.permute.xlu0 %643  ;;  %v6985_v33 = vcombine.high %v638_v28, %v638_v28  ;;  %v6984_v34 = vcombine.low %v638_v28, %v638_v28  ;;  %7305 = vmatpush3.bf16.msra.mxu1 %v682_v32 }
  0xb4   : > { %2160 = vrot.lane.b32.xlu1 %v2152_v19, %s9131_s14  ;;  %7306 = vmatprep.subr.bf16.mxu1 %v7566_v35 }
  0xb5   : > { %v841_v38 = vsel %vm9096_vm1, %v836_v27, %v838_v30  ;;  %6987 = vmatprep.subr.msk.bf16.mxu0 %vm674_vm11, %v6985_v33  ;;  %v676_v39 = vsel %vm674_vm11, %v6984_v34, 0  ;;  %2162 = vrot.lane.b32.xlu0 %v2159_v12, %s9131_s14 }
  0xb6   : > { %845 = vst [vmem:[#allocation3 + $0x8] sm:$0x2] %v841_v38  ;;  %v874_v43 = vpop.permute.xlu1 %873  ;;  %697 = vmatpush1.bf16.msra.mxu0 %v676_v39  ;;  %v7450_v38 = vld [vmem:[%s7645_s27 + $0x4] ss:$0 sps:$4 sm:$0xff]  }
  0xb7   : > { %v876_v46 = vrot.slane %v874_v43, 4  ;;  %698 = vmatprep.subr.bf16.mxu0 %v6982_v40  ;;  %v834_v47 = vpop.permute.xlu0 %833  ;;  %7307 = vmatpush3.bf16.msra.mxu1 %v6983_v44 }
  0xb8   : > { %v837_v48 = vrot.slane %v834_v47, 4  ;;  %2199 = vrot.lane.b32.xlu1 %v2191_v37, %s9129_s13  ;;  %7312 = vmatprep.subr.bf16.mxu1 %v7566_v35 }
  0xb9   : > { %v879_v52 = vsel %vm9114_vm6, %v874_v43, %v876_v46  ;;  %2201 = vrot.lane.b32.xlu0 %v2198_v45, %s9129_s13 }
  0xba   : > { %883 = vst [vmem:[#allocation3 + $0x8] sm:$0x4] %v879_v52  ;;  %v839_v53 = vsel %vm316_vm2, %v837_v48, %v838_v30  ;;  %v912_v54 = vpop.permute.xlu1 %911  ;;  %699 = vmatpush1.bf16.msra.mxu0 %v6981_v49  ;;  %7309 = vmatmul.mubr.msk.bf16.vlgmr.msra.gmra.mxu1 %vm9095_vm12, %v633_v50  ;;  %v7975_v49 = vrot.slane %v7450_v38, %v7640_v6 }
  0xbb   : > { %v840_v56 = vsel %vm9096_vm1, %v834_v47, %v839_v53  ;;  %v914_v57 = vrot.slane %v912_v54, 4  ;;  %v872_v58 = vpop.permute.xlu0 %871  ;;  %7316 = vmatprep.mubr.msk.bf16.mxu1 %vm9093_vm0, %v7566_v35 }
  0xbc   : > { %844 = vst [vmem:[#allocation3] sm:$0x22] %v840_v56  ;;  %v875_v59 = vrot.slane %v872_v58, 4  ;;  %2237 = vrot.lane.b32.xlu1 %v7649_v8, %s7583_s30  ;;  %v2541_v8 = vrot.slane %v7448_v55, %v7640_v6 }
  0xbd   : > { %v917_v61 = vsel %vm9110_vm5, %v912_v54, %v914_v57  ;;  %6988 = vmatmul.mubr.msk.bf16.vlgmr.msra.gmra.mxu0 %vm9095_vm12, %v633_v50  ;;  %2239 = vrot.lane.b32.xlu0 %v7666_v15, %s7583_s30  ;;  %v2511_v15 = vrot.slane %v2503_v60, %v7640_v6  ;;  %v7085_v55 = vld.sshfl [vmem:[%s7645_s27 + $0x4] sm:$0x55 pattern:$0x73625140] }
  0xbe   : > { %921 = vst [vmem:[#allocation3 + $0x8] sm:$0x8] %v917_v61  ;;  %v877_v63 = vsel %vm316_vm2, %v875_v59, %v876_v46  ;;  %v949_v0 = vpop.permute.xlu1 %948  ;;  %1191 = vmatprep.mubr.bf16.mxu0 %v7557_v3  ;;  %v2542_v16 = vcombine.low %v2541_v8, %v2541_v8  ;;  %v2556_v32 = vrot.slane %v2541_v8, %v7640_v6 }
  0xbf   : > { %v878_v1 = vsel %vm9114_vm6, %v872_v58, %v877_v63  ;;  %v951_v2 = vrot.slane %v949_v0, 4  ;;  %v910_v5 = vpop.permute.xlu0 %909  ;;  %v2661_v58 = vrot.slane %v7975_v49, %v7640_v6  ;;  %v3329_v59 = vcombine.high %v7085_v55, %v7085_v55 }
  0xc0   : > { %882 = vst [vmem:[#allocation3] sm:$0x44] %v878_v1  ;;  %v913_v9 = vrot.slane %v910_v5, 4  ;;  %2270 = vperm.xlu1 %7423, %v7030_v62   ;;  %v2549_v27 = vrot.slane %v2542_v16, %v7640_v6  ;;  %v7991_v63 = vrot.slane %v7085_v55, %v7640_v6 }
  0xc1   : > { %v954_v11 = vsel %vm9109_vm3, %v949_v0, %v951_v2  ;;  %2481 = vrot.lane.b32.xlu0 %v7717_v42, %s9117_s17  ;;  %v7997_v1 = vrot.slane %v3329_v59, %v7640_v6  ;;  %v7455_v59 = vld [vmem:[%s7645_s27 + $0x4] ss:$0 sps:$4 sm:$0xff]  }
  0xc2   : > { %958 = vst [vmem:[#allocation3 + $0x14] sm:$0x1] %v954_v11  ;;  %v915_v13 = vsel %vm316_vm2, %v913_v9, %v914_v57  ;;  %v986_v14 = vpop.permute.xlu1 %985  ;;  %v7454_v9 = vld [vmem:[%s7645_s27 + $0x4] ss:$0 sps:$4 sm:$0xff]  }
  0xc3   : > { %v916_v18 = vsel %vm9110_vm5, %v910_v5, %v915_v13  ;;  %v988_v19 = vrot.slane %v986_v14, 4  ;;  %v947_v20 = vpop.permute.xlu0 %946 }
  0xc4   : > { %920 = vst [vmem:[#allocation3] sm:$0x88] %v916_v18  ;;  %v950_v21 = vrot.slane %v947_v20, 4  ;;  %2483 = vrot.lane.b32.xlu1 %v7704_v36, %s9117_s17  ;;  %s9182_s17 = smov 88  }
  0xc5   : > { %v7953_v23 = vld [vmem:[#allocation3 + $0x8] sm:$0xf]  ;;  %v991_v24 = vsel %vm9100_vm7, %v986_v14, %v988_v19  ;;  %2519 = vrot.lane.b32.xlu0 %v2511_v15, %s9105_s18 }
  0xc6   : > { %995 = vst [vmem:[#allocation3 + $0x14] sm:$0x2] %v991_v24  ;;  %v952_v25 = vsel %vm316_vm2, %v950_v21, %v951_v2  ;;  %v1024_v26 = vpop.permute.xlu1 %1023  ;;  %7017 = vst.sshfl [vmem:[#allocation3 + $0x8] sm:$0x1 pattern:$0x75316420] %v1317_v17 }
  0xc7   : > { %v953_v28 = vsel %vm9109_vm3, %v947_v20, %v952_v25  ;;  %v1026_v12 = vrot.slane %v1024_v26, 4  ;;  %v984_v29 = vpop.permute.xlu0 %983 }
  0xc8   : > { %957 = vst [vmem:[#allocation3 + $0xc] sm:$0x11] %v953_v28  ;;  %v987_v30 = vrot.slane %v984_v29, 4  ;;  %2521 = vrot.lane.b32.xlu1 %v2518_v22, %s9105_s18  ;;  %s9138_s18 = smov 106  }
  0xc9   : > { %v1029_v33 = vsel %vm549_vm8, %v1024_v26, %v1026_v12  ;;  %2557 = vrot.lane.b32.xlu0 %v2549_v27, %s9103_s19 }
  0xca   : > { %1033 = vst [vmem:[#allocation3 + $0x14] sm:$0x4] %v1029_v33  ;;  %v989_v34 = vsel %vm316_vm2, %v987_v30, %v988_v19  ;;  %v1062_v37 = vpop.permute.xlu1 %1061  ;;  %v8016_v19 = vrot.slane %v7454_v9, %v7640_v6 }
  0xcb   : > { %v7966_v39 = vld [vmem:[#allocation3] sm:$0xff]  ;;  %v990_v40 = vsel %vm9100_vm7, %v984_v29, %v989_v34  ;;  %v1064_v43 = vrot.slane %v1062_v37, 4  ;;  %v1022_v44 = vpop.permute.xlu0 %1021 }
  0xcc   : > { %994 = vst [vmem:[#allocation3 + $0xc] sm:$0x22] %v990_v40  ;;  %v1025_v45 = vrot.slane %v1022_v44, 4  ;;  %2559 = vrot.lane.b32.xlu1 %v2556_v32, %s9103_s19  ;;  %v3142_v34 = vcombine.low %v8016_v19, %v8016_v19  ;;  %s9137_s19 = smov 68  }
  0xcd   : > { %7016 = vst.sshfl [vmem:[#allocation3] sm:$0x5 pattern:$0x75316420] %v7015_v7  ;;  %v1067_v46 = vsel %vm588_vm9, %v1062_v37, %v1064_v43  ;;  %2594 = vrot.lane.b32.xlu0 %v7704_v36, %s9101_s20  ;;  %v7453_v7 = vld [vmem:[%s7645_s27 + $0x4] ss:$0 sps:$4 sm:$0xff]  }
  0xce   : > { %1071 = vst [vmem:[#allocation3 + $0x14] sm:$0x8] %v1067_v46  ;;  %v1027_v47 = vsel %vm316_vm2, %v1025_v45, %v1026_v12  ;;  %v1099_v48 = vpop.permute.xlu1 %1098  ;;  %v3103_v16 = vrot.slane %v7453_v7, %v7640_v6 }
  0xcf   : > { %v1028_v50 = vsel %vm549_vm8, %v1022_v44, %v1027_v47  ;;  %v1101_v51 = vrot.slane %v1099_v48, 4  ;;  %v1060_v52 = vpop.permute.xlu0 %1059 }
  0xd0   : > { %1032 = vst [vmem:[#allocation3 + $0xc] sm:$0x44] %v1028_v50  ;;  %v1063_v53 = vrot.slane %v1060_v52, 4  ;;  %2596 = vrot.lane.b32.xlu1 %v7712_v41, %s9101_s20  ;;  %v3104_v20 = vcombine.high %v3103_v16, %v3103_v16  ;;  %v3111_v29 = vrot.slane %v3103_v16, %v7640_v6  ;;  %s9136_s20 = smov 84  }
  0xd1   : > { %v1104_v54 = vsel %vm626_vm10, %v1099_v48, %v1101_v51  ;;  %2631 = vrot.lane.b32.xlu0 %v7717_v42, %s9098_s24 }
  0xd2   : > { %1108 = vst [vmem:[#allocation3 + $0x20] sm:$0x1] %v1104_v54  ;;  %v1065_v56 = vsel %vm316_vm2, %v1063_v53, %v1064_v43  ;;  %v1363_v57 = vpop.permute.xlu1 %1362  ;;  %v3118_v38 = vrot.slane %v3104_v20, %v7640_v6 }
  0xd3   : > { %v1066_v60 = vsel %vm588_vm9, %v1060_v52, %v1065_v56  ;;  %v1097_v61 = vpop.permute.xlu0 %1096  ;;  %v1365_v41 = vrot.slane %v1363_v57, 4 }
  0xd4   : > { %1070 = vst [vmem:[#allocation3 + $0xc] sm:$0x88] %v1066_v60  ;;  %v1100_v62 = vrot.slane %v1097_v61, 4  ;;  %2633 = vrot.lane.b32.xlu1 %v7704_v36, %s9098_s24  ;;  %v3066_v36 = vcombine.low %v7085_v55, %v7085_v55  ;;  %v7456_v60 = vld [vmem:[%s7645_s27 + $0x4] ss:$0 sps:$4 sm:$0xff]   ;;  %s9135_s24 = smov 85  }
  0xd5   : > { %v1369_v42 = vsel %vm9113_vm13, %v1363_v57, %v1365_v41  ;;  %2669 = vrot.lane.b32.xlu0 %v2661_v58, %s9115_s29  ;;  %v1114_v13 = vld [vmem:[#allocation3 + $0x14] sm:$0xf]  ;;  %v3156_v57 = vrot.slane %v8016_v19, %v7640_v6 }
  0xd6   : > { %v1102_v0 = vsel %vm316_vm2, %v1100_v62, %v1101_v51  ;;  %1373 = vst [vmem:[#allocation3 + $0x8] sm:$0x2] %v1369_v42  ;;  %v1400_v8 = vpop.permute.xlu1 %1399  ;;  %v8013_v18 = vrot.slane %v3066_v36, %v7640_v6  ;;  %v7007_v24 = vcombine.low %v7953_v23, %v1114_v13  ;;  %v7004_v23 = vld [vmem:[%s9073_s0 + $0x1] sm:$0x1]  ;;  %v3149_v51 = vrot.slane %v3142_v34, %v7640_v6 }
  0xd7   : > { %v1103_v2 = vsel %vm626_vm10, %v1097_v61, %v1102_v0  ;;  %v8000_v5 = vpop.permute.xlu0 %1120  ;;  %v1403_v22 = vrot.slane %v1400_v8, 4 }
  0xd8   : > { %1107 = vst [vmem:[#allocation3 + $0x18] sm:$0x11] %v1103_v2  ;;  %3344 = vrot.lane.b32.xlu1 %v7991_v63, %s7583_s30 }
  0xd9   : > { %v7449_v10 = vld [vmem:[#allocation3 + $0x20] ss:$0 sps:$4 sm:$0x11]   ;;  %3346 = vrot.lane.b32.xlu0 %v7997_v1, %s7583_s30 }
  0xda   : > { %v1439_v11 = vpop.permute.xlu1 %1438  ;;  %v1157_v15 = vsel %vm674_vm11, %v7449_v10, 0  ;;  %v3253_v10 = vrot.slane %v7455_v59, %v7640_v6 }
  0xdb   : > { %v1361_v14 = vpop.permute.xlu0 %1360  ;;  %7313 = vmatpush3.bf16.msra.mxu1 %v1157_v15  ;;  %v1113_v26 = vld [vmem:[#allocation3 + $0xc] sm:$0xff]  ;;  %v1442_v37 = vrot.slane %v1439_v11, 4 }
  0xdc   : > { %v1364_v17 = vrot.slane %v1361_v14, 4  ;;  %3044 = vrot.lane.b32.xlu1 %v7991_v63, %s7564_s10  ;;  %7314 = vmatprep.subr.bf16.mxu1 %v7566_v35  ;;  %v7006_v45 = vcombine.high %v7966_v39, %v1113_v26  ;;  %v7005_v52 = vcombine.low %v7966_v39, %v1113_v26  ;;  %v3254_v19 = vcombine.high %v3253_v10, %v3253_v10 }
  0xdd   : > { %3046 = vrot.lane.b32.xlu0 %v7997_v1, %s7564_s10 }
  0xde   : > { %v1366_v21 = vsel %vm316_vm2, %v1364_v17, %v1365_v41  ;;  %v8021_v25 = vpop.permute.xlu1 %1476  ;;  %v7047_v41 = vld.sshfl [vmem:[%s7645_s27 + $0x4] sm:$0x15 pattern:$0x73625140] }
  0xdf   : > { %v1368_v27 = vsel %vm9113_vm13, %v1361_v14, %v1366_v21  ;;  %v1402_v28 = vpop.permute.xlu0 %1401  ;;  %v1115_v12 = vld [vmem:[#allocation3 + $0x18] sm:$0x11]  ;;  %7315 = vmatpush3.bf16.msra.mxu1 %v7007_v24  ;;  %v1480_v55 = vrot.slane %v8021_v25, 4  ;;  %v2438_v36 = vcombine.high %v7047_v41, %v7047_v41 }
  0xe0   : > { %1372 = vst [vmem:[#allocation3] sm:$0x22] %v1368_v27  ;;  %v1404_v30 = vrot.slane %v1402_v28, 4  ;;  %v7009_v32 = vcombine.high %v1115_v12, %v1115_v12  ;;  %v7008_v33 = vcombine.low %v1115_v12, %v1115_v12  ;;  %3081 = vrot.lane.b32.xlu1 %v8013_v18, %s7565_s11  ;;  %7320 = vmatprep.subr.bf16.mxu1 %v7566_v35 }
  0xe1   : > { %3083 = vrot.lane.b32.xlu0 %v7991_v63, %s7565_s11 }
  0xe2   : > { %v1405_v40 = vsel %vm316_vm2, %v1403_v22, %v1404_v30  ;;  %v1408_v43 = vsel %vm9092_vm14, %v1402_v28, %v1404_v30  ;;  %7011 = vmatprep.subr.msk.bf16.mxu0 %vm674_vm11, %v7009_v32  ;;  %v1151_v44 = vsel %vm674_vm11, %v7008_v33, 0  ;;  %v1515_v46 = vpop.permute.xlu1 %1514  ;;  %7317 = vmatmul.mubr.msk.bf16.vlgmr.msra.gmra.mxu1 %vm9095_vm12, %v7004_v23  ;;  %v3268_v30 = vrot.slane %v3254_v19, %v7640_v6 }
  0xe3   : > { %v1407_v47 = vsel %vm9092_vm14, %v1400_v8, %v1405_v40  ;;  %1412 = vst [vmem:[#allocation3 + $0x8] sm:$0x4] %v1408_v43  ;;  %1172 = vmatpush1.bf16.msra.mxu0 %v1151_v44  ;;  %v1441_v48 = vpop.permute.xlu0 %1440  ;;  %7328 = vmatprep.mubr.msk.bf16.mxu1 %vm9093_vm0, %v7566_v35  ;;  %vm9120_vm14 = vcmask 1014784   ;;  %v1518_v0 = vrot.slane %v1515_v46, 4  ;;  %vm9119_vm0 = vcmask 883712  }
  0xe4   : > { %1411 = vst [vmem:[#allocation3] sm:$0x44] %v1407_v47  ;;  %v1443_v50 = vrot.slane %v1441_v48, 4  ;;  %1173 = vmatprep.subr.bf16.mxu0 %v7006_v45  ;;  %3119 = vrot.lane.b32.xlu1 %v3111_v29, %s7567_s12 }
  0xe5   : > { %3121 = vrot.lane.b32.xlu0 %v3118_v38, %s7567_s12 }
  0xe6   : > { %v1444_v53 = vsel %vm316_vm2, %v1442_v37, %v1443_v50  ;;  %v1447_v54 = vsel %vm9121_vm15, %v1441_v48, %v1443_v50  ;;  %v1554_v56 = vpop.permute.xlu1 %1553  ;;  %v7457_v48 = vld [vmem:[%s7645_s27 + $0x4] ss:$0 sps:$4 sm:$0xff]  }
  0xe7   : > { %v1446_v58 = vsel %vm9121_vm15, %v1439_v11, %v1444_v53  ;;  %1451 = vst [vmem:[#allocation3 + $0x8] sm:$0x8] %v1447_v54  ;;  %1174 = vmatpush1.bf16.msra.mxu0 %v7005_v52  ;;  %v1479_v39 = vpop.permute.xlu0 %1478  ;;  %v3291_v11 = vrot.slane %v7456_v60, %v7640_v6  ;;  %v1557_v16 = vrot.slane %v1554_v56, 4  ;;  %v7458_v50 = vld [vmem:[%s7645_s27 + $0x4] ss:$0 sps:$4 sm:$0xff]  }
  0xe8   : > { %1450 = vst [vmem:[#allocation3] sm:$0x88] %v1446_v58  ;;  %v1481_v61 = vrot.slane %v1479_v39, 4  ;;  %3157 = vrot.lane.b32.xlu1 %v3149_v51, %s7578_s15  ;;  %v2803_v58 = vrot.slane %v7457_v48, %v7640_v6 }
  0xe9   : > { %3159 = vrot.lane.b32.xlu0 %v3156_v57, %s7578_s15  ;;  %v3292_v26 = vcombine.low %v3291_v11, %v3291_v11  ;;  %v3306_v44 = vrot.slane %v3291_v11, %v7640_v6 }
  0xea   : > { %v1482_v62 = vsel %vm316_vm2, %v1480_v55, %v1481_v61  ;;  %v1485_v42 = vsel %vm9120_vm14, %v1479_v39, %v1481_v61  ;;  %7012 = vmatmul.mubr.msk.bf16.vlgmr.msra.gmra.mxu0 %vm9095_vm12, %v7004_v23  ;;  %v1592_v8 = vpop.permute.xlu1 %1591  ;;  %vm9112_vm12 = vcmask 850944   ;;  %v2841_v39 = vrot.slane %v7458_v50, %v7640_v6 }
  0xeb   : > { %v1484_v2 = vsel %vm9120_vm14, %v8021_v25, %v1482_v62  ;;  %1489 = vst [vmem:[#allocation3 + $0x14] sm:$0x1] %v1485_v42  ;;  %v1517_v7 = vpop.permute.xlu0 %1516  ;;  %2374 = vmatprep.mubr.bf16.mxu0 %v7557_v3  ;;  %v3261_v25 = vrot.slane %v3253_v10, %v7640_v6  ;;  %v1595_v12 = vrot.slane %v1592_v8, 4  ;;  %v3299_v34 = vrot.slane %v3292_v26, %v7640_v6 }
  0xec   : > { %1488 = vst [vmem:[#allocation3 + $0xc] sm:$0x11] %v1484_v2  ;;  %v1519_v9 = vrot.slane %v1517_v7, 4  ;;  %3194 = vrot.lane.b32.xlu1 %v7991_v63, %s7579_s16  ;;  %v2804_v62 = vcombine.high %v2803_v58, %v2803_v58  ;;  %v2811_v2 = vrot.slane %v2803_v58, %v7640_v6  ;;  %v2856_v26 = vrot.slane %v2841_v39, %v7640_v6 }
  0xed   : > { %3196 = vrot.lane.b32.xlu0 %v7997_v1, %s7579_s16 }
  0xee   : > { %v8072_v13 = vld [vmem:[#allocation3 + $0x8] sm:$0xf]  ;;  %v1520_v14 = vsel %vm316_vm2, %v1518_v0, %v1519_v9  ;;  %v1523_v15 = vsel %vm9119_vm0, %v1517_v7, %v1519_v9  ;;  %v1629_v17 = vpop.permute.xlu1 %1628  ;;  %v2842_v7 = vcombine.low %v2841_v39, %v2841_v39 }
  0xef   : > { %v8078_v20 = vld [vmem:[#allocation3] sm:$0xff]  ;;  %v1522_v21 = vsel %vm9119_vm0, %v1515_v46, %v1520_v14  ;;  %1527 = vst [vmem:[#allocation3 + $0x14] sm:$0x2] %v1523_v15  ;;  %v1556_v22 = vpop.permute.xlu0 %1555  ;;  %v1632_v40 = vrot.slane %v1629_v17, 4  ;;  %v2818_v14 = vrot.slane %v2804_v62, %v7640_v6 }
  0xf0   : > { %7049 = vst.sshfl [vmem:[#allocation3 + $0x8] sm:$0x1 pattern:$0x75316420] %v2438_v36  ;;  %1526 = vst [vmem:[#allocation3 + $0xc] sm:$0x22] %v1522_v21  ;;  %3231 = vrot.lane.b32.xlu1 %v8013_v18, %s7580_s28  ;;  %v2849_v19 = vrot.slane %v2842_v7, %v7640_v6 }
  0xf1   : > { %v1558_v24 = vrot.slane %v1556_v22, 4  ;;  %7048 = vst.sshfl [vmem:[#allocation3] sm:$0x5 pattern:$0x75316420] %v7047_v41  ;;  %3233 = vrot.lane.b32.xlu0 %v7991_v63, %s7580_s28 }
  0xf2   : > { %v1666_v29 = vpop.permute.xlu1 %1665 }
  0xf3   : > { %v1559_v27 = vsel %vm316_vm2, %v1557_v16, %v1558_v24  ;;  %v1561_v28 = vsel %vm9097_vm4, %v1556_v22, %v1558_v24  ;;  %v1594_v33 = vpop.permute.xlu0 %1593  ;;  %v1669_v53 = vrot.slane %v1666_v29, 4 }
  0xf4   : > { %v1560_v32 = vsel %vm9097_vm4, %v1554_v56, %v1559_v27  ;;  %1565 = vst [vmem:[#allocation3 + $0x14] sm:$0x4] %v1561_v28  ;;  %v1596_v23 = vrot.slane %v1594_v33, 4  ;;  %3269 = vrot.lane.b32.xlu1 %v3261_v25, %s9131_s14  ;;  %vm9108_vm4 = vcmask 687104  }
  0xf5   : > { %1564 = vst [vmem:[#allocation3 + $0xc] sm:$0x44] %v1560_v32  ;;  %3271 = vrot.lane.b32.xlu0 %v3268_v30, %s9131_s14  ;;  %v7460_v30 = vld [vmem:[%s7645_s27 + $0x4] ss:$0 sps:$4 sm:$0xff]  }
  0xf6   : > { %v1597_v37 = vsel %vm316_vm2, %v1595_v12, %v1596_v23  ;;  %v1599_v38 = vsel %vm9096_vm1, %v1594_v33, %v1596_v23  ;;  %v1705_v43 = vpop.permute.xlu1 %1704  ;;  %v7459_v12 = vld [vmem:[%s7645_s27 + $0x4] ss:$0 sps:$4 sm:$0xff]  }
  0xf7   : > { %v1598_v45 = vsel %vm9096_vm1, %v1592_v8, %v1597_v37  ;;  %1603 = vst [vmem:[#allocation3 + $0x14] sm:$0x8] %v1599_v38  ;;  %v1631_v46 = vpop.permute.xlu0 %1630  ;;  %v1708_v61 = vrot.slane %v1705_v43, 4  ;;  %vm9111_vm1 = vcmask 719872  }
  0xf8   : > { %1602 = vst [vmem:[#allocation3 + $0xc] sm:$0x88] %v1598_v45  ;;  %v1633_v47 = vrot.slane %v1631_v46, 4  ;;  %3307 = vrot.lane.b32.xlu1 %v3299_v34, %s9129_s13 }
  0xf9   : > { %3309 = vrot.lane.b32.xlu0 %v3306_v44, %s9129_s13  ;;  %v2991_v44 = vrot.slane %v7460_v30, %v7640_v6 }
  0xfa   : > { %v1634_v51 = vsel %vm316_vm2, %v1632_v40, %v1633_v47  ;;  %v1636_v52 = vsel %vm9114_vm6, %v1631_v46, %v1633_v47  ;;  %v1744_v54 = vpop.permute.xlu1 %1743  ;;  %v2953_v40 = vrot.slane %v7459_v12, %v7640_v6 }
  0xfb   : > { %v1635_v55 = vsel %vm9114_vm6, %v1629_v17, %v1634_v51  ;;  %1640 = vst [vmem:[#allocation3 + $0x20] sm:$0x1] %v1636_v52  ;;  %v1668_v56 = vpop.permute.xlu0 %1667  ;;  %v1747_v10 = vrot.slane %v1744_v54, 4  ;;  %v7461_v51 = vld [vmem:[%s7645_s27 + $0x4] ss:$0 sps:$4 sm:$0xff]  }
  0xfc   : > { %1639 = vst [vmem:[#allocation3 + $0x18] sm:$0x11] %v1635_v55  ;;  %v1670_v57 = vrot.slane %v1668_v56, 4  ;;  %2744 = vrot.lane.b32.xlu1 %v7991_v63, %s9127_s8  ;;  %v2954_v45 = vcombine.high %v2953_v40, %v2953_v40  ;;  %v2961_v55 = vrot.slane %v2953_v40, %v7640_v6 }
  0xfd   : > { %2746 = vrot.lane.b32.xlu0 %v7997_v1, %s9127_s8 }
  0xfe   : > { %v1671_v59 = vsel %vm316_vm2, %v1669_v53, %v1670_v57  ;;  %v1674_v60 = vsel %vm9112_vm12, %v1668_v56, %v1670_v57  ;;  %v1781_v41 = vpop.permute.xlu1 %1780  ;;  %v2992_v56 = vcombine.low %v2991_v44, %v2991_v44  ;;  %v2968_v57 = vrot.slane %v2954_v45, %v7640_v6 }
  0xff   : > { %v1673_v42 = vsel %vm9112_vm12, %v1666_v29, %v1671_v59  ;;  %1678 = vst [vmem:[#allocation3 + $0x20] sm:$0x2] %v1674_v60  ;;  %v1707_v0 = vpop.permute.xlu0 %1706  ;;  %v1784_v24 = vrot.slane %v1781_v41, 4  ;;  %v2691_v60 = vrot.slane %v7461_v51, %v7640_v6  ;;  %vm2244_vm12 = vcmask 359424  }
 0x100   : > { %1677 = vst [vmem:[#allocation3 + $0x18] sm:$0x22] %v1673_v42  ;;  %v1709_v8 = vrot.slane %v1707_v0, 4  ;;  %2781 = vrot.lane.b32.xlu1 %v8013_v18, %s9125_s25  ;;  %v2999_v42 = vrot.slane %v2992_v56, %v7640_v6 }
 0x101   : > { %2783 = vrot.lane.b32.xlu0 %v7991_v63, %s9125_s25 }
 0x102   : > { %v1710_v36 = vsel %vm316_vm2, %v1708_v61, %v1709_v8  ;;  %v1713_v9 = vsel %vm9111_vm1, %v1707_v0, %v1709_v8  ;;  %v1818_v11 = vpop.permute.xlu1 %1817  ;;  %v3006_v0 = vrot.slane %v2991_v44, %v7640_v6 }
 0x103   : > { %v1712_v15 = vsel %vm9111_vm1, %v1705_v43, %v1710_v36  ;;  %1717 = vst [vmem:[#allocation3 + $0x20] sm:$0x4] %v1713_v9  ;;  %v1746_v16 = vpop.permute.xlu0 %1745  ;;  %v1821_v23 = vrot.slane %v1818_v11, 4  ;;  %v2692_v36 = vcombine.low %v2691_v60, %v2691_v60  ;;  %vm9122_vm1 = vcmask 367616  }
 0x104   : > { %1716 = vst [vmem:[#allocation3 + $0x18] sm:$0x44] %v1712_v15  ;;  %v1748_v17 = vrot.slane %v1746_v16, 4  ;;  %2819 = vrot.lane.b32.xlu1 %v2811_v2, %s9123_s26 }
 0x105   : > { %2821 = vrot.lane.b32.xlu0 %v2818_v14, %s9123_s26  ;;  %v7118_v14 = vld.sshfl [vmem:[%s7645_s27 + $0x8] sm:$0x55 pattern:$0x73625140] }
 0x106   : > { %v1749_v21 = vsel %vm316_vm2, %v1747_v10, %v1748_v17  ;;  %v1751_v22 = vsel %vm9110_vm5, %v1746_v16, %v1748_v17  ;;  %v1856_v25 = vpop.permute.xlu1 %1855  ;;  %v3640_v40 = vcombine.low %v7118_v14, %v7118_v14 }
 0x107   : > { %v1750_v27 = vsel %vm9110_vm5, %v1744_v54, %v1749_v21  ;;  %1755 = vst [vmem:[#allocation3 + $0x20] sm:$0x8] %v1751_v22  ;;  %v1783_v28 = vpop.permute.xlu0 %1782  ;;  %v1859_v48 = vrot.slane %v1856_v25, 4  ;;  %v2699_v21 = vrot.slane %v2692_v36, %v7640_v6  ;;  %vm2167_vm5 = vcmask 375808  }
 0x108   : > { %1754 = vst [vmem:[#allocation3 + $0x18] sm:$0x88] %v1750_v27  ;;  %v1785_v29 = vrot.slane %v1783_v28, 4  ;;  %2857 = vrot.lane.b32.xlu1 %v2849_v19, %s9133_s7  ;;  %v3903_v27 = vcombine.high %v7118_v14, %v7118_v14 }
 0x109   : > { %2859 = vrot.lane.b32.xlu0 %v2856_v26, %s9133_s7  ;;  %v2706_v26 = vrot.slane %v2691_v60, %v7640_v6 }
 0x10a   : > { %v1786_v32 = vsel %vm316_vm2, %v1784_v24, %v1785_v29  ;;  %v1788_v33 = vsel %vm9109_vm3, %v1783_v28, %v1785_v29  ;;  %v1895_v34 = vpop.permute.xlu1 %1894 }
 0x10b   : > { %v1787_v37 = vsel %vm9109_vm3, %v1781_v41, %v1786_v32  ;;  %1792 = vst [vmem:[#allocation3 + $0x2c] sm:$0x1] %v1788_v33  ;;  %v1820_v38 = vpop.permute.xlu0 %1819  ;;  %v1898_v39 = vrot.slane %v1895_v34, 4  ;;  %v2654_v41 = vcombine.high %v7975_v49, %v7975_v49  ;;  %v8179_v32 = vrot.slane %v7118_v14, %v7640_v6 }
 0x10c   : > { %1791 = vst [vmem:[#allocation3 + $0x24] sm:$0x11] %v1787_v37  ;;  %v1822_v43 = vrot.slane %v1820_v38, 4  ;;  %2894 = vrot.lane.b32.xlu1 %v7991_v63, %s9134_s9  ;;  %v8184_v37 = vrot.slane %v3903_v27, %v7640_v6  ;;  %vm2128_vm3 = vcmask 384000  }
 0x10d   : > { %2896 = vrot.lane.b32.xlu0 %v7997_v1, %s9134_s9 }
 0x10e   : > { %v1823_v46 = vsel %vm316_vm2, %v1821_v23, %v1822_v43  ;;  %v1825_v47 = vsel %vm9100_vm7, %v1820_v38, %v1822_v43  ;;  %v1933_v50 = vpop.permute.xlu1 %1932  ;;  %v7464_v38 = vld [vmem:[%s7645_s27 + $0x8] ss:$0 sps:$4 sm:$0xff]  }
 0x10f   : > { %v1824_v52 = vsel %vm9100_vm7, %v1818_v11, %v1823_v46  ;;  %1829 = vst [vmem:[#allocation3 + $0x2c] sm:$0x2] %v1825_v47  ;;  %v1858_v53 = vpop.permute.xlu0 %1857  ;;  %vm9107_vm7 = vcmask 556032   ;;  %v1936_v2 = vrot.slane %v1933_v50, 4  ;;  %v2668_v11 = vrot.slane %v2654_v41, %v7640_v6  ;;  %v7465_v47 = vld [vmem:[%s7645_s27 + $0x8] ss:$0 sps:$4 sm:$0xff]  }
 0x110   : > { %1828 = vst [vmem:[#allocation3 + $0x24] sm:$0x22] %v1824_v52  ;;  %v1860_v54 = vrot.slane %v1858_v53, 4  ;;  %2931 = vrot.lane.b32.xlu1 %v8013_v18, %s9135_s24  ;;  %v3677_v52 = vrot.slane %v7464_v38, %v7640_v6 }
 0x111   : > { %2933 = vrot.lane.b32.xlu0 %v7991_v63, %s9135_s24 }
 0x112   : > { %v1861_v58 = vsel %vm316_vm2, %v1859_v48, %v1860_v54  ;;  %v1864_v1 = vsel %vm9108_vm4, %v1858_v53, %v1860_v54  ;;  %v1970_v59 = vpop.permute.xlu1 %1969  ;;  %v8197_v53 = vrot.slane %v3640_v40, %v7640_v6  ;;  %v3678_v60 = vcombine.high %v3677_v52, %v3677_v52 }
 0x113   : > { %v1863_v61 = vsel %vm9108_vm4, %v1856_v25, %v1861_v58  ;;  %1868 = vst [vmem:[#allocation3 + $0x2c] sm:$0x4] %v1864_v1  ;;  %v1897_v18 = vpop.permute.xlu0 %1896  ;;  %v1973_v17 = vrot.slane %v1970_v59, 4  ;;  %vm2090_vm4 = vcmask 392192  }
 0x114   : > { %1867 = vst [vmem:[#allocation3 + $0x24] sm:$0x44] %v1863_v61  ;;  %v1899_v62 = vrot.slane %v1897_v18, 4  ;;  %2969 = vrot.lane.b32.xlu1 %v2961_v55, %s9136_s20  ;;  %v3685_v61 = vrot.slane %v3677_v52, %v7640_v6 }
 0x115   : > { %2971 = vrot.lane.b32.xlu0 %v2968_v57, %s9136_s20  ;;  %v3715_v57 = vrot.slane %v7465_v47, %v7640_v6 }
 0x116   : > { %v1900_v63 = vsel %vm316_vm2, %v1898_v39, %v1899_v62  ;;  %v1903_v8 = vsel %vm9107_vm7, %v1897_v18, %v1899_v62  ;;  %v2008_v7 = vpop.permute.xlu1 %2007 }
 0x117   : > { %v1902_v49 = vsel %vm9107_vm7, %v1895_v34, %v1900_v63  ;;  %1907 = vst [vmem:[#allocation3 + $0x2c] sm:$0x8] %v1903_v8  ;;  %v1935_v9 = vpop.permute.xlu0 %1934  ;;  %v2011_v29 = vrot.slane %v2008_v7, 4  ;;  %vm2052_vm7 = vcmask 523264  }
 0x118   : > { %1906 = vst [vmem:[#allocation3 + $0x24] sm:$0x88] %v1902_v49  ;;  %v1937_v10 = vrot.slane %v1935_v9, 4  ;;  %3007 = vrot.lane.b32.xlu1 %v2999_v42, %s9137_s19  ;;  %v3716_v42 = vcombine.low %v3715_v57, %v3715_v57 }
 0x119   : > { %3009 = vrot.lane.b32.xlu0 %v3006_v0, %s9137_s19 }
 0x11a   : > { %v1938_v15 = vsel %vm316_vm2, %v1936_v2, %v1937_v10  ;;  %v1940_v16 = vsel %vm549_vm8, %v1935_v9, %v1937_v10  ;;  %v2046_v19 = vpop.permute.xlu1 %2045  ;;  %v3692_v2 = vrot.slane %v3678_v60, %v7640_v6  ;;  %v3723_v10 = vrot.slane %v3716_v42, %v7640_v6 }
 0x11b   : > { %v1939_v22 = vsel %vm549_vm8, %v1933_v50, %v1938_v15  ;;  %1944 = vst [vmem:[#allocation3 + $0x38] sm:$0x1] %v1940_v16  ;;  %v1972_v24 = vpop.permute.xlu0 %1971  ;;  %v2049_v45 = vrot.slane %v2046_v19, 4  ;;  %v3730_v16 = vrot.slane %v3715_v57, %v7640_v6 }
 0x11c   : > { %1943 = vst [vmem:[#allocation3 + $0x30] sm:$0x11] %v1939_v22  ;;  %v1974_v25 = vrot.slane %v1972_v24, 4  ;;  %2671 = vrot.lane.b32.xlu1 %v2668_v11, %s9115_s29 }
 0x11d   : > { %2707 = vrot.lane.b32.xlu0 %v2699_v21, %s9138_s18 }
 0x11e   : > { %v1975_v28 = vsel %vm316_vm2, %v1973_v17, %v1974_v25  ;;  %v1977_v12 = vsel %vm588_vm9, %v1972_v24, %v1974_v25  ;;  %v2084_v30 = vpop.permute.xlu1 %2083  ;;  %v7466_v17 = vld [vmem:[%s7645_s27 + $0x8] ss:$0 sps:$4 sm:$0xff]  }
 0x11f   : > { %v1976_v33 = vsel %vm588_vm9, %v1970_v59, %v1975_v28  ;;  %1981 = vst [vmem:[#allocation3 + $0x38] sm:$0x2] %v1977_v12  ;;  %v2010_v23 = vpop.permute.xlu0 %2009  ;;  %v2087_v56 = vrot.slane %v2084_v30, 4  ;;  %v7467_v24 = vld [vmem:[%s7645_s27 + $0x8] ss:$0 sps:$4 sm:$0xff]   ;;  %v3827_v12 = vrot.slane %v7466_v17, %v7640_v6 }
 0x120   : > { %1980 = vst [vmem:[#allocation3 + $0x30] sm:$0x22] %v1976_v33  ;;  %v2012_v34 = vrot.slane %v2010_v23, 4  ;;  %2709 = vrot.lane.b32.xlu1 %v2706_v26, %s9138_s18 }
 0x121   : > { %3918 = vrot.lane.b32.xlu0 %v8179_v32, %s7567_s12 }
 0x122   : > { %v2013_v43 = vsel %vm316_vm2, %v2011_v29, %v2012_v34  ;;  %v2015_v44 = vsel %vm626_vm10, %v2010_v23, %v2012_v34  ;;  %v2122_v46 = vpop.permute.xlu1 %2121  ;;  %v3865_v23 = vrot.slane %v7467_v24, %v7640_v6 }
 0x123   : > { %v2014_v48 = vsel %vm626_vm10, %v2008_v7, %v2013_v43  ;;  %2019 = vst [vmem:[#allocation3 + $0x38] sm:$0x4] %v2015_v44  ;;  %v2048_v50 = vpop.permute.xlu0 %2047  ;;  %v2125_v62 = vrot.slane %v2122_v46, 4  ;;  %v3828_v43 = vcombine.high %v3827_v12, %v3827_v12 }
 0x124   : > { %2018 = vst [vmem:[#allocation3 + $0x30] sm:$0x44] %v2014_v48  ;;  %v2050_v51 = vrot.slane %v2048_v50, 4  ;;  %3920 = vrot.lane.b32.xlu1 %v8184_v37, %s7567_s12  ;;  %v3866_v47 = vcombine.low %v3865_v23, %v3865_v23  ;;  %v3880_v60 = vrot.slane %v3865_v23, %v7640_v6  ;;  %v2257_v23 = vld [vmem:[#allocation3 + $0x20] sm:$0xf] }
 0x125   : > { %3618 = vrot.lane.b32.xlu0 %v8179_v32, %s9115_s29  ;;  %v3842_v52 = vrot.slane %v3828_v43, %v7640_v6 }
 0x126   : > { %v2051_v54 = vsel %vm316_vm2, %v2049_v45, %v2050_v51  ;;  %v2054_v55 = vsel %vm2052_vm7, %v2048_v50, %v2050_v51  ;;  %v2161_v39 = vpop.permute.xlu1 %2160 }
 0x127   : > { %v2053_v58 = vsel %vm2052_vm7, %v2046_v19, %v2051_v54  ;;  %2058 = vst [vmem:[#allocation3 + $0x38] sm:$0x8] %v2054_v55  ;;  %v2086_v1 = vpop.permute.xlu0 %2085  ;;  %v2164_v9 = vrot.slane %v2161_v39, 4 }
 0x128   : > { %2057 = vst [vmem:[#allocation3 + $0x30] sm:$0x88] %v2053_v58  ;;  %v2088_v59 = vrot.slane %v2086_v1, 4  ;;  %3620 = vrot.lane.b32.xlu1 %v8184_v37, %s9115_s29 }
 0x129   : > { %3655 = vrot.lane.b32.xlu0 %v8197_v53, %s9138_s18  ;;  %v7141_v54 = vld.sshfl [vmem:[%s7645_s27 + $0xc] sm:$0x55 pattern:$0x73625140] }
 0x12a   : > { %v2089_v18 = vsel %vm316_vm2, %v2087_v56, %v2088_v59  ;;  %v2092_v41 = vsel %vm2090_vm4, %v2086_v1, %v2088_v59  ;;  %v2200_v7 = vpop.permute.xlu1 %2199  ;;  %v4377_v58 = vcombine.high %v7141_v54, %v7141_v54 }
 0x12b   : > { %v2091_v0 = vsel %vm2090_vm4, %v2084_v30, %v2089_v18  ;;  %2096 = vst [vmem:[#allocation3 + $0x44] sm:$0x1] %v2092_v41  ;;  %v2124_v63 = vpop.permute.xlu0 %2123  ;;  %v2203_v22 = vrot.slane %v2200_v7, 4 }
 0x12c   : > { %2095 = vst [vmem:[#allocation3 + $0x3c] sm:$0x11] %v2091_v0  ;;  %v2126_v8 = vrot.slane %v2124_v63, 4  ;;  %3657 = vrot.lane.b32.xlu1 %v8179_v32, %s9138_s18 }
 0x12d   : > { %3693 = vrot.lane.b32.xlu0 %v3685_v61, %s9127_s8 }
 0x12e   : > { %v2127_v36 = vsel %vm316_vm2, %v2125_v62, %v2126_v8  ;;  %v2130_v49 = vsel %vm2128_vm3, %v2124_v63, %v2126_v8  ;;  %v2238_v27 = vpop.permute.xlu1 %2237  ;;  %v2261_v61 = vld [vmem:[#allocation3 + $0x38] sm:$0xf] }
 0x12f   : > { %v2129_v11 = vsel %vm2128_vm3, %v2122_v46, %v2127_v36  ;;  %2134 = vst [vmem:[#allocation3 + $0x44] sm:$0x2] %v2130_v49  ;;  %v2163_v14 = vpop.permute.xlu0 %2162  ;;  %v2241_v33 = vrot.slane %v2238_v27, 4  ;;  %v3835_v46 = vrot.slane %v3827_v12, %v7640_v6  ;;  %v8253_v1 = vld [vmem:[#allocation3 + $0x30] sm:$0xff]  ;;  %v8266_v49 = vrot.slane %v4377_v58, %v7640_v6 }
 0x130   : > { %2133 = vst [vmem:[#allocation3 + $0x3c] sm:$0x22] %v2129_v11  ;;  %v2165_v15 = vrot.slane %v2163_v14, 4  ;;  %3695 = vrot.lane.b32.xlu1 %v3692_v2, %s9127_s8 }
 0x131   : > { %3731 = vrot.lane.b32.xlu0 %v3723_v10, %s9133_s7 }
 0x132   : > { %v2166_v19 = vsel %vm316_vm2, %v2164_v9, %v2165_v15  ;;  %v2169_v21 = vsel %vm2167_vm5, %v2163_v14, %v2165_v15  ;;  %v8269_v9 = vrot.slane %v7141_v54, %v7640_v6 }
 0x133   : > { %v2168_v25 = vsel %vm2167_vm5, %v2161_v39, %v2166_v19  ;;  %2173 = vst [vmem:[#allocation3 + $0x44] sm:$0x4] %v2169_v21  ;;  %v2202_v26 = vpop.permute.xlu0 %2201  ;;  %v4114_v19 = vcombine.low %v7141_v54, %v7141_v54 }
 0x134   : > { %2172 = vst [vmem:[#allocation3 + $0x3c] sm:$0x44] %v2168_v25  ;;  %v2204_v28 = vrot.slane %v2202_v26, 4  ;;  %3733 = vrot.lane.b32.xlu1 %v3730_v16, %s9133_s7  ;;  %v7468_v16 = vld [vmem:[%s7645_s27 + $0xc] ss:$0 sps:$4 sm:$0xff]  }
 0x135   : > { %3768 = vrot.lane.b32.xlu0 %v8179_v32, %s9134_s9  ;;  %v8289_v43 = vrot.slane %v4114_v19, %v7640_v6 }
 0x136   : > { %v2205_v29 = vsel %vm316_vm2, %v2203_v22, %v2204_v28  ;;  %v2208_v30 = vsel %vm9122_vm1, %v2202_v26, %v2204_v28  ;;  %v2256_v26 = vld [vmem:[#allocation3 + $0x18] sm:$0xff] }
 0x137   : > { %v2207_v34 = vsel %vm9122_vm1, %v2200_v7, %v2205_v29  ;;  %2212 = vst [vmem:[#allocation3 + $0x44] sm:$0x8] %v2208_v30  ;;  %v2240_v38 = vpop.permute.xlu0 %2239 }
 0x138   : > { %2211 = vst [vmem:[#allocation3 + $0x3c] sm:$0x88] %v2207_v34  ;;  %v2242_v40 = vrot.slane %v2240_v38, 4  ;;  %3770 = vrot.lane.b32.xlu1 %v8184_v37, %s9134_s9  ;;  %v2259_v34 = vld [vmem:[#allocation3 + $0x2c] sm:$0xf] }
 0x139   : > { %3805 = vrot.lane.b32.xlu0 %v8197_v53, %s9135_s24  ;;  %v3873_v53 = vrot.slane %v3866_v47, %v7640_v6 }
 0x13a   : > { %v2243_v44 = vsel %vm316_vm2, %v2241_v33, %v2242_v40  ;;  %v2246_v45 = vsel %vm2244_vm12, %v2240_v38, %v2242_v40  ;;  %v7469_v33 = vld [vmem:[%s7645_s27 + $0xc] ss:$0 sps:$4 sm:$0xff]   ;;  %v4151_v40 = vrot.slane %v7468_v16, %v7640_v6 }
 0x13b   : > { %v2245_v48 = vsel %vm2244_vm12, %v2238_v27, %v2243_v44  ;;  %2250 = vst [vmem:[#allocation3 + $0x50] sm:$0x1] %v2246_v45  ;;  %v8245_v50 = vpop.permute.xlu1 %2270  ;;  %v2482_v51 = vpop.permute.xlu0 %2481  ;;  %v2258_v27 = vld [vmem:[#allocation3 + $0x24] sm:$0xff]  ;;  %v2255_v44 = vld [vmem:[#allocation3 + $0x14] sm:$0xf] }
 0x13c   : > { %2249 = vst [vmem:[#allocation3 + $0x48] sm:$0x11] %v2245_v48  ;;  %3807 = vrot.lane.b32.xlu1 %v8179_v32, %s9135_s24  ;;  %v2485_v55 = vrot.slane %v2482_v51, 4  ;;  %v7035_v48 = vcombine.high %v2256_v26, %v2258_v27  ;;  %v4152_v58 = vcombine.high %v4151_v40, %v4151_v40 }
 0x13d   : > { %3843 = vrot.lane.b32.xlu0 %v3835_v46, %s7564_s10 }
 0x13e   : > { %v2263_v18 = vld [vmem:[#allocation3 + $0x44] sm:$0xf] }
 0x13f   : > { %v2484_v56 = vpop.permute.xlu1 %2483  ;;  %v2520_v57 = vpop.permute.xlu0 %2519  ;;  %v8255_v39 = vld [vmem:[#allocation3 + $0x3c] sm:$0xff]  ;;  %v7039_v17 = vcombine.low %v2261_v61, %v2263_v18 }
 0x140   : > { %v2486_v59 = vrot.slane %v2484_v56, 4  ;;  %3845 = vrot.lane.b32.xlu1 %v3842_v52, %s7564_s10  ;;  %v2523_v42 = vrot.slane %v2520_v57, 4  ;;  %v7038_v36 = vcombine.high %v8253_v1, %v8255_v39  ;;  %v7037_v29 = vcombine.low %v8253_v1, %v8255_v39 }
 0x141   : > { %3881 = vrot.lane.b32.xlu0 %v3873_v53, %s7565_s11  ;;  %v7034_v1 = vcombine.low %v2256_v26, %v2258_v27  ;;  %v7033_v39 = vcombine.low %v8072_v13, %v2255_v44  ;;  %v4159_v13 = vrot.slane %v4151_v40, %v7640_v6 }
 0x142   : > { %v2489_v41 = vsel %vm9113_vm13, %v2484_v56, %v2486_v59  ;;  %v2487_v62 = vsel %vm316_vm2, %v2485_v55, %v2486_v59  ;;  %v7463_v0 = vld [vmem:[#allocation3 + $0x50] ss:$0 sps:$4 sm:$0x11]   ;;  %v7036_v55 = vcombine.low %v2257_v23, %v2259_v34  ;;  %v4189_v56 = vrot.slane %v7469_v33, %v7640_v6 }
 0x143   : > { %2493 = vst [vmem:[#allocation3 + $0x8] sm:$0x2] %v2489_v41  ;;  %v2488_v63 = vsel %vm9113_vm13, %v2482_v51, %v2487_v62  ;;  %v2522_v8 = vpop.permute.xlu1 %2521  ;;  %v2264_v2 = vld [vmem:[#allocation3 + $0x48] sm:$0x11]  ;;  %v2558_v7 = vpop.permute.xlu0 %2557  ;;  %v2340_v14 = vsel %vm674_vm11, %v7463_v0, 0  ;;  %vm9139_vm13 = vcmask 1031168  }
 0x144   : > { %2492 = vst [vmem:[#allocation3] sm:$0x22] %v2488_v63  ;;  %v2524_v10 = vrot.slane %v2522_v8, 4  ;;  %v7041_v11 = vcombine.high %v2264_v2, %v2264_v2  ;;  %v7040_v15 = vcombine.low %v2264_v2, %v2264_v2  ;;  %3883 = vrot.lane.b32.xlu1 %v3880_v60, %s7565_s11  ;;  %7321 = vmatpush3.bf16.msra.mxu1 %v2340_v14  ;;  %v2561_v25 = vrot.slane %v2558_v7, 4  ;;  %vm9140_vm6 = vmmov %vm9139_vm13  ;;  %v2254_v51 = vld [vmem:[#allocation3 + $0xc] sm:$0xff] }
 0x145   : > { %7322 = vmatprep.subr.bf16.mxu1 %v7566_v35  ;;  %4392 = vrot.lane.b32.xlu0 %v8269_v9, %s7567_s12  ;;  %v7032_v18 = vcombine.high %v8078_v20, %v2254_v51  ;;  %v4190_v0 = vcombine.low %v4189_v56, %v4189_v56  ;;  %v7031_v2 = vcombine.low %v8078_v20, %v2254_v51 }
 0x146   : > { %v2527_v21 = vsel %vm9139_vm13, %v2522_v8, %v2524_v10  ;;  %v2525_v22 = vsel %vm316_vm2, %v2523_v42, %v2524_v10  ;;  %7043 = vmatprep.subr.msk.bf16.mxu0 %vm674_vm11, %v7041_v11  ;;  %v2334_v24 = vsel %vm674_vm11, %v7040_v15, 0  ;;  %v4166_v8 = vrot.slane %v4152_v58, %v7640_v6 }
 0x147   : > { %2531 = vst [vmem:[#allocation3 + $0x8] sm:$0x4] %v2527_v21  ;;  %v2526_v28 = vsel %vm9140_vm6, %v2520_v57, %v2525_v22  ;;  %v2560_v12 = vpop.permute.xlu1 %2559  ;;  %2351 = vmatpush1.bf16.msra.mxu0 %v2334_v24  ;;  %v2595_v30 = vpop.permute.xlu0 %2594  ;;  %vm2329_vm6 = vcmask 408576   ;;  %v4197_v20 = vrot.slane %v4190_v0, %v7640_v6  ;;  %v4204_v19 = vrot.slane %v4189_v56, %v7640_v6 }
 0x148   : > { %2530 = vst [vmem:[#allocation3] sm:$0x44] %v2526_v28  ;;  %v2562_v38 = vrot.slane %v2560_v12, 4  ;;  %2352 = vmatprep.subr.bf16.mxu0 %v7038_v36  ;;  %4394 = vrot.lane.b32.xlu1 %v8266_v49, %s7567_s12  ;;  %v2598_v47 = vrot.slane %v2595_v30, 4  ;;  %vm9141_vm13 = vmmov 0  }
 0x149   : > { %7323 = vmatpush3.bf16.msra.mxu1 %v7039_v17  ;;  %4092 = vrot.lane.b32.xlu0 %v8269_v9, %s9115_s29 }
 0x14a   : > { %v2565_v45 = vsel %vm9121_vm15, %v2560_v12, %v2562_v38  ;;  %v2563_v46 = vsel %vm316_vm2, %v2561_v25, %v2562_v38  ;;  %7324 = vmatprep.subr.bf16.mxu1 %v7566_v35 }
 0x14b   : > { %2569 = vst [vmem:[#allocation3 + $0x8] sm:$0x8] %v2565_v45  ;;  %v2564_v52 = vsel %vm9121_vm15, %v2558_v7, %v2563_v46  ;;  %v2597_v54 = vpop.permute.xlu1 %2596  ;;  %2353 = vmatpush1.bf16.msra.mxu0 %v7037_v29  ;;  %v2632_v53 = vpop.permute.xlu0 %2631  ;;  %v2251_v7 = vld [vmem:[%s9074_s1] sm:$0x1]  ;;  %vm9148_vm15 = vcmask 711680  }
 0x14c   : > { %2568 = vst [vmem:[#allocation3] sm:$0x88] %v2564_v52  ;;  %v2599_v57 = vrot.slane %v2597_v54, 4  ;;  %2354 = vmatprep.subr.bf16.mxu0 %v7035_v48  ;;  %4094 = vrot.lane.b32.xlu1 %v8266_v49, %s9115_s29  ;;  %v2635_v61 = vrot.slane %v2632_v53, 4  ;;  %s7384_s29 = smul.u32 12, %s9264_s23  ;;  %s9184_s23 = smov 126  }
 0x14d   : > { %7325 = vmatpush3.bf16.msra.mxu1 %v7036_v55  ;;  %4129 = vrot.lane.b32.xlu0 %v8289_v43, %s9138_s18 }
 0x14e   : > { %v2602_v59 = vsel %vm9120_vm14, %v2597_v54, %v2599_v57  ;;  %v2600_v60 = vsel %vm316_vm2, %v2598_v47, %v2599_v57  ;;  %7326 = vmatprep.subr.bf16.mxu1 %v7566_v35  ;;  %s8473_s26 = scalar_lea.vmem %s9078_s5, %s7384_s29  ;;  %s9183_s29 = smov 127  }
 0x14f   : > { %2606 = vst [vmem:[#allocation3 + $0x14] sm:$0x1] %v2602_v59  ;;  %v2601_v41 = vsel %vm9120_vm14, %v2595_v30, %v2600_v60  ;;  %v2634_v62 = vpop.permute.xlu1 %2633  ;;  %2355 = vmatpush1.bf16.msra.mxu0 %v7034_v1  ;;  %v8306_v42 = vpop.permute.xlu0 %2669 }
 0x150   : > { %2605 = vst [vmem:[#allocation3 + $0xc] sm:$0x11] %v2601_v41  ;;  %v2636_v63 = vrot.slane %v2634_v62, 4  ;;  %2356 = vmatprep.subr.bf16.mxu0 %v7032_v18  ;;  %4131 = vrot.lane.b32.xlu1 %v8269_v9, %s9138_s18 }
 0x151   : > { %7327 = vmatpush3.bf16.msra.mxu1 %v7033_v39  ;;  %4167 = vrot.lane.b32.xlu0 %v4159_v13, %s9127_s8 }
 0x152   : > { %v2639_v36 = vsel %vm9119_vm0, %v2634_v62, %v2636_v63  ;;  %v2637_v10 = vsel %vm316_vm2, %v2635_v61, %v2636_v63  ;;  %7332 = vmatprep.subr.bf16.mxu1 %v7566_v35 }
 0x153   : > { %2643 = vst [vmem:[#allocation3 + $0x14] sm:$0x2] %v2639_v36  ;;  %v2638_v11 = vsel %vm9119_vm0, %v2632_v53, %v2637_v10  ;;  %v3345_v14 = vpop.permute.xlu1 %3344  ;;  %2357 = vmatpush1.bf16.msra.mxu0 %v7031_v2  ;;  %v3347_v15 = vpop.permute.xlu0 %3346  ;;  %vm9142_vm0 = vcmask 859136  }
 0x154   : > { %2642 = vst [vmem:[#allocation3 + $0xc] sm:$0x22] %v2638_v11  ;;  %v3348_v16 = vrot.slane %v3345_v14, 4  ;;  %7329 = vmatmul.mubr.msk.bf16.vlgmr.msra.gmra.mxu1 %vm2329_vm6, %v2251_v7  ;;  %v3349_v17 = vrot.slane %v3347_v15, 4  ;;  %4169 = vrot.lane.b32.xlu1 %v4166_v8, %s9127_s8  ;;  %vm9143_vm14 = vmmov %vm9142_vm0 }
 0x155   : > { %7340 = vmatprep.mubr.msk.bf16.mxu1 %vm9141_vm13, %v7566_v35  ;;  %4205 = vrot.lane.b32.xlu0 %v4197_v20, %s9133_s7 }
 0x156   : > { %7044 = vmatmul.mubr.msk.bf16.vlgmr.msra.gmra.mxu0 %vm2329_vm6, %v2251_v7  ;;  %v3350_v21 = vsel %vm316_vm2, %v3348_v16, %v3349_v17  ;;  %v3352_v22 = vsel %vm2244_vm12, %v3347_v15, %v3349_v17 }
 0x157   : > { %v3045_v24 = vpop.permute.xlu1 %3044  ;;  %v3351_v25 = vsel %vm2244_vm12, %v3345_v14, %v3350_v21  ;;  %3356 = vst [vmem:[#allocation3 + $0x50] sm:$0x1] %v3352_v22  ;;  %v3047_v26 = vpop.permute.xlu0 %3046  ;;  %3479 = vmatprep.mubr.bf16.mxu0 %v7557_v3 }
 0x158   : > { %v3048_v27 = vrot.slane %v3045_v24, 4  ;;  %3355 = vst [vmem:[#allocation3 + $0x48] sm:$0x11] %v3351_v25  ;;  %v3049_v28 = vrot.slane %v3047_v26, 4  ;;  %4207 = vrot.lane.b32.xlu1 %v4204_v19, %s9133_s7 }
 0x159   : > { %4242 = vrot.lane.b32.xlu0 %v8269_v9, %s9134_s9 }
 0x15a   : > { %v3050_v12 = vsel %vm316_vm2, %v3048_v27, %v3049_v28  ;;  %v3052_v29 = vsel %vm549_vm8, %v3047_v26, %v3049_v28 }
 0x15b   : > { %v3082_v30 = vpop.permute.xlu1 %3081  ;;  %v3051_v33 = vsel %vm549_vm8, %v3045_v24, %v3050_v12  ;;  %3056 = vst [vmem:[#allocation3 + $0x38] sm:$0x1] %v3052_v29  ;;  %v3084_v23 = vpop.permute.xlu0 %3083 }
 0x15c   : > { %v3085_v34 = vrot.slane %v3082_v30, 4  ;;  %3055 = vst [vmem:[#allocation3 + $0x30] sm:$0x11] %v3051_v33  ;;  %v3086_v38 = vrot.slane %v3084_v23, 4 }
 0x15e   : > { %v3087_v40 = vsel %vm316_vm2, %v3085_v34, %v3086_v38  ;;  %v3089_v44 = vsel %vm588_vm9, %v3084_v23, %v3086_v38  ;;  %v7470_v45 = vld [vmem:[#allocation3 + $0x50] ss:$0 sps:$4 sm:$0x11]  }
 0x15f   : > { %v3120_v46 = vpop.permute.xlu1 %3119  ;;  %v3088_v47 = vsel %vm588_vm9, %v3082_v30, %v3087_v40  ;;  %3093 = vst [vmem:[#allocation3 + $0x38] sm:$0x2] %v3089_v44  ;;  %v3122_v48 = vpop.permute.xlu0 %3121  ;;  %v3371_v51 = vld [vmem:[#allocation3 + $0x48] sm:$0x11]  ;;  %v3445_v55 = vsel %vm674_vm11, %v7470_v45, 0 }
 0x160   : > { %v3123_v52 = vrot.slane %v3120_v46, 4  ;;  %3092 = vst [vmem:[#allocation3 + $0x30] sm:$0x22] %v3088_v47  ;;  %v3124_v54 = vrot.slane %v3122_v48, 4  ;;  %v7098_v53 = vcombine.high %v3371_v51, %v3371_v51  ;;  %7333 = vmatpush3.bf16.msra.mxu1 %v3445_v55  ;;  %v7097_v56 = vcombine.low %v3371_v51, %v3371_v51 }
 0x161   : > { %7334 = vmatprep.subr.bf16.mxu1 %v7566_v35 }
 0x162   : > { %v3125_v57 = vsel %vm316_vm2, %v3123_v52, %v3124_v54  ;;  %v3127_v58 = vsel %vm626_vm10, %v3122_v48, %v3124_v54  ;;  %7100 = vmatprep.subr.msk.bf16.mxu0 %vm674_vm11, %v7098_v53  ;;  %v3439_v60 = vsel %vm674_vm11, %v7097_v56, 0 }
 0x163   : > { %v3158_v1 = vpop.permute.xlu1 %3157  ;;  %v3126_v39 = vsel %vm626_vm10, %v3120_v46, %v3125_v57  ;;  %3131 = vst [vmem:[#allocation3 + $0x38] sm:$0x4] %v3127_v58  ;;  %v3160_v59 = vpop.permute.xlu0 %3159  ;;  %3456 = vmatpush1.bf16.msra.mxu0 %v3439_v60 }
 0x164   : > { %v3161_v61 = vrot.slane %v3158_v1, 4  ;;  %3130 = vst [vmem:[#allocation3 + $0x30] sm:$0x44] %v3126_v39  ;;  %v3162_v18 = vrot.slane %v3160_v59, 4 }
 0x166   : > { %v3163_v41 = vsel %vm316_vm2, %v3161_v61, %v3162_v18  ;;  %v3165_v62 = vsel %vm2052_vm7, %v3160_v59, %v3162_v18 }
 0x167   : > { %v3195_v13 = vpop.permute.xlu1 %3194  ;;  %v3164_v0 = vsel %vm2052_vm7, %v3158_v1, %v3163_v41  ;;  %3169 = vst [vmem:[#allocation3 + $0x38] sm:$0x8] %v3165_v62  ;;  %v3197_v63 = vpop.permute.xlu0 %3196 }
 0x168   : > { %v3198_v8 = vrot.slane %v3195_v13, 4  ;;  %3168 = vst [vmem:[#allocation3 + $0x30] sm:$0x88] %v3164_v0  ;;  %v3199_v2 = vrot.slane %v3197_v63, 4 }
 0x16a   : > { %v3200_v7 = vsel %vm316_vm2, %v3198_v8, %v3199_v2  ;;  %v3202_v36 = vsel %vm2090_vm4, %v3197_v63, %v3199_v2 }
 0x16b   : > { %v3232_v10 = vpop.permute.xlu1 %3231  ;;  %v3201_v11 = vsel %vm2090_vm4, %v3195_v13, %v3200_v7  ;;  %3206 = vst [vmem:[#allocation3 + $0x44] sm:$0x1] %v3202_v36  ;;  %v3234_v14 = vpop.permute.xlu0 %3233 }
 0x16c   : > { %v3235_v15 = vrot.slane %v3232_v10, 4  ;;  %3205 = vst [vmem:[#allocation3 + $0x3c] sm:$0x11] %v3201_v11  ;;  %v3236_v20 = vrot.slane %v3234_v14, 4 }
 0x16e   : > { %v3237_v16 = vsel %vm316_vm2, %v3235_v15, %v3236_v20  ;;  %v3239_v17 = vsel %vm2128_vm3, %v3234_v14, %v3236_v20 }
 0x16f   : > { %v3270_v19 = vpop.permute.xlu1 %3269  ;;  %v3238_v21 = vsel %vm2128_vm3, %v3232_v10, %v3237_v16  ;;  %3243 = vst [vmem:[#allocation3 + $0x44] sm:$0x2] %v3239_v17  ;;  %v3272_v22 = vpop.permute.xlu0 %3271 }
 0x170   : > { %v3273_v24 = vrot.slane %v3270_v19, 4  ;;  %3242 = vst [vmem:[#allocation3 + $0x3c] sm:$0x22] %v3238_v21  ;;  %v3274_v25 = vrot.slane %v3272_v22, 4 }
 0x172   : > { %v3275_v26 = vsel %vm316_vm2, %v3273_v24, %v3274_v25  ;;  %v3277_v27 = vsel %vm2167_vm5, %v3272_v22, %v3274_v25 }
 0x173   : > { %v3308_v28 = vpop.permute.xlu1 %3307  ;;  %v3276_v12 = vsel %vm2167_vm5, %v3270_v19, %v3275_v26  ;;  %3281 = vst [vmem:[#allocation3 + $0x44] sm:$0x4] %v3277_v27  ;;  %v3310_v29 = vpop.permute.xlu0 %3309 }
 0x174   : > { %v3311_v30 = vrot.slane %v3308_v28, 4  ;;  %3280 = vst [vmem:[#allocation3 + $0x3c] sm:$0x44] %v3276_v12  ;;  %v3312_v33 = vrot.slane %v3310_v29, 4 }
 0x176   : > { %v3313_v23 = vsel %vm316_vm2, %v3311_v30, %v3312_v33  ;;  %v3315_v34 = vsel %vm9122_vm1, %v3310_v29, %v3312_v33 }
 0x177   : > { %v2745_v38 = vpop.permute.xlu1 %2744  ;;  %v3314_v40 = vsel %vm9122_vm1, %v3308_v28, %v3313_v23  ;;  %3319 = vst [vmem:[#allocation3 + $0x44] sm:$0x8] %v3315_v34  ;;  %v2747_v44 = vpop.permute.xlu0 %2746  ;;  %vm9149_vm1 = vmmov %vm9148_vm15 }
 0x178   : > { %v2748_v45 = vrot.slane %v2745_v38, 4  ;;  %3318 = vst [vmem:[#allocation3 + $0x3c] sm:$0x88] %v3314_v40  ;;  %v2749_v46 = vrot.slane %v2747_v44, 4 }
 0x17a   : > { %v2750_v47 = vsel %vm316_vm2, %v2748_v45, %v2749_v46  ;;  %v2752_v48 = vsel %vm9142_vm0, %v2747_v44, %v2749_v46  ;;  %v759_v54 = vpop.f32.mrf.mxu1  ;;  %vm9144_vm0 = vcmask 850944  }
 0x17b   : > { %v2782_v51 = vpop.permute.xlu1 %2781  ;;  %v2751_v52 = vsel %vm9143_vm14, %v2745_v38, %v2750_v47  ;;  %2756 = vst [vmem:[#allocation3 + $0x20] sm:$0x1] %v2752_v48  ;;  %v760_v53 = vadd.f32 %v759_v54, %v7904_v31  ;;  %v2784_v56 = vpop.permute.xlu0 %2783  ;;  %vm9145_vm14 = vmmov %vm9144_vm0 }
 0x17c   : > { %v2785_v55 = vrot.slane %v2782_v51, 4  ;;  %2755 = vst [vmem:[#allocation3 + $0x18] sm:$0x11] %v2751_v52  ;;  %v2786_v58 = vrot.slane %v2784_v56, 4  ;;  %v7310_v1 = vpop.f32.mrf.mxu1 }
 0x17d   : > { %v718_v57 = vpop.f32.mrf.mxu0  ;;  %770 = vst [vmem:[#allocation2 + $0x8] sm:$0x3] %v760_v53 }
 0x17e   : > { %v7473_v39 = vld [vmem:[#allocation3 + $0x38] ss:$12 sps:$4 sm:$0xff]   ;;  %v2787_v61 = vsel %vm316_vm2, %v2785_v55, %v2786_v58  ;;  %v2789_v18 = vsel %vm9144_vm0, %v2784_v56, %v2786_v58  ;;  %v719_v13 = vadd.f32 %v718_v57, %v7904_v31  ;;  %v762_v7 = vpop.f32.mrf.mxu1  ;;  %vm9146_vm0 = vcmask 719872  }
 0x17f   : > { %v2820_v59 = vpop.permute.xlu1 %2819  ;;  %v720_v60 = vpop.f32.mrf.mxu0  ;;  %v7474_v41 = vld [vmem:[#allocation3 + $0x34] ss:$12 sps:$4 sm:$0xff]   ;;  %v7476_v62 = vld [vmem:[#allocation3 + $0x30] ss:$12 sps:$4 sm:$0xff]   ;;  %v2788_v8 = vsel %vm9145_vm14, %v2782_v51, %v2787_v61  ;;  %2793 = vst [vmem:[#allocation3 + $0x20] sm:$0x2] %v2789_v18  ;;  %7335 = vmatpush3.bf16.msra.mxu1 %v7473_v39  ;;  %vm9147_vm14 = vmmov %vm9146_vm0 }
 0x180   : > { %v2823_v0 = vrot.slane %v2820_v59, 4  ;;  %v721_v63 = vadd.f32 %v720_v60, %v7904_v31  ;;  %v2822_v2 = vpop.permute.xlu0 %2821  ;;  %2792 = vst [vmem:[#allocation3 + $0x18] sm:$0x22] %v2788_v8  ;;  %3457 = vmatprep.subr.bf16.mxu0 %v7474_v41  ;;  %7336 = vmatprep.subr.bf16.mxu1 %v7566_v35  ;;  %v7311_v14 = vpop.f32.mrf.mxu1 }
 0x181   : > { %v2824_v36 = vrot.slane %v2822_v2, 4  ;;  %v722_v10 = vpop.f32.mrf.mxu0  ;;  %3458 = vmatpush1.bf16.msra.mxu0 %v7476_v62 }
 0x182   : > { %v767_v11 = vcombine.low %v719_v13, %v721_v63 }
 0x183   : > { %v2858_v15 = vpop.permute.xlu1 %2857  ;;  %v2825_v20 = vsel %vm316_vm2, %v2823_v0, %v2824_v36  ;;  %v2827_v31 = vsel %vm9146_vm0, %v2822_v2, %v2824_v36  ;;  %v723_v16 = vpop.f32.mrf.mxu0  ;;  %vm9150_vm0 = vcmask 703488  }
 0x184   : > { %769 = vst [vmem:[#allocation2] sm:$0x33] %v767_v11  ;;  %v2861_v17 = vrot.slane %v2858_v15, 4  ;;  %v2826_v19 = vsel %vm9147_vm14, %v2820_v59, %v2825_v20  ;;  %2831 = vst [vmem:[#allocation3 + $0x20] sm:$0x4] %v2827_v31  ;;  %v2860_v21 = vpop.permute.xlu0 %2859  ;;  %v2673_v59 = vrot.slane %v8306_v42, 4 }
 0x185   : > { %2830 = vst [vmem:[#allocation3 + $0x18] sm:$0x44] %v2826_v19  ;;  %v2862_v22 = vrot.slane %v2860_v21, 4  ;;  %vm9151_vm14 = vmmov %vm9150_vm0 }
 0x187   : > { %v2895_v24 = vpop.permute.xlu1 %2894  ;;  %v2863_v25 = vsel %vm316_vm2, %v2861_v17, %v2862_v22  ;;  %v2865_v26 = vsel %vm9148_vm15, %v2860_v21, %v2862_v22 }
 0x188   : > { %v2898_v27 = vrot.slane %v2895_v24, 4  ;;  %v2864_v28 = vsel %vm9149_vm1, %v2858_v15, %v2863_v25  ;;  %2869 = vst [vmem:[#allocation3 + $0x20] sm:$0x8] %v2865_v26  ;;  %v2897_v12 = vpop.permute.xlu0 %2896  ;;  %vm9152_vm1 = vcmask 695296  }
 0x189   : > { %2868 = vst [vmem:[#allocation3 + $0x18] sm:$0x88] %v2864_v28  ;;  %v2899_v29 = vrot.slane %v2897_v12, 4  ;;  %vm9153_vm15 = vmmov %vm9152_vm1 }
 0x18b   : > { %v2932_v30 = vpop.permute.xlu1 %2931  ;;  %v2900_v33 = vsel %vm316_vm2, %v2898_v27, %v2899_v29  ;;  %v2902_v23 = vsel %vm9150_vm0, %v2897_v12, %v2899_v29  ;;  %vm9154_vm0 = vcmask 687104  }
 0x18c   : > { %v2935_v34 = vrot.slane %v2932_v30, 4  ;;  %v2901_v38 = vsel %vm9151_vm14, %v2895_v24, %v2900_v33  ;;  %2906 = vst [vmem:[#allocation3 + $0x2c] sm:$0x1] %v2902_v23  ;;  %v2934_v40 = vpop.permute.xlu0 %2933  ;;  %vm9155_vm14 = vmmov %vm9154_vm0  ;;  %v3360_v23 = vld [vmem:[#allocation3 + $0x8] sm:$0xf] }
 0x18d   : > { %2905 = vst [vmem:[#allocation3 + $0x24] sm:$0x11] %v2901_v38  ;;  %v2936_v44 = vrot.slane %v2934_v40, 4 }
 0x18f   : > { %v2970_v45 = vpop.permute.xlu1 %2969  ;;  %v2937_v46 = vsel %vm316_vm2, %v2935_v34, %v2936_v44  ;;  %v2939_v47 = vsel %vm9152_vm1, %v2934_v40, %v2936_v44  ;;  %vm9156_vm1 = vcmask 556032  }
 0x190   : > { %v2973_v48 = vrot.slane %v2970_v45, 4  ;;  %v2938_v51 = vsel %vm9153_vm15, %v2932_v30, %v2937_v46  ;;  %2943 = vst [vmem:[#allocation3 + $0x2c] sm:$0x2] %v2939_v47  ;;  %v2972_v52 = vpop.permute.xlu0 %2971  ;;  %vm9157_vm15 = vmmov %vm9156_vm1  ;;  %v3359_v46 = vld [vmem:[#allocation3] sm:$0xff] }
 0x191   : > { %2942 = vst [vmem:[#allocation3 + $0x24] sm:$0x22] %v2938_v51  ;;  %v2974_v54 = vrot.slane %v2972_v52, 4 }
 0x193   : > { %v3008_v55 = vpop.permute.xlu1 %3007  ;;  %v2975_v53 = vsel %vm316_vm2, %v2973_v48, %v2974_v54  ;;  %v2977_v56 = vsel %vm9154_vm0, %v2972_v52, %v2974_v54  ;;  %vm9158_vm0 = vcmask 875520  }
 0x194   : > { %v3011_v57 = vrot.slane %v3008_v55, 4  ;;  %v2976_v58 = vsel %vm9155_vm14, %v2970_v45, %v2975_v53  ;;  %2981 = vst [vmem:[#allocation3 + $0x2c] sm:$0x4] %v2977_v56  ;;  %v3010_v1 = vpop.permute.xlu0 %3009  ;;  %vm9159_vm14 = vmmov %vm9158_vm0 }
 0x195   : > { %2980 = vst [vmem:[#allocation3 + $0x24] sm:$0x44] %v2976_v58  ;;  %v3012_v39 = vrot.slane %v3010_v1, 4 }
 0x197   : > { %v2672_v60 = vpop.permute.xlu1 %2671  ;;  %v3013_v61 = vsel %vm316_vm2, %v3011_v57, %v3012_v39  ;;  %v3015_v18 = vsel %vm9156_vm1, %v3010_v1, %v3012_v39  ;;  %vm9160_vm1 = vcmask 867328   ;;  %v7086_v1 = vld [vmem:[%s9074_s1 + $0x1] sm:$0x1] }
 0x198   : > { %v2674_v41 = vrot.slane %v2672_v60, 4  ;;  %v3014_v62 = vsel %vm9157_vm15, %v3008_v55, %v3013_v61  ;;  %3019 = vst [vmem:[#allocation3 + $0x2c] sm:$0x8] %v3015_v18  ;;  %v2708_v13 = vpop.permute.xlu0 %2707  ;;  %vm9161_vm15 = vmmov %vm9160_vm1 }
 0x199   : > { %3018 = vst [vmem:[#allocation3 + $0x24] sm:$0x88] %v3014_v62  ;;  %v2711_v8 = vrot.slane %v2708_v13, 4 }
 0x19a   : > { %v2675_v0 = vsel %vm316_vm2, %v2673_v59, %v2674_v41  ;;  %v2677_v63 = vsel %vm9158_vm0, %v2672_v60, %v2674_v41 }
 0x19b   : > { %v2676_v2 = vsel %vm9159_vm14, %v8306_v42, %v2675_v0  ;;  %2681 = vst [vmem:[#allocation3 + $0x14] sm:$0x4] %v2677_v63  ;;  %v2710_v7 = vpop.permute.xlu1 %2709  ;;  %vm9162_vm14 = vmmov %vm9158_vm0 }
 0x19c   : > { %2680 = vst [vmem:[#allocation3 + $0xc] sm:$0x44] %v2676_v2  ;;  %v2712_v36 = vrot.slane %v2710_v7, 4  ;;  %v3919_v10 = vpop.permute.xlu0 %3918 }
 0x19d   : > { %v3922_v15 = vrot.slane %v3919_v10, 4 }
 0x19e   : > { %v2715_v11 = vsel %vm9160_vm1, %v2710_v7, %v2712_v36  ;;  %v2713_v14 = vsel %vm316_vm2, %v2711_v8, %v2712_v36 }
 0x19f   : > { %2719 = vst [vmem:[#allocation3 + $0x14] sm:$0x8] %v2715_v11  ;;  %v2714_v20 = vsel %vm9161_vm15, %v2708_v13, %v2713_v14  ;;  %v7477_v31 = vld [vmem:[#allocation3 + $0x20] ss:$12 sps:$4 sm:$0xff]   ;;  %v3921_v16 = vpop.permute.xlu1 %3920  ;;  %vm9163_vm15 = vmmov %vm9160_vm1 }
 0x1a0   : > { %2718 = vst [vmem:[#allocation3 + $0xc] sm:$0x88] %v2714_v20  ;;  %v7478_v17 = vld [vmem:[#allocation3 + $0x1c] ss:$12 sps:$4 sm:$0xff]   ;;  %v7480_v19 = vld [vmem:[#allocation3 + $0x18] ss:$12 sps:$4 sm:$0xff]   ;;  %v3619_v42 = vpop.permute.xlu0 %3618  ;;  %7337 = vmatpush3.bf16.msra.mxu1 %v7477_v31 }
 0x1a1   : > { %v3923_v21 = vrot.slane %v3921_v16, 4  ;;  %3459 = vmatprep.subr.bf16.mxu0 %v7478_v17  ;;  %7338 = vmatprep.subr.bf16.mxu1 %v7566_v35  ;;  %v3622_v25 = vrot.slane %v3619_v42, 4 }
 0x1a2   : > { %v1234_v26 = vpop.f32.mrf.mxu1  ;;  %3460 = vmatpush1.bf16.msra.mxu0 %v7480_v19  ;;  %v275_v19 = vsub.s32 0, %v7633_v4 }
 0x1a3   : > { %v3926_v22 = vsel %vm626_vm10, %v3921_v16, %v3923_v21  ;;  %v3924_v24 = vsel %vm316_vm2, %v3922_v15, %v3923_v21  ;;  %v3621_v28 = vpop.permute.xlu1 %3620  ;;  %v1235_v12 = vadd.f32 %v1234_v26, %v8000_v5 }
 0x1a4   : > { %3930 = vst [vmem:[#allocation3 + $0x20] sm:$0x1] %v3926_v22  ;;  %v3925_v27 = vsel %vm626_vm10, %v3919_v10, %v3924_v24  ;;  %v3623_v29 = vrot.slane %v3621_v28, 4  ;;  %v3656_v30 = vpop.permute.xlu0 %3655  ;;  %v7318_v33 = vpop.f32.mrf.mxu1 }
 0x1a5   : > { %3929 = vst [vmem:[#allocation3 + $0x18] sm:$0x11] %v3925_v27  ;;  %v1245_v38 = vrot.slane %v1235_v12, 6  ;;  %v3659_v45 = vrot.slane %v3656_v30, 4  ;;  %v271_v27 = vld [vmem:[%s9077_s4] sm:$0x7] }
 0x1a6   : > { %v3362_v34 = vld [vmem:[#allocation3 + $0x14] sm:$0xf]  ;;  %v3626_v40 = vsel %vm9158_vm0, %v3621_v28, %v3623_v29  ;;  %v3624_v44 = vsel %vm316_vm2, %v3622_v25, %v3623_v29  ;;  %v1237_v51 = vpop.f32.mrf.mxu1  ;;  %vm9164_vm0 = vcmask 859136   ;;  %v283_v28 = vsub.s32 2, %v7633_v4 }
 0x1a7   : > { %v3361_v47 = vld [vmem:[#allocation3 + $0xc] sm:$0xff]  ;;  %v7090_v48 = vcombine.low %v3360_v23, %v3362_v34  ;;  %3630 = vst [vmem:[#allocation3 + $0x8] sm:$0x1] %v3626_v40  ;;  %v3625_v52 = vsel %vm9162_vm14, %v3619_v42, %v3624_v44  ;;  %v3658_v54 = vpop.permute.xlu1 %3657  ;;  %1249 = vst [vmem:[#allocation2 + $0x8] sm:$0xc] %v1245_v38  ;;  %v276_v33 = vrot.slane %v271_v27, %v275_v19 }
 0x1a8   : > { %v7089_v55 = vcombine.high %v3359_v46, %v3361_v47  ;;  %v7088_v53 = vcombine.low %v3359_v46, %v3361_v47  ;;  %3629 = vst [vmem:[#allocation3] sm:$0x11] %v3625_v52  ;;  %v3660_v56 = vrot.slane %v3658_v54, 4  ;;  %v3694_v57 = vpop.permute.xlu0 %3693  ;;  %v7319_v58 = vpop.f32.mrf.mxu1  ;;  %vm9165_vm14 = vmmov %vm9164_vm0  ;;  %v8440_v47 = vrot.slane %v271_v27, %v283_v28 }
 0x1a9   : > { %7339 = vmatpush3.bf16.msra.mxu1 %v7090_v48  ;;  %v3697_v61 = vrot.slane %v3694_v57, 4 }
 0x1aa   : > { %v1193_v39 = vpop.f32.mrf.mxu0  ;;  %3461 = vmatprep.subr.bf16.mxu0 %v7089_v55  ;;  %v3663_v59 = vsel %vm9160_vm1, %v3658_v54, %v3660_v56  ;;  %v3661_v60 = vsel %vm316_vm2, %v3659_v45, %v3660_v56  ;;  %7344 = vmatprep.subr.bf16.mxu1 %v7566_v35  ;;  %vm9166_vm1 = vcmask 711680   ;;  %v7584_v45 = vmov 1983009808  }
 0x1ab   : > { %v7483_v18 = vld [vmem:[#allocation3 + $0x20] ss:$0 sps:$4 sm:$0x11]   ;;  %3462 = vmatpush1.bf16.msra.mxu0 %v7088_v53  ;;  %3667 = vst [vmem:[#allocation3 + $0x8] sm:$0x2] %v3663_v59  ;;  %v3662_v41 = vsel %vm9163_vm15, %v3656_v30, %v3661_v60  ;;  %v3696_v62 = vpop.permute.xlu1 %3695  ;;  %v1194_v10 = vadd.f32 %v1193_v39, %v8000_v5  ;;  %vm9167_vm15 = vmmov %vm9166_vm1  ;;  %v1263_v46 = vunpack.c.l.s4 %v7584_v45 }
 0x1ac   : > { %v3936_v13 = vld [vmem:[#allocation3 + $0x18] sm:$0x11]  ;;  %v1195_v0 = vpop.f32.mrf.mxu0  ;;  %3666 = vst [vmem:[#allocation3] sm:$0x22] %v3662_v41  ;;  %v3698_v63 = vrot.slane %v3696_v62, 4  ;;  %v3732_v8 = vpop.permute.xlu0 %3731  ;;  %7341 = vmatmul.mubr.msk.bf16.vlgmr.msra.gmra.mxu1 %vm2329_vm6, %v7086_v1  ;;  %v3978_v2 = vsel %vm674_vm11, %v7483_v18, 0 }
 0x1ad   : > { %v7123_v7 = vcombine.high %v3936_v13, %v3936_v13  ;;  %v7122_v36 = vcombine.low %v3936_v13, %v3936_v13  ;;  %v1196_v11 = vadd.f32 %v1195_v0, %v8000_v5  ;;  %7345 = vmatpush3.bf16.msra.mxu1 %v3978_v2  ;;  %7348 = vmatprep.mubr.msk.bf16.mxu1 %vm9141_vm13, %v7566_v35  ;;  %v3735_v31 = vrot.slane %v3732_v8, 4 }
 0x1ae   : > { %v1197_v14 = vpop.f32.mrf.mxu0  ;;  %v3701_v15 = vsel %vm9164_vm0, %v3696_v62, %v3698_v63  ;;  %v3699_v20 = vsel %vm316_vm2, %v3697_v61, %v3698_v63  ;;  %7101 = vmatmul.mubr.msk.bf16.vlgmr.msra.gmra.mxu0 %vm2329_vm6, %v7086_v1  ;;  %v279_v5 = vsub.s32 1, %v7633_v4  ;;  %7346 = vmatprep.subr.bf16.mxu1 %v7566_v35  ;;  %vm9168_vm0 = vcmask 703488   ;;  %v1251_v54 = vld [vmem:[#allocation2 + $0x8] sm:$0xf] }
 0x1af   : > { %7125 = vmatprep.subr.msk.bf16.mxu0 %vm674_vm11, %v7123_v7  ;;  %v3972_v16 = vsel %vm674_vm11, %v7122_v36, 0  ;;  %v1243_v17 = vcombine.low %v1194_v10, %v1196_v11  ;;  %3705 = vst [vmem:[#allocation3 + $0x8] sm:$0x4] %v3701_v15  ;;  %v3700_v21 = vsel %vm9165_vm14, %v3694_v57, %v3699_v20  ;;  %v3734_v42 = vpop.permute.xlu1 %3733  ;;  %4012 = vmatprep.mubr.bf16.mxu0 %v7557_v3  ;;  %vm9169_vm14 = vmmov %vm9168_vm0  ;;  %v1264_v1 = vunpack.c.0.s8 %v1263_v46 }
 0x1b0   : > { %3993 = vmatpush1.bf16.msra.mxu0 %v3972_v16  ;;  %v1198_v22 = vpop.f32.mrf.mxu0  ;;  %3704 = vst [vmem:[#allocation3] sm:$0x44] %v3700_v21  ;;  %v3736_v24 = vrot.slane %v3734_v42, 4  ;;  %v3769_v25 = vpop.permute.xlu0 %3768  ;;  %v280_v23 = vrot.slane %v271_v27, %v279_v5  ;;  %v1282_v59 = vmul.f32 %v1251_v54, %v8440_v47  ;;  %v1257_v10 = vpack.c.bf16 %v1251_v54, %v1251_v54 }
 0x1b1   : > { %v1244_v26 = vrot.slane %v1243_v17, 6  ;;  %v3772_v30 = vrot.slane %v3769_v25, 4 }
 0x1b2   : > { %v3739_v12 = vsel %vm9166_vm1, %v3734_v42, %v3736_v24  ;;  %v3737_v29 = vsel %vm316_vm2, %v3735_v31, %v3736_v24  ;;  %v8444_v55 = vcombine.low %v276_v33, %v280_v23  ;;  %vm9170_vm1 = vcmask 695296  }
 0x1b3   : > { %1248 = vst [vmem:[#allocation2] sm:$0xcc] %v1244_v26  ;;  %3743 = vst [vmem:[#allocation3 + $0x8] sm:$0x8] %v3739_v12  ;;  %v3738_v34 = vsel %vm9167_vm15, %v3732_v8, %v3737_v29  ;;  %v3771_v38 = vpop.permute.xlu1 %3770  ;;  %v8453_v8 = vsub.s32 %v1264_v1, %v7633_v4  ;;  %v1295_v11 = vmul.f32 %v1282_v59, %v1251_v54  ;;  %v1290_v21 = vsel %vm316_vm2, %v1282_v59, 0.0 }
 0x1b4   : > { %3742 = vst [vmem:[#allocation3] sm:$0x88] %v3738_v34  ;;  %v3773_v40 = vrot.slane %v3771_v38, 4  ;;  %v3806_v44 = vpop.permute.xlu0 %3805  ;;  %vm9171_vm15 = vmmov %vm9170_vm1 }
 0x1b5   : > { %v3809_v52 = vrot.slane %v3806_v44, 4  ;;  %v1302_v33 = vsel %vm316_vm2, %v1295_v11, 0.0  ;;  %v3931_v11 = vld [vmem:[%s9073_s0] sm:$0x1] }
 0x1b6   : > { %v3776_v48 = vsel %vm9168_vm0, %v3771_v38, %v3773_v40  ;;  %v3774_v51 = vsel %vm316_vm2, %v3772_v30, %v3773_v40  ;;  %v1275_v40 = vrot.slane %v1257_v10, %v8453_v8  ;;  %vm9172_vm0 = vcmask 875520   ;;  %v7481_v10 = vld [vmem:[%s7645_s27 + $0xc] ss:$0 sps:$4 sm:$0xff]  }
 0x1b7   : > { %3780 = vst [vmem:[#allocation3 + $0x14] sm:$0x1] %v3776_v48  ;;  %v3775_v53 = vsel %vm9169_vm14, %v3769_v25, %v3774_v51  ;;  %v3808_v56 = vpop.permute.xlu1 %3807  ;;  %vm9173_vm14 = vmmov %vm9172_vm0 }
 0x1b8   : > { %3779 = vst [vmem:[#allocation3 + $0xc] sm:$0x11] %v3775_v53  ;;  %v3810_v57 = vrot.slane %v3808_v56, 4  ;;  %v3844_v58 = vpop.permute.xlu0 %3843 }
 0x1b9   : > { %v3847_v18 = vrot.slane %v3844_v58, 4 }
 0x1ba   : > { %v1250_v39 = vld [vmem:[#allocation2] sm:$0xff]  ;;  %v3813_v60 = vsel %vm9170_vm1, %v3808_v56, %v3810_v57  ;;  %v3811_v61 = vsel %vm316_vm2, %v3809_v52, %v3810_v57  ;;  %v3933_v57 = vld [vmem:[#allocation3 + $0x8] sm:$0xf]  ;;  %vm9174_vm1 = vcmask 867328  }
 0x1bb   : > { %v1281_v41 = vmul.f32 %v8444_v55, %v1250_v39  ;;  %3817 = vst [vmem:[#allocation3 + $0x14] sm:$0x2] %v3813_v60  ;;  %v3812_v62 = vsel %vm9171_vm15, %v3806_v44, %v3811_v61  ;;  %v3846_v13 = vpop.permute.xlu1 %3845  ;;  %v1253_v36 = vcombine.high %v1250_v39, %v1250_v39  ;;  %vm9175_vm15 = vmmov %vm9174_vm1 }
 0x1bc   : > { %3816 = vst [vmem:[#allocation3 + $0xc] sm:$0x22] %v3812_v62  ;;  %v3848_v0 = vrot.slane %v3846_v13, 4  ;;  %v3882_v63 = vpop.permute.xlu0 %3881 }
 0x1bd   : > { %v1284_v2 = vcombine.high %v1281_v41, %v1281_v41  ;;  %v1294_v7 = vmul.f32 %v1281_v41, %v1250_v39  ;;  %v3885_v20 = vrot.slane %v3882_v63, 4  ;;  %v1287_v31 = vsel %vm316_vm2, %v1281_v41, 0.0 }
 0x1be   : > { %v3851_v14 = vsel %vm549_vm8, %v3846_v13, %v3848_v0  ;;  %v3849_v15 = vsel %vm316_vm2, %v3847_v18, %v3848_v0  ;;  %v7014_v27 = vpack.c.bf16 %v1253_v36, %v1250_v39  ;;  %v3932_v39 = vld [vmem:[#allocation3] sm:$0xff] }
 0x1bf   : > { %v1288_v16 = vsel %vm316_vm2, %v1284_v2, 0.0  ;;  %v1297_v17 = vcombine.high %v1294_v7, %v1294_v7  ;;  %3855 = vst [vmem:[#allocation3 + $0x14] sm:$0x4] %v3851_v14  ;;  %v3850_v4 = vsel %vm549_vm8, %v3844_v58, %v3849_v15  ;;  %v3884_v19 = vpop.permute.xlu1 %3883  ;;  %v1299_v24 = vsel %vm316_vm2, %v1294_v7, 0.0 }
 0x1c0   : > { %v1289_v5 = vadd.f32 %v1288_v16, %v1287_v31  ;;  %3854 = vst [vmem:[#allocation3 + $0xc] sm:$0x44] %v3850_v4  ;;  %v3886_v42 = vrot.slane %v3884_v19, 4  ;;  %v4393_v22 = vpop.permute.xlu0 %4392  ;;  %v1268_v38 = vrot.slane %v7014_v27, %v8453_v8 }
 0x1c1   : > { %v1300_v25 = vsel %vm316_vm2, %v1297_v17, 0.0  ;;  %v4396_v26 = vrot.slane %v4393_v22, 4 }
 0x1c2   : > { %v1291_v28 = vadd.f32 %v1290_v21, %v1289_v5  ;;  %v1301_v12 = vadd.f32 %v1300_v25, %v1299_v24  ;;  %v3889_v29 = vsel %vm588_vm9, %v3884_v19, %v3886_v42  ;;  %v3887_v30 = vsel %vm316_vm2, %v3885_v20, %v3886_v42 }
 0x1c3   : > { %3893 = vst [vmem:[#allocation3 + $0x14] sm:$0x8] %v3889_v29  ;;  %v3888_v23 = vsel %vm588_vm9, %v3882_v63, %v3887_v30  ;;  %v4395_v34 = vpop.permute.xlu1 %4394  ;;  %v1276_v48 = vcombine.low %v1268_v38, %v1275_v40  ;;  %v4301_v24 = vrot.slane %v7481_v10, %v7640_v6  ;;  %v7482_v30 = vld [vmem:[%s7645_s27 + $0xc] ss:$0 sps:$4 sm:$0xff]  }
 0x1c4   : > { %1292 = vadd.xlane.f32.xlu1 %v1291_v28  ;;  %v1303_v44 = vadd.f32 %v1302_v33, %v1301_v12  ;;  %3892 = vst [vmem:[#allocation3 + $0xc] sm:$0x88] %v3888_v23  ;;  %v4397_v45 = vrot.slane %v4395_v34, 4  ;;  %v4093_v46 = vpop.permute.xlu0 %4092 }
 0x1c5   : > { %v4096_v54 = vrot.slane %v4093_v46, 4  ;;  %1278 = vst [vmem:[%s8473_s26] sm:$0x3f] %v1276_v48  ;;  %v4302_v23 = vcombine.high %v4301_v24, %v4301_v24 }
 0x1c6   : > { %1304 = vadd.xlane.f32.xlu0 %v1303_v44  ;;  %v4400_v51 = vsel %vm626_vm10, %v4395_v34, %v4397_v45  ;;  %v4398_v52 = vsel %vm316_vm2, %v4396_v26, %v4397_v45  ;;  %v4339_v44 = vrot.slane %v7482_v30, %v7640_v6 }
 0x1c7   : > { %4404 = vst [vmem:[#allocation3 + $0x20] sm:$0x1] %v4400_v51  ;;  %v4399_v53 = vsel %vm626_vm10, %v4393_v22, %v4398_v52  ;;  %v4095_v56 = vpop.permute.xlu1 %4094  ;;  %v4316_v45 = vrot.slane %v4302_v23, %v7640_v6 }
 0x1c8   : > { %4403 = vst [vmem:[#allocation3 + $0x18] sm:$0x11] %v4399_v53  ;;  %v4097_v58 = vrot.slane %v4095_v56, 4  ;;  %v4130_v1 = vpop.permute.xlu0 %4129  ;;  %v4354_v48 = vrot.slane %v4339_v44, %v7640_v6  ;;  %v7487_v53 = vld [vmem:[%s7645_s27 + $0x8] ss:$0 sps:$4 sm:$0xff]  }
 0x1c9   : > { %v4133_v18 = vrot.slane %v4130_v1, 4 }
 0x1ca   : > { %v3935_v59 = vld [vmem:[#allocation3 + $0x14] sm:$0xf]  ;;  %v4100_v60 = vsel %vm9172_vm0, %v4095_v56, %v4097_v58  ;;  %v4098_v61 = vsel %vm316_vm2, %v4096_v54, %v4097_v58  ;;  %vm9176_vm0 = vcmask 146432  }
 0x1cb   : > { %v3934_v41 = vld [vmem:[#allocation3 + $0xc] sm:$0xff]  ;;  %v7121_v62 = vcombine.low %v3933_v57, %v3935_v59  ;;  %4104 = vst [vmem:[#allocation3 + $0x8] sm:$0x1] %v4100_v60  ;;  %v4099_v13 = vsel %vm9173_vm14, %v4093_v46, %v4098_v61  ;;  %v4132_v0 = vpop.permute.xlu1 %4131  ;;  %vm9177_vm14 = vcmask 859136   ;;  %v4340_v46 = vcombine.low %v4339_v44, %v4339_v44  ;;  %v7488_v61 = vld [vmem:[%s7645_s27 + $0x8] ss:$0 sps:$4 sm:$0xff]  }
 0x1cc   : > { %v7120_v63 = vcombine.high %v3932_v39, %v3934_v41  ;;  %v7119_v2 = vcombine.low %v3932_v39, %v3934_v41  ;;  %4103 = vst [vmem:[#allocation3] sm:$0x11] %v4099_v13  ;;  %v4134_v7 = vrot.slane %v4132_v0, 4  ;;  %v4168_v36 = vpop.permute.xlu0 %4167  ;;  %v7489_v13 = vld [vmem:[%s7645_s27 + $0x8] ss:$0 sps:$4 sm:$0xff]  }
 0x1cd   : > { %7347 = vmatpush3.bf16.msra.mxu1 %v7121_v62  ;;  %v4171_v20 = vrot.slane %v4168_v36, 4  ;;  %v4347_v51 = vrot.slane %v4340_v46, %v7640_v6  ;;  %v5425_v62 = vrot.slane %v7488_v61, %v7640_v6  ;;  %v7500_v61 = vld [vmem:[%s7645_s27 + $0x8] ss:$0 sps:$4 sm:$0xff]  }
 0x1ce   : > { %3994 = vmatprep.subr.bf16.mxu0 %v7120_v63  ;;  %v4137_v14 = vsel %vm9174_vm1, %v4132_v0, %v4134_v7  ;;  %v4135_v15 = vsel %vm316_vm2, %v4133_v18, %v4134_v7  ;;  %7352 = vmatprep.subr.bf16.mxu1 %v7566_v35  ;;  %v7490_v31 = vld [vmem:[#allocation3 + $0x20] ss:$0 sps:$4 sm:$0x11]   ;;  %vm9178_vm1 = vmmov %vm9176_vm0  ;;  %v5463_v63 = vrot.slane %v7489_v13, %v7640_v6 }
 0x1cf   : > { %3995 = vmatpush1.bf16.msra.mxu0 %v7119_v2  ;;  %4141 = vst [vmem:[#allocation3 + $0x8] sm:$0x2] %v4137_v14  ;;  %v4136_v16 = vsel %vm9175_vm15, %v4130_v1, %v4135_v15  ;;  %v4170_v17 = vpop.permute.xlu1 %4169  ;;  %v4410_v4 = vld [vmem:[#allocation3 + $0x18] sm:$0x11]  ;;  %v4452_v21 = vsel %vm674_vm11, %v7490_v31, 0  ;;  %vm9179_vm15 = vmmov %vm9177_vm14  ;;  %v5313_v1 = vrot.slane %v7487_v53, %v7640_v6  ;;  %v5426_v0 = vcombine.high %v5425_v62, %v5425_v62 }
 0x1d0   : > { %4140 = vst [vmem:[#allocation3] sm:$0x22] %v4136_v16  ;;  %v4172_v19 = vrot.slane %v4170_v17, 4  ;;  %v4206_v5 = vpop.permute.xlu0 %4205  ;;  %7349 = vmatmul.mubr.msk.bf16.vlgmr.msra.gmra.mxu1 %vm9176_vm0, %v3931_v11  ;;  %v7147_v42 = vcombine.high %v4410_v4, %v4410_v4  ;;  %v7146_v22 = vcombine.low %v4410_v4, %v4410_v4  ;;  %vm9180_vm0 = vcmask 711680  }
 0x1d1   : > { %7353 = vmatpush3.bf16.msra.mxu1 %v4452_v21  ;;  %7356 = vmatprep.mubr.msk.bf16.mxu1 %vm9141_vm13, %v7566_v35  ;;  %v4209_v27 = vrot.slane %v4206_v5, 4  ;;  %v5314_v59 = vcombine.low %v5313_v1, %v5313_v1  ;;  %v5440_v2 = vrot.slane %v5426_v0, %v7640_v6  ;;  %v5433_v7 = vrot.slane %v5425_v62, %v7640_v6  ;;  %v7495_v21 = vld [vmem:[%s7645_s27 + $0x8] ss:$0 sps:$4 sm:$0xff]  }
 0x1d2   : > { %v4175_v25 = vsel %vm9177_vm14, %v4170_v17, %v4172_v19  ;;  %v4173_v26 = vsel %vm316_vm2, %v4171_v20, %v4172_v19  ;;  %7149 = vmatprep.subr.msk.bf16.mxu0 %vm674_vm11, %v7147_v42  ;;  %7126 = vmatmul.mubr.msk.bf16.vlgmr.msra.gmra.mxu0 %vm9178_vm1, %v3931_v11  ;;  %v4446_v28 = vsel %vm674_vm11, %v7146_v22, 0  ;;  %vm9181_vm14 = vmmov %vm9180_vm0  ;;  %v5478_v10 = vrot.slane %v5463_v63, %v7640_v6  ;;  %v7491_v11 = vld [vmem:[%s7645_s27 + $0x8] ss:$0 sps:$4 sm:$0xff]  }
 0x1d3   : > { %4179 = vst [vmem:[#allocation3 + $0x8] sm:$0x4] %v4175_v25  ;;  %v4174_v12 = vsel %vm9179_vm15, %v4168_v36, %v4173_v26  ;;  %v4208_v29 = vpop.permute.xlu1 %4207  ;;  %4467 = vmatpush1.bf16.msra.mxu0 %v4446_v28  ;;  %7354 = vmatprep.subr.bf16.mxu1 %v7566_v35  ;;  %v5321_v18 = vrot.slane %v5314_v59, %v7640_v6  ;;  %v7494_v20 = vld [vmem:[%s7645_s27 + $0x8] ss:$0 sps:$4 sm:$0xff]   ;;  %vm9189_vm1 = vcmask 703488  }
 0x1d4   : > { %4178 = vst [vmem:[#allocation3] sm:$0x44] %v4174_v12  ;;  %v4210_v33 = vrot.slane %v4208_v29, 4  ;;  %4486 = vmatprep.mubr.bf16.mxu0 %v7557_v3  ;;  %v5464_v36 = vcombine.low %v5463_v63, %v5463_v63  ;;  %v4975_v15 = vrot.slane %v7491_v11, %v7640_v6  ;;  %v5013_v16 = vrot.slane %v7494_v20, %v7640_v6  ;;  %v7496_v12 = vld [vmem:[%s7645_s27 + $0x8] ss:$0 sps:$4 sm:$0xff]   ;;  %vm9190_vm15 = vmmov %vm9189_vm1 }
 0x1d5   : > { %4244 = vrot.lane.b32.xlu1 %v8266_v49, %s9134_s9  ;;  %v4309_v49 = vrot.slane %v4301_v24, %v7640_v6  ;;  %v5125_v25 = vrot.slane %v7495_v21, %v7640_v6  ;;  %v5163_v44 = vrot.slane %v7496_v12, %v7640_v6  ;;  %v7499_v59 = vld [vmem:[%s7645_s27 + $0x8] ss:$0 sps:$4 sm:$0xff]   ;;  %v4863_v62 = vrot.slane %v7500_v61, %v7640_v6  ;;  %v7249_v0 = vld.sshfl [vmem:[%s7645_s27 + $0xc] sm:$0x55 pattern:$0x73625140] }
 0x1d6   : > { %v4213_v34 = vsel %vm9180_vm0, %v4208_v29, %v4210_v33  ;;  %v4211_v38 = vsel %vm316_vm2, %v4209_v27, %v4210_v33  ;;  %v5471_v14 = vrot.slane %v5464_v36, %v7640_v6  ;;  %v4976_v31 = vcombine.high %v4975_v15, %v4975_v15 }
 0x1d7   : > { %4217 = vst [vmem:[#allocation3 + $0x8] sm:$0x8] %v4213_v34  ;;  %v4212_v40 = vsel %vm9181_vm14, %v4206_v5, %v4211_v38  ;;  %v4983_v4 = vrot.slane %v4975_v15, %v7640_v6  ;;  %v5014_v19 = vcombine.low %v5013_v16, %v5013_v16  ;;  %v5028_v5 = vrot.slane %v5013_v16, %v7640_v6  ;;  %v7502_v15 = vld [vmem:[%s7645_s27 + $0xc] ss:$0 sps:$4 sm:$0xff]  }
 0x1d8   : > { %4216 = vst [vmem:[#allocation3] sm:$0x88] %v4212_v40  ;;  %v4990_v17 = vrot.slane %v4976_v31, %v7640_v6  ;;  %v5126_v23 = vcombine.high %v5125_v25, %v5125_v25  ;;  %v5133_v46 = vrot.slane %v5125_v25, %v7640_v6  ;;  %v4243_v31 = vpop.permute.xlu0 %4242  ;;  %v7503_v25 = vld [vmem:[%s7645_s27 + $0xc] ss:$0 sps:$4 sm:$0xff]   ;;  %vm9191_vm0 = vcmask 695296  }
 0x1d9   : > { %4281 = vrot.lane.b32.xlu1 %v8269_v9, %s9135_s24  ;;  %v7486_v9 = vld [vmem:[%s7645_s27 + $0x8] ss:$0 sps:$4 sm:$0xff]   ;;  %v5021_v22 = vrot.slane %v5014_v19, %v7640_v6  ;;  %vm9192_vm14 = vmmov %vm9191_vm0 }
 0x1da   : > { %v5275_v52 = vrot.slane %v7486_v9, %v7640_v6 }
 0x1dc   : > { %4279 = vrot.lane.b32.xlu0 %v8289_v43, %s9135_s24  ;;  %v7183_v43 = vld.sshfl [vmem:[%s7645_s27 + $0x8] sm:$0x55 pattern:$0x73625140]  ;;  %v5276_v57 = vcombine.high %v5275_v52, %v5275_v52 }
 0x1dd   : > { %4319 = vrot.lane.b32.xlu1 %v4316_v45, %s7564_s10  ;;  %v5238_v54 = vcombine.low %v7183_v43, %v7183_v43  ;;  %v8533_v56 = vrot.slane %v7183_v43, %v7640_v6  ;;  %v5351_v60 = vcombine.high %v7183_v43, %v7183_v43 }
 0x1de   : > { %v5290_v39 = vrot.slane %v5276_v57, %v7640_v6 }
 0x1df   : > { %v8538_v58 = vrot.slane %v5238_v54, %v7640_v6  ;;  %v8554_v41 = vrot.slane %v5351_v60, %v7640_v6  ;;  %v4825_v60 = vrot.slane %v7499_v59, %v7640_v6 }
 0x1e0   : > { %4317 = vrot.lane.b32.xlu0 %v4309_v49, %s7564_s10  ;;  %v7497_v49 = vld [vmem:[%s7645_s27 + $0x8] ss:$0 sps:$4 sm:$0xff]  }
 0x1e1   : > { %4357 = vrot.lane.b32.xlu1 %v4354_v48, %s7565_s11  ;;  %v5164_v48 = vcombine.low %v5163_v44, %v5163_v44  ;;  %v4675_v9 = vrot.slane %v7497_v49, %v7640_v6  ;;  %v4833_v63 = vrot.slane %v4825_v60, %v7640_v6 }
 0x1e3   : > { %v5171_v43 = vrot.slane %v5164_v48, %v7640_v6  ;;  %v4676_v54 = vcombine.high %v4675_v9, %v4675_v9 }
 0x1e4   : > { %4355 = vrot.lane.b32.xlu0 %v4347_v51, %s7565_s11  ;;  %v5178_v51 = vrot.slane %v5163_v44, %v7640_v6 }
 0x1e5   : > { %5518 = vrot.lane.b32.xlu1 %v8184_v37, %s7583_s30  ;;  %v4690_v57 = vrot.slane %v4676_v54, %v7640_v6 }
 0x1e8   : > { %5516 = vrot.lane.b32.xlu0 %v8179_v32, %s7583_s30 }
 0x1e9   : > { %5218 = vrot.lane.b32.xlu1 %v8184_v37, %s7564_s10  ;;  %v5283_v37 = vrot.slane %v5275_v52, %v7640_v6  ;;  %v7498_v52 = vld [vmem:[%s7645_s27 + $0x8] ss:$0 sps:$4 sm:$0xff]  }
 0x1ea   : > { %v4713_v53 = vrot.slane %v7498_v52, %v7640_v6 }
 0x1ec   : > { %5216 = vrot.lane.b32.xlu0 %v8179_v32, %s7564_s10  ;;  %v5328_v32 = vrot.slane %v5313_v1, %v7640_v6  ;;  %v4683_v1 = vrot.slane %v4675_v9, %v7640_v6 }
 0x1ed   : > { %5255 = vrot.lane.b32.xlu1 %v8533_v56, %s7565_s11 }
 0x1f0   : > { %5253 = vrot.lane.b32.xlu0 %v8538_v58, %s7565_s11 }
 0x1f1   : > { %5293 = vrot.lane.b32.xlu1 %v5290_v39, %s7567_s12  ;;  %v4714_v39 = vcombine.low %v4713_v53, %v4713_v53 }
 0x1f4   : > { %5291 = vrot.lane.b32.xlu0 %v5283_v37, %s7567_s12  ;;  %v4728_v37 = vrot.slane %v4713_v53, %v7640_v6 }
 0x1f5   : > { %5331 = vrot.lane.b32.xlu1 %v5328_v32, %s7578_s15  ;;  %v4721_v32 = vrot.slane %v4714_v39, %v7640_v6 }
 0x1f8   : > { %5329 = vrot.lane.b32.xlu0 %v5321_v18, %s7578_s15  ;;  %v4826_v18 = vcombine.high %v4825_v60, %v4825_v60 }
 0x1f9   : > { %5368 = vrot.lane.b32.xlu1 %v8554_v41, %s7579_s16 }
 0x1fa   : > { %v4840_v13 = vrot.slane %v4826_v18, %v7640_v6 }
 0x1fc   : > { %5366 = vrot.lane.b32.xlu0 %v8533_v56, %s7579_s16 }
 0x1fd   : > { %5405 = vrot.lane.b32.xlu1 %v8533_v56, %s7580_s28 }
 0x200   : > { %5403 = vrot.lane.b32.xlu0 %v8538_v58, %s7580_s28 }
 0x201   : > { %5443 = vrot.lane.b32.xlu1 %v5440_v2, %s9131_s14  ;;  %v4878_v2 = vrot.slane %v4863_v62, %v7640_v6 }
 0x204   : > { %5441 = vrot.lane.b32.xlu0 %v5433_v7, %s9131_s14  ;;  %s9188_s14 = smov 107   ;;  %v6605_v7 = vcombine.high %v7249_v0, %v7249_v0 }
 0x205   : > { %5481 = vrot.lane.b32.xlu1 %v5478_v10, %s9129_s13  ;;  %v7501_v10 = vld [vmem:[%s7645_s27 + $0xc] ss:$0 sps:$4 sm:$0xff]  }
 0x206   : > { %v6379_v11 = vrot.slane %v7501_v10, %v7640_v6  ;;  %v7155_v10 = vld.sshfl [vmem:[%s7645_s27 + $0x8] sm:$0x15 pattern:$0x73625140] }
 0x208   : > { %5479 = vrot.lane.b32.xlu0 %v5471_v14, %s9129_s13  ;;  %s9187_s13 = smov 108   ;;  %v6342_v14 = vcombine.low %v7249_v0, %v7249_v0  ;;  %v6380_v20 = vcombine.high %v6379_v11, %v6379_v11  ;;  %v6387_v21 = vrot.slane %v6379_v11, %v7640_v6 }
 0x209   : > { %4918 = vrot.lane.b32.xlu1 %v8554_v41, %s9127_s8 }
 0x20a   : > { %v8674_v16 = vrot.slane %v6342_v14, %v7640_v6  ;;  %v6394_v19 = vrot.slane %v6380_v20, %v7640_v6 }
 0x20c   : > { %4916 = vrot.lane.b32.xlu0 %v8533_v56, %s9127_s8  ;;  %s9186_s8 = smov 124  }
 0x20d   : > { %4955 = vrot.lane.b32.xlu1 %v8533_v56, %s9125_s25 }
 0x210   : > { %4953 = vrot.lane.b32.xlu0 %v8538_v58, %s9125_s25  ;;  %s9185_s25 = smov 125  }
 0x211   : > { %4993 = vrot.lane.b32.xlu1 %v4990_v17, %s9182_s17  ;;  %v6417_v17 = vrot.slane %v7502_v15, %v7640_v6 }
 0x214   : > { %4991 = vrot.lane.b32.xlu0 %v4983_v4, %s9182_s17  ;;  %v2417_v42 = vpop.f32.mrf.mxu1 }
 0x215   : > { %5031 = vrot.lane.b32.xlu1 %v5028_v5, %s9133_s7  ;;  %v2418_v24 = vadd.f32 %v2417_v42, %v8245_v50  ;;  %v6418_v42 = vcombine.low %v6417_v17, %v6417_v17 }
 0x216   : > { %v2376_v26 = vpop.f32.mrf.mxu0  ;;  %v7330_v27 = vpop.f32.mrf.mxu1 }
 0x217   : > { %2428 = vst [vmem:[#allocation2 + $0x8] sm:$0x3] %v2418_v24  ;;  %v2377_v30 = vadd.f32 %v2376_v26, %v8245_v50  ;;  %v6432_v24 = vrot.slane %v6417_v17, %v7640_v6  ;;  %v4246_v26 = vrot.slane %v4243_v31, 4 }
 0x218   : > { %v2378_v28 = vpop.f32.mrf.mxu0  ;;  %5029 = vrot.lane.b32.xlu0 %v5021_v22, %s9133_s7  ;;  %v2420_v29 = vpop.f32.mrf.mxu1 }
 0x219   : > { %v2379_v33 = vadd.f32 %v2378_v28, %v8245_v50  ;;  %5068 = vrot.lane.b32.xlu1 %v8554_v41, %s9134_s9  ;;  %v5140_v50 = vrot.slane %v5126_v23, %v7640_v6 }
 0x21a   : > { %v2380_v34 = vpop.f32.mrf.mxu0  ;;  %v7331_v38 = vpop.f32.mrf.mxu1 }
 0x21b   : > { %v2425_v40 = vcombine.low %v2377_v30, %v2379_v33  ;;  %v6425_v33 = vrot.slane %v6418_v42, %v7640_v6  ;;  %v6529_v38 = vrot.slane %v7503_v25, %v7640_v6  ;;  %v4610_v42 = vcombine.high %v7155_v10, %v7155_v10  ;;  %v7513_v25 = vld [vmem:[%s7645_s27 + $0xc] ss:$0 sps:$4 sm:$0xff]  }
 0x21c   : > { %5066 = vrot.lane.b32.xlu0 %v8533_v56, %s9134_s9  ;;  %v2381_v45 = vpop.f32.mrf.mxu0 }
 0x21d   : > { %2427 = vst [vmem:[#allocation2] sm:$0x33] %v2425_v40  ;;  %5105 = vrot.lane.b32.xlu1 %v8533_v56, %s9135_s24  ;;  %v6530_v9 = vcombine.high %v6529_v38, %v6529_v38  ;;  %v6537_v61 = vrot.slane %v6529_v38, %v7640_v6 }
 0x21f   : > { %v6544_v59 = vrot.slane %v6530_v9, %v7640_v6 }
 0x220   : > { %5103 = vrot.lane.b32.xlu0 %v8538_v58, %s9135_s24 }
 0x221   : > { %5143 = vrot.lane.b32.xlu1 %v5140_v50, %s9136_s20 }
 0x224   : > { %5141 = vrot.lane.b32.xlu0 %v5133_v46, %s9136_s20  ;;  %v7504_v46 = vld [vmem:[%s7645_s27 + $0xc] ss:$0 sps:$4 sm:$0xff]  }
 0x225   : > { %5181 = vrot.lane.b32.xlu1 %v5178_v51, %s9137_s19 }
 0x228   : > { %5179 = vrot.lane.b32.xlu0 %v5171_v43, %s9137_s19 }
 0x229   : > { %4655 = vrot.lane.b32.xlu1 %v8533_v56, %s9183_s29 }
 0x22c   : > { %4653 = vrot.lane.b32.xlu0 %v8538_v58, %s9183_s29 }
 0x22d   : > { %4693 = vrot.lane.b32.xlu1 %v4690_v57, %s9184_s23 }
 0x230   : > { %4691 = vrot.lane.b32.xlu0 %v4683_v1, %s9184_s23  ;;  %v6567_v1 = vrot.slane %v7504_v46, %v7640_v6 }
 0x231   : > { %4731 = vrot.lane.b32.xlu1 %v4728_v37, %s9185_s25 }
 0x234   : > { %4729 = vrot.lane.b32.xlu0 %v4721_v32, %s9185_s25 }
 0x235   : > { %4768 = vrot.lane.b32.xlu1 %v8554_v41, %s9186_s8  ;;  %v4864_v41 = vcombine.low %v4863_v62, %v4863_v62 }
 0x237   : > { %v4871_v36 = vrot.slane %v4864_v41, %v7640_v6 }
 0x238   : > { %4766 = vrot.lane.b32.xlu0 %v8533_v56, %s9186_s8 }
 0x239   : > { %4805 = vrot.lane.b32.xlu1 %v8533_v56, %s9187_s13  ;;  %v8656_v56 = vrot.slane %v6605_v7, %v7640_v6  ;;  %v7511_v7 = vld [vmem:[%s7645_s27 + $0xc] ss:$0 sps:$4 sm:$0xff]  }
 0x23c   : > { %4803 = vrot.lane.b32.xlu0 %v8538_v58, %s9187_s13  ;;  %v8661_v58 = vrot.slane %v7249_v0, %v7640_v6  ;;  %v6568_v0 = vcombine.low %v6567_v1, %v6567_v1 }
 0x23d   : > { %4843 = vrot.lane.b32.xlu1 %v4840_v13, %s9188_s14 }
 0x240   : > { %4841 = vrot.lane.b32.xlu0 %v4833_v63, %s9188_s14 }
 0x241   : > { %4881 = vrot.lane.b32.xlu1 %v4878_v2, %s9138_s18  ;;  %v6582_v2 = vrot.slane %v6567_v1, %v7640_v6 }
 0x244   : > { %4879 = vrot.lane.b32.xlu0 %v4871_v36, %s9138_s18 }
 0x245   : > { %6622 = vrot.lane.b32.xlu1 %v8656_v56, %s7583_s30 }
 0x248   : > { %6620 = vrot.lane.b32.xlu0 %v8661_v58, %s7583_s30 }
 0x249   : > { %6322 = vrot.lane.b32.xlu1 %v8656_v56, %s7564_s10 }
 0x24c   : > { %6320 = vrot.lane.b32.xlu0 %v8661_v58, %s7564_s10  ;;  %s9193_s10 = smov 46  }
 0x24d   : > { %6359 = vrot.lane.b32.xlu1 %v8661_v58, %s7565_s11  ;;  %v8679_v4 = vpop.xlane.xlu1 %1292 }
 0x24f   : > { %v8682_v5 = vpop.xlane.xlu0 %1304 }
 0x250   : > { %6357 = vrot.lane.b32.xlu0 %v8674_v16, %s7565_s11  ;;  %s9195_s11 = smov 105  }
 0x251   : > { %6397 = vrot.lane.b32.xlu1 %v6394_v19, %s7567_s12  ;;  %v4245_v22 = vpop.permute.xlu1 %4244 }
 0x252   : > { %v4247_v27 = vrot.slane %v4245_v22, 4 }
 0x253   : > { %v4280_v28 = vpop.permute.xlu0 %4279 }
 0x254   : > { %v4248_v12 = vsel %vm316_vm2, %v4246_v26, %v4247_v27  ;;  %v4250_v29 = vsel %vm9189_vm1, %v4245_v22, %v4247_v27  ;;  %6395 = vrot.lane.b32.xlu0 %v6387_v21, %s7567_s12  ;;  %v4283_v30 = vrot.slane %v4280_v28, 4  ;;  %v8730_v21 = vrot.slane %v7511_v7, %v7640_v6 }
 0x255   : > { %v4249_v23 = vsel %vm9190_vm15, %v4243_v31, %v4248_v12  ;;  %4254 = vst [vmem:[#allocation3 + $0x14] sm:$0x1] %v4250_v29  ;;  %6435 = vrot.lane.b32.xlu1 %v6432_v24, %s7578_s15  ;;  %v4282_v34 = vpop.permute.xlu1 %4281  ;;  %v6575_v31 = vrot.slane %v6568_v0, %v7640_v6  ;;  %vm9197_vm1 = vcmask 146432  }
 0x256   : > { %4253 = vst [vmem:[#allocation3 + $0xc] sm:$0x11] %v4249_v23  ;;  %v4284_v40 = vrot.slane %v4282_v34, 4  ;;  %vm9198_vm15 = vmmov %vm9197_vm1 }
 0x257   : > { %v4318_v44 = vpop.permute.xlu0 %4317 }
 0x258   : > { %v4287_v45 = vsel %vm9191_vm0, %v4282_v34, %v4284_v40  ;;  %v4285_v50 = vsel %vm316_vm2, %v4283_v30, %v4284_v40  ;;  %6433 = vrot.lane.b32.xlu0 %v6425_v33, %s7578_s15  ;;  %v4321_v49 = vrot.slane %v4318_v44, 4  ;;  %v6080_v34 = vcombine.high %v8730_v21, %v8730_v21  ;;  %v7142_v40 = vld [vmem:[%s9073_s0 + $0x1] sm:$0x1] }
 0x259   : > { %4291 = vst [vmem:[#allocation3 + $0x14] sm:$0x2] %v4287_v45  ;;  %v4286_v48 = vsel %vm9192_vm14, %v4280_v28, %v4285_v50  ;;  %6472 = vrot.lane.b32.xlu1 %v8656_v56, %s7579_s16  ;;  %v4320_v51 = vpop.permute.xlu1 %4319  ;;  %v6117_v45 = vrot.slane %v7513_v25, %v7640_v6  ;;  %vm9199_vm0 = vcmask 367616  }
 0x25a   : > { %4290 = vst [vmem:[#allocation3 + $0xc] sm:$0x22] %v4286_v48  ;;  %v4322_v43 = vrot.slane %v4320_v51, 4  ;;  %vm9200_vm14 = vmmov %vm9199_vm0 }
 0x25b   : > { %v4356_v52 = vpop.permute.xlu0 %4355  ;;  %v6132_v0 = vrot.slane %v6117_v45, %v7640_v6 }
 0x25c   : > { %v4325_v54 = vsel %vm549_vm8, %v4320_v51, %v4322_v43  ;;  %v4323_v53 = vsel %vm316_vm2, %v4321_v49, %v4322_v43  ;;  %6470 = vrot.lane.b32.xlu0 %v8661_v58, %s7579_s16  ;;  %v4359_v57 = vrot.slane %v4356_v52, 4  ;;  %s9196_s16 = smov 104  }
 0x25d   : > { %4329 = vst [vmem:[#allocation3 + $0x14] sm:$0x4] %v4325_v54  ;;  %v4324_v39 = vsel %vm549_vm8, %v4318_v44, %v4323_v53  ;;  %6509 = vrot.lane.b32.xlu1 %v8661_v58, %s7580_s28  ;;  %v4358_v37 = vpop.permute.xlu1 %4357 }
 0x25e   : > { %4328 = vst [vmem:[#allocation3 + $0xc] sm:$0x44] %v4324_v39  ;;  %v4360_v32 = vrot.slane %v4358_v37, 4 }
 0x25f   : > { %v5517_v60 = vpop.permute.xlu0 %5516 }
 0x260   : > { %v4363_v18 = vsel %vm588_vm9, %v4358_v37, %v4360_v32  ;;  %v4361_v62 = vsel %vm316_vm2, %v4359_v57, %v4360_v32  ;;  %6507 = vrot.lane.b32.xlu0 %v8674_v16, %s7580_s28  ;;  %v5520_v13 = vrot.slane %v5517_v60, 4  ;;  %s9194_s28 = smov 45   ;;  %v6087_v37 = vrot.slane %v8730_v21, %v7640_v6 }
 0x261   : > { %4367 = vst [vmem:[#allocation3 + $0x14] sm:$0x8] %v4363_v18  ;;  %v4362_v63 = vsel %vm588_vm9, %v4356_v52, %v4361_v62  ;;  %6547 = vrot.lane.b32.xlu1 %v6544_v59, %s9193_s10  ;;  %v5519_v41 = vpop.permute.xlu1 %5518  ;;  %v6094_v52 = vrot.slane %v6080_v34, %v7640_v6  ;;  %v6118_v59 = vcombine.low %v6117_v45, %v6117_v45 }
 0x262   : > { %4366 = vst [vmem:[#allocation3 + $0xc] sm:$0x88] %v4362_v63  ;;  %v5521_v36 = vrot.slane %v5519_v41, 4  ;;  %v7514_v63 = vld [vmem:[%s7645_s27 + $0xc] ss:$0 sps:$4 sm:$0xff]  }
 0x263   : > { %v5217_v11 = vpop.permute.xlu0 %5216 }
 0x264   : > { %v5524_v14 = vsel %vm2244_vm12, %v5519_v41, %v5521_v36  ;;  %v5522_v15 = vsel %vm316_vm2, %v5520_v13, %v5521_v36  ;;  %6545 = vrot.lane.b32.xlu0 %v6537_v61, %s9193_s10  ;;  %v5220_v20 = vrot.slane %v5217_v11, 4 }
 0x265   : > { %5528 = vst [vmem:[#allocation3 + $0x50] sm:$0x1] %v5524_v14  ;;  %v5523_v17 = vsel %vm2244_vm12, %v5517_v60, %v5522_v15  ;;  %6585 = vrot.lane.b32.xlu1 %v6582_v2, %s9194_s28  ;;  %v5219_v19 = vpop.permute.xlu1 %5218 }
 0x266   : > { %5527 = vst [vmem:[#allocation3 + $0x48] sm:$0x11] %v5523_v17  ;;  %v5221_v22 = vrot.slane %v5219_v19, 4 }
 0x267   : > { %v5254_v24 = vpop.permute.xlu0 %5253 }
 0x268   : > { %v5224_v26 = vsel %vm549_vm8, %v5219_v19, %v5221_v22  ;;  %v5222_v27 = vsel %vm316_vm2, %v5220_v20, %v5221_v22  ;;  %6583 = vrot.lane.b32.xlu0 %v6575_v31, %s9194_s28  ;;  %v5257_v28 = vrot.slane %v5254_v24, 4  ;;  %v7505_v12 = vld [vmem:[#allocation3 + $0x8] ss:$12 sps:$4 sm:$0xff]   ;;  %v6229_v20 = vrot.slane %v7514_v63, %v7640_v6  ;;  %v7515_v22 = vld [vmem:[%s7645_s27 + $0xc] ss:$0 sps:$4 sm:$0xff]  }
 0x269   : > { %5228 = vst [vmem:[#allocation3 + $0x38] sm:$0x1] %v5224_v26  ;;  %v5223_v29 = vsel %vm549_vm8, %v5217_v11, %v5222_v27  ;;  %6022 = vrot.lane.b32.xlu1 %v8656_v56, %s9195_s11  ;;  %v5256_v30 = vpop.permute.xlu1 %5255  ;;  %v7506_v33 = vld [vmem:[#allocation3 + $0x4] ss:$12 sps:$4 sm:$0xff]   ;;  %v7508_v23 = vld [vmem:[#allocation3] ss:$12 sps:$4 sm:$0xff]   ;;  %7355 = vmatpush3.bf16.msra.mxu1 %v7505_v12  ;;  %v6125_v11 = vrot.slane %v6118_v59, %v7640_v6 }
 0x26a   : > { %7157 = vst.sshfl [vmem:[#allocation3 + $0x8] sm:$0x1 pattern:$0x75316420] %v4610_v42  ;;  %5227 = vst [vmem:[#allocation3 + $0x30] sm:$0x11] %v5223_v29  ;;  %4468 = vmatprep.subr.bf16.mxu0 %v7506_v33  ;;  %7360 = vmatprep.subr.bf16.mxu1 %v7566_v35  ;;  %v6230_v26 = vcombine.high %v6229_v20, %v6229_v20  ;;  %v6267_v33 = vrot.slane %v7515_v22, %v7640_v6 }
 0x26b   : > { %v5258_v38 = vrot.slane %v5256_v30, 4  ;;  %7156 = vst.sshfl [vmem:[#allocation3] sm:$0x5 pattern:$0x75316420] %v7155_v10  ;;  %v5292_v44 = vpop.permute.xlu0 %5291  ;;  %4469 = vmatpush1.bf16.msra.mxu0 %v7508_v23 }
 0x26c   : > { %6020 = vrot.lane.b32.xlu0 %v8661_v58, %s9195_s11  ;;  %v5295_v46 = vrot.slane %v5292_v44, 4  ;;  %v7509_v48 = vld [vmem:[#allocation3 + $0x50] ss:$0 sps:$4 sm:$0x11]   ;;  %7357 = vmatmul.mubr.msk.bf16.vlgmr.msra.gmra.mxu1 %vm9197_vm1, %v7142_v40  ;;  %vm9201_vm1 = vcmask 859136  }
 0x26d   : > { %v5261_v50 = vsel %vm588_vm9, %v5256_v30, %v5258_v38  ;;  %v5259_v49 = vsel %vm316_vm2, %v5257_v28, %v5258_v38  ;;  %6059 = vrot.lane.b32.xlu1 %v8661_v58, %s9196_s16  ;;  %v5294_v9 = vpop.permute.xlu1 %5293  ;;  %v5542_v43 = vld [vmem:[#allocation3 + $0x48] sm:$0x11]  ;;  %v5616_v53 = vsel %vm674_vm11, %v7509_v48, 0  ;;  %7368 = vmatprep.mubr.msk.bf16.mxu1 %vm9141_vm13, %v7566_v35  ;;  %v6244_v38 = vrot.slane %v6230_v26, %v7640_v6 }
 0x26e   : > { %5265 = vst [vmem:[#allocation3 + $0x38] sm:$0x2] %v5261_v50  ;;  %v5260_v51 = vsel %vm588_vm9, %v5254_v24, %v5259_v49  ;;  %v5296_v54 = vrot.slane %v5294_v9, 4  ;;  %v7205_v57 = vcombine.high %v5542_v43, %v5542_v43  ;;  %v7204_v1 = vcombine.low %v5542_v43, %v5542_v43  ;;  %7361 = vmatpush3.bf16.msra.mxu1 %v5616_v53 }
 0x26f   : > { %5264 = vst [vmem:[#allocation3 + $0x30] sm:$0x22] %v5260_v51  ;;  %7150 = vmatmul.mubr.msk.bf16.vlgmr.msra.gmra.mxu0 %vm9198_vm15, %v7142_v40  ;;  %v5330_v39 = vpop.permute.xlu0 %5329  ;;  %7362 = vmatprep.subr.bf16.mxu1 %v7566_v35  ;;  %v7516_v40 = vld [vmem:[%s7645_s27 + $0xc] ss:$0 sps:$4 sm:$0xff]   ;;  %v6237_v50 = vrot.slane %v6229_v20, %v7640_v6  ;;  %v6268_v51 = vcombine.low %v6267_v33, %v6267_v33  ;;  %vm9202_vm15 = vmmov %vm9201_vm1 }
 0x270   : > { %v5299_v32 = vsel %vm626_vm10, %v5294_v9, %v5296_v54  ;;  %v5297_v60 = vsel %vm316_vm2, %v5295_v46, %v5296_v54  ;;  %6057 = vrot.lane.b32.xlu0 %v8674_v16, %s9196_s16  ;;  %7207 = vmatprep.subr.msk.bf16.mxu0 %vm674_vm11, %v7205_v57  ;;  %v5610_v61 = vsel %vm674_vm11, %v7204_v1, 0  ;;  %v5333_v18 = vrot.slane %v5330_v39, 4  ;;  %v7522_v20 = vld [vmem:[%s7645_s27 + $0xc] ss:$0 sps:$4 sm:$0xff]  }
 0x271   : > { %5303 = vst [vmem:[#allocation3 + $0x38] sm:$0x4] %v5299_v32  ;;  %v5298_v62 = vsel %vm626_vm10, %v5292_v44, %v5297_v60  ;;  %6097 = vrot.lane.b32.xlu1 %v6094_v52, %s9182_s17  ;;  %v5332_v13 = vpop.permute.xlu1 %5331  ;;  %5627 = vmatpush1.bf16.msra.mxu0 %v5610_v61  ;;  %v6282_v52 = vrot.slane %v6267_v33, %v7640_v6  ;;  %v7520_v32 = vld [vmem:[%s7645_s27 + $0xc] ss:$0 sps:$4 sm:$0xff]  }
 0x272   : > { %5302 = vst [vmem:[#allocation3 + $0x30] sm:$0x44] %v5298_v62  ;;  %v5334_v41 = vrot.slane %v5332_v13, 4  ;;  %5650 = vmatprep.mubr.bf16.mxu0 %v7557_v3  ;;  %v5779_v54 = vrot.slane %v7516_v40, %v7640_v6  ;;  %v6275_v59 = vrot.slane %v6268_v51, %v7640_v6  ;;  %v5929_v40 = vrot.slane %v7522_v20, %v7640_v6 }
 0x273   : > { %v5367_v2 = vpop.permute.xlu0 %5366 }
 0x274   : > { %v5337_v7 = vsel %vm2052_vm7, %v5332_v13, %v5334_v41  ;;  %v5335_v36 = vsel %vm316_vm2, %v5333_v18, %v5334_v41  ;;  %6095 = vrot.lane.b32.xlu0 %v6087_v37, %s9182_s17  ;;  %v5370_v10 = vrot.slane %v5367_v2, 4  ;;  %v5780_v18 = vcombine.high %v5779_v54, %v5779_v54 }
 0x275   : > { %5341 = vst [vmem:[#allocation3 + $0x38] sm:$0x8] %v5337_v7  ;;  %v5336_v14 = vsel %vm2052_vm7, %v5330_v39, %v5335_v36  ;;  %6135 = vrot.lane.b32.xlu1 %v6132_v0, %s9133_s7  ;;  %v5369_v15 = vpop.permute.xlu1 %5368 }
 0x276   : > { %5340 = vst [vmem:[#allocation3 + $0x30] sm:$0x88] %v5336_v14  ;;  %v5371_v31 = vrot.slane %v5369_v15, 4 }
 0x277   : > { %v5404_v17 = vpop.permute.xlu0 %5403 }
 0x278   : > { %v5374_v19 = vsel %vm2090_vm4, %v5369_v15, %v5371_v31  ;;  %v5372_v21 = vsel %vm316_vm2, %v5370_v10, %v5371_v31  ;;  %6133 = vrot.lane.b32.xlu0 %v6125_v11, %s9133_s7  ;;  %v5407_v42 = vrot.slane %v5404_v17, 4  ;;  %v5794_v10 = vrot.slane %v5780_v18, %v7640_v6 }
 0x279   : > { %5378 = vst [vmem:[#allocation3 + $0x44] sm:$0x1] %v5374_v19  ;;  %v5373_v24 = vsel %vm2090_vm4, %v5367_v2, %v5372_v21  ;;  %6172 = vrot.lane.b32.xlu1 %v8656_v56, %s9134_s9  ;;  %v5406_v25 = vpop.permute.xlu1 %5405  ;;  %v5817_v2 = vrot.slane %v7520_v32, %v7640_v6  ;;  %v5787_v15 = vrot.slane %v5779_v54, %v7640_v6 }
 0x27a   : > { %5377 = vst [vmem:[#allocation3 + $0x3c] sm:$0x11] %v5373_v24  ;;  %v5408_v27 = vrot.slane %v5406_v25, 4 }
 0x27b   : > { %v5442_v28 = vpop.permute.xlu0 %5441  ;;  %v5832_v26 = vrot.slane %v5817_v2, %v7640_v6 }
 0x27c   : > { %v5411_v12 = vsel %vm2128_vm3, %v5406_v25, %v5408_v27  ;;  %v5409_v29 = vsel %vm316_vm2, %v5407_v42, %v5408_v27  ;;  %6170 = vrot.lane.b32.xlu0 %v8661_v58, %s9134_s9  ;;  %v5445_v30 = vrot.slane %v5442_v28, 4  ;;  %v5818_v42 = vcombine.low %v5817_v2, %v5817_v2  ;;  %v8862_v2 = vpop.f32.mrf.mxu0 }
 0x27d   : > { %5415 = vst [vmem:[#allocation3 + $0x44] sm:$0x2] %v5411_v12  ;;  %v5410_v23 = vsel %vm2128_vm3, %v5404_v17, %v5409_v29  ;;  %6209 = vrot.lane.b32.xlu1 %v8661_v58, %s9135_s24  ;;  %v5444_v34 = vpop.permute.xlu1 %5443 }
 0x27e   : > { %5414 = vst [vmem:[#allocation3 + $0x3c] sm:$0x22] %v5410_v23  ;;  %v5446_v44 = vrot.slane %v5444_v34, 4  ;;  %v5825_v23 = vrot.slane %v5818_v42, %v7640_v6 }
 0x27f   : > { %v5480_v45 = vpop.permute.xlu0 %5479 }
 0x280   : > { %v5449_v49 = vsel %vm2167_vm5, %v5444_v34, %v5446_v44  ;;  %v5447_v46 = vsel %vm316_vm2, %v5445_v30, %v5446_v44  ;;  %6207 = vrot.lane.b32.xlu0 %v8674_v16, %s9135_s24  ;;  %v5483_v48 = vrot.slane %v5480_v45, 4 }
 0x281   : > { %5453 = vst [vmem:[#allocation3 + $0x44] sm:$0x4] %v5449_v49  ;;  %v5448_v9 = vsel %vm2167_vm5, %v5442_v28, %v5447_v46  ;;  %6247 = vrot.lane.b32.xlu1 %v6244_v38, %s9136_s20  ;;  %v5482_v43 = vpop.permute.xlu1 %5481 }
 0x282   : > { %5452 = vst [vmem:[#allocation3 + $0x3c] sm:$0x44] %v5448_v9  ;;  %v5484_v53 = vrot.slane %v5482_v43, 4 }
 0x283   : > { %v4917_v57 = vpop.permute.xlu0 %4916 }
 0x284   : > { %v5487_v1 = vsel %vm9199_vm0, %v5482_v43, %v5484_v53  ;;  %v5485_v39 = vsel %vm316_vm2, %v5483_v48, %v5484_v53  ;;  %6245 = vrot.lane.b32.xlu0 %v6237_v50, %s9136_s20  ;;  %v4920_v37 = vrot.slane %v4917_v57, 4  ;;  %vm9203_vm0 = vcmask 850944   ;;  %v7523_v48 = vld [vmem:[%s7645_s27 + $0xc] ss:$0 sps:$4 sm:$0xff]  }
 0x285   : > { %5491 = vst [vmem:[#allocation3 + $0x44] sm:$0x8] %v5487_v1  ;;  %v5486_v60 = vsel %vm9200_vm14, %v5480_v45, %v5485_v39  ;;  %6285 = vrot.lane.b32.xlu1 %v6282_v52, %s9137_s19  ;;  %v4919_v61 = vpop.permute.xlu1 %4918  ;;  %vm9204_vm14 = vmmov %vm9203_vm0  ;;  %v5930_v43 = vcombine.high %v5929_v40, %v5929_v40  ;;  %v5967_v39 = vrot.slane %v7523_v48, %v7640_v6 }
 0x286   : > { %5490 = vst [vmem:[#allocation3 + $0x3c] sm:$0x88] %v5486_v60  ;;  %v4921_v62 = vrot.slane %v4919_v61, 4 }
 0x287   : > { %v4954_v13 = vpop.permute.xlu0 %4953 }
 0x288   : > { %v4924_v0 = vsel %vm9201_vm1, %v4919_v61, %v4921_v62  ;;  %v4922_v63 = vsel %vm316_vm2, %v4920_v37, %v4921_v62  ;;  %6283 = vrot.lane.b32.xlu0 %v6275_v59, %s9137_s19  ;;  %v4957_v41 = vrot.slane %v4954_v13, 4  ;;  %vm9205_vm1 = vcmask 719872  }
 0x289   : > { %4928 = vst [vmem:[#allocation3 + $0x20] sm:$0x1] %v4924_v0  ;;  %v4923_v7 = vsel %vm9202_vm15, %v4917_v57, %v4922_v63  ;;  %5759 = vrot.lane.b32.xlu1 %v8661_v58, %s9183_s29  ;;  %v4956_v36 = vpop.permute.xlu1 %4955  ;;  %vm9206_vm15 = vmmov %vm9205_vm1  ;;  %v5944_v59 = vrot.slane %v5930_v43, %v7640_v6  ;;  %v5937_v61 = vrot.slane %v5929_v40, %v7640_v6  ;;  %v3938_v43 = vld [vmem:[%s9075_s2] sm:$0x3] }
 0x28a   : > { %4927 = vst [vmem:[#allocation3 + $0x18] sm:$0x11] %v4923_v7  ;;  %v4958_v11 = vrot.slane %v4956_v36, 4  ;;  %v5968_v0 = vcombine.low %v5967_v39, %v5967_v39 }
 0x28b   : > { %v4992_v14 = vpop.permute.xlu0 %4991 }
 0x28c   : > { %v4961_v31 = vsel %vm9203_vm0, %v4956_v36, %v4958_v11  ;;  %v4959_v17 = vsel %vm316_vm2, %v4957_v41, %v4958_v11  ;;  %5757 = vrot.lane.b32.xlu0 %v8674_v16, %s9183_s29  ;;  %v4995_v19 = vrot.slane %v4992_v14, 4  ;;  %v7517_v21 = vld [vmem:[#allocation3 + $0x38] ss:$12 sps:$4 sm:$0xff]   ;;  %vm9207_vm0 = vcmask 711680   ;;  %v8864_v36 = vpop.f32.mrf.mxu1  ;;  %v8866_v11 = vpop.f32.mrf.mxu0 }
 0x28d   : > { %4965 = vst [vmem:[#allocation3 + $0x20] sm:$0x2] %v4961_v31  ;;  %v4960_v22 = vsel %vm9204_vm14, %v4954_v13, %v4959_v17  ;;  %5797 = vrot.lane.b32.xlu1 %v5794_v10, %s9184_s23  ;;  %v4994_v24 = vpop.permute.xlu1 %4993  ;;  %v7518_v25 = vld [vmem:[#allocation3 + $0x34] ss:$12 sps:$4 sm:$0xff]   ;;  %v7521_v27 = vld [vmem:[#allocation3 + $0x30] ss:$12 sps:$4 sm:$0xff]   ;;  %7363 = vmatpush3.bf16.msra.mxu1 %v7517_v21  ;;  %vm9208_vm14 = vmmov %vm9207_vm0  ;;  %v5982_v41 = vrot.slane %v5967_v39, %v7640_v6 }
 0x28e   : > { %4964 = vst [vmem:[#allocation3 + $0x18] sm:$0x22] %v4960_v22  ;;  %v4996_v28 = vrot.slane %v4994_v24, 4  ;;  %5628 = vmatprep.subr.bf16.mxu0 %v7518_v25  ;;  %7364 = vmatprep.subr.bf16.mxu1 %v7566_v35  ;;  %v5975_v20 = vrot.slane %v5968_v0, %v7640_v6  ;;  %v7342_v31 = vpop.f32.mrf.mxu1  ;;  %v3485_v21 = vpop.f32.mrf.mxu0  ;;  %v4412_v22 = vld [vmem:[%s9075_s2 + $0x2] sm:$0x3] }
 0x28f   : > { %v5030_v12 = vpop.permute.xlu0 %5029  ;;  %5629 = vmatpush1.bf16.msra.mxu0 %v7521_v27 }
 0x290   : > { %v4999_v29 = vsel %vm9205_vm1, %v4994_v24, %v4996_v28  ;;  %v4997_v30 = vsel %vm316_vm2, %v4995_v19, %v4996_v28  ;;  %5795 = vrot.lane.b32.xlu0 %v5787_v15, %s9184_s23  ;;  %v5033_v33 = vrot.slane %v5030_v12, 4  ;;  %vm9209_vm1 = vcmask 703488   ;;  %v3525_v24 = vpop.f32.mrf.mxu1  ;;  %s7271_s23 = sshll.u32 %s9266_s22, 3 }
 0x291   : > { %5003 = vst [vmem:[#allocation3 + $0x20] sm:$0x4] %v4999_v29  ;;  %v4998_v34 = vsel %vm9206_vm15, %v4992_v14, %v4997_v30  ;;  %5835 = vrot.lane.b32.xlu1 %v5832_v26, %s9185_s25  ;;  %v5032_v38 = vpop.permute.xlu1 %5031  ;;  %vm9210_vm15 = vmmov %vm9209_vm1  ;;  %v3486_v26 = vpop.f32.mrf.mxu0  ;;  %s9052_s11 = scalar_lea.vmem %s9079_s6, %s7271_s23 }
 0x292   : > { %5002 = vst [vmem:[#allocation3 + $0x18] sm:$0x44] %v4998_v34  ;;  %v5034_v44 = vrot.slane %v5032_v38, 4 }
 0x293   : > { %v5067_v45 = vpop.permute.xlu0 %5066 }
 0x294   : > { %v5037_v50 = vsel %vm9207_vm0, %v5032_v38, %v5034_v44  ;;  %v5035_v49 = vsel %vm316_vm2, %v5033_v33, %v5034_v44  ;;  %5833 = vrot.lane.b32.xlu0 %v5825_v23, %s9185_s25  ;;  %v5070_v46 = vrot.slane %v5067_v45, 4  ;;  %vm9211_vm0 = vcmask 695296   ;;  %v7087_v33 = vld [vmem:[%s9075_s2 + $0x6] sm:$0x3]  ;;  %v8884_v23 = vpop.f32.mrf.mxu0 }
 0x295   : > { %5041 = vst [vmem:[#allocation3 + $0x20] sm:$0x8] %v5037_v50  ;;  %v5036_v51 = vsel %vm9208_vm14, %v5030_v12, %v5035_v49  ;;  %5872 = vrot.lane.b32.xlu1 %v8656_v56, %s9186_s8  ;;  %v5069_v9 = vpop.permute.xlu1 %5068  ;;  %vm9212_vm14 = vmmov %vm9211_vm0  ;;  %v7343_v12 = vpop.f32.mrf.mxu1  ;;  %v7251_v38 = vld [vmem:[%s9075_s2 + $0x6] sm:$0x3] }
 0x296   : > { %5040 = vst [vmem:[#allocation3 + $0x18] sm:$0x88] %v5036_v51  ;;  %v5071_v52 = vrot.slane %v5069_v9, 4 }
 0x297   : > { %v5104_v54 = vpop.permute.xlu0 %5103  ;;  %v8889_v40 = vpop.f32.mrf.mxu1 }
 0x298   : > { %v5074_v53 = vsel %vm9209_vm1, %v5069_v9, %v5071_v52  ;;  %v5072_v57 = vsel %vm316_vm2, %v5070_v46, %v5071_v52  ;;  %5870 = vrot.lane.b32.xlu0 %v8661_v58, %s9186_s8  ;;  %v5107_v1 = vrot.slane %v5104_v54, 4  ;;  %vm9213_vm1 = vcmask 687104  }
 0x299   : > { %5078 = vst [vmem:[#allocation3 + $0x2c] sm:$0x1] %v5074_v53  ;;  %v5073_v37 = vsel %vm9210_vm15, %v5067_v45, %v5072_v57  ;;  %5909 = vrot.lane.b32.xlu1 %v8661_v58, %s9187_s13  ;;  %v5106_v56 = vpop.permute.xlu1 %5105  ;;  %vm9214_vm15 = vmmov %vm9213_vm1  ;;  %v8891_v45 = vpop.f32.mrf.mxu0 }
 0x29a   : > { %5077 = vst [vmem:[#allocation3 + $0x24] sm:$0x11] %v5073_v37  ;;  %v5108_v32 = vrot.slane %v5106_v56, 4  ;;  %v7350_v48 = vpop.f32.mrf.mxu1 }
 0x29b   : > { %v5142_v60 = vpop.permute.xlu0 %5141  ;;  %v4018_v52 = vpop.f32.mrf.mxu0 }
 0x29c   : > { %v5111_v18 = vsel %vm9211_vm0, %v5106_v56, %v5108_v32  ;;  %v5109_v62 = vsel %vm316_vm2, %v5107_v1, %v5108_v32  ;;  %5907 = vrot.lane.b32.xlu0 %v8674_v16, %s9187_s13  ;;  %v5145_v13 = vrot.slane %v5142_v60, 4  ;;  %vm9215_vm0 = vcmask 556032   ;;  %v4058_v53 = vpop.f32.mrf.mxu1  ;;  %v7194_v1 = vld [vmem:[%s9075_s2 + $0x4] sm:$0x3] }
 0x29d   : > { %5115 = vst [vmem:[#allocation3 + $0x2c] sm:$0x2] %v5111_v18  ;;  %v5110_v58 = vsel %vm9212_vm14, %v5104_v54, %v5109_v62  ;;  %5947 = vrot.lane.b32.xlu1 %v5944_v59, %s9188_s14  ;;  %v5144_v63 = vpop.permute.xlu1 %5143  ;;  %vm9216_vm14 = vmmov %vm9215_vm0  ;;  %v4019_v39 = vpop.f32.mrf.mxu0  ;;  %v7211_v52 = vld.sshfl [vmem:[%s7645_s27 + $0xc] sm:$0x15 pattern:$0x73625140] }
 0x29e   : > { %5114 = vst [vmem:[#allocation3 + $0x24] sm:$0x22] %v5110_v58  ;;  %v5146_v7 = vrot.slane %v5144_v63, 4 }
 0x29f   : > { %v5180_v10 = vpop.permute.xlu0 %5179 }
 0x2a0   : > { %v5149_v16 = vsel %vm9213_vm1, %v5144_v63, %v5146_v7  ;;  %v5147_v14 = vsel %vm316_vm2, %v5145_v13, %v5146_v7  ;;  %5945 = vrot.lane.b32.xlu0 %v5937_v61, %s9188_s14  ;;  %v5183_v15 = vrot.slane %v5180_v10, 4  ;;  %vm9217_vm1 = vcmask 1039360  }
 0x2a1   : > { %5153 = vst [vmem:[#allocation3 + $0x2c] sm:$0x4] %v5149_v16  ;;  %v5148_v17 = vsel %vm9214_vm15, %v5142_v60, %v5147_v14  ;;  %5985 = vrot.lane.b32.xlu1 %v5982_v41, %s9138_s18  ;;  %v5182_v19 = vpop.permute.xlu1 %5181  ;;  %vm9218_vm15 = vmmov %vm9217_vm1  ;;  %v7351_v60 = vpop.f32.mrf.mxu1 }
 0x2a2   : > { %5152 = vst [vmem:[#allocation3 + $0x24] sm:$0x44] %v5148_v17  ;;  %v5184_v42 = vrot.slane %v5182_v19, 4 }
 0x2a3   : > { %v4654_v25 = vpop.permute.xlu0 %4653 }
 0x2a4   : > { %v5187_v27 = vsel %vm9215_vm0, %v5182_v19, %v5184_v42  ;;  %v5185_v6 = vsel %vm316_vm2, %v5183_v15, %v5184_v42  ;;  %5983 = vrot.lane.b32.xlu0 %v5975_v20, %s9138_s18  ;;  %v4657_v28 = vrot.slane %v4654_v25, 4  ;;  %vm9219_vm0 = vcmask 1031168  }
 0x2a5   : > { %5191 = vst [vmem:[#allocation3 + $0x2c] sm:$0x8] %v5187_v27  ;;  %v5186_v29 = vsel %vm9216_vm14, %v5180_v10, %v5185_v6  ;;  %4415 = vperm.xlu1 %7423, %v4412_v22   ;;  %v4656_v30 = vpop.permute.xlu1 %4655  ;;  %vm9220_vm14 = vmmov %vm9219_vm0 }
 0x2a6   : > { %5190 = vst [vmem:[#allocation3 + $0x24] sm:$0x88] %v5186_v29  ;;  %v4658_v34 = vrot.slane %v4656_v30, 4 }
 0x2a7   : > { %v4692_v44 = vpop.permute.xlu0 %4691 }
 0x2a8   : > { %v4661_v50 = vsel %vm9217_vm1, %v4656_v30, %v4658_v34  ;;  %v4659_v49 = vsel %vm316_vm2, %v4657_v28, %v4658_v34  ;;  %3376 = vperm.xlu0 %7422, %v7087_v33   ;;  %v4695_v46 = vrot.slane %v4692_v44, 4  ;;  %vm9221_vm1 = vcmask 1022976  }
 0x2a9   : > { %4665 = vst [vmem:[#allocation3 + $0x8] sm:$0x2] %v4661_v50  ;;  %v4660_v51 = vsel %vm9218_vm15, %v4654_v25, %v4659_v49  ;;  %6651 = vperm.xlu1 %7423, %v7251_v38   ;;  %v4694_v9 = vpop.permute.xlu1 %4693  ;;  %vm9222_vm15 = vmmov %vm9221_vm1 }
 0x2aa   : > { %4664 = vst [vmem:[#allocation3] sm:$0x22] %v4660_v51  ;;  %v4696_v54 = vrot.slane %v4694_v9, 4 }
 0x2ab   : > { %v4730_v57 = vpop.permute.xlu0 %4729 }
 0x2ac   : > { %v4699_v37 = vsel %vm9219_vm0, %v4694_v9, %v4696_v54  ;;  %v4697_v56 = vsel %vm316_vm2, %v4695_v46, %v4696_v54  ;;  %3941 = vperm.xlu0 %7422, %v3938_v43   ;;  %v4733_v59 = vrot.slane %v4730_v57, 4  ;;  %v7524_v32 = vld [vmem:[#allocation3 + $0x20] ss:$12 sps:$4 sm:$0xff]   ;;  %vm9223_vm0 = vcmask 1014784  }
 0x2ad   : > { %4703 = vst [vmem:[#allocation3 + $0x8] sm:$0x4] %v4699_v37  ;;  %v4698_v61 = vsel %vm9220_vm14, %v4692_v44, %v4697_v56  ;;  %v4732_v18 = vpop.permute.xlu1 %4731  ;;  %v7525_v62 = vld [vmem:[#allocation3 + $0x1c] ss:$12 sps:$4 sm:$0xff]   ;;  %v7527_v13 = vld [vmem:[#allocation3 + $0x18] ss:$12 sps:$4 sm:$0xff]   ;;  %7365 = vmatpush3.bf16.msra.mxu1 %v7524_v32  ;;  %vm9224_vm14 = vmmov %vm9223_vm0  ;;  %v5714_v56 = vcombine.high %v7211_v52, %v7211_v52 }
 0x2ae   : > { %4702 = vst [vmem:[#allocation3] sm:$0x44] %v4698_v61  ;;  %v4734_v0 = vrot.slane %v4732_v18, 4  ;;  %5630 = vmatprep.subr.bf16.mxu0 %v7525_v62  ;;  %7366 = vmatprep.subr.bf16.mxu1 %v7566_v35 }
 0x2af   : > { %v4767_v58 = vpop.permute.xlu0 %4766  ;;  %5631 = vmatpush1.bf16.msra.mxu0 %v7527_v13 }
 0x2b0   : > { %v4737_v63 = vsel %vm9221_vm1, %v4732_v18, %v4734_v0  ;;  %v4735_v41 = vsel %vm316_vm2, %v4733_v59, %v4734_v0  ;;  %5547 = vperm.xlu0 %7422, %v7194_v1   ;;  %v4770_v7 = vrot.slane %v4767_v58, 4  ;;  %vm9225_vm1 = vcmask 883712  }
 0x2b1   : > { %4741 = vst [vmem:[#allocation3 + $0x8] sm:$0x8] %v4737_v63  ;;  %v4736_v10 = vsel %vm9222_vm15, %v4730_v57, %v4735_v41  ;;  %v4769_v16 = vpop.permute.xlu1 %4768  ;;  %vm9226_vm15 = vmmov %vm9225_vm1 }
 0x2b2   : > { %4740 = vst [vmem:[#allocation3] sm:$0x88] %v4736_v10  ;;  %v4771_v14 = vrot.slane %v4769_v16, 4 }
 0x2b3   : > { %v4804_v15 = vpop.permute.xlu0 %4803 }
 0x2b4   : > { %v4774_v20 = vsel %vm9223_vm0, %v4769_v16, %v4771_v14  ;;  %v4772_v31 = vsel %vm316_vm2, %v4770_v7, %v4771_v14  ;;  %v4807_v17 = vrot.slane %v4804_v15, 4  ;;  %vm9227_vm0 = vcmask 875520   ;;  %v5529_v16 = vld [vmem:[%s9074_s1] sm:$0x1] }
 0x2b5   : > { %4778 = vst [vmem:[#allocation3 + $0x14] sm:$0x1] %v4774_v20  ;;  %v4773_v19 = vsel %vm9224_vm14, %v4767_v58, %v4772_v31  ;;  %v4806_v21 = vpop.permute.xlu1 %4805  ;;  %vm9228_vm14 = vmmov %vm9227_vm0 }
 0x2b6   : > { %4777 = vst [vmem:[#allocation3 + $0xc] sm:$0x11] %v4773_v19  ;;  %v4808_v42 = vrot.slane %v4806_v21, 4 }
 0x2b7   : > { %v4842_v22 = vpop.permute.xlu0 %4841 }
 0x2b8   : > { %v4811_v24 = vsel %vm9225_vm1, %v4806_v21, %v4808_v42  ;;  %v4809_v25 = vsel %vm316_vm2, %v4807_v17, %v4808_v42  ;;  %v4845_v26 = vrot.slane %v4842_v22, 4  ;;  %vm9229_vm1 = vcmask 867328  }
 0x2b9   : > { %4815 = vst [vmem:[#allocation3 + $0x14] sm:$0x2] %v4811_v24  ;;  %v4810_v27 = vsel %vm9226_vm15, %v4804_v15, %v4809_v25  ;;  %v4844_v6 = vpop.permute.xlu1 %4843  ;;  %vm9230_vm15 = vmmov %vm9229_vm1  ;;  %v5530_v58 = vld [vmem:[#allocation3] sm:$0xff] }
 0x2ba   : > { %4814 = vst [vmem:[#allocation3 + $0xc] sm:$0x22] %v4810_v27  ;;  %v4846_v28 = vrot.slane %v4844_v6, 4 }
 0x2bb   : > { %v4880_v12 = vpop.permute.xlu0 %4879 }
 0x2bc   : > { %v4849_v29 = vsel %vm9227_vm0, %v4844_v6, %v4846_v28  ;;  %v4847_v30 = vsel %vm316_vm2, %v4845_v26, %v4846_v28  ;;  %v4883_v33 = vrot.slane %v4880_v12, 4  ;;  %vm9241_vm0 = vcmask 703488  }
 0x2bd   : > { %4853 = vst [vmem:[#allocation3 + $0x14] sm:$0x4] %v4849_v29  ;;  %v4848_v34 = vsel %vm9228_vm14, %v4842_v22, %v4847_v30  ;;  %v4882_v38 = vpop.permute.xlu1 %4881  ;;  %vm9242_vm14 = vmmov %vm9241_vm0 }
 0x2be   : > { %4852 = vst [vmem:[#allocation3 + $0xc] sm:$0x44] %v4848_v34  ;;  %v4884_v44 = vrot.slane %v4882_v38, 4 }
 0x2bf   : > { %v6621_v50 = vpop.permute.xlu0 %6620 }
 0x2c0   : > { %v4887_v49 = vsel %vm9229_vm1, %v4882_v38, %v4884_v44  ;;  %v4885_v46 = vsel %vm316_vm2, %v4883_v33, %v4884_v44  ;;  %v6624_v48 = vrot.slane %v6621_v50, 4  ;;  %vm9243_vm1 = vcmask 695296  }
 0x2c1   : > { %4891 = vst [vmem:[#allocation3 + $0x14] sm:$0x8] %v4887_v49  ;;  %v4886_v51 = vsel %vm9230_vm15, %v4880_v12, %v4885_v46  ;;  %v6623_v9 = vpop.permute.xlu1 %6622  ;;  %vm9244_vm15 = vmmov %vm9243_vm1 }
 0x2c2   : > { %4890 = vst [vmem:[#allocation3 + $0xc] sm:$0x88] %v4886_v51  ;;  %v6625_v43 = vrot.slane %v6623_v9, 4 }
 0x2c3   : > { %v6321_v54 = vpop.permute.xlu0 %6320 }
 0x2c4   : > { %v6628_v53 = vsel %vm2244_vm12, %v6623_v9, %v6625_v43  ;;  %v6626_v57 = vsel %vm316_vm2, %v6624_v48, %v6625_v43  ;;  %v6324_v1 = vrot.slane %v6321_v54, 4 }
 0x2c5   : > { %6632 = vst [vmem:[#allocation3 + $0x50] sm:$0x1] %v6628_v53  ;;  %v6627_v39 = vsel %vm2244_vm12, %v6621_v50, %v6626_v57  ;;  %v6323_v37 = vpop.permute.xlu1 %6322  ;;  %vm9239_vm12 = vcmask 711680  }
 0x2c6   : > { %6631 = vst [vmem:[#allocation3 + $0x48] sm:$0x11] %v6627_v39  ;;  %v6325_v59 = vrot.slane %v6323_v37, 4 }
 0x2c7   : > { %v6358_v32 = vpop.permute.xlu0 %6357 }
 0x2c8   : > { %v6328_v60 = vsel %vm549_vm8, %v6323_v37, %v6325_v59  ;;  %v6326_v61 = vsel %vm316_vm2, %v6324_v1, %v6325_v59  ;;  %v6361_v18 = vrot.slane %v6358_v32, 4  ;;  %v7528_v62 = vld [vmem:[#allocation3 + $0x8] ss:$12 sps:$4 sm:$0xff]  }
 0x2c9   : > { %6332 = vst [vmem:[#allocation3 + $0x38] sm:$0x1] %v6328_v60  ;;  %v6327_v13 = vsel %vm549_vm8, %v6321_v54, %v6326_v61  ;;  %v6360_v0 = vpop.permute.xlu1 %6359  ;;  %7213 = vst.sshfl [vmem:[#allocation3 + $0x8] sm:$0x1 pattern:$0x75316420] %v5714_v56  ;;  %7367 = vmatpush3.bf16.msra.mxu1 %v7528_v62 }
 0x2ca   : > { %v5532_v63 = vld [vmem:[#allocation3 + $0xc] sm:$0xff]  ;;  %6331 = vst [vmem:[#allocation3 + $0x30] sm:$0x11] %v6327_v13  ;;  %v6362_v7 = vrot.slane %v6360_v0, 4  ;;  %7372 = vmatprep.subr.bf16.mxu1 %v7566_v35  ;;  %vm9235_vm8 = vcmask 850944  }
 0x2cb   : > { %v7529_v41 = vld [vmem:[#allocation3 + $0x4] ss:$12 sps:$4 sm:$0xff]   ;;  %v7195_v10 = vcombine.low %v5530_v58, %v5532_v63  ;;  %v6396_v14 = vpop.permute.xlu0 %6395 }
 0x2cc   : > { %7212 = vst.sshfl [vmem:[#allocation3] sm:$0x5 pattern:$0x75316420] %v7211_v52  ;;  %5632 = vmatprep.subr.bf16.mxu0 %v7529_v41  ;;  %v6365_v15 = vsel %vm588_vm9, %v6360_v0, %v6362_v7  ;;  %v6363_v20 = vsel %vm316_vm2, %v6361_v18, %v6362_v7  ;;  %v6399_v31 = vrot.slane %v6396_v14, 4  ;;  %7369 = vmatmul.mubr.msk.bf16.vlgmr.msra.gmra.mxu1 %vm2329_vm6, %v5529_v16 }
 0x2cd   : > { %5633 = vmatpush1.bf16.msra.mxu0 %v7195_v10  ;;  %v7532_v17 = vld [vmem:[#allocation3 + $0x50] ss:$0 sps:$4 sm:$0x11]   ;;  %6369 = vst [vmem:[#allocation3 + $0x38] sm:$0x2] %v6365_v15  ;;  %v6364_v19 = vsel %vm588_vm9, %v6358_v32, %v6363_v20  ;;  %v6398_v21 = vpop.permute.xlu1 %6397  ;;  %7380 = vmatprep.mubr.msk.bf16.mxu1 %vm9141_vm13, %v7566_v35  ;;  %vm9236_vm9 = vmmov %vm9235_vm8 }
 0x2ce   : > { %v6646_v42 = vld [vmem:[#allocation3 + $0x48] sm:$0x11]  ;;  %6368 = vst [vmem:[#allocation3 + $0x30] sm:$0x22] %v6364_v19  ;;  %v6400_v22 = vrot.slane %v6398_v21, 4  ;;  %v6720_v25 = vsel %vm674_vm11, %v7532_v17, 0  ;;  %vm9240_vm13 = vmmov %vm9239_vm12 }
 0x2cf   : > { %v7262_v24 = vcombine.high %v6646_v42, %v6646_v42  ;;  %v7261_v26 = vcombine.low %v6646_v42, %v6646_v42  ;;  %7373 = vmatpush3.bf16.msra.mxu1 %v6720_v25  ;;  %v6434_v27 = vpop.permute.xlu0 %6433 }
 0x2d0   : > { %7208 = vmatmul.mubr.msk.bf16.vlgmr.msra.gmra.mxu0 %vm2329_vm6, %v5529_v16  ;;  %v6403_v6 = vsel %vm626_vm10, %v6398_v21, %v6400_v22  ;;  %v6401_v28 = vsel %vm316_vm2, %v6399_v31, %v6400_v22  ;;  %v6437_v29 = vrot.slane %v6434_v27, 4  ;;  %7374 = vmatprep.subr.bf16.mxu1 %v7566_v35 }
 0x2d1   : > { %7264 = vmatprep.subr.msk.bf16.mxu0 %vm674_vm11, %v7262_v24  ;;  %v6714_v12 = vsel %vm674_vm11, %v7261_v26, 0  ;;  %6407 = vst [vmem:[#allocation3 + $0x38] sm:$0x4] %v6403_v6  ;;  %v6402_v30 = vsel %vm626_vm10, %v6396_v14, %v6401_v28  ;;  %v6436_v33 = vpop.permute.xlu1 %6435  ;;  %6754 = vmatprep.mubr.bf16.mxu0 %v7557_v3  ;;  %vm9237_vm10 = vcmask 719872  }
 0x2d2   : > { %6731 = vmatpush1.bf16.msra.mxu0 %v6714_v12  ;;  %6406 = vst [vmem:[#allocation3 + $0x30] sm:$0x44] %v6402_v30  ;;  %v6438_v34 = vrot.slane %v6436_v33, 4  ;;  %vm9238_vm11 = vmmov %vm9237_vm10 }
 0x2d3   : > { %v6471_v38 = vpop.permute.xlu0 %6470 }
 0x2d4   : > { %v6441_v44 = vsel %vm2052_vm7, %v6436_v33, %v6438_v34  ;;  %v6439_v50 = vsel %vm316_vm2, %v6437_v29, %v6438_v34  ;;  %v6474_v49 = vrot.slane %v6471_v38, 4 }
 0x2d5   : > { %6445 = vst [vmem:[#allocation3 + $0x38] sm:$0x8] %v6441_v44  ;;  %v6440_v46 = vsel %vm2052_vm7, %v6434_v27, %v6439_v50  ;;  %v6473_v48 = vpop.permute.xlu1 %6472  ;;  %vm9233_vm7 = vcmask 859136  }
 0x2d6   : > { %6444 = vst [vmem:[#allocation3 + $0x30] sm:$0x88] %v6440_v46  ;;  %v6475_v51 = vrot.slane %v6473_v48, 4 }
 0x2d7   : > { %v6508_v9 = vpop.permute.xlu0 %6507 }
 0x2d8   : > { %v6478_v43 = vsel %vm2090_vm4, %v6473_v48, %v6475_v51  ;;  %v6476_v52 = vsel %vm316_vm2, %v6474_v49, %v6475_v51  ;;  %v6511_v3 = vrot.slane %v6508_v9, 4 }
 0x2d9   : > { %6482 = vst [vmem:[#allocation3 + $0x44] sm:$0x1] %v6478_v43  ;;  %v6477_v54 = vsel %vm2090_vm4, %v6471_v38, %v6476_v52  ;;  %v6510_v53 = vpop.permute.xlu1 %6509  ;;  %vm9231_vm4 = vcmask 367616  }
 0x2da   : > { %6481 = vst [vmem:[#allocation3 + $0x3c] sm:$0x11] %v6477_v54  ;;  %v6512_v57 = vrot.slane %v6510_v53, 4 }
 0x2db   : > { %v6546_v1 = vpop.permute.xlu0 %6545 }
 0x2dc   : > { %v6515_v39 = vsel %vm2128_vm3, %v6510_v53, %v6512_v57  ;;  %v6513_v37 = vsel %vm316_vm2, %v6511_v3, %v6512_v57  ;;  %v6549_v56 = vrot.slane %v6546_v1, 4 }
 0x2dd   : > { %6519 = vst [vmem:[#allocation3 + $0x44] sm:$0x2] %v6515_v39  ;;  %v6514_v59 = vsel %vm2128_vm3, %v6508_v9, %v6513_v37  ;;  %v6548_v32 = vpop.permute.xlu1 %6547  ;;  %vm9232_vm3 = vmmov %vm9231_vm4 }
 0x2de   : > { %6518 = vst [vmem:[#allocation3 + $0x3c] sm:$0x22] %v6514_v59  ;;  %v6550_v60 = vrot.slane %v6548_v32, 4 }
 0x2df   : > { %v6584_v61 = vpop.permute.xlu0 %6583 }
 0x2e0   : > { %v6553_v18 = vsel %vm2167_vm5, %v6548_v32, %v6550_v60  ;;  %v6551_v62 = vsel %vm316_vm2, %v6549_v56, %v6550_v60  ;;  %v6587_v13 = vrot.slane %v6584_v61, 4 }
 0x2e1   : > { %6557 = vst [vmem:[#allocation3 + $0x44] sm:$0x4] %v6553_v18  ;;  %v6552_v0 = vsel %vm2167_vm5, %v6546_v1, %v6551_v62  ;;  %v6586_v58 = vpop.permute.xlu1 %6585  ;;  %vm9234_vm5 = vmmov %vm9233_vm7 }
 0x2e2   : > { %6556 = vst [vmem:[#allocation3 + $0x3c] sm:$0x44] %v6552_v0  ;;  %v6588_v63 = vrot.slane %v6586_v58, 4 }
 0x2e3   : > { %v6021_v41 = vpop.permute.xlu0 %6020 }
 0x2e4   : > { %v6591_v7 = vsel %vm9231_vm4, %v6586_v58, %v6588_v63  ;;  %v6589_v10 = vsel %vm316_vm2, %v6587_v13, %v6588_v63  ;;  %v6024_v16 = vrot.slane %v6021_v41, 4  ;;  %vm9245_vm4 = vcmask 687104  }
 0x2e5   : > { %6595 = vst [vmem:[#allocation3 + $0x44] sm:$0x8] %v6591_v7  ;;  %v6590_v14 = vsel %vm9232_vm3, %v6584_v61, %v6589_v10  ;;  %v6023_v15 = vpop.permute.xlu1 %6022  ;;  %vm9246_vm3 = vmmov %vm9245_vm4 }
 0x2e6   : > { %6594 = vst [vmem:[#allocation3 + $0x3c] sm:$0x88] %v6590_v14  ;;  %v6025_v20 = vrot.slane %v6023_v15, 4 }
 0x2e7   : > { %v6058_v31 = vpop.permute.xlu0 %6057 }
 0x2e8   : > { %v6028_v17 = vsel %vm9233_vm7, %v6023_v15, %v6025_v20  ;;  %v6026_v19 = vsel %vm316_vm2, %v6024_v16, %v6025_v20  ;;  %v6061_v21 = vrot.slane %v6058_v31, 4  ;;  %vm9247_vm7 = vcmask 556032  }
 0x2e9   : > { %6032 = vst [vmem:[#allocation3 + $0x20] sm:$0x1] %v6028_v17  ;;  %v6027_v42 = vsel %vm9234_vm5, %v6021_v41, %v6026_v19  ;;  %v6060_v22 = vpop.permute.xlu1 %6059  ;;  %vm9248_vm5 = vmmov %vm9247_vm7 }
 0x2ea   : > { %6031 = vst [vmem:[#allocation3 + $0x18] sm:$0x11] %v6027_v42  ;;  %v6062_v24 = vrot.slane %v6060_v22, 4 }
 0x2eb   : > { %v6096_v25 = vpop.permute.xlu0 %6095 }
 0x2ec   : > { %v6065_v26 = vsel %vm9235_vm8, %v6060_v22, %v6062_v24  ;;  %v6063_v27 = vsel %vm316_vm2, %v6061_v21, %v6062_v24  ;;  %v6099_v6 = vrot.slane %v6096_v25, 4  ;;  %v7534_v28 = vld [vmem:[#allocation3 + $0x38] ss:$12 sps:$4 sm:$0xff]   ;;  %vm9249_vm8 = vcmask 1039360  }
 0x2ed   : > { %6069 = vst [vmem:[#allocation3 + $0x20] sm:$0x2] %v6065_v26  ;;  %v6064_v12 = vsel %vm9236_vm9, %v6058_v31, %v6063_v27  ;;  %v6098_v29 = vpop.permute.xlu1 %6097  ;;  %v7535_v30 = vld [vmem:[#allocation3 + $0x30] ss:$12 sps:$4 sm:$0xff]   ;;  %v7537_v33 = vld [vmem:[#allocation3 + $0x34] ss:$12 sps:$4 sm:$0xff]   ;;  %7375 = vmatpush3.bf16.msra.mxu1 %v7534_v28  ;;  %vm9250_vm9 = vmmov %vm9249_vm8 }
 0x2ee   : > { %6068 = vst [vmem:[#allocation3 + $0x18] sm:$0x22] %v6064_v12  ;;  %v6100_v34 = vrot.slane %v6098_v29, 4  ;;  %6732 = vmatprep.subr.bf16.mxu0 %v7537_v33  ;;  %7376 = vmatprep.subr.bf16.mxu1 %v7566_v35 }
 0x2ef   : > { %v6134_v38 = vpop.permute.xlu0 %6133  ;;  %6733 = vmatpush1.bf16.msra.mxu0 %v7535_v30 }
 0x2f0   : > { %v6103_v44 = vsel %vm9237_vm10, %v6098_v29, %v6100_v34  ;;  %v6101_v50 = vsel %vm316_vm2, %v6099_v6, %v6100_v34  ;;  %v6137_v49 = vrot.slane %v6134_v38, 4  ;;  %vm9251_vm10 = vcmask 1031168  }
 0x2f1   : > { %6107 = vst [vmem:[#allocation3 + $0x20] sm:$0x4] %v6103_v44  ;;  %v6102_v46 = vsel %vm9238_vm11, %v6096_v25, %v6101_v50  ;;  %v6136_v48 = vpop.permute.xlu1 %6135  ;;  %vm9252_vm11 = vmmov %vm9251_vm10 }
 0x2f2   : > { %6106 = vst [vmem:[#allocation3 + $0x18] sm:$0x44] %v6102_v46  ;;  %v6138_v51 = vrot.slane %v6136_v48, 4 }
 0x2f3   : > { %v6171_v9 = vpop.permute.xlu0 %6170 }
 0x2f4   : > { %v6141_v43 = vsel %vm9239_vm12, %v6136_v48, %v6138_v51  ;;  %v6139_v52 = vsel %vm316_vm2, %v6137_v49, %v6138_v51  ;;  %v6174_v3 = vrot.slane %v6171_v9, 4  ;;  %vm9253_vm12 = vcmask 1022976  }
 0x2f5   : > { %6145 = vst [vmem:[#allocation3 + $0x20] sm:$0x8] %v6141_v43  ;;  %v6140_v54 = vsel %vm9240_vm13, %v6134_v38, %v6139_v52  ;;  %v6173_v53 = vpop.permute.xlu1 %6172  ;;  %vm9254_vm13 = vmmov %vm9253_vm12 }
 0x2f6   : > { %6144 = vst [vmem:[#allocation3 + $0x18] sm:$0x88] %v6140_v54  ;;  %v6175_v57 = vrot.slane %v6173_v53, 4 }
 0x2f7   : > { %v6208_v1 = vpop.permute.xlu0 %6207 }
 0x2f8   : > { %v6178_v39 = vsel %vm9241_vm0, %v6173_v53, %v6175_v57  ;;  %v6176_v37 = vsel %vm316_vm2, %v6174_v3, %v6175_v57  ;;  %v6211_v56 = vrot.slane %v6208_v1, 4  ;;  %vm9255_vm0 = vcmask 1014784  }
 0x2f9   : > { %6182 = vst [vmem:[#allocation3 + $0x2c] sm:$0x1] %v6178_v39  ;;  %v6177_v59 = vsel %vm9242_vm14, %v6171_v9, %v6176_v37  ;;  %v6210_v32 = vpop.permute.xlu1 %6209  ;;  %vm9256_vm14 = vmmov %vm9255_vm0 }
 0x2fa   : > { %6181 = vst [vmem:[#allocation3 + $0x24] sm:$0x11] %v6177_v59  ;;  %v6212_v60 = vrot.slane %v6210_v32, 4 }
 0x2fb   : > { %v6246_v61 = vpop.permute.xlu0 %6245 }
 0x2fc   : > { %v6215_v18 = vsel %vm9243_vm1, %v6210_v32, %v6212_v60  ;;  %v6213_v62 = vsel %vm316_vm2, %v6211_v56, %v6212_v60  ;;  %v6249_v13 = vrot.slane %v6246_v61, 4  ;;  %vm9257_vm1 = vcmask 883712  }
 0x2fd   : > { %6219 = vst [vmem:[#allocation3 + $0x2c] sm:$0x2] %v6215_v18  ;;  %v6214_v0 = vsel %vm9244_vm15, %v6208_v1, %v6213_v62  ;;  %v6248_v58 = vpop.permute.xlu1 %6247  ;;  %vm9258_vm15 = vmmov %vm9257_vm1 }
 0x2fe   : > { %6218 = vst [vmem:[#allocation3 + $0x24] sm:$0x22] %v6214_v0  ;;  %v6250_v63 = vrot.slane %v6248_v58, 4 }
 0x2ff   : > { %v6284_v41 = vpop.permute.xlu0 %6283 }
 0x300   : > { %v6253_v7 = vsel %vm9245_vm4, %v6248_v58, %v6250_v63  ;;  %v6251_v10 = vsel %vm316_vm2, %v6249_v13, %v6250_v63  ;;  %v6287_v16 = vrot.slane %v6284_v41, 4  ;;  %vm9259_vm4 = vcmask 875520  }
 0x301   : > { %6257 = vst [vmem:[#allocation3 + $0x2c] sm:$0x4] %v6253_v7  ;;  %v6252_v14 = vsel %vm9246_vm3, %v6246_v61, %v6251_v10  ;;  %v6286_v15 = vpop.permute.xlu1 %6285  ;;  %vm9260_vm3 = vmmov %vm9259_vm4 }
 0x302   : > { %6256 = vst [vmem:[#allocation3 + $0x24] sm:$0x44] %v6252_v14  ;;  %v6288_v20 = vrot.slane %v6286_v15, 4 }
 0x303   : > { %v5758_v31 = vpop.permute.xlu0 %5757 }
 0x304   : > { %v6291_v17 = vsel %vm9247_vm7, %v6286_v15, %v6288_v20  ;;  %v6289_v19 = vsel %vm316_vm2, %v6287_v16, %v6288_v20  ;;  %v5761_v21 = vrot.slane %v5758_v31, 4  ;;  %vm9261_vm7 = vcmask 867328  }
 0x305   : > { %6295 = vst [vmem:[#allocation3 + $0x2c] sm:$0x8] %v6291_v17  ;;  %v6290_v42 = vsel %vm9248_vm5, %v6284_v41, %v6289_v19  ;;  %v5760_v22 = vpop.permute.xlu1 %5759  ;;  %vm9262_vm5 = vmmov %vm9261_vm7 }
 0x306   : > { %6294 = vst [vmem:[#allocation3 + $0x24] sm:$0x88] %v6290_v42  ;;  %v5762_v24 = vrot.slane %v5760_v22, 4 }
 0x307   : > { %v5796_v25 = vpop.permute.xlu0 %5795 }
 0x308   : > { %v5765_v26 = vsel %vm9249_vm8, %v5760_v22, %v5762_v24  ;;  %v5763_v27 = vsel %vm316_vm2, %v5761_v21, %v5762_v24  ;;  %v5799_v6 = vrot.slane %v5796_v25, 4  ;;  %vm6869_vm8 = vcmask 15360  }
 0x309   : > { %5769 = vst [vmem:[#allocation3 + $0x8] sm:$0x2] %v5765_v26  ;;  %v5764_v28 = vsel %vm9250_vm9, %v5758_v31, %v5763_v27  ;;  %v5798_v12 = vpop.permute.xlu1 %5797 }
 0x30a   : > { %5768 = vst [vmem:[#allocation3] sm:$0x22] %v5764_v28  ;;  %v5800_v29 = vrot.slane %v5798_v12, 4 }
 0x30b   : > { %v5834_v30 = vpop.permute.xlu0 %5833 }
 0x30c   : > { %v5803_v33 = vsel %vm9251_vm10, %v5798_v12, %v5800_v29  ;;  %v5801_v34 = vsel %vm316_vm2, %v5799_v6, %v5800_v29  ;;  %v5837_v38 = vrot.slane %v5834_v30, 4  ;;  %v7538_v44 = vld [vmem:[#allocation3 + $0x20] ss:$12 sps:$4 sm:$0xff]   ;;  %v7250_v29 = vld [vmem:[%s9074_s1 + $0x1] sm:$0x1] }
 0x30d   : > { %5807 = vst [vmem:[#allocation3 + $0x8] sm:$0x4] %v5803_v33  ;;  %v5802_v50 = vsel %vm9252_vm11, %v5796_v25, %v5801_v34  ;;  %v5836_v49 = vpop.permute.xlu1 %5835  ;;  %v7539_v46 = vld [vmem:[#allocation3 + $0x18] ss:$12 sps:$4 sm:$0xff]   ;;  %v7541_v48 = vld [vmem:[#allocation3 + $0x1c] ss:$12 sps:$4 sm:$0xff]   ;;  %7377 = vmatpush3.bf16.msra.mxu1 %v7538_v44 }
 0x30e   : > { %5806 = vst [vmem:[#allocation3] sm:$0x44] %v5802_v50  ;;  %v5838_v51 = vrot.slane %v5836_v49, 4  ;;  %6734 = vmatprep.subr.bf16.mxu0 %v7541_v48  ;;  %7378 = vmatprep.subr.bf16.mxu1 %v7566_v35 }
 0x30f   : > { %v5871_v9 = vpop.permute.xlu0 %5870  ;;  %6735 = vmatpush1.bf16.msra.mxu0 %v7539_v46 }
 0x310   : > { %v5841_v43 = vsel %vm9253_vm12, %v5836_v49, %v5838_v51  ;;  %v5839_v52 = vsel %vm316_vm2, %v5837_v38, %v5838_v51  ;;  %v5874_v3 = vrot.slane %v5871_v9, 4 }
 0x311   : > { %5845 = vst [vmem:[#allocation3 + $0x8] sm:$0x8] %v5841_v43  ;;  %v5840_v54 = vsel %vm9254_vm13, %v5834_v30, %v5839_v52  ;;  %v5873_v53 = vpop.permute.xlu1 %5872 }
 0x312   : > { %5844 = vst [vmem:[#allocation3] sm:$0x88] %v5840_v54  ;;  %v5875_v57 = vrot.slane %v5873_v53, 4 }
 0x313   : > { %v5908_v1 = vpop.permute.xlu0 %5907 }
 0x314   : > { %v5878_v39 = vsel %vm9255_vm0, %v5873_v53, %v5875_v57  ;;  %v5876_v37 = vsel %vm316_vm2, %v5874_v3, %v5875_v57  ;;  %v5911_v56 = vrot.slane %v5908_v1, 4 }
 0x315   : > { %5882 = vst [vmem:[#allocation3 + $0x14] sm:$0x1] %v5878_v39  ;;  %v5877_v35 = vsel %vm9256_vm14, %v5871_v9, %v5876_v37  ;;  %v5910_v59 = vpop.permute.xlu1 %5909 }
 0x316   : > { %5881 = vst [vmem:[#allocation3 + $0xc] sm:$0x11] %v5877_v35  ;;  %v5912_v32 = vrot.slane %v5910_v59, 4 }
 0x317   : > { %v5946_v60 = vpop.permute.xlu0 %5945 }
 0x318   : > { %v5915_v61 = vsel %vm9257_vm1, %v5910_v59, %v5912_v32  ;;  %v5913_v18 = vsel %vm316_vm2, %v5911_v56, %v5912_v32  ;;  %v5949_v62 = vrot.slane %v5946_v60, 4 }
 0x319   : > { %5919 = vst [vmem:[#allocation3 + $0x14] sm:$0x2] %v5915_v61  ;;  %v5914_v13 = vsel %vm9258_vm15, %v5908_v1, %v5913_v18  ;;  %v5948_v0 = vpop.permute.xlu1 %5947 }
 0x31a   : > { %5918 = vst [vmem:[#allocation3 + $0xc] sm:$0x22] %v5914_v13  ;;  %v5950_v58 = vrot.slane %v5948_v0, 4 }
 0x31b   : > { %v5984_v63 = vpop.permute.xlu0 %5983 }
 0x31c   : > { %v5953_v41 = vsel %vm9259_vm4, %v5948_v0, %v5950_v58  ;;  %v5951_v7 = vsel %vm316_vm2, %v5949_v62, %v5950_v58  ;;  %v5987_v10 = vrot.slane %v5984_v63, 4 }
 0x31d   : > { %5957 = vst [vmem:[#allocation3 + $0x14] sm:$0x4] %v5953_v41  ;;  %v5952_v16 = vsel %vm9260_vm3, %v5946_v60, %v5951_v7  ;;  %v5986_v14 = vpop.permute.xlu1 %5985 }
 0x31e   : > { %5956 = vst [vmem:[#allocation3 + $0xc] sm:$0x44] %v5952_v16  ;;  %v5988_v15 = vrot.slane %v5986_v14, 4 }
 0x320   : > { %v5991_v20 = vsel %vm9261_vm7, %v5986_v14, %v5988_v15  ;;  %v5989_v31 = vsel %vm316_vm2, %v5987_v10, %v5988_v15 }
 0x321   : > { %5995 = vst [vmem:[#allocation3 + $0x14] sm:$0x8] %v5991_v20  ;;  %v5990_v17 = vsel %vm9262_vm5, %v5984_v63, %v5989_v31 }
 0x322   : > { %5994 = vst [vmem:[#allocation3 + $0xc] sm:$0x88] %v5990_v17 }
 0x323   : > { %v3377_v19 = vpop.permute.xlu0 %3376 }
 0x324   : > { %v3482_v21 = vadd.f32 %v8862_v2, %v3377_v19  ;;  %v3484_v42 = vadd.f32 %v8866_v11, %v3377_v19  ;;  %v3523_v22 = vadd.f32 %v8864_v36, %v3377_v19  ;;  %v4416_v36 = vpop.permute.xlu1 %4415 }
 0x326   : > { %v3531_v24 = vcombine.low %v3482_v21, %v3484_v42  ;;  %v3533_v25 = vrot.slane %v3523_v22, 6 }
 0x327   : > { %v3942_v6 = vpop.permute.xlu0 %3941 }
 0x328   : > { %v3532_v26 = vrot.slane %v3531_v24, 6  ;;  %3537 = vst [vmem:[#allocation2 + $0x8] sm:$0xc] %v3533_v25  ;;  %v7542_v27 = vld [vmem:[#allocation3 + $0x8] ss:$12 sps:$4 sm:$0xff]   ;;  %v4015_v2 = vadd.f32 %v8884_v23, %v3942_v6  ;;  %v4017_v11 = vadd.f32 %v8891_v45, %v3942_v6  ;;  %v4056_v33 = vadd.f32 %v8889_v40, %v3942_v6 }
 0x329   : > { %v7543_v28 = vld [vmem:[#allocation3] ss:$12 sps:$4 sm:$0xff]   ;;  %v7545_v12 = vld [vmem:[#allocation3 + $0x4] ss:$12 sps:$4 sm:$0xff]   ;;  %7379 = vmatpush3.bf16.msra.mxu1 %v7542_v27 }
 0x32a   : > { %3536 = vst [vmem:[#allocation2] sm:$0xcc] %v3532_v26  ;;  %6736 = vmatprep.subr.bf16.mxu0 %v7545_v12  ;;  %v4063_v49 = vcombine.low %v4015_v2, %v4017_v11 }
 0x32b   : > { %6737 = vmatpush1.bf16.msra.mxu0 %v7543_v28 }
 0x32c   : > { %v4529_v30 = vpop.f32.mrf.mxu1  ;;  %7381 = vmatmul.mubr.msk.bf16.vlgmr.msra.gmra.mxu1 %vm2329_vm6, %v7250_v29 }
 0x32d   : > { %v4530_v34 = vadd.f32 %v4529_v30, %v4416_v36 }
 0x32e   : > { %7265 = vmatmul.mubr.msk.bf16.vlgmr.msra.gmra.mxu0 %vm2329_vm6, %v7250_v29  ;;  %v7358_v50 = vpop.f32.mrf.mxu1  ;;  %vm1306_vm6 = vcmask 7168  }
 0x32f   : > { %v3539_v38 = vld [vmem:[#allocation2 + $0x8] sm:$0xf]  ;;  %v4488_v44 = vpop.f32.mrf.mxu0  ;;  %v4540_v46 = vrot.slane %v4530_v34, 6  ;;  %v5548_v50 = vpop.permute.xlu0 %5547 }
 0x330   : > { %4066 = vst [vmem:[#allocation2 + $0x8] sm:$0x3] %v4056_v33  ;;  %v3569_v45 = vmul.f32 %v3539_v38, %v8440_v47  ;;  %v4532_v51 = vpop.f32.mrf.mxu1  ;;  %v4489_v9 = vadd.f32 %v4488_v44, %v4416_v36  ;;  %v3545_v53 = vpack.c.bf16 %v3539_v38, %v3539_v38 }
 0x331   : > { %v3538_v48 = vld [vmem:[#allocation2] sm:$0xff]  ;;  %v4490_v23 = vpop.f32.mrf.mxu0  ;;  %4544 = vst [vmem:[#allocation2 + $0x8] sm:$0xc] %v4540_v46 }
 0x332   : > { %4065 = vst [vmem:[#allocation2] sm:$0x33] %v4063_v49  ;;  %v4491_v43 = vadd.f32 %v4490_v23, %v4416_v36  ;;  %v3568_v40 = vmul.f32 %v3538_v48, %v8444_v55  ;;  %v7359_v3 = vpop.f32.mrf.mxu1  ;;  %v3541_v54 = vcombine.high %v3538_v48, %v3538_v48  ;;  %v3581_v37 = vmul.f32 %v3569_v45, %v3539_v38 }
 0x333   : > { %v4492_v52 = vpop.f32.mrf.mxu0  ;;  %v3563_v13 = vrot.slane %v3545_v53, %v8453_v8  ;;  %v3576_v0 = vsel %vm316_vm2, %v3569_v45, 0.0  ;;  %v6652_v53 = vpop.permute.xlu1 %6651 }
 0x334   : > { %v4538_v57 = vcombine.low %v4489_v9, %v4491_v43  ;;  %v3571_v1 = vcombine.high %v3568_v40, %v3568_v40  ;;  %v3580_v39 = vmul.f32 %v3568_v40, %v3538_v48  ;;  %v7103_v35 = vpack.c.bf16 %v3541_v54, %v3538_v48 }
 0x335   : > { %v4493_v56 = vpop.f32.mrf.mxu0  ;;  %v3573_v32 = vsel %vm316_vm2, %v3568_v40, 0.0  ;;  %v3588_v16 = vsel %vm316_vm2, %v3581_v37, 0.0 }
 0x336   : > { %v4539_v59 = vrot.slane %v4538_v57, 6  ;;  %v3574_v60 = vsel %vm316_vm2, %v3571_v1, 0.0  ;;  %v3583_v61 = vcombine.high %v3580_v39, %v3580_v39  ;;  %v3556_v62 = vrot.slane %v7103_v35, %v8453_v8 }
 0x337   : > { %v3575_v18 = vadd.f32 %v3574_v60, %v3573_v32  ;;  %v3585_v58 = vsel %vm316_vm2, %v3580_v39, 0.0  ;;  %v1307_v35 = vsel %vm1306_vm6, %v8679_v4, %v8682_v5 }
 0x338   : > { %4543 = vst [vmem:[#allocation2] sm:$0xcc] %v4539_v59  ;;  %v3586_v63 = vsel %vm316_vm2, %v3583_v61, 0.0  ;;  %v3564_v10 = vcombine.low %v3556_v62, %v3563_v13  ;;  %v4546_v15 = vld [vmem:[#allocation2 + $0x8] sm:$0xf] }
 0x339   : > { %v3577_v41 = vadd.f32 %v3576_v0, %v3575_v18  ;;  %v3587_v7 = vadd.f32 %v3586_v63, %v3585_v58  ;;  %v4552_v31 = vpack.c.bf16 %v4546_v15, %v4546_v15  ;;  %v4576_v17 = vmul.f32 %v4546_v15, %v8440_v47 }
 0x33a   : > { %7104 = vst [vmem:[%s8473_s26 + $0x6] sm:$0x3f] %v3564_v10 }
 0x33b   : > { %3578 = vadd.xlane.f32.xlu1 %v3577_v41  ;;  %v3589_v14 = vadd.f32 %v3588_v16, %v3587_v7  ;;  %v4570_v25 = vrot.slane %v4552_v31, %v8453_v8  ;;  %v4588_v26 = vmul.f32 %v4576_v17, %v4546_v15  ;;  %v4583_v2 = vsel %vm316_vm2, %v4576_v17, 0.0 }
 0x33d   : > { %3590 = vadd.xlane.f32.xlu0 %v3589_v14  ;;  %v4595_v38 = vsel %vm316_vm2, %v4588_v26, 0.0 }
 0x33f   : > { %v4545_v20 = vld [vmem:[#allocation2] sm:$0xff] }
 0x340   : > { %v4575_v19 = vmul.f32 %v4545_v20, %v8444_v55  ;;  %v4548_v21 = vcombine.high %v4545_v20, %v4545_v20 }
 0x342   : > { %v4578_v42 = vcombine.high %v4575_v19, %v4575_v19  ;;  %v7152_v22 = vpack.c.bf16 %v4548_v21, %v4545_v20  ;;  %v4587_v24 = vmul.f32 %v4575_v19, %v4545_v20  ;;  %v4580_v27 = vsel %vm316_vm2, %v4575_v19, 0.0 }
 0x344   : > { %v4581_v6 = vsel %vm316_vm2, %v4578_v42, 0.0  ;;  %v4563_v28 = vrot.slane %v7152_v22, %v8453_v8  ;;  %v4590_v12 = vcombine.high %v4587_v24, %v4587_v24  ;;  %v4592_v36 = vsel %vm316_vm2, %v4587_v24, 0.0 }
 0x345   : > { %v4582_v29 = vadd.f32 %v4581_v6, %v4580_v27 }
 0x346   : > { %v4571_v11 = vcombine.low %v4563_v28, %v4570_v25  ;;  %v4593_v30 = vsel %vm316_vm2, %v4590_v12, 0.0 }
 0x347   : > { %v4584_v33 = vadd.f32 %v4583_v2, %v4582_v29  ;;  %v4594_v34 = vadd.f32 %v4593_v30, %v4592_v36 }
 0x348   : > { %7153 = vst [vmem:[%s8473_s26 + $0xc] sm:$0x3f] %v4571_v11 }
 0x349   : > { %4585 = vadd.xlane.f32.xlu0 %v4584_v33  ;;  %v4596_v44 = vadd.f32 %v4595_v38, %v4594_v34 }
 0x34b   : > { %4597 = vadd.xlane.f32.xlu1 %v4596_v44 }
 0x38c   : > { %v5693_v49 = vpop.f32.mrf.mxu1 }
 0x38d   : > { %v5694_v46 = vadd.f32 %v5693_v49, %v5548_v50 }
 0x38e   : > { %v7370_v23 = vpop.f32.mrf.mxu1 }
 0x38f   : > { %5704 = vst [vmem:[#allocation2 + $0x8] sm:$0x3] %v5694_v46 }
 0x390   : > { %v5652_v48 = vpop.f32.mrf.mxu0  ;;  %v5696_v51 = vpop.f32.mrf.mxu1 }
 0x391   : > { %v5653_v9 = vadd.f32 %v5652_v48, %v5548_v50 }
 0x392   : > { %v5654_v45 = vpop.f32.mrf.mxu0  ;;  %v7371_v52 = vpop.f32.mrf.mxu1 }
 0x393   : > { %v5655_v43 = vadd.f32 %v5654_v45, %v5548_v50 }
 0x394   : > { %v5656_v40 = vpop.f32.mrf.mxu0 }
 0x395   : > { %v5701_v3 = vcombine.low %v5653_v9, %v5655_v43 }
 0x396   : > { %v5657_v54 = vpop.f32.mrf.mxu0 }
 0x397   : > { %5703 = vst [vmem:[#allocation2] sm:$0x33] %v5701_v3 }
 0x3c4   : > { %v3579_v57 = vpop.xlane.xlu1 %3578 }
 0x3c6   : > { %v3591_v1 = vpop.xlane.xlu0 %3590 }
 0x3c7   : > { %v3592_v39 = vsel %vm1306_vm6, %v3579_v57, %v3591_v1 }
 0x3d2   : > { %v4586_v37 = vpop.xlane.xlu0 %4585 }
 0x3d4   : > { %v4598_v56 = vpop.xlane.xlu1 %4597 }
 0x3d5   : > { %v4599_v59 = vsel %vm1306_vm6, %v4586_v37, %v4598_v56 }
 0x3d6   : > { %v4600_v32 = vadd.f32 %v4599_v59, %v1307_v35 }
 0x3d8   : > { %v6870_v60 = vsel %vm6869_vm8, %v4600_v32, 0.0 }
 0x3d9   : > { %6872 = vst [vmem:[%s9052_s11] sm:$0xf] %v6870_v60 }
 0x3ec   : > { %v6797_v61 = vpop.f32.mrf.mxu1 }
 0x3ed   : > { %v6798_v18 = vadd.f32 %v6797_v61, %v6652_v53 }
 0x3ee   : > { %v6756_v62 = vpop.f32.mrf.mxu0  ;;  %v7382_v13 = vpop.f32.mrf.mxu1 }
 0x3ef   : > { %v6808_v0 = vrot.slane %v6798_v18, 6  ;;  %v6757_v5 = vadd.f32 %v6756_v62, %v6652_v53 }
 0x3f0   : > { %v6758_v58 = vpop.f32.mrf.mxu0  ;;  %v6800_v4 = vpop.f32.mrf.mxu1 }
 0x3f1   : > { %6812 = vst [vmem:[#allocation2 + $0x8] sm:$0xc] %v6808_v0  ;;  %v6759_v63 = vadd.f32 %v6758_v58, %v6652_v53 }
 0x3f2   : > { %v6760_v41 = vpop.f32.mrf.mxu0  ;;  %v7383_v7 = vpop.f32.mrf.mxu1 }
 0x3f3   : > { %v6806_v10 = vcombine.low %v6757_v5, %v6759_v63 }
 0x3f4   : > { %v6761_v16 = vpop.f32.mrf.mxu0 }
 0x3f5   : > { %v6807_v14 = vrot.slane %v6806_v10, 6 }
 0x3f7   : > { %6811 = vst [vmem:[#allocation2] sm:$0xcc] %v6807_v14 }
 0x3f8   : > { %v6814_v15 = vld [vmem:[#allocation2 + $0x8] sm:$0xf] }
 0x3f9   : > { %v6820_v31 = vpack.c.bf16 %v6814_v15, %v6814_v15  ;;  %v6844_v17 = vmul.f32 %v6814_v15, %v8440_v47 }
 0x3fb   : > { %v6838_v25 = vrot.slane %v6820_v31, %v8453_v8  ;;  %v6856_v26 = vmul.f32 %v6844_v17, %v6814_v15  ;;  %v6851_v47 = vsel %vm316_vm2, %v6844_v17, 0.0 }
 0x3fd   : > { %v6863_v33 = vsel %vm316_vm2, %v6856_v26, 0.0 }
 0x3fe   : > { %v6813_v20 = vld [vmem:[#allocation2] sm:$0xff] }
 0x3ff   : > { %v6843_v19 = vmul.f32 %v6813_v20, %v8444_v55  ;;  %v6816_v21 = vcombine.high %v6813_v20, %v6813_v20 }
 0x401   : > { %v6846_v42 = vcombine.high %v6843_v19, %v6843_v19  ;;  %v7267_v22 = vpack.c.bf16 %v6816_v21, %v6813_v20  ;;  %v6855_v24 = vmul.f32 %v6843_v19, %v6813_v20  ;;  %v6848_v27 = vsel %vm316_vm2, %v6843_v19, 0.0 }
 0x403   : > { %v6849_v6 = vsel %vm316_vm2, %v6846_v42, 0.0  ;;  %v6831_v28 = vrot.slane %v7267_v22, %v8453_v8  ;;  %v6858_v12 = vcombine.high %v6855_v24, %v6855_v24  ;;  %v6860_v2 = vsel %vm316_vm2, %v6855_v24, 0.0 }
 0x404   : > { %v6850_v29 = vadd.f32 %v6849_v6, %v6848_v27 }
 0x405   : > { %v6839_v55 = vcombine.low %v6831_v28, %v6838_v25  ;;  %v6861_v11 = vsel %vm316_vm2, %v6858_v12, 0.0 }
 0x406   : > { %v6852_v36 = vadd.f32 %v6851_v47, %v6850_v29  ;;  %v6862_v30 = vadd.f32 %v6861_v11, %v6860_v2 }
 0x407   : > { %7268 = vst [vmem:[%s8473_s26 + $0x12] sm:$0x3f] %v6839_v55 }
 0x408   : > { %6853 = vadd.xlane.f32.xlu0 %v6852_v36  ;;  %v6864_v34 = vadd.f32 %v6863_v33, %v6862_v30 }
 0x40a   : > { %6865 = vadd.xlane.f32.xlu1 %v6864_v34 }
 0x491   : > { %v6854_v38 = vpop.xlane.xlu0 %6853 }
 0x493   : > { %v6866_v8 = vpop.xlane.xlu1 %6865 }
 0x494   : > { %v6867_v44 = vsel %vm1306_vm6, %v6854_v38, %v6866_v8 }
 0x495   : > { %v6868_v50 = vadd.f32 %v6867_v44, %v3592_v39 }
 0x497   : > { %v6871_v49 = vsel %vm6869_vm8, %v6868_v50, 0.0 }
 0x498   : > { %6873 = vst [vmem:[%s9052_s11 + $0x4] sm:$0xf] %v6871_v49 }
 0x499 PF: > { %s17_s21 = sadd.s32 1, %s7554_s21  }
 0x49a   : > { %p14_p5 = scmp.ge.s32.totalorder %s17_s21, 4  }
 0x49c   :  { %16 = sbr.rel (!%p14_p5) target bundleno = 1 (0x1), region = 91 }

</bundles_post_ra>
